<compile_context>
chip_gen: v5e
topology: v5e:2x2
jax: 0.10.0
libtpu: 0.0.40
codegen_flags: <defaults>
</compile_context>

<pallas_src>
import functools
import math

import jax
import jax.numpy as jnp
from jax.experimental import pallas as pl
from jax.experimental.pallas import tpu as pltpu


# ----------------------------------------------------------------------------
# Fixed small graph (stands in for get_graph_info / get_skip_graph output)
# ----------------------------------------------------------------------------
GRAPH_NODES = [
    dict(id=0, inputs=[], type=0),        # input node  (stride 2, Cin -> Cout)
    dict(id=1, inputs=[0], type=1),
    dict(id=2, inputs=[0, 1], type=1),
    dict(id=3, inputs=[1, 2], type=1),    # output node
]
INPUT_NODES = [0]
OUTPUT_NODES = [3]
NO_SKIP = False
SKIP_GRAPH = {1: [], 2: [], 3: [0]}       # skip edges get the temporal zero-shift

LANE = 128


def _vmem_budget_bytes():
    # Per-generation VMEM-aware block budget (v7x: 64 MiB physical vs 128 MiB
    # on v5e/v6e).  Generous headroom for double buffering + spills.
    try:
        cap = int(pltpu.get_tpu_info().vmem_capacity_bytes)
    except Exception:
        cap = 64 << 20
    return max(4 << 20, cap // 16)


def _pick_row_block(rows, t, n_in):
    """Row-block (multiple of 8, divides rows) for the (T, rows, 128) LIF grid."""
    if rows <= 8 or rows % 8:
        return rows
    per_row = t * LANE * 2 * (n_in + 1) * 2     # bf16 in+out blocks, double-buffered
    rb = min(rows, max(8, (_vmem_budget_bytes() // per_row) // 8 * 8))
    while rows % rb:
        rb -= 8
    if rows // rb < 2:                          # >=2 blocks so both v7x TCs get work
        r2 = rb - 8
        while r2 >= 8 and rows % r2:
            r2 -= 8
        if r2 >= 8:
            rb = r2
    return rb


def _pick_image_block(n_imgs, per_img_bytes, budget):
    nb = max(1, min(n_imgs, budget // max(per_img_bytes, 1)))
    while n_imgs % nb:
        nb -= 1
    if nb == n_imgs and n_imgs > 1:             # keep >=2 grid blocks (v7x megacore)
        nb2 = n_imgs // 2
        while n_imgs % nb2:
            nb2 -= 1
        nb = nb2
    return max(1, nb)


# ----------------------------------------------------------------------------
# Kernel 1: multi-step LIF with fused input-sum and fused temporal skip-shift
# ----------------------------------------------------------------------------
def _lif_kernel(*refs, tau, v_th, shifted):
    # refs = (in_0, ..., in_{k-1}, out); every block is (T, rb, 128)
    n_in = len(shifted)
    in_refs, o_ref = refs[:n_in], refs[n_in]
    T = o_ref.shape[0]
    decay = 1.0 - 1.0 / tau
    v = jnp.zeros(o_ref.shape[1:], jnp.float32)     # membrane kept in f32 (v5e VPU)
    # TODO(synk): for large T switch to lax.fori_loop(..., unroll=True).
    for t in range(T):                               # static unroll over time
        x = jnp.zeros_like(v)
        for r, sh in zip(in_refs, shifted):
            if sh:                                   # skip edge: prepend-zero shift
                if t > 0:
                    x = x + r[t - 1].astype(jnp.float32)
            else:
                x = x + r[t].astype(jnp.float32)
        v = v * decay + x                            # decay_input=False, v_reset=0
        spike = (v >= v_th).astype(jnp.float32)      # ATan surrogate fwd = Heaviside
        o_ref[t] = spike.astype(o_ref.dtype)
        v = v * (1.0 - spike)                        # hard reset to 0


def lif_multistep_fused(inputs, shifted, tau=2.0, v_th=1.0):
    """(sum of inputs, skip edges read at t-1) -> LIF -> bf16 spikes (exact 0/1)."""
    shape = inputs[0].shape
    T = shape[0]
    n = math.prod(shape[1:])
    pad = (-n) % LANE
    rows = (n + pad) // LANE
    flat = []
    for a in inputs:
        f = a.reshape(T, n)
        if pad:                                      # fallback; not hit at these shapes
            f = jnp.pad(f, ((0, 0), (0, pad)))
        flat.append(f.reshape(T, rows, LANE))

    rb = _pick_row_block(rows, T, len(inputs))
    spec = pl.BlockSpec((T, rb, LANE), lambda i: (0, i, 0))
    out = pl.pallas_call(
        functools.partial(_lif_kernel, tau=tau, v_th=v_th, shifted=tuple(shifted)),
        out_shape=jax.ShapeDtypeStruct((T, rows, LANE), jnp.bfloat16),
        grid=(rows // rb,),
        in_specs=[spec] * len(inputs),
        out_specs=spec,
        compiler_params=pltpu.CompilerParams(
            dimension_semantics=("parallel",),
            vmem_limit_bytes=32 << 20),
    )(*flat)
    out = out.reshape(T, rows * LANE)
    if pad:
        out = out[:, :n]
    return out.reshape(shape)


# ----------------------------------------------------------------------------
# Kernel 2: fused depthwise3x3 + pointwise1x1 + BN, in-kernel taps (no im2col
#           in HBM), unpadded bf16 output.
# ----------------------------------------------------------------------------
def _dwsep_pointwise_body(tap_srcs, wd_ref, wps_ref, b_ref, o_ref, cin):
    # tap_srcs: 9 x (ref, row_off, col_off) contiguous windows of bf16 spikes.
    nb, ho, wo, _ = o_ref.shape
    acc = None
    for k, (ref, r0, c0) in enumerate(tap_srcs):
        tap = ref[:, r0:r0 + ho, c0:c0 + wo, :]          # bf16 window load (VMEM)
        term = tap * wd_ref[k:k + 1, :]                  # promotes to f32
        acc = term if acc is None else acc + term        # depthwise accumulate [.,.,.,C]
    # pointwise 1x1 (+BN scale folded into wps): y[..., co] = sum_c acc[..., c]*wps[c,co]
    lane_idx = jax.lax.broadcasted_iota(jnp.int32, acc.shape, dimension=3)
    y = jnp.zeros(o_ref.shape, jnp.float32) + b_ref[...]
    for c in range(cin):
        acc_c = jnp.sum(jnp.where(lane_idx == c, acc, 0.0), axis=-1, keepdims=True)
        y = y + acc_c * wps_ref[c:c + 1, :]
    o_ref[...] = y.astype(o_ref.dtype)


def _conv_kernel_s1(x_ref, wd_ref, wps_ref, b_ref, o_ref, *, cin):
    srcs = [(x_ref, di, dj) for di in range(3) for dj in range(3)]
    _dwsep_pointwise_body(srcs, wd_ref, wps_ref, b_ref, o_ref, cin)


def _conv_kernel_s2(p00_ref, p01_ref, p10_ref, p11_ref,
                    wd_ref, wps_ref, b_ref, o_ref, *, cin):
    phase = {(0, 0): p00_ref, (0, 1): p01_ref, (1, 0): p10_ref, (1, 1): p11_ref}
    srcs = [(phase[(di % 2, dj % 2)], di // 2, dj // 2)
            for di in range(3) for dj in range(3)]
    _dwsep_pointwise_body(srcs, wd_ref, wps_ref, b_ref, o_ref, cin)


def node_conv(spikes_img, params, stride):
    # spikes_img: [N, H, W, C] bf16 (0/1).  BN(pointwise(depthwise(x))) exactly.
    N, H, W, C = spikes_img.shape
    cout = params["wps"].shape[1]
    ho = (H - 1) // stride + 1
    wo = (W - 1) // stride + 1
    wd9, wps, beff = params["wd9"], params["wps"], params["beff"]

    per_img = ((H + 2) * (W + 2) * C * 2 + ho * wo * cout * 2) * 2 \
              + ho * wo * (2 * C + 2 * cout) * 4
    nb = _pick_image_block(N, per_img, _vmem_budget_bytes())

    xpad = jnp.pad(spikes_img, ((0, 0), (1, 1), (1, 1), (0, 0)))   # bf16, small

    def full_spec(a):
        nd = a.ndim
        return pl.BlockSpec(a.shape, lambda i, _nd=nd: (0,) * _nd)

    if stride == 1:
        kern = functools.partial(_conv_kernel_s1, cin=C)
        acts = (xpad,)
        act_specs = [pl.BlockSpec((nb, H + 2, W + 2, C), lambda i: (i, 0, 0, 0))]
    else:
        assert H % 2 == 0 and W % 2 == 0
        # space-to-depth phases: every stride-2 tap becomes a contiguous window.
        acts = tuple(xpad[:, a::2, b::2, :] for a in (0, 1) for b in (0, 1))
        kern = functools.partial(_conv_kernel_s2, cin=C)
        act_specs = [pl.BlockSpec((nb,) + p.shape[1:], lambda i: (i, 0, 0, 0))
                     for p in acts]

    out = pl.pallas_call(
        kern,
        out_shape=jax.ShapeDtypeStruct((N, ho, wo, cout), jnp.bfloat16),
        grid=(N // nb,),
        in_specs=act_specs + [full_spec(wd9), full_spec(wps), full_spec(beff)],
        out_specs=pl.BlockSpec((nb, ho, wo, cout), lambda i: (i, 0, 0, 0)),
        compiler_params=pltpu.CompilerParams(
            dimension_semantics=("parallel",),
            vmem_limit_bytes=32 << 20),
    )(*acts, wd9, wps, beff)
    return out


# ----------------------------------------------------------------------------
# SCN / Node_OP / StageBlock glue (channels-last, bf16 across the stage)
# ----------------------------------------------------------------------------
def node_forward(inputs, shifted, params, is_input_node, tau):
    # inputs: list of [T, B, h, w, c] tensors; shifted: per-input skip flags.
    T, B = inputs[0].shape[:2]
    spikes = lif_multistep_fused(inputs, shifted, tau=tau)      # sn + input sum + skip
    h, w, c = spikes.shape[2:]
    # dropout == Identity (every_node_dropout=False / eval mode)
    y = node_conv(spikes.reshape(T * B, h, w, c), params,
                  stride=2 if is_input_node else 1)
    ho, wo, cout = y.shape[1:]
    return y.reshape(T, B, ho, wo, cout)


def stage_block_forward(x, node_params, tau):
    # x: [T, B, C, H, W] f32  ->  [T, B, Cout, Ho, Wo] f32
    xcl = jnp.transpose(x, (0, 1, 3, 4, 2)).astype(jnp.bfloat16)   # one transpose in
    results = {}
    for nid in INPUT_NODES:
        results[nid] = node_forward([xcl], (False,), node_params[nid], True, tau)
    for nid, node in enumerate(GRAPH_NODES):
        if nid in INPUT_NODES:
            continue
        ins = [results[i] for i in node["inputs"]]
        flags = [False] * len(ins)
        if not NO_SKIP:
            for sid in SKIP_GRAPH[nid]:
                ins.append(results[sid])          # shift handled inside the LIF kernel
                flags.append(True)
        results[nid] = node_forward(ins, tuple(flags), node_params[nid], False, tau)
    result = results[OUTPUT_NODES[0]].astype(jnp.float32)
    for nid in OUTPUT_NODES[1:]:
        result = result + results[nid].astype(jnp.float32)
    result = result / float(len(OUTPUT_NODES))
    return jnp.transpose(result, (0, 1, 4, 2, 3))                  # one transpose out


# ----------------------------------------------------------------------------
# Deterministic parameter init (PyTorch-default-style uniform bounds), with the
# depthwise bias + pointwise bias + eval-BN folded into (wd9, wps, beff).
# ----------------------------------------------------------------------------
def init_node_params(key, is_input_node, inplanes, outplanes):
    cin = inplanes if is_input_node else outplanes
    cout = outplanes
    k = jax.random.split(key, 6)
    b_dw_bound = 1.0 / 3.0                     # fan_in = 1*3*3 per depthwise group
    w_dw = jax.random.uniform(k[0], (3, 3, cin), jnp.float32, -b_dw_bound, b_dw_bound)
    b_dw = jax.random.uniform(k[1], (cin,), jnp.float32, -b_dw_bound, b_dw_bound)
    b_pw_bound = 1.0 / (cin ** 0.5)
    w_pw = jax.random.uniform(k[2], (cin, cout), jnp.float32, -b_pw_bound, b_pw_bound)
    b_pw = jax.random.uniform(k[3], (cout,), jnp.float32, -b_pw_bound, b_pw_bound)
    gamma = jax.random.uniform(k[4], (cout,), jnp.float32, 0.5, 1.5)
    beta = jax.random.uniform(k[5], (cout,), jnp.float32, -0.1, 0.1)
    run_mean = jnp.zeros((cout,), jnp.float32)
    run_var = jnp.ones((cout,), jnp.float32)
    eps = 1e-5
    scale = gamma / jnp.sqrt(run_var + eps)
    shift = beta - run_mean * scale
    wd9 = w_dw.reshape(9, cin)                               # tap index = di*3 + dj
    wps = w_pw * scale[None, :]                              # BN scale folded
    beff = ((b_dw @ w_pw) + b_pw) * scale + shift            # all biases + BN shift
    return dict(wd9=wd9, wps=wps, beff=beff.reshape(1, cout))


# ----------------------------------------------------------------------------
if __name__ == "__main__":
    key = jax.random.PRNGKey(0)
    T, B, CIN, COUT, H, W = 4, 2, 4, 8, 16, 16
    TAU = 2.0

    kx, kp = jax.random.split(key)
    x = jax.random.normal(kx, (T, B, CIN, H, W), jnp.float32) * 1.5

    node_keys = jax.random.split(kp, len(GRAPH_NODES))
    node_params = [init_node_params(node_keys[i], i in INPUT_NODES, CIN, COUT)
                   for i in range(len(GRAPH_NODES))]

    fwd = jax.jit(lambda xx: stage_block_forward(xx, node_params, tau=TAU))
    out = jax.block_until_ready(fwd(x))

    assert out.shape == (T, B, COUT, H // 2, W // 2), out.shape
    assert bool(jnp.all(jnp.isfinite(out)))
    print("KERNEL_OK")
</pallas_src>

<mosaic_0001>
module attributes {stable_mosaic.version = 11 : i64} {
  func.func @_lif_kernel(%arg0: i32, %arg1: memref<4x8x128xbf16, #tpu.memory_space<vmem>>, %arg2: memref<4x8x128xbf16, #tpu.memory_space<vmem>>) attributes {dimension_semantics = [#tpu.dimension_semantics<parallel>], iteration_bounds = array<i64: 2>, scalar_prefetch = 0 : i64, scratch_operands = 0 : i64, tpu.core_type = #tpu.core_type<tc>, window_params = [{transform_indices = @transform_0, window_bounds = array<i64: 4, 8, 128>}, {transform_indices = @transform_1, window_bounds = array<i64: 4, 8, 128>}]} {
    %cst = arith.constant 0.000000e+00 : f32
    %0 = vector.broadcast %cst : f32 to vector<8x128xf32>
    %cst_0 = arith.constant 0.000000e+00 : f32
    %1 = vector.broadcast %cst_0 : f32 to vector<8x128xf32>
    %c0 = arith.constant 0 : index
    %c0_1 = arith.constant 0 : index
    %c0_2 = arith.constant 0 : index
    %2 = vector.load %arg1[%c0, %c0_1, %c0_2] : memref<4x8x128xbf16, #tpu.memory_space<vmem>>, vector<1x8x128xbf16>
    %3 = vector.shape_cast %2 : vector<1x8x128xbf16> to vector<8x128xbf16>
    %4 = arith.extf %3 : vector<8x128xbf16> to vector<8x128xf32>
    %5 = arith.addf %1, %4 : vector<8x128xf32>
    %cst_3 = arith.constant 5.000000e-01 : f32
    %6 = vector.broadcast %cst_3 : f32 to vector<8x128xf32>
    %7 = arith.mulf %0, %6 : vector<8x128xf32>
    %8 = arith.addf %7, %5 : vector<8x128xf32>
    %cst_4 = arith.constant 1.000000e+00 : f32
    %9 = vector.broadcast %cst_4 : f32 to vector<8x128xf32>
    %10 = arith.cmpf oge, %8, %9 : vector<8x128xf32>
    %11 = arith.extui %10 : vector<8x128xi1> to vector<8x128xi32>
    %12 = arith.sitofp %11 : vector<8x128xi32> to vector<8x128xf32>
    %13 = arith.truncf %12 : vector<8x128xf32> to vector<8x128xbf16>
    %c0_5 = arith.constant 0 : index
    %c0_6 = arith.constant 0 : index
    %c0_7 = arith.constant 0 : index
    %14 = vector.load %arg2[%c0_5, %c0_6, %c0_7] : memref<4x8x128xbf16, #tpu.memory_space<vmem>>, vector<1x8x128xbf16>
    %15 = vector.shape_cast %14 : vector<1x8x128xbf16> to vector<8x128xbf16>
    %16 = vector.shape_cast %13 : vector<8x128xbf16> to vector<1x8x128xbf16>
    tpu.vector_store %arg2[%c0_5, %c0_6, %c0_7], %16 {strides = array<i32>} : memref<4x8x128xbf16, #tpu.memory_space<vmem>>, vector<1x8x128xbf16>,
    %cst_8 = arith.constant 1.000000e+00 : f32
    %17 = vector.broadcast %cst_8 : f32 to vector<8x128xf32>
    %18 = arith.subf %17, %12 : vector<8x128xf32>
    %19 = arith.mulf %8, %18 : vector<8x128xf32>
    %cst_9 = arith.constant 0.000000e+00 : f32
    %20 = vector.broadcast %cst_9 : f32 to vector<8x128xf32>
    %c1 = arith.constant 1 : index
    %c0_10 = arith.constant 0 : index
    %c0_11 = arith.constant 0 : index
    %21 = vector.load %arg1[%c1, %c0_10, %c0_11] : memref<4x8x128xbf16, #tpu.memory_space<vmem>>, vector<1x8x128xbf16>
    %22 = vector.shape_cast %21 : vector<1x8x128xbf16> to vector<8x128xbf16>
    %23 = arith.extf %22 : vector<8x128xbf16> to vector<8x128xf32>
    %24 = arith.addf %20, %23 : vector<8x128xf32>
    %cst_12 = arith.constant 5.000000e-01 : f32
    %25 = vector.broadcast %cst_12 : f32 to vector<8x128xf32>
    %26 = arith.mulf %19, %25 : vector<8x128xf32>
    %27 = arith.addf %26, %24 : vector<8x128xf32>
    %cst_13 = arith.constant 1.000000e+00 : f32
    %28 = vector.broadcast %cst_13 : f32 to vector<8x128xf32>
    %29 = arith.cmpf oge, %27, %28 : vector<8x128xf32>
    %30 = arith.extui %29 : vector<8x128xi1> to vector<8x128xi32>
    %31 = arith.sitofp %30 : vector<8x128xi32> to vector<8x128xf32>
    %32 = arith.truncf %31 : vector<8x128xf32> to vector<8x128xbf16>
    %c1_14 = arith.constant 1 : index
    %c0_15 = arith.constant 0 : index
    %c0_16 = arith.constant 0 : index
    %33 = vector.load %arg2[%c1_14, %c0_15, %c0_16] : memref<4x8x128xbf16, #tpu.memory_space<vmem>>, vector<1x8x128xbf16>
    %34 = vector.shape_cast %33 : vector<1x8x128xbf16> to vector<8x128xbf16>
    %35 = vector.shape_cast %32 : vector<8x128xbf16> to vector<1x8x128xbf16>
    tpu.vector_store %arg2[%c1_14, %c0_15, %c0_16], %35 {strides = array<i32>} : memref<4x8x128xbf16, #tpu.memory_space<vmem>>, vector<1x8x128xbf16>,
    %cst_17 = arith.constant 1.000000e+00 : f32
    %36 = vector.broadcast %cst_17 : f32 to vector<8x128xf32>
    %37 = arith.subf %36, %31 : vector<8x128xf32>
    %38 = arith.mulf %27, %37 : vector<8x128xf32>
    %cst_18 = arith.constant 0.000000e+00 : f32
    %39 = vector.broadcast %cst_18 : f32 to vector<8x128xf32>
    %c2 = arith.constant 2 : index
    %c0_19 = arith.constant 0 : index
    %c0_20 = arith.constant 0 : index
    %40 = vector.load %arg1[%c2, %c0_19, %c0_20] : memref<4x8x128xbf16, #tpu.memory_space<vmem>>, vector<1x8x128xbf16>
    %41 = vector.shape_cast %40 : vector<1x8x128xbf16> to vector<8x128xbf16>
    %42 = arith.extf %41 : vector<8x128xbf16> to vector<8x128xf32>
    %43 = arith.addf %39, %42 : vector<8x128xf32>
    %cst_21 = arith.constant 5.000000e-01 : f32
    %44 = vector.broadcast %cst_21 : f32 to vector<8x128xf32>
    %45 = arith.mulf %38, %44 : vector<8x128xf32>
    %46 = arith.addf %45, %43 : vector<8x128xf32>
    %cst_22 = arith.constant 1.000000e+00 : f32
    %47 = vector.broadcast %cst_22 : f32 to vector<8x128xf32>
    %48 = arith.cmpf oge, %46, %47 : vector<8x128xf32>
    %49 = arith.extui %48 : vector<8x128xi1> to vector<8x128xi32>
    %50 = arith.sitofp %49 : vector<8x128xi32> to vector<8x128xf32>
    %51 = arith.truncf %50 : vector<8x128xf32> to vector<8x128xbf16>
    %c2_23 = arith.constant 2 : index
    %c0_24 = arith.constant 0 : index
    %c0_25 = arith.constant 0 : index
    %52 = vector.load %arg2[%c2_23, %c0_24, %c0_25] : memref<4x8x128xbf16, #tpu.memory_space<vmem>>, vector<1x8x128xbf16>
    %53 = vector.shape_cast %52 : vector<1x8x128xbf16> to vector<8x128xbf16>
    %54 = vector.shape_cast %51 : vector<8x128xbf16> to vector<1x8x128xbf16>
    tpu.vector_store %arg2[%c2_23, %c0_24, %c0_25], %54 {strides = array<i32>} : memref<4x8x128xbf16, #tpu.memory_space<vmem>>, vector<1x8x128xbf16>,
    %cst_26 = arith.constant 1.000000e+00 : f32
    %55 = vector.broadcast %cst_26 : f32 to vector<8x128xf32>
    %56 = arith.subf %55, %50 : vector<8x128xf32>
    %57 = arith.mulf %46, %56 : vector<8x128xf32>
    %cst_27 = arith.constant 0.000000e+00 : f32
    %58 = vector.broadcast %cst_27 : f32 to vector<8x128xf32>
    %c3 = arith.constant 3 : index
    %c0_28 = arith.constant 0 : index
    %c0_29 = arith.constant 0 : index
    %59 = vector.load %arg1[%c3, %c0_28, %c0_29] : memref<4x8x128xbf16, #tpu.memory_space<vmem>>, vector<1x8x128xbf16>
    %60 = vector.shape_cast %59 : vector<1x8x128xbf16> to vector<8x128xbf16>
    %61 = arith.extf %60 : vector<8x128xbf16> to vector<8x128xf32>
    %62 = arith.addf %58, %61 : vector<8x128xf32>
    %cst_30 = arith.constant 5.000000e-01 : f32
    %63 = vector.broadcast %cst_30 : f32 to vector<8x128xf32>
    %64 = arith.mulf %57, %63 : vector<8x128xf32>
    %65 = arith.addf %64, %62 : vector<8x128xf32>
    %cst_31 = arith.constant 1.000000e+00 : f32
    %66 = vector.broadcast %cst_31 : f32 to vector<8x128xf32>
    %67 = arith.cmpf oge, %65, %66 : vector<8x128xf32>
    %68 = arith.extui %67 : vector<8x128xi1> to vector<8x128xi32>
    %69 = arith.sitofp %68 : vector<8x128xi32> to vector<8x128xf32>
    %70 = arith.truncf %69 : vector<8x128xf32> to vector<8x128xbf16>
    %c3_32 = arith.constant 3 : index
    %c0_33 = arith.constant 0 : index
    %c0_34 = arith.constant 0 : index
    %71 = vector.load %arg2[%c3_32, %c0_33, %c0_34] : memref<4x8x128xbf16, #tpu.memory_space<vmem>>, vector<1x8x128xbf16>
    %72 = vector.shape_cast %71 : vector<1x8x128xbf16> to vector<8x128xbf16>
    %73 = vector.shape_cast %70 : vector<8x128xbf16> to vector<1x8x128xbf16>
    tpu.vector_store %arg2[%c3_32, %c0_33, %c0_34], %73 {strides = array<i32>} : memref<4x8x128xbf16, #tpu.memory_space<vmem>>, vector<1x8x128xbf16>,
    return
  }
  func.func @transform_0(%arg0: i32) -> (i32, i32, i32) {
    %c0_i32 = arith.constant 0 : i32
    %c0_i32_0 = arith.constant 0 : i32
    %c0_i32_1 = arith.constant 0 : i32
    return %c0_i32, %arg0, %c0_i32_0 : i32, i32, i32
  }
  func.func @transform_1(%arg0: i32) -> (i32, i32, i32) {
    %c0_i32 = arith.constant 0 : i32
    %c0_i32_0 = arith.constant 0 : i32
    %c0_i32_1 = arith.constant 0 : i32
    return %c0_i32, %arg0, %c0_i32_0 : i32, i32, i32
  }
}

module attributes {stable_mosaic.version = 11 : i64} {
  func.func @_conv_kernel_s2(%arg0: i32, %arg1: memref<4x9x9x4xbf16, #tpu.memory_space<vmem>>, %arg2: memref<4x9x9x4xbf16, #tpu.memory_space<vmem>>, %arg3: memref<4x9x9x4xbf16, #tpu.memory_space<vmem>>, %arg4: memref<4x9x9x4xbf16, #tpu.memory_space<vmem>>, %arg5: memref<9x4xf32, #tpu.memory_space<vmem>>, %arg6: memref<4x8xf32, #tpu.memory_space<vmem>>, %arg7: memref<1x8xf32, #tpu.memory_space<vmem>>, %arg8: memref<4x8x8x8xbf16, #tpu.memory_space<vmem>>) attributes {dimension_semantics = [#tpu.dimension_semantics<parallel>], iteration_bounds = array<i64: 2>, scalar_prefetch = 0 : i64, scratch_operands = 0 : i64, tpu.core_type = #tpu.core_type<tc>, window_params = [{transform_indices = @transform_0, window_bounds = array<i64: 4, 9, 9, 4>}, {transform_indices = @transform_1, window_bounds = array<i64: 4, 9, 9, 4>}, {transform_indices = @transform_2, window_bounds = array<i64: 4, 9, 9, 4>}, {transform_indices = @transform_3, window_bounds = array<i64: 4, 9, 9, 4>}, {pipeline_mode = #tpu.pipeline_mode<synchronous>, transform_indices = @transform_4, window_bounds = array<i64: 9, 4>}, {pipeline_mode = #tpu.pipeline_mode<synchronous>, transform_indices = @transform_5, window_bounds = array<i64: 4, 8>}, {pipeline_mode = #tpu.pipeline_mode<synchronous>, transform_indices = @transform_6, window_bounds = array<i64: 1, 8>}, {transform_indices = @transform_7, window_bounds = array<i64: 4, 8, 8, 8>}]} {
    %c0 = arith.constant 0 : index
    %c0_0 = arith.constant 0 : index
    %c0_1 = arith.constant 0 : index
    %c0_2 = arith.constant 0 : index
    %0 = vector.load %arg1[%c0, %c0_0, %c0_1, %c0_2] : memref<4x9x9x4xbf16, #tpu.memory_space<vmem>>, vector<4x8x8x4xbf16>
    %c0_3 = arith.constant 0 : index
    %c0_4 = arith.constant 0 : index
    %1 = vector.load %arg5[%c0_3, %c0_4] : memref<9x4xf32, #tpu.memory_space<vmem>>, vector<1x4xf32>
    %2 = arith.extf %0 : vector<4x8x8x4xbf16> to vector<4x8x8x4xf32>
    %3 = vector.shape_cast %1 : vector<1x4xf32> to vector<1x1x1x4xf32>
    %4 = vector.broadcast %3 : vector<1x1x1x4xf32> to vector<4x8x8x4xf32>
    %5 = arith.mulf %2, %4 : vector<4x8x8x4xf32>
    %c0_5 = arith.constant 0 : index
    %c0_6 = arith.constant 0 : index
    %c0_7 = arith.constant 0 : index
    %c0_8 = arith.constant 0 : index
    %6 = vector.load %arg2[%c0_5, %c0_6, %c0_7, %c0_8] : memref<4x9x9x4xbf16, #tpu.memory_space<vmem>>, vector<4x8x8x4xbf16>
    %c1 = arith.constant 1 : index
    %c0_9 = arith.constant 0 : index
    %7 = vector.load %arg5[%c1, %c0_9] : memref<9x4xf32, #tpu.memory_space<vmem>>, vector<1x4xf32>
    %8 = arith.extf %6 : vector<4x8x8x4xbf16> to vector<4x8x8x4xf32>
    %9 = vector.shape_cast %7 : vector<1x4xf32> to vector<1x1x1x4xf32>
    %10 = vector.broadcast %9 : vector<1x1x1x4xf32> to vector<4x8x8x4xf32>
    %11 = arith.mulf %8, %10 : vector<4x8x8x4xf32>
    %12 = arith.addf %5, %11 : vector<4x8x8x4xf32>
    %c0_10 = arith.constant 0 : index
    %c0_11 = arith.constant 0 : index
    %c1_12 = arith.constant 1 : index
    %c0_13 = arith.constant 0 : index
    %13 = vector.load %arg1[%c0_10, %c0_11, %c1_12, %c0_13] : memref<4x9x9x4xbf16, #tpu.memory_space<vmem>>, vector<4x8x8x4xbf16>
    %c2 = arith.constant 2 : index
    %c0_14 = arith.constant 0 : index
    %14 = vector.load %arg5[%c2, %c0_14] : memref<9x4xf32, #tpu.memory_space<vmem>>, vector<1x4xf32>
    %15 = arith.extf %13 : vector<4x8x8x4xbf16> to vector<4x8x8x4xf32>
    %16 = vector.shape_cast %14 : vector<1x4xf32> to vector<1x1x1x4xf32>
    %17 = vector.broadcast %16 : vector<1x1x1x4xf32> to vector<4x8x8x4xf32>
    %18 = arith.mulf %15, %17 : vector<4x8x8x4xf32>
    %19 = arith.addf %12, %18 : vector<4x8x8x4xf32>
    %c0_15 = arith.constant 0 : index
    %c0_16 = arith.constant 0 : index
    %c0_17 = arith.constant 0 : index
    %c0_18 = arith.constant 0 : index
    %20 = vector.load %arg3[%c0_15, %c0_16, %c0_17, %c0_18] : memref<4x9x9x4xbf16, #tpu.memory_space<vmem>>, vector<4x8x8x4xbf16>
    %c3 = arith.constant 3 : index
    %c0_19 = arith.constant 0 : index
    %21 = vector.load %arg5[%c3, %c0_19] : memref<9x4xf32, #tpu.memory_space<vmem>>, vector<1x4xf32>
    %22 = arith.extf %20 : vector<4x8x8x4xbf16> to vector<4x8x8x4xf32>
    %23 = vector.shape_cast %21 : vector<1x4xf32> to vector<1x1x1x4xf32>
    %24 = vector.broadcast %23 : vector<1x1x1x4xf32> to vector<4x8x8x4xf32>
    %25 = arith.mulf %22, %24 : vector<4x8x8x4xf32>
    %26 = arith.addf %19, %25 : vector<4x8x8x4xf32>
    %c0_20 = arith.constant 0 : index
    %c0_21 = arith.constant 0 : index
    %c0_22 = arith.constant 0 : index
    %c0_23 = arith.constant 0 : index
    %27 = vector.load %arg4[%c0_20, %c0_21, %c0_22, %c0_23] : memref<4x9x9x4xbf16, #tpu.memory_space<vmem>>, vector<4x8x8x4xbf16>
    %c4 = arith.constant 4 : index
    %c0_24 = arith.constant 0 : index
    %28 = vector.load %arg5[%c4, %c0_24] : memref<9x4xf32, #tpu.memory_space<vmem>>, vector<1x4xf32>
    %29 = arith.extf %27 : vector<4x8x8x4xbf16> to vector<4x8x8x4xf32>
    %30 = vector.shape_cast %28 : vector<1x4xf32> to vector<1x1x1x4xf32>
    %31 = vector.broadcast %30 : vector<1x1x1x4xf32> to vector<4x8x8x4xf32>
    %32 = arith.mulf %29, %31 : vector<4x8x8x4xf32>
    %33 = arith.addf %26, %32 : vector<4x8x8x4xf32>
    %c0_25 = arith.constant 0 : index
    %c0_26 = arith.constant 0 : index
    %c1_27 = arith.constant 1 : index
    %c0_28 = arith.constant 0 : index
    %34 = vector.load %arg3[%c0_25, %c0_26, %c1_27, %c0_28] : memref<4x9x9x4xbf16, #tpu.memory_space<vmem>>, vector<4x8x8x4xbf16>
    %c5 = arith.constant 5 : index
    %c0_29 = arith.constant 0 : index
    %35 = vector.load %arg5[%c5, %c0_29] : memref<9x4xf32, #tpu.memory_space<vmem>>, vector<1x4xf32>
    %36 = arith.extf %34 : vector<4x8x8x4xbf16> to vector<4x8x8x4xf32>
    %37 = vector.shape_cast %35 : vector<1x4xf32> to vector<1x1x1x4xf32>
    %38 = vector.broadcast %37 : vector<1x1x1x4xf32> to vector<4x8x8x4xf32>
    %39 = arith.mulf %36, %38 : vector<4x8x8x4xf32>
    %40 = arith.addf %33, %39 : vector<4x8x8x4xf32>
    %c0_30 = arith.constant 0 : index
    %c1_31 = arith.constant 1 : index
    %c0_32 = arith.constant 0 : index
    %c0_33 = arith.constant 0 : index
    %41 = vector.load %arg1[%c0_30, %c1_31, %c0_32, %c0_33] : memref<4x9x9x4xbf16, #tpu.memory_space<vmem>>, vector<4x8x8x4xbf16>
    %c6 = arith.constant 6 : index
    %c0_34 = arith.constant 0 : index
    %42 = vector.load %arg5[%c6, %c0_34] : memref<9x4xf32, #tpu.memory_space<vmem>>, vector<1x4xf32>
    %43 = arith.extf %41 : vector<4x8x8x4xbf16> to vector<4x8x8x4xf32>
    %44 = vector.shape_cast %42 : vector<1x4xf32> to vector<1x1x1x4xf32>
    %45 = vector.broadcast %44 : vector<1x1x1x4xf32> to vector<4x8x8x4xf32>
    %46 = arith.mulf %43, %45 : vector<4x8x8x4xf32>
    %47 = arith.addf %40, %46 : vector<4x8x8x4xf32>
    %c0_35 = arith.constant 0 : index
    %c1_36 = arith.constant 1 : index
    %c0_37 = arith.constant 0 : index
    %c0_38 = arith.constant 0 : index
    %48 = vector.load %arg2[%c0_35, %c1_36, %c0_37, %c0_38] : memref<4x9x9x4xbf16, #tpu.memory_space<vmem>>, vector<4x8x8x4xbf16>
    %c7 = arith.constant 7 : index
    %c0_39 = arith.constant 0 : index
    %49 = vector.load %arg5[%c7, %c0_39] : memref<9x4xf32, #tpu.memory_space<vmem>>, vector<1x4xf32>
    %50 = arith.extf %48 : vector<4x8x8x4xbf16> to vector<4x8x8x4xf32>
    %51 = vector.shape_cast %49 : vector<1x4xf32> to vector<1x1x1x4xf32>
    %52 = vector.broadcast %51 : vector<1x1x1x4xf32> to vector<4x8x8x4xf32>
    %53 = arith.mulf %50, %52 : vector<4x8x8x4xf32>
    %54 = arith.addf %47, %53 : vector<4x8x8x4xf32>
    %c0_40 = arith.constant 0 : index
    %c1_41 = arith.constant 1 : index
    %c1_42 = arith.constant 1 : index
    %c0_43 = arith.constant 0 : index
    %55 = vector.load %arg1[%c0_40, %c1_41, %c1_42, %c0_43] : memref<4x9x9x4xbf16, #tpu.memory_space<vmem>>, vector<4x8x8x4xbf16>
    %c8 = arith.constant 8 : index
    %c0_44 = arith.constant 0 : index
    %56 = vector.load %arg5[%c8, %c0_44] : memref<9x4xf32, #tpu.memory_space<vmem>>, vector<1x4xf32>
    %57 = arith.extf %55 : vector<4x8x8x4xbf16> to vector<4x8x8x4xf32>
    %58 = vector.shape_cast %56 : vector<1x4xf32> to vector<1x1x1x4xf32>
    %59 = vector.broadcast %58 : vector<1x1x1x4xf32> to vector<4x8x8x4xf32>
    %60 = arith.mulf %57, %59 : vector<4x8x8x4xf32>
    %61 = arith.addf %54, %60 : vector<4x8x8x4xf32>
    %62 = tpu.iota {dimensions = array<i32: 3>} : vector<4x8x8x4xi32>
    %cst = arith.constant 0.000000e+00 : f32
    %63 = vector.broadcast %cst : f32 to vector<4x8x8x8xf32>
    %c0_45 = arith.constant 0 : index
    %c0_46 = arith.constant 0 : index
    %64 = vector.load %arg7[%c0_45, %c0_46] : memref<1x8xf32, #tpu.memory_space<vmem>>, vector<1x8xf32>
    %65 = vector.shape_cast %64 : vector<1x8xf32> to vector<1x1x1x8xf32>
    %66 = vector.broadcast %65 : vector<1x1x1x8xf32> to vector<4x8x8x8xf32>
    %67 = arith.addf %63, %66 : vector<4x8x8x8xf32>
    %c0_i32 = arith.constant 0 : i32
    %68 = vector.broadcast %c0_i32 : i32 to vector<4x8x8x4xi32>
    %69 = arith.cmpi eq, %62, %68 : vector<4x8x8x4xi32>
    %cst_47 = arith.constant 0.000000e+00 : f32
    %70 = vector.broadcast %cst_47 : f32 to vector<4x8x8x4xf32>
    %71 = arith.select %69, %61, %70 : vector<4x8x8x4xi1>, vector<4x8x8x4xf32>
    %cst_48 = arith.constant dense<0.000000e+00> : vector<4x8x8xf32>
    %72 = vector.multi_reduction <add>, %71, %cst_48 [3] : vector<4x8x8x4xf32> to vector<4x8x8xf32>
    %73 = vector.shape_cast %72 : vector<4x8x8xf32> to vector<4x8x8x1xf32>
    %c0_49 = arith.constant 0 : index
    %c0_50 = arith.constant 0 : index
    %74 = vector.load %arg6[%c0_49, %c0_50] : memref<4x8xf32, #tpu.memory_space<vmem>>, vector<1x8xf32>
    %75 = vector.shape_cast %74 : vector<1x8xf32> to vector<1x1x1x8xf32>
    %76 = vector.broadcast %73 : vector<4x8x8x1xf32> to vector<4x8x8x8xf32>
    %77 = vector.broadcast %75 : vector<1x1x1x8xf32> to vector<4x8x8x8xf32>
    %78 = arith.mulf %76, %77 : vector<4x8x8x8xf32>
    %79 = arith.addf %67, %78 : vector<4x8x8x8xf32>
    %c1_i32 = arith.constant 1 : i32
    %80 = vector.broadcast %c1_i32 : i32 to vector<4x8x8x4xi32>
    %81 = arith.cmpi eq, %62, %80 : vector<4x8x8x4xi32>
    %cst_51 = arith.constant 0.000000e+00 : f32
    %82 = vector.broadcast %cst_51 : f32 to vector<4x8x8x4xf32>
    %83 = arith.select %81, %61, %82 : vector<4x8x8x4xi1>, vector<4x8x8x4xf32>
    %cst_52 = arith.constant dense<0.000000e+00> : vector<4x8x8xf32>
    %84 = vector.multi_reduction <add>, %83, %cst_52 [3] : vector<4x8x8x4xf32> to vector<4x8x8xf32>
    %85 = vector.shape_cast %84 : vector<4x8x8xf32> to vector<4x8x8x1xf32>
    %c1_53 = arith.constant 1 : index
    %c0_54 = arith.constant 0 : index
    %86 = vector.load %arg6[%c1_53, %c0_54] : memref<4x8xf32, #tpu.memory_space<vmem>>, vector<1x8xf32>
    %87 = vector.shape_cast %86 : vector<1x8xf32> to vector<1x1x1x8xf32>
    %88 = vector.broadcast %85 : vector<4x8x8x1xf32> to vector<4x8x8x8xf32>
    %89 = vector.broadcast %87 : vector<1x1x1x8xf32> to vector<4x8x8x8xf32>
    %90 = arith.mulf %88, %89 : vector<4x8x8x8xf32>
    %91 = arith.addf %79, %90 : vector<4x8x8x8xf32>
    %c2_i32 = arith.constant 2 : i32
    %92 = vector.broadcast %c2_i32 : i32 to vector<4x8x8x4xi32>
    %93 = arith.cmpi eq, %62, %92 : vector<4x8x8x4xi32>
    %cst_55 = arith.constant 0.000000e+00 : f32
    %94 = vector.broadcast %cst_55 : f32 to vector<4x8x8x4xf32>
    %95 = arith.select %93, %61, %94 : vector<4x8x8x4xi1>, vector<4x8x8x4xf32>
    %cst_56 = arith.constant dense<0.000000e+00> : vector<4x8x8xf32>
    %96 = vector.multi_reduction <add>, %95, %cst_56 [3] : vector<4x8x8x4xf32> to vector<4x8x8xf32>
    %97 = vector.shape_cast %96 : vector<4x8x8xf32> to vector<4x8x8x1xf32>
    %c2_57 = arith.constant 2 : index
    %c0_58 = arith.constant 0 : index
    %98 = vector.load %arg6[%c2_57, %c0_58] : memref<4x8xf32, #tpu.memory_space<vmem>>, vector<1x8xf32>
    %99 = vector.shape_cast %98 : vector<1x8xf32> to vector<1x1x1x8xf32>
    %100 = vector.broadcast %97 : vector<4x8x8x1xf32> to vector<4x8x8x8xf32>
    %101 = vector.broadcast %99 : vector<1x1x1x8xf32> to vector<4x8x8x8xf32>
    %102 = arith.mulf %100, %101 : vector<4x8x8x8xf32>
    %103 = arith.addf %91, %102 : vector<4x8x8x8xf32>
    %c3_i32 = arith.constant 3 : i32
    %104 = vector.broadcast %c3_i32 : i32 to vector<4x8x8x4xi32>
    %105 = arith.cmpi eq, %62, %104 : vector<4x8x8x4xi32>
    %cst_59 = arith.constant 0.000000e+00 : f32
    %106 = vector.broadcast %cst_59 : f32 to vector<4x8x8x4xf32>
    %107 = arith.select %105, %61, %106 : vector<4x8x8x4xi1>, vector<4x8x8x4xf32>
    %cst_60 = arith.constant dense<0.000000e+00> : vector<4x8x8xf32>
    %108 = vector.multi_reduction <add>, %107, %cst_60 [3] : vector<4x8x8x4xf32> to vector<4x8x8xf32>
    %109 = vector.shape_cast %108 : vector<4x8x8xf32> to vector<4x8x8x1xf32>
    %c3_61 = arith.constant 3 : index
    %c0_62 = arith.constant 0 : index
    %110 = vector.load %arg6[%c3_61, %c0_62] : memref<4x8xf32, #tpu.memory_space<vmem>>, vector<1x8xf32>
    %111 = vector.shape_cast %110 : vector<1x8xf32> to vector<1x1x1x8xf32>
    %112 = vector.broadcast %109 : vector<4x8x8x1xf32> to vector<4x8x8x8xf32>
    %113 = vector.broadcast %111 : vector<1x1x1x8xf32> to vector<4x8x8x8xf32>
    %114 = arith.mulf %112, %113 : vector<4x8x8x8xf32>
    %115 = arith.addf %103, %114 : vector<4x8x8x8xf32>
    %116 = arith.truncf %115 : vector<4x8x8x8xf32> to vector<4x8x8x8xbf16>
    %c0_63 = arith.constant 0 : index
    %c0_64 = arith.constant 0 : index
    %c0_65 = arith.constant 0 : index
    %c0_66 = arith.constant 0 : index
    %117 = vector.load %arg8[%c0_63, %c0_64, %c0_65, %c0_66] : memref<4x8x8x8xbf16, #tpu.memory_space<vmem>>, vector<4x8x8x8xbf16>
    tpu.vector_store %arg8[%c0_63, %c0_64, %c0_65, %c0_66], %116 {strides = array<i32>} : memref<4x8x8x8xbf16, #tpu.memory_space<vmem>>, vector<4x8x8x8xbf16>,
    return
  }
  func.func @transform_0(%arg0: i32) -> (i32, i32, i32, i32) {
    %c0_i32 = arith.constant 0 : i32
    %c0_i32_0 = arith.constant 0 : i32
    %c0_i32_1 = arith.constant 0 : i32
    %c0_i32_2 = arith.constant 0 : i32
    return %arg0, %c0_i32, %c0_i32_0, %c0_i32_1 : i32, i32, i32, i32
  }
  func.func @transform_1(%arg0: i32) -> (i32, i32, i32, i32) {
    %c0_i32 = arith.constant 0 : i32
    %c0_i32_0 = arith.constant 0 : i32
    %c0_i32_1 = arith.constant 0 : i32
    %c0_i32_2 = arith.constant 0 : i32
    return %arg0, %c0_i32, %c0_i32_0, %c0_i32_1 : i32, i32, i32, i32
  }
  func.func @transform_2(%arg0: i32) -> (i32, i32, i32, i32) {
    %c0_i32 = arith.constant 0 : i32
    %c0_i32_0 = arith.constant 0 : i32
    %c0_i32_1 = arith.constant 0 : i32
    %c0_i32_2 = arith.constant 0 : i32
    return %arg0, %c0_i32, %c0_i32_0, %c0_i32_1 : i32, i32, i32, i32
  }
  func.func @transform_3(%arg0: i32) -> (i32, i32, i32, i32) {
    %c0_i32 = arith.constant 0 : i32
    %c0_i32_0 = arith.constant 0 : i32
    %c0_i32_1 = arith.constant 0 : i32
    %c0_i32_2 = arith.constant 0 : i32
    return %arg0, %c0_i32, %c0_i32_0, %c0_i32_1 : i32, i32, i32, i32
  }
  func.func @transform_4(%arg0: i32) -> (i32, i32) {
    %c0_i32 = arith.constant 0 : i32
    %c0_i32_0 = arith.constant 0 : i32
    %c0_i32_1 = arith.constant 0 : i32
    return %c0_i32, %c0_i32_0 : i32, i32
  }
  func.func @transform_5(%arg0: i32) -> (i32, i32) {
    %c0_i32 = arith.constant 0 : i32
    %c0_i32_0 = arith.constant 0 : i32
    %c0_i32_1 = arith.constant 0 : i32
    return %c0_i32, %c0_i32_0 : i32, i32
  }
  func.func @transform_6(%arg0: i32) -> (i32, i32) {
    %c0_i32 = arith.constant 0 : i32
    %c0_i32_0 = arith.constant 0 : i32
    %c0_i32_1 = arith.constant 0 : i32
    return %c0_i32, %c0_i32_0 : i32, i32
  }
  func.func @transform_7(%arg0: i32) -> (i32, i32, i32, i32) {
    %c0_i32 = arith.constant 0 : i32
    %c0_i32_0 = arith.constant 0 : i32
    %c0_i32_1 = arith.constant 0 : i32
    %c0_i32_2 = arith.constant 0 : i32
    return %arg0, %c0_i32, %c0_i32_0, %c0_i32_1 : i32, i32, i32, i32
  }
}

module attributes {stable_mosaic.version = 11 : i64} {
  func.func @_lif_kernel(%arg0: i32, %arg1: memref<4x8x128xbf16, #tpu.memory_space<vmem>>, %arg2: memref<4x8x128xbf16, #tpu.memory_space<vmem>>) attributes {dimension_semantics = [#tpu.dimension_semantics<parallel>], iteration_bounds = array<i64: 1>, scalar_prefetch = 0 : i64, scratch_operands = 0 : i64, tpu.core_type = #tpu.core_type<tc>, window_params = [{transform_indices = @transform_0, window_bounds = array<i64: 4, 8, 128>}, {transform_indices = @transform_1, window_bounds = array<i64: 4, 8, 128>}]} {
    %cst = arith.constant 0.000000e+00 : f32
    %0 = vector.broadcast %cst : f32 to vector<8x128xf32>
    %cst_0 = arith.constant 0.000000e+00 : f32
    %1 = vector.broadcast %cst_0 : f32 to vector<8x128xf32>
    %c0 = arith.constant 0 : index
    %c0_1 = arith.constant 0 : index
    %c0_2 = arith.constant 0 : index
    %2 = vector.load %arg1[%c0, %c0_1, %c0_2] : memref<4x8x128xbf16, #tpu.memory_space<vmem>>, vector<1x8x128xbf16>
    %3 = vector.shape_cast %2 : vector<1x8x128xbf16> to vector<8x128xbf16>
    %4 = arith.extf %3 : vector<8x128xbf16> to vector<8x128xf32>
    %5 = arith.addf %1, %4 : vector<8x128xf32>
    %cst_3 = arith.constant 5.000000e-01 : f32
    %6 = vector.broadcast %cst_3 : f32 to vector<8x128xf32>
    %7 = arith.mulf %0, %6 : vector<8x128xf32>
    %8 = arith.addf %7, %5 : vector<8x128xf32>
    %cst_4 = arith.constant 1.000000e+00 : f32
    %9 = vector.broadcast %cst_4 : f32 to vector<8x128xf32>
    %10 = arith.cmpf oge, %8, %9 : vector<8x128xf32>
    %11 = arith.extui %10 : vector<8x128xi1> to vector<8x128xi32>
    %12 = arith.sitofp %11 : vector<8x128xi32> to vector<8x128xf32>
    %13 = arith.truncf %12 : vector<8x128xf32> to vector<8x128xbf16>
    %c0_5 = arith.constant 0 : index
    %c0_6 = arith.constant 0 : index
    %c0_7 = arith.constant 0 : index
    %14 = vector.load %arg2[%c0_5, %c0_6, %c0_7] : memref<4x8x128xbf16, #tpu.memory_space<vmem>>, vector<1x8x128xbf16>
    %15 = vector.shape_cast %14 : vector<1x8x128xbf16> to vector<8x128xbf16>
    %16 = vector.shape_cast %13 : vector<8x128xbf16> to vector<1x8x128xbf16>
    tpu.vector_store %arg2[%c0_5, %c0_6, %c0_7], %16 {strides = array<i32>} : memref<4x8x128xbf16, #tpu.memory_space<vmem>>, vector<1x8x128xbf16>,
    %cst_8 = arith.constant 1.000000e+00 : f32
    %17 = vector.broadcast %cst_8 : f32 to vector<8x128xf32>
    %18 = arith.subf %17, %12 : vector<8x128xf32>
    %19 = arith.mulf %8, %18 : vector<8x128xf32>
    %cst_9 = arith.constant 0.000000e+00 : f32
    %20 = vector.broadcast %cst_9 : f32 to vector<8x128xf32>
    %c1 = arith.constant 1 : index
    %c0_10 = arith.constant 0 : index
    %c0_11 = arith.constant 0 : index
    %21 = vector.load %arg1[%c1, %c0_10, %c0_11] : memref<4x8x128xbf16, #tpu.memory_space<vmem>>, vector<1x8x128xbf16>
    %22 = vector.shape_cast %21 : vector<1x8x128xbf16> to vector<8x128xbf16>
    %23 = arith.extf %22 : vector<8x128xbf16> to vector<8x128xf32>
    %24 = arith.addf %20, %23 : vector<8x128xf32>
    %cst_12 = arith.constant 5.000000e-01 : f32
    %25 = vector.broadcast %cst_12 : f32 to vector<8x128xf32>
    %26 = arith.mulf %19, %25 : vector<8x128xf32>
    %27 = arith.addf %26, %24 : vector<8x128xf32>
    %cst_13 = arith.constant 1.000000e+00 : f32
    %28 = vector.broadcast %cst_13 : f32 to vector<8x128xf32>
    %29 = arith.cmpf oge, %27, %28 : vector<8x128xf32>
    %30 = arith.extui %29 : vector<8x128xi1> to vector<8x128xi32>
    %31 = arith.sitofp %30 : vector<8x128xi32> to vector<8x128xf32>
    %32 = arith.truncf %31 : vector<8x128xf32> to vector<8x128xbf16>
    %c1_14 = arith.constant 1 : index
    %c0_15 = arith.constant 0 : index
    %c0_16 = arith.constant 0 : index
    %33 = vector.load %arg2[%c1_14, %c0_15, %c0_16] : memref<4x8x128xbf16, #tpu.memory_space<vmem>>, vector<1x8x128xbf16>
    %34 = vector.shape_cast %33 : vector<1x8x128xbf16> to vector<8x128xbf16>
    %35 = vector.shape_cast %32 : vector<8x128xbf16> to vector<1x8x128xbf16>
    tpu.vector_store %arg2[%c1_14, %c0_15, %c0_16], %35 {strides = array<i32>} : memref<4x8x128xbf16, #tpu.memory_space<vmem>>, vector<1x8x128xbf16>,
    %cst_17 = arith.constant 1.000000e+00 : f32
    %36 = vector.broadcast %cst_17 : f32 to vector<8x128xf32>
    %37 = arith.subf %36, %31 : vector<8x128xf32>
    %38 = arith.mulf %27, %37 : vector<8x128xf32>
    %cst_18 = arith.constant 0.000000e+00 : f32
    %39 = vector.broadcast %cst_18 : f32 to vector<8x128xf32>
    %c2 = arith.constant 2 : index
    %c0_19 = arith.constant 0 : index
    %c0_20 = arith.constant 0 : index
    %40 = vector.load %arg1[%c2, %c0_19, %c0_20] : memref<4x8x128xbf16, #tpu.memory_space<vmem>>, vector<1x8x128xbf16>
    %41 = vector.shape_cast %40 : vector<1x8x128xbf16> to vector<8x128xbf16>
    %42 = arith.extf %41 : vector<8x128xbf16> to vector<8x128xf32>
    %43 = arith.addf %39, %42 : vector<8x128xf32>
    %cst_21 = arith.constant 5.000000e-01 : f32
    %44 = vector.broadcast %cst_21 : f32 to vector<8x128xf32>
    %45 = arith.mulf %38, %44 : vector<8x128xf32>
    %46 = arith.addf %45, %43 : vector<8x128xf32>
    %cst_22 = arith.constant 1.000000e+00 : f32
    %47 = vector.broadcast %cst_22 : f32 to vector<8x128xf32>
    %48 = arith.cmpf oge, %46, %47 : vector<8x128xf32>
    %49 = arith.extui %48 : vector<8x128xi1> to vector<8x128xi32>
    %50 = arith.sitofp %49 : vector<8x128xi32> to vector<8x128xf32>
    %51 = arith.truncf %50 : vector<8x128xf32> to vector<8x128xbf16>
    %c2_23 = arith.constant 2 : index
    %c0_24 = arith.constant 0 : index
    %c0_25 = arith.constant 0 : index
    %52 = vector.load %arg2[%c2_23, %c0_24, %c0_25] : memref<4x8x128xbf16, #tpu.memory_space<vmem>>, vector<1x8x128xbf16>
    %53 = vector.shape_cast %52 : vector<1x8x128xbf16> to vector<8x128xbf16>
    %54 = vector.shape_cast %51 : vector<8x128xbf16> to vector<1x8x128xbf16>
    tpu.vector_store %arg2[%c2_23, %c0_24, %c0_25], %54 {strides = array<i32>} : memref<4x8x128xbf16, #tpu.memory_space<vmem>>, vector<1x8x128xbf16>,
    %cst_26 = arith.constant 1.000000e+00 : f32
    %55 = vector.broadcast %cst_26 : f32 to vector<8x128xf32>
    %56 = arith.subf %55, %50 : vector<8x128xf32>
    %57 = arith.mulf %46, %56 : vector<8x128xf32>
    %cst_27 = arith.constant 0.000000e+00 : f32
    %58 = vector.broadcast %cst_27 : f32 to vector<8x128xf32>
    %c3 = arith.constant 3 : index
    %c0_28 = arith.constant 0 : index
    %c0_29 = arith.constant 0 : index
    %59 = vector.load %arg1[%c3, %c0_28, %c0_29] : memref<4x8x128xbf16, #tpu.memory_space<vmem>>, vector<1x8x128xbf16>
    %60 = vector.shape_cast %59 : vector<1x8x128xbf16> to vector<8x128xbf16>
    %61 = arith.extf %60 : vector<8x128xbf16> to vector<8x128xf32>
    %62 = arith.addf %58, %61 : vector<8x128xf32>
    %cst_30 = arith.constant 5.000000e-01 : f32
    %63 = vector.broadcast %cst_30 : f32 to vector<8x128xf32>
    %64 = arith.mulf %57, %63 : vector<8x128xf32>
    %65 = arith.addf %64, %62 : vector<8x128xf32>
    %cst_31 = arith.constant 1.000000e+00 : f32
    %66 = vector.broadcast %cst_31 : f32 to vector<8x128xf32>
    %67 = arith.cmpf oge, %65, %66 : vector<8x128xf32>
    %68 = arith.extui %67 : vector<8x128xi1> to vector<8x128xi32>
    %69 = arith.sitofp %68 : vector<8x128xi32> to vector<8x128xf32>
    %70 = arith.truncf %69 : vector<8x128xf32> to vector<8x128xbf16>
    %c3_32 = arith.constant 3 : index
    %c0_33 = arith.constant 0 : index
    %c0_34 = arith.constant 0 : index
    %71 = vector.load %arg2[%c3_32, %c0_33, %c0_34] : memref<4x8x128xbf16, #tpu.memory_space<vmem>>, vector<1x8x128xbf16>
    %72 = vector.shape_cast %71 : vector<1x8x128xbf16> to vector<8x128xbf16>
    %73 = vector.shape_cast %70 : vector<8x128xbf16> to vector<1x8x128xbf16>
    tpu.vector_store %arg2[%c3_32, %c0_33, %c0_34], %73 {strides = array<i32>} : memref<4x8x128xbf16, #tpu.memory_space<vmem>>, vector<1x8x128xbf16>,
    return
  }
  func.func @transform_0(%arg0: i32) -> (i32, i32, i32) {
    %c0_i32 = arith.constant 0 : i32
    %c0_i32_0 = arith.constant 0 : i32
    %c0_i32_1 = arith.constant 0 : i32
    return %c0_i32, %arg0, %c0_i32_0 : i32, i32, i32
  }
  func.func @transform_1(%arg0: i32) -> (i32, i32, i32) {
    %c0_i32 = arith.constant 0 : i32
    %c0_i32_0 = arith.constant 0 : i32
    %c0_i32_1 = arith.constant 0 : i32
    return %c0_i32, %arg0, %c0_i32_0 : i32, i32, i32
  }
}

module attributes {stable_mosaic.version = 11 : i64} {
  func.func @_conv_kernel_s1(%arg0: i32, %arg1: memref<4x10x10x8xbf16, #tpu.memory_space<vmem>>, %arg2: memref<9x8xf32, #tpu.memory_space<vmem>>, %arg3: memref<8x8xf32, #tpu.memory_space<vmem>>, %arg4: memref<1x8xf32, #tpu.memory_space<vmem>>, %arg5: memref<4x8x8x8xbf16, #tpu.memory_space<vmem>>) attributes {dimension_semantics = [#tpu.dimension_semantics<parallel>], iteration_bounds = array<i64: 2>, scalar_prefetch = 0 : i64, scratch_operands = 0 : i64, tpu.core_type = #tpu.core_type<tc>, window_params = [{transform_indices = @transform_0, window_bounds = array<i64: 4, 10, 10, 8>}, {pipeline_mode = #tpu.pipeline_mode<synchronous>, transform_indices = @transform_1, window_bounds = array<i64: 9, 8>}, {pipeline_mode = #tpu.pipeline_mode<synchronous>, transform_indices = @transform_2, window_bounds = array<i64: 8, 8>}, {pipeline_mode = #tpu.pipeline_mode<synchronous>, transform_indices = @transform_3, window_bounds = array<i64: 1, 8>}, {transform_indices = @transform_4, window_bounds = array<i64: 4, 8, 8, 8>}]} {
    %c0 = arith.constant 0 : index
    %c0_0 = arith.constant 0 : index
    %c0_1 = arith.constant 0 : index
    %c0_2 = arith.constant 0 : index
    %0 = vector.load %arg1[%c0, %c0_0, %c0_1, %c0_2] : memref<4x10x10x8xbf16, #tpu.memory_space<vmem>>, vector<4x8x8x8xbf16>
    %c0_3 = arith.constant 0 : index
    %c0_4 = arith.constant 0 : index
    %1 = vector.load %arg2[%c0_3, %c0_4] : memref<9x8xf32, #tpu.memory_space<vmem>>, vector<1x8xf32>
    %2 = arith.extf %0 : vector<4x8x8x8xbf16> to vector<4x8x8x8xf32>
    %3 = vector.shape_cast %1 : vector<1x8xf32> to vector<1x1x1x8xf32>
    %4 = vector.broadcast %3 : vector<1x1x1x8xf32> to vector<4x8x8x8xf32>
    %5 = arith.mulf %2, %4 : vector<4x8x8x8xf32>
    %c0_5 = arith.constant 0 : index
    %c0_6 = arith.constant 0 : index
    %c1 = arith.constant 1 : index
    %c0_7 = arith.constant 0 : index
    %6 = vector.load %arg1[%c0_5, %c0_6, %c1, %c0_7] : memref<4x10x10x8xbf16, #tpu.memory_space<vmem>>, vector<4x8x8x8xbf16>
    %c1_8 = arith.constant 1 : index
    %c0_9 = arith.constant 0 : index
    %7 = vector.load %arg2[%c1_8, %c0_9] : memref<9x8xf32, #tpu.memory_space<vmem>>, vector<1x8xf32>
    %8 = arith.extf %6 : vector<4x8x8x8xbf16> to vector<4x8x8x8xf32>
    %9 = vector.shape_cast %7 : vector<1x8xf32> to vector<1x1x1x8xf32>
    %10 = vector.broadcast %9 : vector<1x1x1x8xf32> to vector<4x8x8x8xf32>
    %11 = arith.mulf %8, %10 : vector<4x8x8x8xf32>
    %12 = arith.addf %5, %11 : vector<4x8x8x8xf32>
    %c0_10 = arith.constant 0 : index
    %c0_11 = arith.constant 0 : index
    %c2 = arith.constant 2 : index
    %c0_12 = arith.constant 0 : index
    %13 = vector.load %arg1[%c0_10, %c0_11, %c2, %c0_12] : memref<4x10x10x8xbf16, #tpu.memory_space<vmem>>, vector<4x8x8x8xbf16>
    %c2_13 = arith.constant 2 : index
    %c0_14 = arith.constant 0 : index
    %14 = vector.load %arg2[%c2_13, %c0_14] : memref<9x8xf32, #tpu.memory_space<vmem>>, vector<1x8xf32>
    %15 = arith.extf %13 : vector<4x8x8x8xbf16> to vector<4x8x8x8xf32>
    %16 = vector.shape_cast %14 : vector<1x8xf32> to vector<1x1x1x8xf32>
    %17 = vector.broadcast %16 : vector<1x1x1x8xf32> to vector<4x8x8x8xf32>
    %18 = arith.mulf %15, %17 : vector<4x8x8x8xf32>
    %19 = arith.addf %12, %18 : vector<4x8x8x8xf32>
    %c0_15 = arith.constant 0 : index
    %c1_16 = arith.constant 1 : index
    %c0_17 = arith.constant 0 : index
    %c0_18 = arith.constant 0 : index
    %20 = vector.load %arg1[%c0_15, %c1_16, %c0_17, %c0_18] : memref<4x10x10x8xbf16, #tpu.memory_space<vmem>>, vector<4x8x8x8xbf16>
    %c3 = arith.constant 3 : index
    %c0_19 = arith.constant 0 : index
    %21 = vector.load %arg2[%c3, %c0_19] : memref<9x8xf32, #tpu.memory_space<vmem>>, vector<1x8xf32>
    %22 = arith.extf %20 : vector<4x8x8x8xbf16> to vector<4x8x8x8xf32>
    %23 = vector.shape_cast %21 : vector<1x8xf32> to vector<1x1x1x8xf32>
    %24 = vector.broadcast %23 : vector<1x1x1x8xf32> to vector<4x8x8x8xf32>
    %25 = arith.mulf %22, %24 : vector<4x8x8x8xf32>
    %26 = arith.addf %19, %25 : vector<4x8x8x8xf32>
    %c0_20 = arith.constant 0 : index
    %c1_21 = arith.constant 1 : index
    %c1_22 = arith.constant 1 : index
    %c0_23 = arith.constant 0 : index
    %27 = vector.load %arg1[%c0_20, %c1_21, %c1_22, %c0_23] : memref<4x10x10x8xbf16, #tpu.memory_space<vmem>>, vector<4x8x8x8xbf16>
    %c4 = arith.constant 4 : index
    %c0_24 = arith.constant 0 : index
    %28 = vector.load %arg2[%c4, %c0_24] : memref<9x8xf32, #tpu.memory_space<vmem>>, vector<1x8xf32>
    %29 = arith.extf %27 : vector<4x8x8x8xbf16> to vector<4x8x8x8xf32>
    %30 = vector.shape_cast %28 : vector<1x8xf32> to vector<1x1x1x8xf32>
    %31 = vector.broadcast %30 : vector<1x1x1x8xf32> to vector<4x8x8x8xf32>
    %32 = arith.mulf %29, %31 : vector<4x8x8x8xf32>
    %33 = arith.addf %26, %32 : vector<4x8x8x8xf32>
    %c0_25 = arith.constant 0 : index
    %c1_26 = arith.constant 1 : index
    %c2_27 = arith.constant 2 : index
    %c0_28 = arith.constant 0 : index
    %34 = vector.load %arg1[%c0_25, %c1_26, %c2_27, %c0_28] : memref<4x10x10x8xbf16, #tpu.memory_space<vmem>>, vector<4x8x8x8xbf16>
    %c5 = arith.constant 5 : index
    %c0_29 = arith.constant 0 : index
    %35 = vector.load %arg2[%c5, %c0_29] : memref<9x8xf32, #tpu.memory_space<vmem>>, vector<1x8xf32>
    %36 = arith.extf %34 : vector<4x8x8x8xbf16> to vector<4x8x8x8xf32>
    %37 = vector.shape_cast %35 : vector<1x8xf32> to vector<1x1x1x8xf32>
    %38 = vector.broadcast %37 : vector<1x1x1x8xf32> to vector<4x8x8x8xf32>
    %39 = arith.mulf %36, %38 : vector<4x8x8x8xf32>
    %40 = arith.addf %33, %39 : vector<4x8x8x8xf32>
    %c0_30 = arith.constant 0 : index
    %c2_31 = arith.constant 2 : index
    %c0_32 = arith.constant 0 : index
    %c0_33 = arith.constant 0 : index
    %41 = vector.load %arg1[%c0_30, %c2_31, %c0_32, %c0_33] : memref<4x10x10x8xbf16, #tpu.memory_space<vmem>>, vector<4x8x8x8xbf16>
    %c6 = arith.constant 6 : index
    %c0_34 = arith.constant 0 : index
    %42 = vector.load %arg2[%c6, %c0_34] : memref<9x8xf32, #tpu.memory_space<vmem>>, vector<1x8xf32>
    %43 = arith.extf %41 : vector<4x8x8x8xbf16> to vector<4x8x8x8xf32>
    %44 = vector.shape_cast %42 : vector<1x8xf32> to vector<1x1x1x8xf32>
    %45 = vector.broadcast %44 : vector<1x1x1x8xf32> to vector<4x8x8x8xf32>
    %46 = arith.mulf %43, %45 : vector<4x8x8x8xf32>
    %47 = arith.addf %40, %46 : vector<4x8x8x8xf32>
    %c0_35 = arith.constant 0 : index
    %c2_36 = arith.constant 2 : index
    %c1_37 = arith.constant 1 : index
    %c0_38 = arith.constant 0 : index
    %48 = vector.load %arg1[%c0_35, %c2_36, %c1_37, %c0_38] : memref<4x10x10x8xbf16, #tpu.memory_space<vmem>>, vector<4x8x8x8xbf16>
    %c7 = arith.constant 7 : index
    %c0_39 = arith.constant 0 : index
    %49 = vector.load %arg2[%c7, %c0_39] : memref<9x8xf32, #tpu.memory_space<vmem>>, vector<1x8xf32>
    %50 = arith.extf %48 : vector<4x8x8x8xbf16> to vector<4x8x8x8xf32>
    %51 = vector.shape_cast %49 : vector<1x8xf32> to vector<1x1x1x8xf32>
    %52 = vector.broadcast %51 : vector<1x1x1x8xf32> to vector<4x8x8x8xf32>
    %53 = arith.mulf %50, %52 : vector<4x8x8x8xf32>
    %54 = arith.addf %47, %53 : vector<4x8x8x8xf32>
    %c0_40 = arith.constant 0 : index
    %c2_41 = arith.constant 2 : index
    %c2_42 = arith.constant 2 : index
    %c0_43 = arith.constant 0 : index
    %55 = vector.load %arg1[%c0_40, %c2_41, %c2_42, %c0_43] : memref<4x10x10x8xbf16, #tpu.memory_space<vmem>>, vector<4x8x8x8xbf16>
    %c8 = arith.constant 8 : index
    %c0_44 = arith.constant 0 : index
    %56 = vector.load %arg2[%c8, %c0_44] : memref<9x8xf32, #tpu.memory_space<vmem>>, vector<1x8xf32>
    %57 = arith.extf %55 : vector<4x8x8x8xbf16> to vector<4x8x8x8xf32>
    %58 = vector.shape_cast %56 : vector<1x8xf32> to vector<1x1x1x8xf32>
    %59 = vector.broadcast %58 : vector<1x1x1x8xf32> to vector<4x8x8x8xf32>
    %60 = arith.mulf %57, %59 : vector<4x8x8x8xf32>
    %61 = arith.addf %54, %60 : vector<4x8x8x8xf32>
    %62 = tpu.iota {dimensions = array<i32: 3>} : vector<4x8x8x8xi32>
    %cst = arith.constant 0.000000e+00 : f32
    %63 = vector.broadcast %cst : f32 to vector<4x8x8x8xf32>
    %c0_45 = arith.constant 0 : index
    %c0_46 = arith.constant 0 : index
    %64 = vector.load %arg4[%c0_45, %c0_46] : memref<1x8xf32, #tpu.memory_space<vmem>>, vector<1x8xf32>
    %65 = vector.shape_cast %64 : vector<1x8xf32> to vector<1x1x1x8xf32>
    %66 = vector.broadcast %65 : vector<1x1x1x8xf32> to vector<4x8x8x8xf32>
    %67 = arith.addf %63, %66 : vector<4x8x8x8xf32>
    %c0_i32 = arith.constant 0 : i32
    %68 = vector.broadcast %c0_i32 : i32 to vector<4x8x8x8xi32>
    %69 = arith.cmpi eq, %62, %68 : vector<4x8x8x8xi32>
    %cst_47 = arith.constant 0.000000e+00 : f32
    %70 = vector.broadcast %cst_47 : f32 to vector<4x8x8x8xf32>
    %71 = arith.select %69, %61, %70 : vector<4x8x8x8xi1>, vector<4x8x8x8xf32>
    %cst_48 = arith.constant dense<0.000000e+00> : vector<4x8x8xf32>
    %72 = vector.multi_reduction <add>, %71, %cst_48 [3] : vector<4x8x8x8xf32> to vector<4x8x8xf32>
    %73 = vector.shape_cast %72 : vector<4x8x8xf32> to vector<4x8x8x1xf32>
    %c0_49 = arith.constant 0 : index
    %c0_50 = arith.constant 0 : index
    %74 = vector.load %arg3[%c0_49, %c0_50] : memref<8x8xf32, #tpu.memory_space<vmem>>, vector<1x8xf32>
    %75 = vector.shape_cast %74 : vector<1x8xf32> to vector<1x1x1x8xf32>
    %76 = vector.broadcast %73 : vector<4x8x8x1xf32> to vector<4x8x8x8xf32>
    %77 = vector.broadcast %75 : vector<1x1x1x8xf32> to vector<4x8x8x8xf32>
    %78 = arith.mulf %76, %77 : vector<4x8x8x8xf32>
    %79 = arith.addf %67, %78 : vector<4x8x8x8xf32>
    %c1_i32 = arith.constant 1 : i32
    %80 = vector.broadcast %c1_i32 : i32 to vector<4x8x8x8xi32>
    %81 = arith.cmpi eq, %62, %80 : vector<4x8x8x8xi32>
    %cst_51 = arith.constant 0.000000e+00 : f32
    %82 = vector.broadcast %cst_51 : f32 to vector<4x8x8x8xf32>
    %83 = arith.select %81, %61, %82 : vector<4x8x8x8xi1>, vector<4x8x8x8xf32>
    %cst_52 = arith.constant dense<0.000000e+00> : vector<4x8x8xf32>
    %84 = vector.multi_reduction <add>, %83, %cst_52 [3] : vector<4x8x8x8xf32> to vector<4x8x8xf32>
    %85 = vector.shape_cast %84 : vector<4x8x8xf32> to vector<4x8x8x1xf32>
    %c1_53 = arith.constant 1 : index
    %c0_54 = arith.constant 0 : index
    %86 = vector.load %arg3[%c1_53, %c0_54] : memref<8x8xf32, #tpu.memory_space<vmem>>, vector<1x8xf32>
    %87 = vector.shape_cast %86 : vector<1x8xf32> to vector<1x1x1x8xf32>
    %88 = vector.broadcast %85 : vector<4x8x8x1xf32> to vector<4x8x8x8xf32>
    %89 = vector.broadcast %87 : vector<1x1x1x8xf32> to vector<4x8x8x8xf32>
    %90 = arith.mulf %88, %89 : vector<4x8x8x8xf32>
    %91 = arith.addf %79, %90 : vector<4x8x8x8xf32>
    %c2_i32 = arith.constant 2 : i32
    %92 = vector.broadcast %c2_i32 : i32 to vector<4x8x8x8xi32>
    %93 = arith.cmpi eq, %62, %92 : vector<4x8x8x8xi32>
    %cst_55 = arith.constant 0.000000e+00 : f32
    %94 = vector.broadcast %cst_55 : f32 to vector<4x8x8x8xf32>
    %95 = arith.select %93, %61, %94 : vector<4x8x8x8xi1>, vector<4x8x8x8xf32>
    %cst_56 = arith.constant dense<0.000000e+00> : vector<4x8x8xf32>
    %96 = vector.multi_reduction <add>, %95, %cst_56 [3] : vector<4x8x8x8xf32> to vector<4x8x8xf32>
    %97 = vector.shape_cast %96 : vector<4x8x8xf32> to vector<4x8x8x1xf32>
    %c2_57 = arith.constant 2 : index
    %c0_58 = arith.constant 0 : index
    %98 = vector.load %arg3[%c2_57, %c0_58] : memref<8x8xf32, #tpu.memory_space<vmem>>, vector<1x8xf32>
    %99 = vector.shape_cast %98 : vector<1x8xf32> to vector<1x1x1x8xf32>
    %100 = vector.broadcast %97 : vector<4x8x8x1xf32> to vector<4x8x8x8xf32>
    %101 = vector.broadcast %99 : vector<1x1x1x8xf32> to vector<4x8x8x8xf32>
    %102 = arith.mulf %100, %101 : vector<4x8x8x8xf32>
    %103 = arith.addf %91, %102 : vector<4x8x8x8xf32>
    %c3_i32 = arith.constant 3 : i32
    %104 = vector.broadcast %c3_i32 : i32 to vector<4x8x8x8xi32>
    %105 = arith.cmpi eq, %62, %104 : vector<4x8x8x8xi32>
    %cst_59 = arith.constant 0.000000e+00 : f32
    %106 = vector.broadcast %cst_59 : f32 to vector<4x8x8x8xf32>
    %107 = arith.select %105, %61, %106 : vector<4x8x8x8xi1>, vector<4x8x8x8xf32>
    %cst_60 = arith.constant dense<0.000000e+00> : vector<4x8x8xf32>
    %108 = vector.multi_reduction <add>, %107, %cst_60 [3] : vector<4x8x8x8xf32> to vector<4x8x8xf32>
    %109 = vector.shape_cast %108 : vector<4x8x8xf32> to vector<4x8x8x1xf32>
    %c3_61 = arith.constant 3 : index
    %c0_62 = arith.constant 0 : index
    %110 = vector.load %arg3[%c3_61, %c0_62] : memref<8x8xf32, #tpu.memory_space<vmem>>, vector<1x8xf32>
    %111 = vector.shape_cast %110 : vector<1x8xf32> to vector<1x1x1x8xf32>
    %112 = vector.broadcast %109 : vector<4x8x8x1xf32> to vector<4x8x8x8xf32>
    %113 = vector.broadcast %111 : vector<1x1x1x8xf32> to vector<4x8x8x8xf32>
    %114 = arith.mulf %112, %113 : vector<4x8x8x8xf32>
    %115 = arith.addf %103, %114 : vector<4x8x8x8xf32>
    %c4_i32 = arith.constant 4 : i32
    %116 = vector.broadcast %c4_i32 : i32 to vector<4x8x8x8xi32>
    %117 = arith.cmpi eq, %62, %116 : vector<4x8x8x8xi32>
    %cst_63 = arith.constant 0.000000e+00 : f32
    %118 = vector.broadcast %cst_63 : f32 to vector<4x8x8x8xf32>
    %119 = arith.select %117, %61, %118 : vector<4x8x8x8xi1>, vector<4x8x8x8xf32>
    %cst_64 = arith.constant dense<0.000000e+00> : vector<4x8x8xf32>
    %120 = vector.multi_reduction <add>, %119, %cst_64 [3] : vector<4x8x8x8xf32> to vector<4x8x8xf32>
    %121 = vector.shape_cast %120 : vector<4x8x8xf32> to vector<4x8x8x1xf32>
    %c4_65 = arith.constant 4 : index
    %c0_66 = arith.constant 0 : index
    %122 = vector.load %arg3[%c4_65, %c0_66] : memref<8x8xf32, #tpu.memory_space<vmem>>, vector<1x8xf32>
    %123 = vector.shape_cast %122 : vector<1x8xf32> to vector<1x1x1x8xf32>
    %124 = vector.broadcast %121 : vector<4x8x8x1xf32> to vector<4x8x8x8xf32>
    %125 = vector.broadcast %123 : vector<1x1x1x8xf32> to vector<4x8x8x8xf32>
    %126 = arith.mulf %124, %125 : vector<4x8x8x8xf32>
    %127 = arith.addf %115, %126 : vector<4x8x8x8xf32>
    %c5_i32 = arith.constant 5 : i32
    %128 = vector.broadcast %c5_i32 : i32 to vector<4x8x8x8xi32>
    %129 = arith.cmpi eq, %62, %128 : vector<4x8x8x8xi32>
    %cst_67 = arith.constant 0.000000e+00 : f32
    %130 = vector.broadcast %cst_67 : f32 to vector<4x8x8x8xf32>
    %131 = arith.select %129, %61, %130 : vector<4x8x8x8xi1>, vector<4x8x8x8xf32>
    %cst_68 = arith.constant dense<0.000000e+00> : vector<4x8x8xf32>
    %132 = vector.multi_reduction <add>, %131, %cst_68 [3] : vector<4x8x8x8xf32> to vector<4x8x8xf32>
    %133 = vector.shape_cast %132 : vector<4x8x8xf32> to vector<4x8x8x1xf32>
    %c5_69 = arith.constant 5 : index
    %c0_70 = arith.constant 0 : index
    %134 = vector.load %arg3[%c5_69, %c0_70] : memref<8x8xf32, #tpu.memory_space<vmem>>, vector<1x8xf32>
    %135 = vector.shape_cast %134 : vector<1x8xf32> to vector<1x1x1x8xf32>
    %136 = vector.broadcast %133 : vector<4x8x8x1xf32> to vector<4x8x8x8xf32>
    %137 = vector.broadcast %135 : vector<1x1x1x8xf32> to vector<4x8x8x8xf32>
    %138 = arith.mulf %136, %137 : vector<4x8x8x8xf32>
    %139 = arith.addf %127, %138 : vector<4x8x8x8xf32>
    %c6_i32 = arith.constant 6 : i32
    %140 = vector.broadcast %c6_i32 : i32 to vector<4x8x8x8xi32>
    %141 = arith.cmpi eq, %62, %140 : vector<4x8x8x8xi32>
    %cst_71 = arith.constant 0.000000e+00 : f32
    %142 = vector.broadcast %cst_71 : f32 to vector<4x8x8x8xf32>
    %143 = arith.select %141, %61, %142 : vector<4x8x8x8xi1>, vector<4x8x8x8xf32>
    %cst_72 = arith.constant dense<0.000000e+00> : vector<4x8x8xf32>
    %144 = vector.multi_reduction <add>, %143, %cst_72 [3] : vector<4x8x8x8xf32> to vector<4x8x8xf32>
    %145 = vector.shape_cast %144 : vector<4x8x8xf32> to vector<4x8x8x1xf32>
    %c6_73 = arith.constant 6 : index
    %c0_74 = arith.constant 0 : index
    %146 = vector.load %arg3[%c6_73, %c0_74] : memref<8x8xf32, #tpu.memory_space<vmem>>, vector<1x8xf32>
    %147 = vector.shape_cast %146 : vector<1x8xf32> to vector<1x1x1x8xf32>
    %148 = vector.broadcast %145 : vector<4x8x8x1xf32> to vector<4x8x8x8xf32>
    %149 = vector.broadcast %147 : vector<1x1x1x8xf32> to vector<4x8x8x8xf32>
    %150 = arith.mulf %148, %149 : vector<4x8x8x8xf32>
    %151 = arith.addf %139, %150 : vector<4x8x8x8xf32>
    %c7_i32 = arith.constant 7 : i32
    %152 = vector.broadcast %c7_i32 : i32 to vector<4x8x8x8xi32>
    %153 = arith.cmpi eq, %62, %152 : vector<4x8x8x8xi32>
    %cst_75 = arith.constant 0.000000e+00 : f32
    %154 = vector.broadcast %cst_75 : f32 to vector<4x8x8x8xf32>
    %155 = arith.select %153, %61, %154 : vector<4x8x8x8xi1>, vector<4x8x8x8xf32>
    %cst_76 = arith.constant dense<0.000000e+00> : vector<4x8x8xf32>
    %156 = vector.multi_reduction <add>, %155, %cst_76 [3] : vector<4x8x8x8xf32> to vector<4x8x8xf32>
    %157 = vector.shape_cast %156 : vector<4x8x8xf32> to vector<4x8x8x1xf32>
    %c7_77 = arith.constant 7 : index
    %c0_78 = arith.constant 0 : index
    %158 = vector.load %arg3[%c7_77, %c0_78] : memref<8x8xf32, #tpu.memory_space<vmem>>, vector<1x8xf32>
    %159 = vector.shape_cast %158 : vector<1x8xf32> to vector<1x1x1x8xf32>
    %160 = vector.broadcast %157 : vector<4x8x8x1xf32> to vector<4x8x8x8xf32>
    %161 = vector.broadcast %159 : vector<1x1x1x8xf32> to vector<4x8x8x8xf32>
    %162 = arith.mulf %160, %161 : vector<4x8x8x8xf32>
    %163 = arith.addf %151, %162 : vector<4x8x8x8xf32>
    %164 = arith.truncf %163 : vector<4x8x8x8xf32> to vector<4x8x8x8xbf16>
    %c0_79 = arith.constant 0 : index
    %c0_80 = arith.constant 0 : index
    %c0_81 = arith.constant 0 : index
    %c0_82 = arith.constant 0 : index
    %165 = vector.load %arg5[%c0_79, %c0_80, %c0_81, %c0_82] : memref<4x8x8x8xbf16, #tpu.memory_space<vmem>>, vector<4x8x8x8xbf16>
    tpu.vector_store %arg5[%c0_79, %c0_80, %c0_81, %c0_82], %164 {strides = array<i32>} : memref<4x8x8x8xbf16, #tpu.memory_space<vmem>>, vector<4x8x8x8xbf16>,
    return
  }
  func.func @transform_0(%arg0: i32) -> (i32, i32, i32, i32) {
    %c0_i32 = arith.constant 0 : i32
    %c0_i32_0 = arith.constant 0 : i32
    %c0_i32_1 = arith.constant 0 : i32
    %c0_i32_2 = arith.constant 0 : i32
    return %arg0, %c0_i32, %c0_i32_0, %c0_i32_1 : i32, i32, i32, i32
  }
  func.func @transform_1(%arg0: i32) -> (i32, i32) {
    %c0_i32 = arith.constant 0 : i32
    %c0_i32_0 = arith.constant 0 : i32
    %c0_i32_1 = arith.constant 0 : i32
    return %c0_i32, %c0_i32_0 : i32, i32
  }
  func.func @transform_2(%arg0: i32) -> (i32, i32) {
    %c0_i32 = arith.constant 0 : i32
    %c0_i32_0 = arith.constant 0 : i32
    %c0_i32_1 = arith.constant 0 : i32
    return %c0_i32, %c0_i32_0 : i32, i32
  }
  func.func @transform_3(%arg0: i32) -> (i32, i32) {
    %c0_i32 = arith.constant 0 : i32
    %c0_i32_0 = arith.constant 0 : i32
    %c0_i32_1 = arith.constant 0 : i32
    return %c0_i32, %c0_i32_0 : i32, i32
  }
  func.func @transform_4(%arg0: i32) -> (i32, i32, i32, i32) {
    %c0_i32 = arith.constant 0 : i32
    %c0_i32_0 = arith.constant 0 : i32
    %c0_i32_1 = arith.constant 0 : i32
    %c0_i32_2 = arith.constant 0 : i32
    return %arg0, %c0_i32, %c0_i32_0, %c0_i32_1 : i32, i32, i32, i32
  }
}

module attributes {stable_mosaic.version = 11 : i64} {
  func.func @_lif_kernel(%arg0: i32, %arg1: memref<4x8x128xbf16, #tpu.memory_space<vmem>>, %arg2: memref<4x8x128xbf16, #tpu.memory_space<vmem>>, %arg3: memref<4x8x128xbf16, #tpu.memory_space<vmem>>) attributes {dimension_semantics = [#tpu.dimension_semantics<parallel>], iteration_bounds = array<i64: 1>, scalar_prefetch = 0 : i64, scratch_operands = 0 : i64, tpu.core_type = #tpu.core_type<tc>, window_params = [{transform_indices = @transform_0, window_bounds = array<i64: 4, 8, 128>}, {transform_indices = @transform_1, window_bounds = array<i64: 4, 8, 128>}, {transform_indices = @transform_2, window_bounds = array<i64: 4, 8, 128>}]} {
    %cst = arith.constant 0.000000e+00 : f32
    %0 = vector.broadcast %cst : f32 to vector<8x128xf32>
    %cst_0 = arith.constant 0.000000e+00 : f32
    %1 = vector.broadcast %cst_0 : f32 to vector<8x128xf32>
    %c0 = arith.constant 0 : index
    %c0_1 = arith.constant 0 : index
    %c0_2 = arith.constant 0 : index
    %2 = vector.load %arg1[%c0, %c0_1, %c0_2] : memref<4x8x128xbf16, #tpu.memory_space<vmem>>, vector<1x8x128xbf16>
    %3 = vector.shape_cast %2 : vector<1x8x128xbf16> to vector<8x128xbf16>
    %4 = arith.extf %3 : vector<8x128xbf16> to vector<8x128xf32>
    %5 = arith.addf %1, %4 : vector<8x128xf32>
    %c0_3 = arith.constant 0 : index
    %c0_4 = arith.constant 0 : index
    %c0_5 = arith.constant 0 : index
    %6 = vector.load %arg2[%c0_3, %c0_4, %c0_5] : memref<4x8x128xbf16, #tpu.memory_space<vmem>>, vector<1x8x128xbf16>
    %7 = vector.shape_cast %6 : vector<1x8x128xbf16> to vector<8x128xbf16>
    %8 = arith.extf %7 : vector<8x128xbf16> to vector<8x128xf32>
    %9 = arith.addf %5, %8 : vector<8x128xf32>
    %cst_6 = arith.constant 5.000000e-01 : f32
    %10 = vector.broadcast %cst_6 : f32 to vector<8x128xf32>
    %11 = arith.mulf %0, %10 : vector<8x128xf32>
    %12 = arith.addf %11, %9 : vector<8x128xf32>
    %cst_7 = arith.constant 1.000000e+00 : f32
    %13 = vector.broadcast %cst_7 : f32 to vector<8x128xf32>
    %14 = arith.cmpf oge, %12, %13 : vector<8x128xf32>
    %15 = arith.extui %14 : vector<8x128xi1> to vector<8x128xi32>
    %16 = arith.sitofp %15 : vector<8x128xi32> to vector<8x128xf32>
    %17 = arith.truncf %16 : vector<8x128xf32> to vector<8x128xbf16>
    %c0_8 = arith.constant 0 : index
    %c0_9 = arith.constant 0 : index
    %c0_10 = arith.constant 0 : index
    %18 = vector.load %arg3[%c0_8, %c0_9, %c0_10] : memref<4x8x128xbf16, #tpu.memory_space<vmem>>, vector<1x8x128xbf16>
    %19 = vector.shape_cast %18 : vector<1x8x128xbf16> to vector<8x128xbf16>
    %20 = vector.shape_cast %17 : vector<8x128xbf16> to vector<1x8x128xbf16>
    tpu.vector_store %arg3[%c0_8, %c0_9, %c0_10], %20 {strides = array<i32>} : memref<4x8x128xbf16, #tpu.memory_space<vmem>>, vector<1x8x128xbf16>,
    %cst_11 = arith.constant 1.000000e+00 : f32
    %21 = vector.broadcast %cst_11 : f32 to vector<8x128xf32>
    %22 = arith.subf %21, %16 : vector<8x128xf32>
    %23 = arith.mulf %12, %22 : vector<8x128xf32>
    %cst_12 = arith.constant 0.000000e+00 : f32
    %24 = vector.broadcast %cst_12 : f32 to vector<8x128xf32>
    %c1 = arith.constant 1 : index
    %c0_13 = arith.constant 0 : index
    %c0_14 = arith.constant 0 : index
    %25 = vector.load %arg1[%c1, %c0_13, %c0_14] : memref<4x8x128xbf16, #tpu.memory_space<vmem>>, vector<1x8x128xbf16>
    %26 = vector.shape_cast %25 : vector<1x8x128xbf16> to vector<8x128xbf16>
    %27 = arith.extf %26 : vector<8x128xbf16> to vector<8x128xf32>
    %28 = arith.addf %24, %27 : vector<8x128xf32>
    %c1_15 = arith.constant 1 : index
    %c0_16 = arith.constant 0 : index
    %c0_17 = arith.constant 0 : index
    %29 = vector.load %arg2[%c1_15, %c0_16, %c0_17] : memref<4x8x128xbf16, #tpu.memory_space<vmem>>, vector<1x8x128xbf16>
    %30 = vector.shape_cast %29 : vector<1x8x128xbf16> to vector<8x128xbf16>
    %31 = arith.extf %30 : vector<8x128xbf16> to vector<8x128xf32>
    %32 = arith.addf %28, %31 : vector<8x128xf32>
    %cst_18 = arith.constant 5.000000e-01 : f32
    %33 = vector.broadcast %cst_18 : f32 to vector<8x128xf32>
    %34 = arith.mulf %23, %33 : vector<8x128xf32>
    %35 = arith.addf %34, %32 : vector<8x128xf32>
    %cst_19 = arith.constant 1.000000e+00 : f32
    %36 = vector.broadcast %cst_19 : f32 to vector<8x128xf32>
    %37 = arith.cmpf oge, %35, %36 : vector<8x128xf32>
    %38 = arith.extui %37 : vector<8x128xi1> to vector<8x128xi32>
    %39 = arith.sitofp %38 : vector<8x128xi32> to vector<8x128xf32>
    %40 = arith.truncf %39 : vector<8x128xf32> to vector<8x128xbf16>
    %c1_20 = arith.constant 1 : index
    %c0_21 = arith.constant 0 : index
    %c0_22 = arith.constant 0 : index
    %41 = vector.load %arg3[%c1_20, %c0_21, %c0_22] : memref<4x8x128xbf16, #tpu.memory_space<vmem>>, vector<1x8x128xbf16>
    %42 = vector.shape_cast %41 : vector<1x8x128xbf16> to vector<8x128xbf16>
    %43 = vector.shape_cast %40 : vector<8x128xbf16> to vector<1x8x128xbf16>
    tpu.vector_store %arg3[%c1_20, %c0_21, %c0_22], %43 {strides = array<i32>} : memref<4x8x128xbf16, #tpu.memory_space<vmem>>, vector<1x8x128xbf16>,
    %cst_23 = arith.constant 1.000000e+00 : f32
    %44 = vector.broadcast %cst_23 : f32 to vector<8x128xf32>
    %45 = arith.subf %44, %39 : vector<8x128xf32>
    %46 = arith.mulf %35, %45 : vector<8x128xf32>
    %cst_24 = arith.constant 0.000000e+00 : f32
    %47 = vector.broadcast %cst_24 : f32 to vector<8x128xf32>
    %c2 = arith.constant 2 : index
    %c0_25 = arith.constant 0 : index
    %c0_26 = arith.constant 0 : index
    %48 = vector.load %arg1[%c2, %c0_25, %c0_26] : memref<4x8x128xbf16, #tpu.memory_space<vmem>>, vector<1x8x128xbf16>
    %49 = vector.shape_cast %48 : vector<1x8x128xbf16> to vector<8x128xbf16>
    %50 = arith.extf %49 : vector<8x128xbf16> to vector<8x128xf32>
    %51 = arith.addf %47, %50 : vector<8x128xf32>
    %c2_27 = arith.constant 2 : index
    %c0_28 = arith.constant 0 : index
    %c0_29 = arith.constant 0 : index
    %52 = vector.load %arg2[%c2_27, %c0_28, %c0_29] : memref<4x8x128xbf16, #tpu.memory_space<vmem>>, vector<1x8x128xbf16>
    %53 = vector.shape_cast %52 : vector<1x8x128xbf16> to vector<8x128xbf16>
    %54 = arith.extf %53 : vector<8x128xbf16> to vector<8x128xf32>
    %55 = arith.addf %51, %54 : vector<8x128xf32>
    %cst_30 = arith.constant 5.000000e-01 : f32
    %56 = vector.broadcast %cst_30 : f32 to vector<8x128xf32>
    %57 = arith.mulf %46, %56 : vector<8x128xf32>
    %58 = arith.addf %57, %55 : vector<8x128xf32>
    %cst_31 = arith.constant 1.000000e+00 : f32
    %59 = vector.broadcast %cst_31 : f32 to vector<8x128xf32>
    %60 = arith.cmpf oge, %58, %59 : vector<8x128xf32>
    %61 = arith.extui %60 : vector<8x128xi1> to vector<8x128xi32>
    %62 = arith.sitofp %61 : vector<8x128xi32> to vector<8x128xf32>
    %63 = arith.truncf %62 : vector<8x128xf32> to vector<8x128xbf16>
    %c2_32 = arith.constant 2 : index
    %c0_33 = arith.constant 0 : index
    %c0_34 = arith.constant 0 : index
    %64 = vector.load %arg3[%c2_32, %c0_33, %c0_34] : memref<4x8x128xbf16, #tpu.memory_space<vmem>>, vector<1x8x128xbf16>
    %65 = vector.shape_cast %64 : vector<1x8x128xbf16> to vector<8x128xbf16>
    %66 = vector.shape_cast %63 : vector<8x128xbf16> to vector<1x8x128xbf16>
    tpu.vector_store %arg3[%c2_32, %c0_33, %c0_34], %66 {strides = array<i32>} : memref<4x8x128xbf16, #tpu.memory_space<vmem>>, vector<1x8x128xbf16>,
    %cst_35 = arith.constant 1.000000e+00 : f32
    %67 = vector.broadcast %cst_35 : f32 to vector<8x128xf32>
    %68 = arith.subf %67, %62 : vector<8x128xf32>
    %69 = arith.mulf %58, %68 : vector<8x128xf32>
    %cst_36 = arith.constant 0.000000e+00 : f32
    %70 = vector.broadcast %cst_36 : f32 to vector<8x128xf32>
    %c3 = arith.constant 3 : index
    %c0_37 = arith.constant 0 : index
    %c0_38 = arith.constant 0 : index
    %71 = vector.load %arg1[%c3, %c0_37, %c0_38] : memref<4x8x128xbf16, #tpu.memory_space<vmem>>, vector<1x8x128xbf16>
    %72 = vector.shape_cast %71 : vector<1x8x128xbf16> to vector<8x128xbf16>
    %73 = arith.extf %72 : vector<8x128xbf16> to vector<8x128xf32>
    %74 = arith.addf %70, %73 : vector<8x128xf32>
    %c3_39 = arith.constant 3 : index
    %c0_40 = arith.constant 0 : index
    %c0_41 = arith.constant 0 : index
    %75 = vector.load %arg2[%c3_39, %c0_40, %c0_41] : memref<4x8x128xbf16, #tpu.memory_space<vmem>>, vector<1x8x128xbf16>
    %76 = vector.shape_cast %75 : vector<1x8x128xbf16> to vector<8x128xbf16>
    %77 = arith.extf %76 : vector<8x128xbf16> to vector<8x128xf32>
    %78 = arith.addf %74, %77 : vector<8x128xf32>
    %cst_42 = arith.constant 5.000000e-01 : f32
    %79 = vector.broadcast %cst_42 : f32 to vector<8x128xf32>
    %80 = arith.mulf %69, %79 : vector<8x128xf32>
    %81 = arith.addf %80, %78 : vector<8x128xf32>
    %cst_43 = arith.constant 1.000000e+00 : f32
    %82 = vector.broadcast %cst_43 : f32 to vector<8x128xf32>
    %83 = arith.cmpf oge, %81, %82 : vector<8x128xf32>
    %84 = arith.extui %83 : vector<8x128xi1> to vector<8x128xi32>
    %85 = arith.sitofp %84 : vector<8x128xi32> to vector<8x128xf32>
    %86 = arith.truncf %85 : vector<8x128xf32> to vector<8x128xbf16>
    %c3_44 = arith.constant 3 : index
    %c0_45 = arith.constant 0 : index
    %c0_46 = arith.constant 0 : index
    %87 = vector.load %arg3[%c3_44, %c0_45, %c0_46] : memref<4x8x128xbf16, #tpu.memory_space<vmem>>, vector<1x8x128xbf16>
    %88 = vector.shape_cast %87 : vector<1x8x128xbf16> to vector<8x128xbf16>
    %89 = vector.shape_cast %86 : vector<8x128xbf16> to vector<1x8x128xbf16>
    tpu.vector_store %arg3[%c3_44, %c0_45, %c0_46], %89 {strides = array<i32>} : memref<4x8x128xbf16, #tpu.memory_space<vmem>>, vector<1x8x128xbf16>,
    return
  }
  func.func @transform_0(%arg0: i32) -> (i32, i32, i32) {
    %c0_i32 = arith.constant 0 : i32
    %c0_i32_0 = arith.constant 0 : i32
    %c0_i32_1 = arith.constant 0 : i32
    return %c0_i32, %arg0, %c0_i32_0 : i32, i32, i32
  }
  func.func @transform_1(%arg0: i32) -> (i32, i32, i32) {
    %c0_i32 = arith.constant 0 : i32
    %c0_i32_0 = arith.constant 0 : i32
    %c0_i32_1 = arith.constant 0 : i32
    return %c0_i32, %arg0, %c0_i32_0 : i32, i32, i32
  }
  func.func @transform_2(%arg0: i32) -> (i32, i32, i32) {
    %c0_i32 = arith.constant 0 : i32
    %c0_i32_0 = arith.constant 0 : i32
    %c0_i32_1 = arith.constant 0 : i32
    return %c0_i32, %arg0, %c0_i32_0 : i32, i32, i32
  }
}

module attributes {stable_mosaic.version = 11 : i64} {
  func.func @_lif_kernel(%arg0: i32, %arg1: memref<4x8x128xbf16, #tpu.memory_space<vmem>>, %arg2: memref<4x8x128xbf16, #tpu.memory_space<vmem>>, %arg3: memref<4x8x128xbf16, #tpu.memory_space<vmem>>, %arg4: memref<4x8x128xbf16, #tpu.memory_space<vmem>>) attributes {dimension_semantics = [#tpu.dimension_semantics<parallel>], iteration_bounds = array<i64: 1>, scalar_prefetch = 0 : i64, scratch_operands = 0 : i64, tpu.core_type = #tpu.core_type<tc>, window_params = [{transform_indices = @transform_0, window_bounds = array<i64: 4, 8, 128>}, {transform_indices = @transform_1, window_bounds = array<i64: 4, 8, 128>}, {transform_indices = @transform_2, window_bounds = array<i64: 4, 8, 128>}, {transform_indices = @transform_3, window_bounds = array<i64: 4, 8, 128>}]} {
    %cst = arith.constant 0.000000e+00 : f32
    %0 = vector.broadcast %cst : f32 to vector<8x128xf32>
    %cst_0 = arith.constant 0.000000e+00 : f32
    %1 = vector.broadcast %cst_0 : f32 to vector<8x128xf32>
    %c0 = arith.constant 0 : index
    %c0_1 = arith.constant 0 : index
    %c0_2 = arith.constant 0 : index
    %2 = vector.load %arg1[%c0, %c0_1, %c0_2] : memref<4x8x128xbf16, #tpu.memory_space<vmem>>, vector<1x8x128xbf16>
    %3 = vector.shape_cast %2 : vector<1x8x128xbf16> to vector<8x128xbf16>
    %4 = arith.extf %3 : vector<8x128xbf16> to vector<8x128xf32>
    %5 = arith.addf %1, %4 : vector<8x128xf32>
    %c0_3 = arith.constant 0 : index
    %c0_4 = arith.constant 0 : index
    %c0_5 = arith.constant 0 : index
    %6 = vector.load %arg2[%c0_3, %c0_4, %c0_5] : memref<4x8x128xbf16, #tpu.memory_space<vmem>>, vector<1x8x128xbf16>
    %7 = vector.shape_cast %6 : vector<1x8x128xbf16> to vector<8x128xbf16>
    %8 = arith.extf %7 : vector<8x128xbf16> to vector<8x128xf32>
    %9 = arith.addf %5, %8 : vector<8x128xf32>
    %cst_6 = arith.constant 5.000000e-01 : f32
    %10 = vector.broadcast %cst_6 : f32 to vector<8x128xf32>
    %11 = arith.mulf %0, %10 : vector<8x128xf32>
    %12 = arith.addf %11, %9 : vector<8x128xf32>
    %cst_7 = arith.constant 1.000000e+00 : f32
    %13 = vector.broadcast %cst_7 : f32 to vector<8x128xf32>
    %14 = arith.cmpf oge, %12, %13 : vector<8x128xf32>
    %15 = arith.extui %14 : vector<8x128xi1> to vector<8x128xi32>
    %16 = arith.sitofp %15 : vector<8x128xi32> to vector<8x128xf32>
    %17 = arith.truncf %16 : vector<8x128xf32> to vector<8x128xbf16>
    %c0_8 = arith.constant 0 : index
    %c0_9 = arith.constant 0 : index
    %c0_10 = arith.constant 0 : index
    %18 = vector.load %arg4[%c0_8, %c0_9, %c0_10] : memref<4x8x128xbf16, #tpu.memory_space<vmem>>, vector<1x8x128xbf16>
    %19 = vector.shape_cast %18 : vector<1x8x128xbf16> to vector<8x128xbf16>
    %20 = vector.shape_cast %17 : vector<8x128xbf16> to vector<1x8x128xbf16>
    tpu.vector_store %arg4[%c0_8, %c0_9, %c0_10], %20 {strides = array<i32>} : memref<4x8x128xbf16, #tpu.memory_space<vmem>>, vector<1x8x128xbf16>,
    %cst_11 = arith.constant 1.000000e+00 : f32
    %21 = vector.broadcast %cst_11 : f32 to vector<8x128xf32>
    %22 = arith.subf %21, %16 : vector<8x128xf32>
    %23 = arith.mulf %12, %22 : vector<8x128xf32>
    %cst_12 = arith.constant 0.000000e+00 : f32
    %24 = vector.broadcast %cst_12 : f32 to vector<8x128xf32>
    %c1 = arith.constant 1 : index
    %c0_13 = arith.constant 0 : index
    %c0_14 = arith.constant 0 : index
    %25 = vector.load %arg1[%c1, %c0_13, %c0_14] : memref<4x8x128xbf16, #tpu.memory_space<vmem>>, vector<1x8x128xbf16>
    %26 = vector.shape_cast %25 : vector<1x8x128xbf16> to vector<8x128xbf16>
    %27 = arith.extf %26 : vector<8x128xbf16> to vector<8x128xf32>
    %28 = arith.addf %24, %27 : vector<8x128xf32>
    %c1_15 = arith.constant 1 : index
    %c0_16 = arith.constant 0 : index
    %c0_17 = arith.constant 0 : index
    %29 = vector.load %arg2[%c1_15, %c0_16, %c0_17] : memref<4x8x128xbf16, #tpu.memory_space<vmem>>, vector<1x8x128xbf16>
    %30 = vector.shape_cast %29 : vector<1x8x128xbf16> to vector<8x128xbf16>
    %31 = arith.extf %30 : vector<8x128xbf16> to vector<8x128xf32>
    %32 = arith.addf %28, %31 : vector<8x128xf32>
    %c0_18 = arith.constant 0 : index
    %c0_19 = arith.constant 0 : index
    %c0_20 = arith.constant 0 : index
    %33 = vector.load %arg3[%c0_18, %c0_19, %c0_20] : memref<4x8x128xbf16, #tpu.memory_space<vmem>>, vector<1x8x128xbf16>
    %34 = vector.shape_cast %33 : vector<1x8x128xbf16> to vector<8x128xbf16>
    %35 = arith.extf %34 : vector<8x128xbf16> to vector<8x128xf32>
    %36 = arith.addf %32, %35 : vector<8x128xf32>
    %cst_21 = arith.constant 5.000000e-01 : f32
    %37 = vector.broadcast %cst_21 : f32 to vector<8x128xf32>
    %38 = arith.mulf %23, %37 : vector<8x128xf32>
    %39 = arith.addf %38, %36 : vector<8x128xf32>
    %cst_22 = arith.constant 1.000000e+00 : f32
    %40 = vector.broadcast %cst_22 : f32 to vector<8x128xf32>
    %41 = arith.cmpf oge, %39, %40 : vector<8x128xf32>
    %42 = arith.extui %41 : vector<8x128xi1> to vector<8x128xi32>
    %43 = arith.sitofp %42 : vector<8x128xi32> to vector<8x128xf32>
    %44 = arith.truncf %43 : vector<8x128xf32> to vector<8x128xbf16>
    %c1_23 = arith.constant 1 : index
    %c0_24 = arith.constant 0 : index
    %c0_25 = arith.constant 0 : index
    %45 = vector.load %arg4[%c1_23, %c0_24, %c0_25] : memref<4x8x128xbf16, #tpu.memory_space<vmem>>, vector<1x8x128xbf16>
    %46 = vector.shape_cast %45 : vector<1x8x128xbf16> to vector<8x128xbf16>
    %47 = vector.shape_cast %44 : vector<8x128xbf16> to vector<1x8x128xbf16>
    tpu.vector_store %arg4[%c1_23, %c0_24, %c0_25], %47 {strides = array<i32>} : memref<4x8x128xbf16, #tpu.memory_space<vmem>>, vector<1x8x128xbf16>,
    %cst_26 = arith.constant 1.000000e+00 : f32
    %48 = vector.broadcast %cst_26 : f32 to vector<8x128xf32>
    %49 = arith.subf %48, %43 : vector<8x128xf32>
    %50 = arith.mulf %39, %49 : vector<8x128xf32>
    %cst_27 = arith.constant 0.000000e+00 : f32
    %51 = vector.broadcast %cst_27 : f32 to vector<8x128xf32>
    %c2 = arith.constant 2 : index
    %c0_28 = arith.constant 0 : index
    %c0_29 = arith.constant 0 : index
    %52 = vector.load %arg1[%c2, %c0_28, %c0_29] : memref<4x8x128xbf16, #tpu.memory_space<vmem>>, vector<1x8x128xbf16>
    %53 = vector.shape_cast %52 : vector<1x8x128xbf16> to vector<8x128xbf16>
    %54 = arith.extf %53 : vector<8x128xbf16> to vector<8x128xf32>
    %55 = arith.addf %51, %54 : vector<8x128xf32>
    %c2_30 = arith.constant 2 : index
    %c0_31 = arith.constant 0 : index
    %c0_32 = arith.constant 0 : index
    %56 = vector.load %arg2[%c2_30, %c0_31, %c0_32] : memref<4x8x128xbf16, #tpu.memory_space<vmem>>, vector<1x8x128xbf16>
    %57 = vector.shape_cast %56 : vector<1x8x128xbf16> to vector<8x128xbf16>
    %58 = arith.extf %57 : vector<8x128xbf16> to vector<8x128xf32>
    %59 = arith.addf %55, %58 : vector<8x128xf32>
    %c1_33 = arith.constant 1 : index
    %c0_34 = arith.constant 0 : index
    %c0_35 = arith.constant 0 : index
    %60 = vector.load %arg3[%c1_33, %c0_34, %c0_35] : memref<4x8x128xbf16, #tpu.memory_space<vmem>>, vector<1x8x128xbf16>
    %61 = vector.shape_cast %60 : vector<1x8x128xbf16> to vector<8x128xbf16>
    %62 = arith.extf %61 : vector<8x128xbf16> to vector<8x128xf32>
    %63 = arith.addf %59, %62 : vector<8x128xf32>
    %cst_36 = arith.constant 5.000000e-01 : f32
    %64 = vector.broadcast %cst_36 : f32 to vector<8x128xf32>
    %65 = arith.mulf %50, %64 : vector<8x128xf32>
    %66 = arith.addf %65, %63 : vector<8x128xf32>
    %cst_37 = arith.constant 1.000000e+00 : f32
    %67 = vector.broadcast %cst_37 : f32 to vector<8x128xf32>
    %68 = arith.cmpf oge, %66, %67 : vector<8x128xf32>
    %69 = arith.extui %68 : vector<8x128xi1> to vector<8x128xi32>
    %70 = arith.sitofp %69 : vector<8x128xi32> to vector<8x128xf32>
    %71 = arith.truncf %70 : vector<8x128xf32> to vector<8x128xbf16>
    %c2_38 = arith.constant 2 : index
    %c0_39 = arith.constant 0 : index
    %c0_40 = arith.constant 0 : index
    %72 = vector.load %arg4[%c2_38, %c0_39, %c0_40] : memref<4x8x128xbf16, #tpu.memory_space<vmem>>, vector<1x8x128xbf16>
    %73 = vector.shape_cast %72 : vector<1x8x128xbf16> to vector<8x128xbf16>
    %74 = vector.shape_cast %71 : vector<8x128xbf16> to vector<1x8x128xbf16>
    tpu.vector_store %arg4[%c2_38, %c0_39, %c0_40], %74 {strides = array<i32>} : memref<4x8x128xbf16, #tpu.memory_space<vmem>>, vector<1x8x128xbf16>,
    %cst_41 = arith.constant 1.000000e+00 : f32
    %75 = vector.broadcast %cst_41 : f32 to vector<8x128xf32>
    %76 = arith.subf %75, %70 : vector<8x128xf32>
    %77 = arith.mulf %66, %76 : vector<8x128xf32>
    %cst_42 = arith.constant 0.000000e+00 : f32
    %78 = vector.broadcast %cst_42 : f32 to vector<8x128xf32>
    %c3 = arith.constant 3 : index
    %c0_43 = arith.constant 0 : index
    %c0_44 = arith.constant 0 : index
    %79 = vector.load %arg1[%c3, %c0_43, %c0_44] : memref<4x8x128xbf16, #tpu.memory_space<vmem>>, vector<1x8x128xbf16>
    %80 = vector.shape_cast %79 : vector<1x8x128xbf16> to vector<8x128xbf16>
    %81 = arith.extf %80 : vector<8x128xbf16> to vector<8x128xf32>
    %82 = arith.addf %78, %81 : vector<8x128xf32>
    %c3_45 = arith.constant 3 : index
    %c0_46 = arith.constant 0 : index
    %c0_47 = arith.constant 0 : index
    %83 = vector.load %arg2[%c3_45, %c0_46, %c0_47] : memref<4x8x128xbf16, #tpu.memory_space<vmem>>, vector<1x8x128xbf16>
    %84 = vector.shape_cast %83 : vector<1x8x128xbf16> to vector<8x128xbf16>
    %85 = arith.extf %84 : vector<8x128xbf16> to vector<8x128xf32>
    %86 = arith.addf %82, %85 : vector<8x128xf32>
    %c2_48 = arith.constant 2 : index
    %c0_49 = arith.constant 0 : index
    %c0_50 = arith.constant 0 : index
    %87 = vector.load %arg3[%c2_48, %c0_49, %c0_50] : memref<4x8x128xbf16, #tpu.memory_space<vmem>>, vector<1x8x128xbf16>
    %88 = vector.shape_cast %87 : vector<1x8x128xbf16> to vector<8x128xbf16>
    %89 = arith.extf %88 : vector<8x128xbf16> to vector<8x128xf32>
    %90 = arith.addf %86, %89 : vector<8x128xf32>
    %cst_51 = arith.constant 5.000000e-01 : f32
    %91 = vector.broadcast %cst_51 : f32 to vector<8x128xf32>
    %92 = arith.mulf %77, %91 : vector<8x128xf32>
    %93 = arith.addf %92, %90 : vector<8x128xf32>
    %cst_52 = arith.constant 1.000000e+00 : f32
    %94 = vector.broadcast %cst_52 : f32 to vector<8x128xf32>
    %95 = arith.cmpf oge, %93, %94 : vector<8x128xf32>
    %96 = arith.extui %95 : vector<8x128xi1> to vector<8x128xi32>
    %97 = arith.sitofp %96 : vector<8x128xi32> to vector<8x128xf32>
    %98 = arith.truncf %97 : vector<8x128xf32> to vector<8x128xbf16>
    %c3_53 = arith.constant 3 : index
    %c0_54 = arith.constant 0 : index
    %c0_55 = arith.constant 0 : index
    %99 = vector.load %arg4[%c3_53, %c0_54, %c0_55] : memref<4x8x128xbf16, #tpu.memory_space<vmem>>, vector<1x8x128xbf16>
    %100 = vector.shape_cast %99 : vector<1x8x128xbf16> to vector<8x128xbf16>
    %101 = vector.shape_cast %98 : vector<8x128xbf16> to vector<1x8x128xbf16>
    tpu.vector_store %arg4[%c3_53, %c0_54, %c0_55], %101 {strides = array<i32>} : memref<4x8x128xbf16, #tpu.memory_space<vmem>>, vector<1x8x128xbf16>,
    return
  }
  func.func @transform_0(%arg0: i32) -> (i32, i32, i32) {
    %c0_i32 = arith.constant 0 : i32
    %c0_i32_0 = arith.constant 0 : i32
    %c0_i32_1 = arith.constant 0 : i32
    return %c0_i32, %arg0, %c0_i32_0 : i32, i32, i32
  }
  func.func @transform_1(%arg0: i32) -> (i32, i32, i32) {
    %c0_i32 = arith.constant 0 : i32
    %c0_i32_0 = arith.constant 0 : i32
    %c0_i32_1 = arith.constant 0 : i32
    return %c0_i32, %arg0, %c0_i32_0 : i32, i32, i32
  }
  func.func @transform_2(%arg0: i32) -> (i32, i32, i32) {
    %c0_i32 = arith.constant 0 : i32
    %c0_i32_0 = arith.constant 0 : i32
    %c0_i32_1 = arith.constant 0 : i32
    return %c0_i32, %arg0, %c0_i32_0 : i32, i32, i32
  }
  func.func @transform_3(%arg0: i32) -> (i32, i32, i32) {
    %c0_i32 = arith.constant 0 : i32
    %c0_i32_0 = arith.constant 0 : i32
    %c0_i32_1 = arith.constant 0 : i32
    return %c0_i32, %arg0, %c0_i32_0 : i32, i32, i32
  }
}

</mosaic_0001>

<bundles_post_ra>
// kernel: _lambda_.8
= control target key start
LH: loop header
LB: loop body
LE: loop exit
PB: predicated region body
PF: predicated region fallthrough
CT: control target
= control target key end

     0   :  { %s418_s6 = smov 0   ;;  %s420_s7 = smov 0   ;;  %s488_s0 = inlined_call_operand.vmem [shape: bf16[4,16,128], index: 0, kind: input, shape index: {}]   ;;  %s489_s1 = inlined_call_operand.vmem [shape: bf16[4,16,128], index: 1, kind: output, shape index: {}]  }
   0x1   :  { %s422_s8 = smov 0  }
   0x2 LB: > { %s335_s9 = sadd.s32 4294967295, %s405_s8   ;;  %s435_s10 = sadd.s32 1, %s405_s8   ;;  %s405_s8 = sphi %s422_s8, %s493_s8   ;;  %s401_s7 = sphi %s420_s7, %s492_s7   ;;  %s397_s6 = sphi %s418_s6, %s491_s6  }
   0x3   : > { %s15_s11 = ssub.s32 %s405_s8, %s435_s10  ;;  %s18_s12 = sadd.s32 1, %s401_s7 }
   0x4   : > { %p16_p0 = scmp.eq.s32.totalorder %s15_s11, 0  ;;  %p25_p1 = scmp.ne.s32.totalorder %s401_s7, %s397_s6 }
   0x5   : > { %p26_p2 = scmp.eq.s32.totalorder %s405_s8, 0  ;;  %p55_p3 = scmp.eq.s32.totalorder %s335_s9, 1 }
   0x6   : > { %s446_s13 = scalar_select %p16_p0, %s401_s7, %s18_s12  }
   0x7   : > { %p27_p4 = por %p26_p2, %p25_p1  ;;  %p448_p5 = por %p55_p3, %p25_p1 }
   0x8   : > { %p338_p6 = scmp.ge.s32.totalorder %s405_s8, 2 }
   0xa   : > { %77 = sbr.rel (%p338_p6) target bundleno = 23 (0x17), region = 16 }
   0xf   : > { %80 = sbr.rel (!%p27_p4) target bundleno = 23 (0x17), region = 20  ;;  %s82_s15 = sand.u32 (%p27_p4), 1, %s401_s7  }
  0x10   : > { %s340_s16 = sshll.u32 (%p27_p4), %s405_s8, 2  ;;  %s339_s17 = sshll.u32 (%p27_p4), %s82_s15, 4 }
  0x11   : > { %s86_s20 = scalar_lea.vmem (%p27_p4), %s488_s0, %s340_s16  ;;  %s84_s21 = scalar_lea.vmem (%p27_p4), [#allocation2], %s339_s17 }
  0x12   : > { %v103_v0 = vld [vmem:[%s86_s20] sm:$0xf] (%p27_p4)  ;;  %v105_v1 = vld [vmem:[%s86_s20 + $0x8] sm:$0xf] (%p27_p4)  ;;  %v107_v2 = vld [vmem:[%s86_s20 + $0x10] sm:$0xf] (%p27_p4) }
  0x13   : > { %104 = vst [vmem:[%s84_s21] sm:$0xf] (%p27_p4), %v103_v0  ;;  %v109_v3 = vld [vmem:[%s86_s20 + $0x18] sm:$0xf] (%p27_p4) }
  0x14   : > { %106 = vst [vmem:[%s84_s21 + $0x4] sm:$0xf] %v105_v1 }
  0x15   : > { %108 = vst [vmem:[%s84_s21 + $0x8] sm:$0xf] %v107_v2 }
  0x16   : > { %110 = vst [vmem:[%s84_s21 + $0xc] sm:$0xf] %v109_v3 }
  0x17 PF: > { %p341_p7 = scmp.ge.s32.totalorder %s405_s8, 1  ;;  %p141_p8 = scmp.lt.s32.totalorder %s405_s8, 3 }
  0x19   : > { %p142_p9 = pnand %p341_p7, %p141_p8 }
  0x1a   : > { %s148_s22 = sand.u32 (!%p142_p9), 1, %s397_s6  }
  0x1b   : > { %145 = sbr.rel (%p142_p9) target bundleno = 78 (0x4e), region = 61  ;;  %s342_s23 = sshll.u32 (!%p142_p9), %s148_s22, 4 }
  0x1c   : > { %s150_s24 = scalar_lea.vmem (!%p142_p9), [#allocation2], %s342_s23  ;;  %s461_s25 = scalar_lea.vmem (!%p142_p9), [#allocation3], %s342_s23 }
  0x20   : > { %v166_v4 = vld [vmem:[%s150_s24] sm:$0xff]   ;;  %v407_v6 = vmov 0.0   ;;  %v348_v15 = vld [vmem:[%s150_s24 + $0x8] sm:$0xff]   ;;  %s355_s26 = sshll.u32 (%p448_p5), %s335_s9, 2 }
  0x21   : > { %v167_v5 = vunpack.c.l.bf16 %v166_v4  ;;  %v179_v11 = vunpack.c.h.bf16 %v166_v4  ;;  %v193_v19 = vunpack.c.l.bf16 %v348_v15  ;;  %v207_v26 = vunpack.c.h.bf16 %v348_v15  ;;  %s225_s29 = scalar_lea.vmem (%p448_p5), %s489_s1, %s355_s26 }
  0x23   : > { %vm170_vm0 = vcmp.ge.f32.partialorder %v167_v5, 1.0 }
  0x24   : > { %v344_v7 = vsel %vm170_vm0, 1.0, %v407_v6 }
  0x25   : > { %v173_v8 = vpack.c.bf16 %v344_v7, %v344_v7  ;;  %v175_v9 = vsub.f32 1.0, %v344_v7 }
  0x27   : > { %174 = vst [vmem:[%s461_s25] sm:$0xf] %v173_v8  ;;  %v176_v10 = vmul.f32 %v175_v9, %v167_v5 }
  0x29   : > { %v181_v12 = vmul.f32 0.5, %v176_v10 }
  0x2b   : > { %v182_v13 = vadd.f32 %v181_v12, %v179_v11 }
  0x2d   : > { %vm183_vm1 = vcmp.ge.f32.partialorder %v182_v13, 1.0 }
  0x2e   : > { %v346_v14 = vsel %vm183_vm1, 1.0, %v407_v6  ;;  %v242_v31 = vld [vmem:[%s461_s25] sm:$0xf] (%p448_p5) }
  0x2f   : > { %v186_v16 = vpack.c.bf16 %v346_v14, %v346_v14  ;;  %v189_v17 = vsub.f32 1.0, %v346_v14  ;;  %243 = vst [vmem:[%s225_s29] sm:$0xf] (%p448_p5), %v242_v31 }
  0x31   : > { %347 = vst [vmem:[%s461_s25 + $0x4] sm:$0xf] %v186_v16  ;;  %v190_v18 = vmul.f32 %v189_v17, %v182_v13 }
  0x33   : > { %v195_v20 = vmul.f32 0.5, %v190_v18 }
  0x35   : > { %v196_v21 = vadd.f32 %v195_v20, %v193_v19 }
  0x37   : > { %vm197_vm2 = vcmp.ge.f32.partialorder %v196_v21, 1.0 }
  0x38   : > { %v349_v22 = vsel %vm197_vm2, 1.0, %v407_v6  ;;  %v244_v32 = vld [vmem:[%s461_s25 + $0x4] sm:$0xf] (%p448_p5) }
  0x39   : > { %v200_v23 = vpack.c.bf16 %v349_v22, %v349_v22  ;;  %v203_v24 = vsub.f32 1.0, %v349_v22  ;;  %245 = vst [vmem:[%s225_s29 + $0x8] sm:$0xf] (%p448_p5), %v244_v32 }
  0x3b   : > { %350 = vst [vmem:[%s461_s25 + $0x8] sm:$0xf] %v200_v23  ;;  %v204_v25 = vmul.f32 %v203_v24, %v196_v21 }
  0x3d   : > { %v209_v27 = vmul.f32 0.5, %v204_v25 }
  0x3f   : > { %v210_v28 = vadd.f32 %v209_v27, %v207_v26 }
  0x41   : > { %vm211_vm3 = vcmp.ge.f32.partialorder %v210_v28, 1.0  ;;  %223 = sbr.rel (!%p448_p5) target bundleno = 78 (0x4e), region = 69 }
  0x42   : > { %v352_v29 = vsel %vm211_vm3, 1.0, %v407_v6  ;;  %v246_v33 = vld [vmem:[%s461_s25 + $0x8] sm:$0xf] (%p448_p5) }
  0x43   : > { %v214_v30 = vpack.c.bf16 %v352_v29, %v352_v29  ;;  %247 = vst [vmem:[%s225_s29 + $0x10] sm:$0xf] (%p448_p5), %v246_v33 }
  0x45   : > { %353 = vst [vmem:[%s461_s25 + $0xc] sm:$0xf] %v214_v30 }
  0x4c   : > { %v248_v34 = vld [vmem:[%s461_s25 + $0xc] sm:$0xf] }
  0x4d   : > { %249 = vst [vmem:[%s225_s29 + $0x18] sm:$0xf] %v248_v34 }
  0x4e PF: > { %p8_p10 = scmp.ge.s32.totalorder %s435_s10, 4   ;;  %s491_s6 = smov %s401_s7 }
  0x4f   : > { %s492_s7 = smov %s446_s13  ;;  %s493_s8 = smov %s435_s10 }
  0x50   :  { %10 = sbr.rel (!%p8_p10) target bundleno = 2 (0x2), region = 147 }

// kernel: _lambda_.10
= control target key start
LH: loop header
LB: loop body
LE: loop exit
PB: predicated region body
PF: predicated region fallthrough
CT: control target
= control target key end

     0   :  { %v74_v2 = vmov 0.0   ;;  %s103_s0 = inlined_call_operand.vmem [shape: bf16[4,8,128], index: 0, kind: input, shape index: {}]   ;;  %s104_s1 = inlined_call_operand.vmem [shape: bf16[4,8,128], index: 1, kind: output, shape index: {}]  }
   0x1   :  { %v8_v0 = vld [vmem:[%s103_s0] sm:$0xff]   ;;  %v67_v11 = vld [vmem:[%s103_s0 + $0x8] sm:$0xff]  }
   0x2   :  { %v9_v1 = vunpack.c.l.bf16 %v8_v0  ;;  %v21_v7 = vunpack.c.h.bf16 %v8_v0  ;;  %v35_v15 = vunpack.c.l.bf16 %v67_v11  ;;  %v49_v22 = vunpack.c.h.bf16 %v67_v11 }
   0x4   :  { %vm12_vm0 = vcmp.ge.f32.partialorder %v9_v1, 1.0 }
   0x5   :  { %v63_v3 = vsel %vm12_vm0, 1.0, %v74_v2 }
   0x6   :  { %v15_v4 = vpack.c.bf16 %v63_v3, %v63_v3  ;;  %v17_v5 = vsub.f32 1.0, %v63_v3 }
   0x8   :  { %16 = vst [vmem:[%s104_s1] sm:$0xf] %v15_v4  ;;  %v18_v6 = vmul.f32 %v17_v5, %v9_v1 }
   0xa   :  { %v23_v8 = vmul.f32 0.5, %v18_v6 }
   0xc   :  { %v24_v9 = vadd.f32 %v23_v8, %v21_v7 }
   0xe   :  { %vm25_vm1 = vcmp.ge.f32.partialorder %v24_v9, 1.0 }
   0xf   :  { %v65_v10 = vsel %vm25_vm1, 1.0, %v74_v2 }
  0x10   :  { %v28_v12 = vpack.c.bf16 %v65_v10, %v65_v10  ;;  %v31_v13 = vsub.f32 1.0, %v65_v10 }
  0x12   :  { %66 = vst [vmem:[%s104_s1 + $0x4] sm:$0xf] %v28_v12  ;;  %v32_v14 = vmul.f32 %v31_v13, %v24_v9 }
  0x14   :  { %v37_v16 = vmul.f32 0.5, %v32_v14 }
  0x16   :  { %v38_v17 = vadd.f32 %v37_v16, %v35_v15 }
  0x18   :  { %vm39_vm2 = vcmp.ge.f32.partialorder %v38_v17, 1.0 }
  0x19   :  { %v68_v18 = vsel %vm39_vm2, 1.0, %v74_v2 }
  0x1a   :  { %v42_v19 = vpack.c.bf16 %v68_v18, %v68_v18  ;;  %v45_v20 = vsub.f32 1.0, %v68_v18 }
  0x1c   :  { %69 = vst [vmem:[%s104_s1 + $0x8] sm:$0xf] %v42_v19  ;;  %v46_v21 = vmul.f32 %v45_v20, %v38_v17 }
  0x1e   :  { %v51_v23 = vmul.f32 0.5, %v46_v21 }
  0x20   :  { %v52_v24 = vadd.f32 %v51_v23, %v49_v22 }
  0x22   :  { %vm53_vm3 = vcmp.ge.f32.partialorder %v52_v24, 1.0 }
  0x23   :  { %v71_v25 = vsel %vm53_vm3, 1.0, %v74_v2 }
  0x24   :  { %v56_v26 = vpack.c.bf16 %v71_v25, %v71_v25 }
  0x26   :  { %72 = vst [vmem:[%s104_s1 + $0xc] sm:$0xf] %v56_v26 }

// kernel: _lambda_.9
= control target key start
LH: loop header
LB: loop body
LE: loop exit
PB: predicated region body
PF: predicated region fallthrough
CT: control target
= control target key end

     0   :  { %s3329_s24 = smov 0   ;;  %s5397_s0 = inlined_call_operand.vmem [shape: bf16[8,9,9,4], index: 0, kind: input, shape index: {}]   ;;  %s5398_s1 = inlined_call_operand.vmem [shape: bf16[8,9,9,4], index: 1, kind: input, shape index: {}]   ;;  %s5399_s2 = inlined_call_operand.vmem [shape: bf16[8,9,9,4], index: 2, kind: input, shape index: {}]   ;;  %s5400_s3 = inlined_call_operand.vmem [shape: bf16[8,9,9,4], index: 3, kind: input, shape index: {}]   ;;  %s5401_s4 = inlined_call_operand.vmem [shape: f32[9,4], index: 4, kind: input, shape index: {}]   ;;  %s5402_s5 = inlined_call_operand.vmem [shape: f32[4,8], index: 5, kind: input, shape index: {}]   ;;  %s5403_s6 = inlined_call_operand.vmem [shape: f32[1,8], index: 6, kind: input, shape index: {}]   ;;  %s5404_s7 = inlined_call_operand.vmem [shape: bf16[8,8,8,8], index: 7, kind: output, shape index: {}]  }
   0x1 LB: > { %s3122_s25 = sadd.s32 4294967295, %s3287_s24   ;;  %p3126_p0 = scmp.ge.s32.totalorder %s3287_s24, 1  ;;  %s3287_s24 = sphi %s3329_s24, %s17_s24  }
   0x2   : > { %p275_p1 = scmp.lt.s32.totalorder %s3287_s24, 3 }
   0x4   : > { %p276_p2 = pnand %p3126_p0, %p275_p1 }
   0x6   : > { %279 = sbr.rel (%p276_p2) target bundleno = 730 (0x2da), region = 48 }
   0xb   : > { %s3127_s26 = sshll.u32 %s3122_s25, 2  ;;  %v3343_v0 = vld [vmem:[%s5401_s4] ss:$0 sm:$0xff]  ;;  %v3348_v1 = vld [vmem:[%s5401_s4 + $0x1] ss:$0 sm:$0xff]  ;;  %vm784_vm0 = vcmask 1046528   ;;  %v2175_v4 = vlaneseq }
   0xc   : > { %p328_p3 = scmp.lt.s32.totalorder %s3127_s26, 7  ;;  %v3353_v2 = vld [vmem:[%s5401_s4 + $0x2] ss:$0 sm:$0xff]  ;;  %v3358_v3 = vld [vmem:[%s5401_s4 + $0x3] ss:$0 sm:$0xff]  ;;  %vm2215_vm2 = vcmask 31744  }
   0xd   : > { %v3373_v5 = vld [vmem:[%s5401_s4 + $0x5] ss:$0 sm:$0xff]  ;;  %v3394_v17 = vld [vmem:[%s5401_s4 + $0x4] ss:$0 sm:$0xff]  ;;  %v3397_v20 = vand.u32 127, %v2175_v4  ;;  %vm2995_vm6 = vcmask 60416  }
   0xe   : > { %s5467_s26 = smov (!%p328_p3, %s3127_s26), 7  ;;  %v3407_v26 = vld [vmem:[%s5401_s4 + $0x8] ss:$0 sm:$0xff]  ;;  %v3415_v30 = vld [vmem:[%s5401_s4 + $0x6] ss:$0 sm:$0xff] }
   0xf   : > { %s3237_s27 = smul.u32 72, %s5467_s26  ;;  %v3430_v51 = vld [vmem:[%s5401_s4 + $0x7] ss:$0 sm:$0xff]  ;;  %vm2182_vm1 = vcmp.eq.s32.totalorder %v3397_v20, 0  ;;  %vm2378_vm3 = vcmp.eq.s32.totalorder %v3397_v20, 1  ;;  %vm2573_vm4 = vcmp.eq.s32.totalorder %v3397_v20, 2 }
  0x10   : > { %vm2768_vm5 = vcmp.eq.s32.totalorder %v3397_v20, 3  ;;  %s3236_s11 = sshll.u32 %s5467_s26, 5 }
  0x11   : > { %s3363_s15 = scalar_lea.vmem %s5397_s0, %s3237_s27  ;;  %s3368_s18 = scalar_lea.vmem %s5398_s1, %s3237_s27 }
  0x12   : > { %s3378_s23 = scalar_lea.vmem %s5399_s2, %s3237_s27  ;;  %s3383_s29 = scalar_lea.vmem %s5400_s3, %s3237_s27  ;;  %v366_v6 = vld [vmem:[%s3363_s15 + $0x20] sm:$0xf]  ;;  %v594_v8 = vld [vmem:[%s3363_s15 + $0x24] sm:$0x1]  ;;  %v3142_v19 = vld [vmem:[%s3363_s15 + $0x28] sm:$0xf] }
  0x13   : > { %v464_v7 = vld [vmem:[%s3368_s18 + $0x20] sm:$0xf]  ;;  %v399_v9 = vunpack.c.l.bf16 %v366_v6  ;;  %v627_v11 = vunpack.c.l.bf16 %v594_v8  ;;  %v1209_v14 = vld [vmem:[%s3378_s23 + $0x24] sm:$0x1]  ;;  %v3206_v25 = vld [vmem:[%s3363_s15 + $0x2c] sm:$0x1]  ;;  %v1597_v36 = vunpack.c.l.bf16 %v3142_v19  ;;  %s5244_s14 = scalar_lea.vmem %s5404_s7, %s3236_s11 }
  0x14   : > { %v497_v10 = vunpack.c.l.bf16 %v464_v7  ;;  %v949_v12 = vld [vmem:[%s3378_s23 + $0x20] sm:$0xf]  ;;  %v1242_v18 = vunpack.c.l.bf16 %v1209_v14  ;;  %v3174_v31 = vld [vmem:[%s3368_s18 + $0x28] sm:$0xf]  ;;  %v364_v32 = vld [vmem:[%s3363_s15 + $0x10] sm:$0xf]  ;;  %v1858_v40 = vunpack.c.l.bf16 %v3206_v25 }
  0x15   : > { %v1079_v13 = vld [vmem:[%s3383_s29 + $0x20] sm:$0xf]  ;;  %v982_v15 = vunpack.c.l.bf16 %v949_v12  ;;  %v432_v21 = vmul.f32 %v3343_v0, %v399_v9  ;;  %v664_v23 = vmul.f32 %v3353_v2, %v399_v9  ;;  %v665_v24 = vmul.f32 %v3353_v2, %v627_v11  ;;  %v462_v41 = vld [vmem:[%s3368_s18 + $0x10] sm:$0xf]  ;;  %v592_v42 = vld [vmem:[%s3363_s15 + $0x14] sm:$0x1] }
  0x16   : > { %v1112_v16 = vunpack.c.l.bf16 %v1079_v13  ;;  %v530_v22 = vmul.f32 %v3348_v1, %v497_v10  ;;  %v1280_v29 = vmul.f32 %v3373_v5, %v1242_v18  ;;  %v1728_v44 = vunpack.c.l.bf16 %v3174_v31  ;;  %v947_v47 = vld [vmem:[%s3378_s23 + $0x10] sm:$0xf]  ;;  %v1207_v54 = vld [vmem:[%s3378_s23 + $0x14] sm:$0x1]  ;;  %v3140_v8 = vld [vmem:[%s3363_s15 + $0x18] sm:$0xf] }
  0x17   : > { %v1015_v27 = vmul.f32 %v3358_v3, %v982_v15  ;;  %v1279_v28 = vmul.f32 %v3373_v5, %v982_v15  ;;  %v797_v34 = vrot.slane %v664_v23, 1  ;;  %v798_v35 = vrot.slane %v665_v24, 1  ;;  %v1077_v53 = vld [vmem:[%s3383_s29 + $0x10] sm:$0xf]  ;;  %v3204_v13 = vld [vmem:[%s3363_s15 + $0x1c] sm:$0x1] }
  0x18   : > { %v562_v33 = vadd.f32 %v530_v22, %v432_v21  ;;  %v1145_v37 = vmul.f32 %v3394_v17, %v1112_v16  ;;  %v1412_v39 = vrot.slane %v1280_v29, 1  ;;  %v1895_v45 = vmul.f32 %v3407_v26, %v1597_v36  ;;  %v362_v14 = vld [vmem:[%s3363_s15] sm:$0xf]  ;;  %v3172_v21 = vld [vmem:[%s3368_s18 + $0x18] sm:$0xf] }
  0x19   : > { %v1411_v38 = vrot.slane %v1279_v28, 1  ;;  %v799_v43 = vsel %vm784_vm0, %v797_v34, %v798_v35  ;;  %v397_v46 = vunpack.c.l.bf16 %v364_v32  ;;  %v1630_v50 = vmul.f32 %v3415_v30, %v1597_v36  ;;  %v460_v32 = vld [vmem:[%s3368_s18] sm:$0xf] }
  0x1a   : > { %v917_v48 = vadd.f32 %v799_v43, %v562_v33  ;;  %v1896_v52 = vmul.f32 %v3407_v26, %v1858_v40  ;;  %v2027_v55 = vrot.slane %v1895_v45, 1  ;;  %v495_v57 = vunpack.c.l.bf16 %v462_v41 }
  0x1b   : > { %v1413_v49 = vsel %vm784_vm0, %v1411_v38, %v1412_v39  ;;  %v430_v56 = vmul.f32 %v3343_v0, %v397_v46  ;;  %v625_v58 = vunpack.c.l.bf16 %v592_v42  ;;  %v660_v61 = vmul.f32 %v3353_v2, %v397_v46  ;;  %v945_v42 = vld [vmem:[%s3378_s23] sm:$0xf] }
  0x1c   : > { %v1047_v59 = vadd.f32 %v1015_v27, %v917_v48  ;;  %v2028_v60 = vrot.slane %v1896_v52, 1  ;;  %v980_v62 = vunpack.c.l.bf16 %v947_v47  ;;  %v528_v63 = vmul.f32 %v3348_v1, %v495_v57  ;;  %v1075_v47 = vld [vmem:[%s3383_s29] sm:$0xf]  ;;  %v1205_v57 = vld [vmem:[%s3378_s23 + $0x4] sm:$0x1] }
  0x1d   : > { %v661_v4 = vmul.f32 %v3353_v2, %v625_v58  ;;  %v1110_v6 = vunpack.c.l.bf16 %v1077_v53  ;;  %v1240_v7 = vunpack.c.l.bf16 %v1207_v54  ;;  %v1761_v10 = vmul.f32 %v3430_v51, %v1728_v44 }
  0x1e   : > { %v1177_v9 = vadd.f32 %v1145_v37, %v1047_v59  ;;  %v2029_v11 = vsel %vm784_vm0, %v2027_v55, %v2028_v60  ;;  %v791_v12 = vrot.slane %v660_v61, 1  ;;  %v560_v15 = vadd.f32 %v528_v63, %v430_v56  ;;  %v590_v37 = vld [vmem:[%s3363_s15 + $0x4] sm:$0x1] }
  0x1f   : > { %v792_v16 = vrot.slane %v661_v4, 1  ;;  %v1013_v18 = vmul.f32 %v3358_v3, %v980_v62  ;;  %v1275_v19 = vmul.f32 %v3373_v5, %v980_v62  ;;  %v1143_v23 = vmul.f32 %v3394_v17, %v1110_v6  ;;  %v3138_v62 = vld [vmem:[%s3363_s15 + $0x8] sm:$0xf] }
  0x20   : > { %v1531_v22 = vadd.f32 %v1413_v49, %v1177_v9  ;;  %v1276_v24 = vmul.f32 %v3373_v5, %v1240_v7  ;;  %v1595_v25 = vunpack.c.l.bf16 %v3140_v8  ;;  %v1856_v29 = vunpack.c.l.bf16 %v3204_v13  ;;  %v3202_v8 = vld [vmem:[%s3363_s15 + $0xc] sm:$0x1]  ;;  %v367_v9 = vld [vmem:[%s3363_s15 + $0x28] sm:$0xf] }
  0x21   : > { %v793_v27 = vsel %vm784_vm0, %v791_v12, %v792_v16  ;;  %v1405_v28 = vrot.slane %v1275_v19, 1  ;;  %v395_v31 = vunpack.c.l.bf16 %v362_v14  ;;  %v1726_v36 = vunpack.c.l.bf16 %v3172_v21  ;;  %v3170_v14 = vld [vmem:[%s3368_s18 + $0x8] sm:$0xf] }
  0x22   : > { %v1662_v33 = vadd.f32 %v1630_v50, %v1531_v22  ;;  %v915_v34 = vadd.f32 %v793_v27, %v560_v15  ;;  %v1406_v35 = vrot.slane %v1276_v24, 1  ;;  %v1628_v38 = vmul.f32 %v3415_v30, %v1595_v25 }
  0x23   : > { %v1891_v39 = vmul.f32 %v3407_v26, %v1595_v25  ;;  %v1892_v40 = vmul.f32 %v3407_v26, %v1856_v29  ;;  %v428_v41 = vmul.f32 %v3343_v0, %v395_v31  ;;  %v493_v46 = vunpack.c.l.bf16 %v460_v32  ;;  %v465_v25 = vld [vmem:[%s3368_s18 + $0x28] sm:$0xf]  ;;  %v595_v32 = vld [vmem:[%s3363_s15 + $0x2c] sm:$0x1] }
  0x24   : > { %v1793_v43 = vadd.f32 %v1761_v10, %v1662_v33  ;;  %v1045_v44 = vadd.f32 %v1013_v18, %v915_v34  ;;  %v1407_v45 = vsel %vm784_vm0, %v1405_v28, %v1406_v35  ;;  %v623_v50 = vunpack.c.l.bf16 %v590_v37 }
  0x25   : > { %v2021_v48 = vrot.slane %v1891_v39, 1  ;;  %v2022_v49 = vrot.slane %v1892_v40, 1  ;;  %v656_v52 = vmul.f32 %v3353_v2, %v395_v31  ;;  %v526_v55 = vmul.f32 %v3348_v1, %v493_v46  ;;  %v1080_v46 = vld [vmem:[%s3383_s29 + $0x28] sm:$0xf] }
  0x26   : > { %v3461_v53 = vadd.f32 %v2029_v11, %v1793_v43  ;;  %v1175_v54 = vadd.f32 %v1143_v23, %v1045_v44  ;;  %v978_v56 = vunpack.c.l.bf16 %v945_v42  ;;  %v1759_v58 = vmul.f32 %v3430_v51, %v1726_v36 }
  0x27   : > { %v657_v59 = vmul.f32 %v3353_v2, %v623_v50  ;;  %v785_v60 = vrot.slane %v656_v52, 1  ;;  %v1108_v61 = vunpack.c.l.bf16 %v1075_v47  ;;  %v2023_v6 = vsel %vm784_vm0, %v2021_v48, %v2022_v49  ;;  %v1210_v52 = vld [vmem:[%s3378_s23 + $0x2c] sm:$0x1] }
  0x28   : > { %v2187_v63 = vsel %vm2182_vm1, %v3461_v53, 0.0  ;;  %v1529_v4 = vadd.f32 %v1407_v45, %v1175_v54  ;;  %v558_v7 = vadd.f32 %v526_v55, %v428_v41  ;;  %v1011_v12 = vmul.f32 %v3358_v3, %v978_v56  ;;  %v950_v41 = vld [vmem:[%s3378_s23 + $0x28] sm:$0xf] }
  0x29   : > { %v2228_v10 = vsel %vm2215_vm2, %v2187_v63, 0.0  ;;  %v786_v11 = vrot.slane %v657_v59, 1  ;;  %v1238_v13 = vunpack.c.l.bf16 %v1205_v57  ;;  %v1141_v16 = vmul.f32 %v3394_v17, %v1108_v61  ;;  %v3207_v63 = vld [vmem:[%s3363_s15 + $0x34] sm:$0x1] }
  0x2a   : > { %2229 = vadd.xlane.f32.xlu2 %v2228_v10  ;;  %v1660_v15 = vadd.f32 %v1628_v38, %v1529_v4  ;;  %v1271_v18 = vmul.f32 %v3373_v5, %v978_v56  ;;  %v1593_v19 = vunpack.c.l.bf16 %v3138_v62  ;;  %v1854_v23 = vunpack.c.l.bf16 %v3202_v8 }
  0x2b   : > { %v787_v21 = vsel %vm784_vm0, %v785_v60, %v786_v11  ;;  %v1272_v22 = vmul.f32 %v3373_v5, %v1238_v13  ;;  %v400_v24 = vunpack.c.l.bf16 %v367_v9  ;;  %v1724_v31 = vunpack.c.l.bf16 %v3170_v14  ;;  %v3175_v9 = vld [vmem:[%s3368_s18 + $0x30] sm:$0xf]  ;;  %v365_v14 = vld [vmem:[%s3363_s15 + $0x18] sm:$0xf] }
  0x2c   : > { %v1791_v27 = vadd.f32 %v1759_v58, %v1660_v15  ;;  %v913_v28 = vadd.f32 %v787_v21, %v558_v7  ;;  %v1399_v29 = vrot.slane %v1271_v18, 1  ;;  %v1626_v34 = vmul.f32 %v3415_v30, %v1593_v19  ;;  %v3143_v58 = vld [vmem:[%s3363_s15 + $0x30] sm:$0xf]  ;;  %v463_v21 = vld [vmem:[%s3368_s18 + $0x18] sm:$0xf] }
  0x2d   : > { %v1400_v33 = vrot.slane %v1272_v22, 1  ;;  %v1887_v35 = vmul.f32 %v3407_v26, %v1593_v19  ;;  %v1888_v36 = vmul.f32 %v3407_v26, %v1854_v23  ;;  %v433_v39 = vmul.f32 %v3343_v0, %v400_v24  ;;  %v593_v22 = vld [vmem:[%s3363_s15 + $0x1c] sm:$0x1] }
  0x2e   : > { %v3486_v37 = vadd.f32 %v2023_v6, %v1791_v27  ;;  %v1043_v38 = vadd.f32 %v1011_v12, %v913_v28  ;;  %v498_v40 = vunpack.c.l.bf16 %v465_v25  ;;  %v628_v45 = vunpack.c.l.bf16 %v595_v32 }
  0x2f   : > { %v1401_v42 = vsel %vm784_vm0, %v1399_v29, %v1400_v33  ;;  %v2015_v43 = vrot.slane %v1887_v35, 1  ;;  %v2016_v44 = vrot.slane %v1888_v36, 1  ;;  %v666_v50 = vmul.f32 %v3353_v2, %v400_v24 }
  0x30   : > { %v2185_v47 = vsel %vm2182_vm1, %v3486_v37, 0.0  ;;  %v1173_v48 = vadd.f32 %v1141_v16, %v1043_v38  ;;  %v531_v49 = vmul.f32 %v3348_v1, %v498_v40  ;;  %v1757_v55 = vmul.f32 %v3430_v51, %v1724_v31  ;;  %v948_v38 = vld [vmem:[%s3378_s23 + $0x18] sm:$0xf] }
  0x31   : > { %v2222_v54 = vsel %vm2215_vm2, %v2185_v47, 0.0  ;;  %v667_v56 = vmul.f32 %v3353_v2, %v628_v45  ;;  %v983_v57 = vunpack.c.l.bf16 %v950_v41  ;;  %v800_v61 = vrot.slane %v666_v50, 1 }
  0x32   : > { %2223 = vadd.xlane.f32.xlu1 %v2222_v54  ;;  %v1527_v59 = vadd.f32 %v1401_v42, %v1173_v48  ;;  %v563_v60 = vadd.f32 %v531_v49, %v433_v39  ;;  %v1113_v62 = vunpack.c.l.bf16 %v1080_v46  ;;  %v2017_v4 = vsel %vm784_vm0, %v2015_v43, %v2016_v44  ;;  %v1078_v43 = vld [vmem:[%s3383_s29 + $0x18] sm:$0xf]  ;;  %v1208_v48 = vld [vmem:[%s3378_s23 + $0x1c] sm:$0x1] }
  0x33   : > { %v801_v6 = vrot.slane %v667_v56, 1  ;;  %v1243_v7 = vunpack.c.l.bf16 %v1210_v52  ;;  %v1281_v8 = vmul.f32 %v3373_v5, %v983_v57  ;;  %v1016_v11 = vmul.f32 %v3358_v3, %v983_v57 }
  0x34   : > { %v1658_v10 = vadd.f32 %v1626_v34, %v1527_v59  ;;  %v1146_v12 = vmul.f32 %v3394_v17, %v1113_v62  ;;  %v1598_v13 = vunpack.c.l.bf16 %v3143_v58  ;;  %v1859_v19 = vunpack.c.l.bf16 %v3207_v63 }
  0x35   : > { %v802_v15 = vsel %vm784_vm0, %v800_v61, %v801_v6  ;;  %v1282_v16 = vmul.f32 %v3373_v5, %v1243_v7  ;;  %v1414_v18 = vrot.slane %v1281_v8, 1  ;;  %v1729_v27 = vunpack.c.l.bf16 %v3175_v9  ;;  %v3173_v6 = vld [vmem:[%s3368_s18 + $0x20] sm:$0xf] }
  0x36   : > { %v1789_v23 = vadd.f32 %v1757_v55, %v1658_v10  ;;  %v918_v24 = vadd.f32 %v802_v15, %v563_v60  ;;  %v1631_v25 = vmul.f32 %v3415_v30, %v1598_v13  ;;  %v1897_v29 = vmul.f32 %v3407_v26, %v1598_v13  ;;  %v3141_v55 = vld [vmem:[%s3363_s15 + $0x20] sm:$0xf]  ;;  %v3205_v60 = vld [vmem:[%s3363_s15 + $0x24] sm:$0x1] }
  0x37   : > { %v1415_v28 = vrot.slane %v1282_v16, 1  ;;  %v1898_v31 = vmul.f32 %v3407_v26, %v1859_v19  ;;  %v398_v32 = vunpack.c.l.bf16 %v365_v14  ;;  %v496_v35 = vunpack.c.l.bf16 %v463_v21  ;;  %v461_v16 = vld [vmem:[%s3368_s18 + $0x8] sm:$0xf] }
  0x38   : > { %v3516_v33 = vadd.f32 %v2017_v4, %v1789_v23  ;;  %v1048_v34 = vadd.f32 %v1016_v11, %v918_v24  ;;  %v626_v36 = vunpack.c.l.bf16 %v593_v22  ;;  %v2030_v40 = vrot.slane %v1897_v29, 1  ;;  %v363_v11 = vld [vmem:[%s3363_s15 + $0x8] sm:$0xf] }
  0x39   : > { %v1416_v39 = vsel %vm784_vm0, %v1414_v18, %v1415_v28  ;;  %v2031_v41 = vrot.slane %v1898_v31, 1  ;;  %v431_v42 = vmul.f32 %v3343_v0, %v398_v32  ;;  %v529_v46 = vmul.f32 %v3348_v1, %v496_v35  ;;  %v591_v18 = vld [vmem:[%s3363_s15 + $0xc] sm:$0x1]  ;;  %v946_v35 = vld [vmem:[%s3378_s23 + $0x8] sm:$0xf] }
  0x3a   : > { %5422 = vst [vmem:[#allocation2_spill] sm:$0xff] %v3516_v33  ;;  %v2183_v44 = vsel %vm2182_vm1, %v3516_v33, 0.0  ;;  %v1178_v45 = vadd.f32 %v1146_v12, %v1048_v34  ;;  %v662_v47 = vmul.f32 %v3353_v2, %v398_v32  ;;  %v1762_v50 = vmul.f32 %v3430_v51, %v1729_v27 }
  0x3b   : > { %v2216_v49 = vsel %vm2215_vm2, %v2183_v44, 0.0  ;;  %v663_v52 = vmul.f32 %v3353_v2, %v626_v36  ;;  %v981_v54 = vunpack.c.l.bf16 %v948_v38  ;;  %v561_v57 = vadd.f32 %v529_v46, %v431_v42  ;;  %v1206_v46 = vld [vmem:[%s3378_s23 + $0xc] sm:$0x1] }
  0x3c   : > { %2217 = vadd.xlane.f32.xlu0 %v2216_v49  ;;  %v1532_v56 = vadd.f32 %v1416_v39, %v1178_v45  ;;  %v794_v58 = vrot.slane %v662_v47, 1  ;;  %v1111_v59 = vunpack.c.l.bf16 %v1078_v43  ;;  %v2032_v61 = vsel %vm784_vm0, %v2030_v40, %v2031_v41  ;;  %v1076_v41 = vld [vmem:[%s3383_s29 + $0x8] sm:$0xf] }
  0x3d   : > { %v795_v62 = vrot.slane %v663_v52, 1  ;;  %v1241_v63 = vunpack.c.l.bf16 %v1208_v48  ;;  %v1277_v4 = vmul.f32 %v3373_v5, %v981_v54  ;;  %v1014_v8 = vmul.f32 %v3358_v3, %v981_v54  ;;  %v3139_v52 = vld [vmem:[%s3363_s15 + $0x10] sm:$0xf] }
  0x3e   : > { %v1663_v7 = vadd.f32 %v1631_v25, %v1532_v56  ;;  %v1144_v9 = vmul.f32 %v3394_v17, %v1111_v59  ;;  %v1596_v10 = vunpack.c.l.bf16 %v3141_v55  ;;  %v1857_v15 = vunpack.c.l.bf16 %v3205_v60 }
  0x3f   : > { %v796_v12 = vsel %vm784_vm0, %v794_v58, %v795_v62  ;;  %v1278_v13 = vmul.f32 %v3373_v5, %v1241_v63  ;;  %v1408_v14 = vrot.slane %v1277_v4, 1  ;;  %v1727_v23 = vunpack.c.l.bf16 %v3173_v6  ;;  %v3203_v58 = vld [vmem:[%s3363_s15 + $0x14] sm:$0x1]  ;;  %v3171_v63 = vld [vmem:[%s3368_s18 + $0x10] sm:$0xf] }
  0x40   : > { %v1794_v19 = vadd.f32 %v1762_v50, %v1663_v7  ;;  %v916_v21 = vadd.f32 %v796_v12, %v561_v57  ;;  %v1629_v22 = vmul.f32 %v3415_v30, %v1596_v10  ;;  %v1893_v25 = vmul.f32 %v3407_v26, %v1596_v10 }
  0x41   : > { %v1409_v24 = vrot.slane %v1278_v13, 1  ;;  %v1894_v27 = vmul.f32 %v3407_v26, %v1857_v15  ;;  %v396_v28 = vunpack.c.l.bf16 %v363_v11  ;;  %v494_v32 = vunpack.c.l.bf16 %v461_v16  ;;  %v598_v15 = vld [vmem:[%s3363_s15 + $0x4c] sm:$0x1] }
  0x42   : > { %v3546_v29 = vadd.f32 %v2032_v61, %v1794_v19  ;;  %v1046_v31 = vadd.f32 %v1014_v8, %v916_v21  ;;  %v624_v34 = vunpack.c.l.bf16 %v591_v18  ;;  %v2024_v38 = vrot.slane %v1893_v25, 1 }
  0x43   : > { %v1410_v36 = vsel %vm784_vm0, %v1408_v14, %v1409_v24  ;;  %v2025_v39 = vrot.slane %v1894_v27, 1  ;;  %v429_v40 = vmul.f32 %v3343_v0, %v396_v28  ;;  %v527_v44 = vmul.f32 %v3348_v1, %v494_v32  ;;  %v468_v14 = vld [vmem:[%s3368_s18 + $0x48] sm:$0xf] }
  0x44   : > { %v2188_v42 = vsel %vm2182_vm1, %v3546_v29, 0.0  ;;  %v1176_v43 = vadd.f32 %v1144_v9, %v1046_v31  ;;  %v658_v45 = vmul.f32 %v3353_v2, %v396_v28  ;;  %v1760_v48 = vmul.f32 %v3430_v51, %v1727_v23  ;;  %v370_v9 = vld [vmem:[%s3363_s15 + $0x48] sm:$0xf] }
  0x45   : > { %v2231_v47 = vsel %vm2215_vm2, %v2188_v42, 0.0  ;;  %v659_v49 = vmul.f32 %v3353_v2, %v624_v34  ;;  %v979_v50 = vunpack.c.l.bf16 %v946_v35  ;;  %v559_v55 = vadd.f32 %v527_v44, %v429_v40  ;;  %v953_v34 = vld [vmem:[%s3378_s23 + $0x48] sm:$0xf] }
  0x46   : > { %2232 = vadd.xlane.f32.xlu2 %v2231_v47  ;;  %v1530_v54 = vadd.f32 %v1410_v36, %v1176_v43  ;;  %v788_v56 = vrot.slane %v658_v45, 1  ;;  %v1109_v57 = vunpack.c.l.bf16 %v1076_v41  ;;  %v2026_v59 = vsel %vm784_vm0, %v2024_v38, %v2025_v39  ;;  %v1083_v40 = vld [vmem:[%s3383_s29 + $0x48] sm:$0xf]  ;;  %v1213_v45 = vld [vmem:[%s3378_s23 + $0x4c] sm:$0x1] }
  0x47   : > { %v789_v60 = vrot.slane %v659_v49, 1  ;;  %v1239_v61 = vunpack.c.l.bf16 %v1206_v46  ;;  %v1273_v62 = vmul.f32 %v3373_v5, %v979_v50  ;;  %v1012_v6 = vmul.f32 %v3358_v3, %v979_v50  ;;  %v3146_v50 = vld [vmem:[%s3363_s15 + $0x50] sm:$0xf] }
  0x48   : > { %v1661_v4 = vadd.f32 %v1629_v22, %v1530_v54  ;;  %v1142_v7 = vmul.f32 %v3394_v17, %v1109_v57  ;;  %v1594_v8 = vunpack.c.l.bf16 %v3139_v52  ;;  %v1855_v13 = vunpack.c.l.bf16 %v3203_v58  ;;  %v3210_v57 = vld [vmem:[%s3363_s15 + $0x54] sm:$0x1] }
  0x49   : > { %v790_v10 = vsel %vm784_vm0, %v788_v56, %v789_v60  ;;  %v1274_v11 = vmul.f32 %v3373_v5, %v1239_v61  ;;  %v1402_v12 = vrot.slane %v1273_v62, 1  ;;  %v1725_v21 = vunpack.c.l.bf16 %v3171_v63  ;;  %v3178_v62 = vld [vmem:[%s3368_s18 + $0x50] sm:$0xf] }
  0x4a   : > { %v1792_v16 = vadd.f32 %v1760_v48, %v1661_v4  ;;  %v914_v18 = vadd.f32 %v790_v10, %v559_v55  ;;  %v1627_v19 = vmul.f32 %v3415_v30, %v1594_v8  ;;  %v1889_v23 = vmul.f32 %v3407_v26, %v1594_v8  ;;  %v369_v8 = vld [vmem:[%s3363_s15 + $0x38] sm:$0xf] }
  0x4b   : > { %v1403_v22 = vrot.slane %v1274_v11, 1  ;;  %v1890_v24 = vmul.f32 %v3407_v26, %v1855_v13  ;;  %v403_v25 = vunpack.c.l.bf16 %v370_v9  ;;  %v501_v31 = vunpack.c.l.bf16 %v468_v14  ;;  %v467_v13 = vld [vmem:[%s3368_s18 + $0x38] sm:$0xf]  ;;  %v597_v14 = vld [vmem:[%s3363_s15 + $0x3c] sm:$0x1] }
  0x4c   : > { %v3576_v27 = vadd.f32 %v2026_v59, %v1792_v16  ;;  %v1044_v28 = vadd.f32 %v1012_v6, %v914_v18  ;;  %v631_v32 = vunpack.c.l.bf16 %v598_v15  ;;  %v2018_v36 = vrot.slane %v1889_v23, 1 }
  0x4d   : > { %v1404_v35 = vsel %vm784_vm0, %v1402_v12, %v1403_v22  ;;  %v2019_v38 = vrot.slane %v1890_v24, 1  ;;  %v436_v39 = vmul.f32 %v3343_v0, %v403_v25  ;;  %v534_v43 = vmul.f32 %v3348_v1, %v501_v31 }
  0x4e   : > { %5423 = vst [vmem:[#allocation3_spill] sm:$0xff] %v3576_v27  ;;  %v2186_v41 = vsel %vm2182_vm1, %v3576_v27, 0.0  ;;  %v1174_v42 = vadd.f32 %v1142_v7, %v1044_v28  ;;  %v672_v44 = vmul.f32 %v3353_v2, %v403_v25  ;;  %v1758_v47 = vmul.f32 %v3430_v51, %v1725_v21 }
  0x4f   : > { %v2225_v46 = vsel %vm2215_vm2, %v2186_v41, 0.0  ;;  %v673_v48 = vmul.f32 %v3353_v2, %v631_v32  ;;  %v986_v49 = vunpack.c.l.bf16 %v953_v34  ;;  %v566_v54 = vadd.f32 %v534_v43, %v436_v39  ;;  %v952_v34 = vld [vmem:[%s3378_s23 + $0x38] sm:$0xf] }
  0x50   : > { %2226 = vadd.xlane.f32.xlu1 %v2225_v46  ;;  %v1528_v52 = vadd.f32 %v1404_v35, %v1174_v42  ;;  %v809_v55 = vrot.slane %v672_v44, 1  ;;  %v1116_v56 = vunpack.c.l.bf16 %v1083_v40  ;;  %v2020_v58 = vsel %vm784_vm0, %v2018_v36, %v2019_v38  ;;  %v1082_v40 = vld [vmem:[%s3383_s29 + $0x38] sm:$0xf] }
  0x51   : > { %v810_v59 = vrot.slane %v673_v48, 1  ;;  %v1246_v60 = vunpack.c.l.bf16 %v1213_v45  ;;  %v1287_v61 = vmul.f32 %v3373_v5, %v986_v49  ;;  %v1019_v4 = vmul.f32 %v3358_v3, %v986_v49  ;;  %v1212_v45 = vld [vmem:[%s3378_s23 + $0x3c] sm:$0x1] }
  0x52   : > { %v1659_v63 = vadd.f32 %v1627_v19, %v1528_v52  ;;  %v1149_v6 = vmul.f32 %v3394_v17, %v1116_v56  ;;  %v1601_v7 = vunpack.c.l.bf16 %v3146_v50  ;;  %v1862_v12 = vunpack.c.l.bf16 %v3210_v57  ;;  %v3145_v50 = vld [vmem:[%s3363_s15 + $0x40] sm:$0xf]  ;;  %v3209_v57 = vld [vmem:[%s3363_s15 + $0x44] sm:$0x1] }
  0x53   : > { %v811_v9 = vsel %vm784_vm0, %v809_v55, %v810_v59  ;;  %v1288_v10 = vmul.f32 %v3373_v5, %v1246_v60  ;;  %v1423_v11 = vrot.slane %v1287_v61, 1  ;;  %v1732_v19 = vunpack.c.l.bf16 %v3178_v62  ;;  %v3177_v62 = vld [vmem:[%s3368_s18 + $0x40] sm:$0xf] }
  0x54   : > { %v1790_v15 = vadd.f32 %v1758_v47, %v1659_v63  ;;  %v921_v16 = vadd.f32 %v811_v9, %v566_v54  ;;  %v1634_v18 = vmul.f32 %v3415_v30, %v1601_v7  ;;  %v1903_v22 = vmul.f32 %v3407_v26, %v1601_v7 }
  0x55   : > { %v1424_v21 = vrot.slane %v1288_v10, 1  ;;  %v1904_v23 = vmul.f32 %v3407_v26, %v1862_v12  ;;  %v402_v24 = vunpack.c.l.bf16 %v369_v8  ;;  %v500_v31 = vunpack.c.l.bf16 %v467_v13  ;;  %v368_v8 = vld [vmem:[%s3363_s15 + $0x30] sm:$0xf] }
  0x56   : > { %v3606_v25 = vadd.f32 %v2020_v58, %v1790_v15  ;;  %v1051_v28 = vadd.f32 %v1019_v4, %v921_v16  ;;  %v630_v32 = vunpack.c.l.bf16 %v597_v14  ;;  %v2039_v36 = vrot.slane %v1903_v22, 1  ;;  %v466_v13 = vld [vmem:[%s3368_s18 + $0x30] sm:$0xf]  ;;  %v596_v14 = vld [vmem:[%s3363_s15 + $0x34] sm:$0x1] }
  0x57   : > { %v1425_v35 = vsel %vm784_vm0, %v1423_v11, %v1424_v21  ;;  %v2040_v38 = vrot.slane %v1904_v23, 1  ;;  %v435_v39 = vmul.f32 %v3343_v0, %v402_v24  ;;  %v533_v43 = vmul.f32 %v3348_v1, %v500_v31 }
  0x58   : > { %v2184_v41 = vsel %vm2182_vm1, %v3606_v25, 0.0  ;;  %v1181_v42 = vadd.f32 %v1149_v6, %v1051_v28  ;;  %v670_v44 = vmul.f32 %v3353_v2, %v402_v24  ;;  %v1765_v47 = vmul.f32 %v3430_v51, %v1732_v19 }
  0x59   : > { %v2219_v46 = vsel %vm2215_vm2, %v2184_v41, 0.0  ;;  %v671_v48 = vmul.f32 %v3353_v2, %v630_v32  ;;  %v985_v49 = vunpack.c.l.bf16 %v952_v34  ;;  %v565_v54 = vadd.f32 %v533_v43, %v435_v39  ;;  %v1081_v41 = vld [vmem:[%s3383_s29 + $0x30] sm:$0xf] }
  0x5a   : > { %2220 = vadd.xlane.f32.xlu0 %v2219_v46  ;;  %v1535_v52 = vadd.f32 %v1425_v35, %v1181_v42  ;;  %v806_v55 = vrot.slane %v670_v44, 1  ;;  %v1115_v56 = vunpack.c.l.bf16 %v1082_v40  ;;  %v2041_v58 = vsel %vm784_vm0, %v2039_v36, %v2040_v38  ;;  %v951_v35 = vld [vmem:[%s3378_s23 + $0x30] sm:$0xf]  ;;  %v1211_v46 = vld [vmem:[%s3378_s23 + $0x34] sm:$0x1] }
  0x5b   : > { %v807_v59 = vrot.slane %v671_v48, 1  ;;  %v1245_v60 = vunpack.c.l.bf16 %v1212_v45  ;;  %v1285_v61 = vmul.f32 %v3373_v5, %v985_v49  ;;  %v1018_v4 = vmul.f32 %v3358_v3, %v985_v49 }
  0x5c   : > { %v1666_v63 = vadd.f32 %v1634_v18, %v1535_v52  ;;  %v1148_v6 = vmul.f32 %v3394_v17, %v1115_v56  ;;  %v1600_v7 = vunpack.c.l.bf16 %v3145_v50  ;;  %v1861_v12 = vunpack.c.l.bf16 %v3209_v57  ;;  %v3144_v52 = vld [vmem:[%s3363_s15 + $0x38] sm:$0xf] }
  0x5d   : > { %v808_v9 = vsel %vm784_vm0, %v806_v55, %v807_v59  ;;  %v1286_v10 = vmul.f32 %v3373_v5, %v1245_v60  ;;  %v1420_v11 = vrot.slane %v1285_v61, 1  ;;  %v1731_v19 = vunpack.c.l.bf16 %v3177_v62 }
  0x5e   : > { %v1797_v15 = vadd.f32 %v1765_v47, %v1666_v63  ;;  %v920_v16 = vadd.f32 %v808_v9, %v565_v54  ;;  %v1633_v18 = vmul.f32 %v3415_v30, %v1600_v7  ;;  %v1901_v22 = vmul.f32 %v3407_v26, %v1600_v7  ;;  %v3176_v63 = vld [vmem:[%s3368_s18 + $0x38] sm:$0xf]  ;;  %v373_v9 = vld [vmem:[%s3363_s15 + $0x60] sm:$0xf] }
  0x5f   : > { %v1421_v21 = vrot.slane %v1286_v10, 1  ;;  %v1902_v23 = vmul.f32 %v3407_v26, %v1861_v12  ;;  %v401_v24 = vunpack.c.l.bf16 %v368_v8  ;;  %v499_v32 = vunpack.c.l.bf16 %v466_v13 }
  0x60   : > { %v3636_v28 = vadd.f32 %v2041_v58, %v1797_v15  ;;  %v1050_v31 = vadd.f32 %v1018_v4, %v920_v16  ;;  %v629_v34 = vunpack.c.l.bf16 %v596_v14  ;;  %v2036_v38 = vrot.slane %v1901_v22, 1  ;;  %v3208_v58 = vld [vmem:[%s3363_s15 + $0x3c] sm:$0x1]  ;;  %v471_v14 = vld [vmem:[%s3368_s18 + $0x60] sm:$0xf] }
  0x61   : > { %v1422_v36 = vsel %vm784_vm0, %v1420_v11, %v1421_v21  ;;  %v2037_v39 = vrot.slane %v1902_v23, 1  ;;  %v434_v40 = vmul.f32 %v3343_v0, %v401_v24  ;;  %v532_v44 = vmul.f32 %v3348_v1, %v499_v32  ;;  %v601_v15 = vld [vmem:[%s3363_s15 + $0x64] sm:$0x1] }
  0x62   : > { %v2191_v42 = vsel %vm2182_vm1, %v3636_v28, 0.0  ;;  %v1180_v43 = vadd.f32 %v1148_v6, %v1050_v31  ;;  %v668_v45 = vmul.f32 %v3353_v2, %v401_v24  ;;  %v1764_v48 = vmul.f32 %v3430_v51, %v1731_v19 }
  0x63   : > { %v2240_v47 = vsel %vm2215_vm2, %v2191_v42, 0.0  ;;  %v669_v49 = vmul.f32 %v3353_v2, %v629_v34  ;;  %v984_v50 = vunpack.c.l.bf16 %v951_v35  ;;  %v564_v55 = vadd.f32 %v532_v44, %v434_v40 }
  0x64   : > { %2241 = vadd.xlane.f32.xlu2 %v2240_v47  ;;  %v1534_v54 = vadd.f32 %v1422_v36, %v1180_v43  ;;  %v803_v56 = vrot.slane %v668_v45, 1  ;;  %v1114_v57 = vunpack.c.l.bf16 %v1081_v41  ;;  %v2038_v59 = vsel %vm784_vm0, %v2036_v38, %v2037_v39  ;;  %v956_v38 = vld [vmem:[%s3378_s23 + $0x60] sm:$0xf] }
  0x65   : > { %v804_v60 = vrot.slane %v669_v49, 1  ;;  %v1244_v61 = vunpack.c.l.bf16 %v1211_v46  ;;  %v1283_v62 = vmul.f32 %v3373_v5, %v984_v50  ;;  %v1017_v6 = vmul.f32 %v3358_v3, %v984_v50  ;;  %v1086_v43 = vld [vmem:[%s3383_s29 + $0x60] sm:$0xf] }
  0x66   : > { %v1665_v4 = vadd.f32 %v1633_v18, %v1534_v54  ;;  %v1147_v7 = vmul.f32 %v3394_v17, %v1114_v57  ;;  %v1599_v8 = vunpack.c.l.bf16 %v3144_v52  ;;  %v1860_v13 = vunpack.c.l.bf16 %v3208_v58  ;;  %v3149_v54 = vld [vmem:[%s3363_s15 + $0x68] sm:$0xf] }
  0x67   : > { %v805_v10 = vsel %vm784_vm0, %v803_v56, %v804_v60  ;;  %v1284_v11 = vmul.f32 %v3373_v5, %v1244_v61  ;;  %v1417_v12 = vrot.slane %v1283_v62, 1  ;;  %v1730_v21 = vunpack.c.l.bf16 %v3176_v63  ;;  %v3181_v63 = vld [vmem:[%s3368_s18 + $0x68] sm:$0xf] }
  0x68   : > { %v1796_v16 = vadd.f32 %v1764_v48, %v1665_v4  ;;  %v919_v19 = vadd.f32 %v805_v10, %v564_v55  ;;  %v1632_v18 = vmul.f32 %v3415_v30, %v1599_v8  ;;  %v1899_v23 = vmul.f32 %v3407_v26, %v1599_v8  ;;  %v1216_v48 = vld [vmem:[%s3378_s23 + $0x64] sm:$0x1]  ;;  %v372_v8 = vld [vmem:[%s3363_s15 + $0x58] sm:$0xf] }
  0x69   : > { %v1418_v22 = vrot.slane %v1284_v11, 1  ;;  %v1900_v24 = vmul.f32 %v3407_v26, %v1860_v13  ;;  %v406_v31 = vunpack.c.l.bf16 %v373_v9  ;;  %v504_v35 = vunpack.c.l.bf16 %v471_v14  ;;  %v470_v13 = vld [vmem:[%s3368_s18 + $0x58] sm:$0xf]  ;;  %v600_v14 = vld [vmem:[%s3363_s15 + $0x5c] sm:$0x1] }
  0x6a   : > { %v3666_v32 = vadd.f32 %v2038_v59, %v1796_v16  ;;  %v1049_v34 = vadd.f32 %v1017_v6, %v919_v19  ;;  %v634_v36 = vunpack.c.l.bf16 %v601_v15  ;;  %v2033_v40 = vrot.slane %v1899_v23, 1 }
  0x6b   : > { %v1419_v39 = vsel %vm784_vm0, %v1417_v12, %v1418_v22  ;;  %v2034_v41 = vrot.slane %v1900_v24, 1  ;;  %v439_v42 = vmul.f32 %v3343_v0, %v406_v31  ;;  %v537_v46 = vmul.f32 %v3348_v1, %v504_v35  ;;  %v3213_v1 = vld [vmem:[%s3363_s15 + $0x6c] sm:$0x1] }
  0x6c   : > { %5424 = vst [vmem:[#allocation4_spill] sm:$0xff] %v3666_v32  ;;  %v2190_v44 = vsel %vm2182_vm1, %v3666_v32, 0.0  ;;  %v1179_v45 = vadd.f32 %v1147_v7, %v1049_v34  ;;  %v678_v47 = vmul.f32 %v3353_v2, %v406_v31  ;;  %v1763_v50 = vmul.f32 %v3430_v51, %v1730_v21  ;;  %v955_v34 = vld [vmem:[%s3378_s23 + $0x58] sm:$0xf] }
  0x6d   : > { %v2237_v49 = vsel %vm2215_vm2, %v2190_v44, 0.0  ;;  %v679_v52 = vmul.f32 %v3353_v2, %v634_v36  ;;  %v989_v0 = vunpack.c.l.bf16 %v956_v38  ;;  %v569_v56 = vadd.f32 %v537_v46, %v439_v42  ;;  %v3703_v38 = vld [vmem:[%s5401_s4] ss:$0 sm:$0xff]  ;;  %v3713_v42 = vld [vmem:[%s5401_s4 + $0x1] ss:$0 sm:$0xff] }
  0x6e   : > { %2238 = vadd.xlane.f32.xlu1 %v2237_v49  ;;  %v1533_v55 = vadd.f32 %v1419_v39, %v1179_v45  ;;  %v818_v57 = vrot.slane %v678_v47, 1  ;;  %v1119_v58 = vunpack.c.l.bf16 %v1086_v43  ;;  %v2035_v59 = vsel %vm784_vm0, %v2033_v40, %v2034_v41  ;;  %v1085_v39 = vld [vmem:[%s3383_s29 + $0x58] sm:$0xf]  ;;  %v3719_v44 = vld [vmem:[%s5401_s4 + $0x2] ss:$0 sm:$0xff] }
  0x6f   : > { %v819_v60 = vrot.slane %v679_v52, 1  ;;  %v1249_v61 = vunpack.c.l.bf16 %v1216_v48  ;;  %v1293_v62 = vmul.f32 %v3373_v5, %v989_v0  ;;  %v1022_v2 = vmul.f32 %v3358_v3, %v989_v0  ;;  %v1215_v46 = vld [vmem:[%s3378_s23 + $0x5c] sm:$0x1]  ;;  %v3148_v52 = vld [vmem:[%s3363_s15 + $0x60] sm:$0xf] }
  0x70   : > { %v1664_v4 = vadd.f32 %v1632_v18, %v1533_v55  ;;  %v1152_v6 = vmul.f32 %v3394_v17, %v1119_v58  ;;  %v1604_v7 = vunpack.c.l.bf16 %v3149_v54  ;;  %v1865_v12 = vunpack.c.l.bf16 %v3213_v1 }
  0x71   : > { %v820_v9 = vsel %vm784_vm0, %v818_v57, %v819_v60  ;;  %v1294_v10 = vmul.f32 %v3373_v5, %v1249_v61  ;;  %v1432_v11 = vrot.slane %v1293_v62, 1  ;;  %v1735_v18 = vunpack.c.l.bf16 %v3181_v63  ;;  %v3212_v57 = vld [vmem:[%s3363_s15 + $0x64] sm:$0x1]  ;;  %v3180_v61 = vld [vmem:[%s3368_s18 + $0x60] sm:$0xf] }
  0x72   : > { %v1795_v15 = vadd.f32 %v1763_v50, %v1664_v4  ;;  %v924_v16 = vadd.f32 %v820_v9, %v569_v56  ;;  %v1637_v19 = vmul.f32 %v3415_v30, %v1604_v7  ;;  %v1909_v17 = vmul.f32 %v3407_v26, %v1604_v7  ;;  %v3739_v63 = vld [vmem:[%s5401_s4 + $0x3] ss:$0 sm:$0xff] }
  0x73   : > { %v1433_v3 = vrot.slane %v1294_v10, 1  ;;  %v1910_v21 = vmul.f32 %v3407_v26, %v1865_v12  ;;  %v405_v22 = vunpack.c.l.bf16 %v372_v8  ;;  %v503_v24 = vunpack.c.l.bf16 %v470_v13  ;;  %v371_v8 = vld [vmem:[%s3363_s15 + $0x50] sm:$0xf] }
  0x74   : > { %v3696_v23 = vadd.f32 %v2035_v59, %v1795_v15  ;;  %v1054_v5 = vadd.f32 %v1022_v2, %v924_v16  ;;  %v633_v31 = vunpack.c.l.bf16 %v600_v14  ;;  %v2048_v36 = vrot.slane %v1909_v17, 1  ;;  %v3745_v2 = vld [vmem:[%s5401_s4 + $0x4] ss:$0 sm:$0xff]  ;;  %v469_v13 = vld [vmem:[%s3368_s18 + $0x50] sm:$0xf] }
  0x75   : > { %v1434_v35 = vsel %vm784_vm0, %v1432_v11, %v1433_v3  ;;  %v2049_v30 = vrot.slane %v1910_v21, 1  ;;  %v438_v26 = vmul.f32 %v3703_v38, %v405_v22  ;;  %v536_v43 = vmul.f32 %v3713_v42, %v503_v24  ;;  %v599_v14 = vld [vmem:[%s3363_s15 + $0x54] sm:$0x1]  ;;  %v3762_v21 = vld [vmem:[%s5401_s4 + $0x8] ss:$0 sm:$0xff] }
  0x76   : > { %5425 = vst [vmem:[#allocation5_spill] sm:$0xff] %v3696_v23  ;;  %v2189_v40 = vsel %vm2182_vm1, %v3696_v23, 0.0  ;;  %v1184_v41 = vadd.f32 %v1152_v6, %v1054_v5  ;;  %v676_v45 = vmul.f32 %v3719_v44, %v405_v22  ;;  %v1768_v48 = vmul.f32 %v3430_v51, %v1735_v18  ;;  %v3732_v51 = vld [vmem:[%s5401_s4 + $0x5] ss:$0 sm:$0xff] }
  0x77   : > { %v2234_v47 = vsel %vm2215_vm2, %v2189_v40, 0.0  ;;  %v677_v49 = vmul.f32 %v3719_v44, %v633_v31  ;;  %v988_v50 = vunpack.c.l.bf16 %v955_v34  ;;  %v568_v54 = vadd.f32 %v536_v43, %v438_v26  ;;  %v1084_v43 = vld [vmem:[%s3383_s29 + $0x50] sm:$0xf] }
  0x78   : > { %2235 = vadd.xlane.f32.xlu0 %v2234_v47  ;;  %v1538_v0 = vadd.f32 %v1434_v35, %v1184_v41  ;;  %v815_v55 = vrot.slane %v676_v45, 1  ;;  %v1118_v56 = vunpack.c.l.bf16 %v1085_v39  ;;  %v2050_v58 = vsel %vm784_vm0, %v2048_v36, %v2049_v30  ;;  %v954_v30 = vld [vmem:[%s3378_s23 + $0x50] sm:$0xf] }
  0x79   : > { %v816_v1 = vrot.slane %v677_v49, 1  ;;  %v1248_v59 = vunpack.c.l.bf16 %v1215_v46  ;;  %v1291_v60 = vmul.f32 %v3732_v51, %v988_v50  ;;  %v1021_v4 = vmul.f32 %v3739_v63, %v988_v50  ;;  %v1214_v49 = vld [vmem:[%s3378_s23 + $0x54] sm:$0x1] }
  0x7a   : > { %v1669_v62 = vadd.f32 %v1637_v19, %v1538_v0  ;;  %v1151_v6 = vmul.f32 %v3745_v2, %v1118_v56  ;;  %v1603_v7 = vunpack.c.l.bf16 %v3148_v52  ;;  %v1864_v12 = vunpack.c.l.bf16 %v3212_v57  ;;  %v3756_v19 = vld [vmem:[%s5401_s4 + $0x6] ss:$0 sm:$0xff]  ;;  %v3782_v52 = vld [vmem:[%s5401_s4 + $0x7] ss:$0 sm:$0xff]  ;;  %v3147_v56 = vld [vmem:[%s3363_s15 + $0x58] sm:$0xf] }
  0x7b   : > { %v817_v9 = vsel %vm784_vm0, %v815_v55, %v816_v1  ;;  %v1292_v10 = vmul.f32 %v3732_v51, %v1248_v59  ;;  %v1429_v11 = vrot.slane %v1291_v60, 1  ;;  %v1734_v3 = vunpack.c.l.bf16 %v3180_v61  ;;  %v3211_v60 = vld [vmem:[%s3363_s15 + $0x5c] sm:$0x1] }
  0x7c   : > { %v1800_v15 = vadd.f32 %v1768_v48, %v1669_v62  ;;  %v923_v16 = vadd.f32 %v817_v9, %v568_v54  ;;  %v1636_v18 = vmul.f32 %v3756_v19, %v1603_v7  ;;  %v1907_v22 = vmul.f32 %v3762_v21, %v1603_v7  ;;  %v3179_v7 = vld [vmem:[%s3368_s18 + $0x58] sm:$0xf] }
  0x7d   : > { %v1430_v17 = vrot.slane %v1292_v10, 1  ;;  %v1908_v5 = vmul.f32 %v3762_v21, %v1864_v12  ;;  %v404_v24 = vunpack.c.l.bf16 %v371_v8  ;;  %v502_v35 = vunpack.c.l.bf16 %v469_v13  ;;  %v376_v12 = vld [vmem:[%s3363_s15 + $0x78] sm:$0xf] }
  0x7e   : > { %v3766_v31 = vadd.f32 %v2050_v58, %v1800_v15  ;;  %v1053_v34 = vadd.f32 %v1021_v4, %v923_v16  ;;  %v632_v36 = vunpack.c.l.bf16 %v599_v14  ;;  %v2045_v39 = vrot.slane %v1907_v22, 1 }
  0x7f   : > { %v1431_v26 = vsel %vm784_vm0, %v1429_v11, %v1430_v17  ;;  %v2046_v40 = vrot.slane %v1908_v5, 1  ;;  %v437_v41 = vmul.f32 %v3703_v38, %v404_v24  ;;  %v535_v47 = vmul.f32 %v3713_v42, %v502_v35  ;;  %v604_v17 = vld [vmem:[%s3363_s15 + $0x7c] sm:$0x1] }
  0x80   : > { %v2194_v45 = vsel %vm2182_vm1, %v3766_v31, 0.0  ;;  %v1183_v46 = vadd.f32 %v1151_v6, %v1053_v34  ;;  %v674_v48 = vmul.f32 %v3719_v44, %v404_v24  ;;  %v1767_v0 = vmul.f32 %v3782_v52, %v1734_v3  ;;  %v474_v3 = vld [vmem:[%s3368_s18 + $0x78] sm:$0xf] }
  0x81   : > { %v2249_v50 = vsel %vm2215_vm2, %v2194_v45, 0.0  ;;  %v675_v54 = vmul.f32 %v3719_v44, %v632_v36  ;;  %v987_v55 = vunpack.c.l.bf16 %v954_v30  ;;  %v567_v58 = vadd.f32 %v535_v47, %v437_v41 }
  0x82   : > { %2250 = vadd.xlane.f32.xlu2 %v2249_v50  ;;  %v1537_v57 = vadd.f32 %v1431_v26, %v1183_v46  ;;  %v812_v1 = vrot.slane %v674_v48, 1  ;;  %v1117_v59 = vunpack.c.l.bf16 %v1084_v43  ;;  %v2047_v61 = vsel %vm784_vm0, %v2045_v39, %v2046_v40  ;;  %v959_v43 = vld [vmem:[%s3378_s23 + $0x78] sm:$0xf] }
  0x83   : > { %v813_v62 = vrot.slane %v675_v54, 1  ;;  %v1247_v4 = vunpack.c.l.bf16 %v1214_v49  ;;  %v1289_v6 = vmul.f32 %v3732_v51, %v987_v55  ;;  %v1020_v9 = vmul.f32 %v3739_v63, %v987_v55  ;;  %v1089_v49 = vld [vmem:[%s3383_s29 + $0x78] sm:$0xf] }
  0x84   : > { %v1668_v8 = vadd.f32 %v1636_v18, %v1537_v57  ;;  %v1150_v10 = vmul.f32 %v3745_v2, %v1117_v59  ;;  %v1602_v11 = vunpack.c.l.bf16 %v3147_v56  ;;  %v1863_v16 = vunpack.c.l.bf16 %v3211_v60  ;;  %v1219_v56 = vld [vmem:[%s3378_s23 + $0x7c] sm:$0x1]  ;;  %v3152_v60 = vld [vmem:[%s3363_s15 + $0x80] sm:$0xf] }
  0x85   : > { %v814_v13 = vsel %vm784_vm0, %v812_v1, %v813_v62  ;;  %v1290_v14 = vmul.f32 %v3732_v51, %v1247_v4  ;;  %v1426_v15 = vrot.slane %v1289_v6, 1  ;;  %v1733_v24 = vunpack.c.l.bf16 %v3179_v7  ;;  %v3216_v7 = vld [vmem:[%s3363_s15 + $0x84] sm:$0x1] }
  0x86   : > { %v1799_v22 = vadd.f32 %v1767_v0, %v1668_v8  ;;  %v922_v5 = vadd.f32 %v814_v13, %v567_v58  ;;  %v1635_v18 = vmul.f32 %v3756_v19, %v1602_v11  ;;  %v1905_v35 = vmul.f32 %v3762_v21, %v1602_v11 }
  0x87   : > { %v1427_v34 = vrot.slane %v1290_v14, 1  ;;  %v1906_v36 = vmul.f32 %v3762_v21, %v1863_v16  ;;  %v409_v30 = vunpack.c.l.bf16 %v376_v12  ;;  %v507_v40 = vunpack.c.l.bf16 %v474_v3  ;;  %v3184_v12 = vld [vmem:[%s3368_s18 + $0x80] sm:$0xf]  ;;  %v375_v3 = vld [vmem:[%s3363_s15 + $0x70] sm:$0xf] }
  0x88   : > { %v3801_v26 = vadd.f32 %v2047_v61, %v1799_v22  ;;  %v1052_v39 = vadd.f32 %v1020_v9, %v922_v5  ;;  %v637_v41 = vunpack.c.l.bf16 %v604_v17  ;;  %v2042_v46 = vrot.slane %v1905_v35, 1  ;;  %v603_v35 = vld [vmem:[%s3363_s15 + $0x74] sm:$0x1] }
  0x89   : > { %v1428_v45 = vsel %vm784_vm0, %v1426_v15, %v1427_v34  ;;  %v2043_v47 = vrot.slane %v1906_v36, 1  ;;  %v442_v48 = vmul.f32 %v3703_v38, %v409_v30  ;;  %v540_v54 = vmul.f32 %v3713_v42, %v507_v40  ;;  %v473_v34 = vld [vmem:[%s3368_s18 + $0x70] sm:$0xf] }
  0x8a   : > { %5426 = vst [vmem:[#allocation6_spill] sm:$0xff] %v3801_v26  ;;  %v2193_v50 = vsel %vm2182_vm1, %v3801_v26, 0.0  ;;  %v1182_v0 = vadd.f32 %v1150_v10, %v1052_v39  ;;  %v684_v55 = vmul.f32 %v3719_v44, %v409_v30  ;;  %v1766_v58 = vmul.f32 %v3782_v52, %v1733_v24 }
  0x8b   : > { %v2246_v57 = vsel %vm2215_vm2, %v2193_v50, 0.0  ;;  %v685_v1 = vmul.f32 %v3719_v44, %v637_v41  ;;  %v992_v59 = vunpack.c.l.bf16 %v959_v43  ;;  %v572_v62 = vadd.f32 %v540_v54, %v442_v48  ;;  %v958_v50 = vld [vmem:[%s3378_s23 + $0x70] sm:$0xf] }
  0x8c   : > { %2247 = vadd.xlane.f32.xlu1 %v2246_v57  ;;  %v1536_v61 = vadd.f32 %v1428_v45, %v1182_v0  ;;  %v827_v4 = vrot.slane %v684_v55, 1  ;;  %v1122_v6 = vunpack.c.l.bf16 %v1089_v49  ;;  %v2044_v8 = vsel %vm784_vm0, %v2042_v46, %v2043_v47  ;;  %v1088_v57 = vld [vmem:[%s3383_s29 + $0x70] sm:$0xf] }
  0x8d   : > { %v828_v9 = vrot.slane %v685_v1, 1  ;;  %v1252_v10 = vunpack.c.l.bf16 %v1219_v56  ;;  %v1299_v11 = vmul.f32 %v3732_v51, %v992_v59  ;;  %v1025_v14 = vmul.f32 %v3739_v63, %v992_v59 }
  0x8e   : > { %v1667_v13 = vadd.f32 %v1635_v18, %v1536_v61  ;;  %v1155_v15 = vmul.f32 %v3745_v2, %v1122_v6  ;;  %v1607_v16 = vunpack.c.l.bf16 %v3152_v60  ;;  %v1868_v24 = vunpack.c.l.bf16 %v3216_v7  ;;  %v1218_v61 = vld [vmem:[%s3378_s23 + $0x74] sm:$0x1] }
  0x8f   : > { %v829_v17 = vsel %vm784_vm0, %v827_v4, %v828_v9  ;;  %v1300_v22 = vmul.f32 %v3732_v51, %v1252_v10  ;;  %v1441_v5 = vrot.slane %v1299_v11, 1  ;;  %v1738_v39 = vunpack.c.l.bf16 %v3184_v12 }
  0x90   : > { %v1798_v36 = vadd.f32 %v1766_v58, %v1667_v13  ;;  %v927_v30 = vadd.f32 %v829_v17, %v572_v62  ;;  %v1640_v18 = vmul.f32 %v3756_v19, %v1607_v16  ;;  %v1915_v41 = vmul.f32 %v3762_v21, %v1607_v16  ;;  %v3215_v13 = vld [vmem:[%s3363_s15 + $0x7c] sm:$0x1]  ;;  %v3183_v17 = vld [vmem:[%s3368_s18 + $0x78] sm:$0xf] }
  0x91   : > { %v1442_v40 = vrot.slane %v1300_v22, 1  ;;  %v1916_v43 = vmul.f32 %v3762_v21, %v1868_v24  ;;  %v408_v45 = vunpack.c.l.bf16 %v375_v3  ;;  %v506_v48 = vunpack.c.l.bf16 %v473_v34 }
  0x92   : > { %v3831_v46 = vadd.f32 %v2044_v8, %v1798_v36  ;;  %v1057_v47 = vadd.f32 %v1025_v14, %v927_v30  ;;  %v636_v49 = vunpack.c.l.bf16 %v603_v35  ;;  %v2057_v54 = vrot.slane %v1915_v41, 1  ;;  %v3151_v8 = vld [vmem:[%s3363_s15 + $0x78] sm:$0xf]  ;;  %v374_v35 = vld [vmem:[%s3363_s15 + $0x68] sm:$0xf] }
  0x93   : > { %v1443_v0 = vsel %vm784_vm0, %v1441_v5, %v1442_v40  ;;  %v2058_v55 = vrot.slane %v1916_v43, 1  ;;  %v441_v56 = vmul.f32 %v3703_v38, %v408_v45  ;;  %v539_v59 = vmul.f32 %v3713_v42, %v506_v48  ;;  %v472_v41 = vld [vmem:[%s3368_s18 + $0x68] sm:$0xf]  ;;  %v602_v43 = vld [vmem:[%s3363_s15 + $0x6c] sm:$0x1] }
  0x94   : > { %5427 = vst [vmem:[#allocation7_spill] sm:$0xff] %v3831_v46  ;;  %v2192_v58 = vsel %vm2182_vm1, %v3831_v46, 0.0  ;;  %v1187_v1 = vadd.f32 %v1155_v15, %v1057_v47  ;;  %v682_v60 = vmul.f32 %v3719_v44, %v408_v45  ;;  %v1771_v4 = vmul.f32 %v3782_v52, %v1738_v39 }
  0x95   : > { %v2243_v62 = vsel %vm2215_vm2, %v2192_v58, 0.0  ;;  %v683_v6 = vmul.f32 %v3719_v44, %v636_v49  ;;  %v991_v7 = vunpack.c.l.bf16 %v958_v50  ;;  %v571_v10 = vadd.f32 %v539_v59, %v441_v56 }
  0x96   : > { %2244 = vadd.xlane.f32.xlu0 %v2243_v62  ;;  %v1541_v9 = vadd.f32 %v1443_v0, %v1187_v1  ;;  %v824_v11 = vrot.slane %v682_v60, 1  ;;  %v1121_v12 = vunpack.c.l.bf16 %v1088_v57  ;;  %v2059_v14 = vsel %vm784_vm0, %v2057_v54, %v2058_v55  ;;  %v957_v1 = vld [vmem:[%s3378_s23 + $0x68] sm:$0xf] }
  0x97   : > { %v825_v15 = vrot.slane %v683_v6, 1  ;;  %v1251_v16 = vunpack.c.l.bf16 %v1218_v61  ;;  %v1297_v3 = vmul.f32 %v3732_v51, %v991_v7  ;;  %v1024_v5 = vmul.f32 %v3739_v63, %v991_v7 }
  0x98   : > { %v1672_v22 = vadd.f32 %v1640_v18, %v1541_v9  ;;  %v1154_v24 = vmul.f32 %v3745_v2, %v1121_v12  ;;  %v1606_v34 = vunpack.c.l.bf16 %v3151_v8  ;;  %v1867_v40 = vunpack.c.l.bf16 %v3215_v13 }
  0x99   : > { %v826_v36 = vsel %vm784_vm0, %v824_v11, %v825_v15  ;;  %v1298_v30 = vmul.f32 %v3732_v51, %v1251_v16  ;;  %v1438_v39 = vrot.slane %v1297_v3, 1  ;;  %v1737_v48 = vunpack.c.l.bf16 %v3183_v17  ;;  %v3150_v15 = vld [vmem:[%s3363_s15 + $0x70] sm:$0xf] }
  0x9a   : > { %v1803_v45 = vadd.f32 %v1771_v4, %v1672_v22  ;;  %v926_v47 = vadd.f32 %v826_v36, %v571_v10  ;;  %v1639_v18 = vmul.f32 %v3756_v19, %v1606_v34  ;;  %v1913_v50 = vmul.f32 %v3762_v21, %v1606_v34  ;;  %v1087_v4 = vld [vmem:[%s3383_s29 + $0x68] sm:$0xf]  ;;  %v1217_v10 = vld [vmem:[%s3378_s23 + $0x6c] sm:$0x1] }
  0x9b   : > { %v1439_v49 = vrot.slane %v1298_v30, 1  ;;  %v1914_v0 = vmul.f32 %v3762_v21, %v1867_v40  ;;  %v407_v54 = vunpack.c.l.bf16 %v374_v35  ;;  %v505_v57 = vunpack.c.l.bf16 %v472_v41  ;;  %v3182_v30 = vld [vmem:[%s3368_s18 + $0x70] sm:$0xf] }
  0x9c   : > { %v3861_v55 = vadd.f32 %v2059_v14, %v1803_v45  ;;  %v1056_v56 = vadd.f32 %v1024_v5, %v926_v47  ;;  %v635_v58 = vunpack.c.l.bf16 %v602_v43  ;;  %v2054_v60 = vrot.slane %v1913_v50, 1  ;;  %v3214_v5 = vld [vmem:[%s3363_s15 + $0x74] sm:$0x1]  ;;  %v379_v45 = vld [vmem:[%s3363_s15 + $0x98] sm:$0xf] }
  0x9d   : > { %v1440_v59 = vsel %vm784_vm0, %v1438_v39, %v1439_v49  ;;  %v2055_v61 = vrot.slane %v1914_v0, 1  ;;  %v440_v62 = vmul.f32 %v3703_v38, %v407_v54  ;;  %v538_v8 = vmul.f32 %v3713_v42, %v505_v57  ;;  %v477_v0 = vld [vmem:[%s3368_s18 + $0x98] sm:$0xf] }
  0x9e   : > { %v2197_v6 = vsel %vm2182_vm1, %v3861_v55, 0.0  ;;  %v1186_v7 = vadd.f32 %v1154_v24, %v1056_v56  ;;  %v680_v9 = vmul.f32 %v3719_v44, %v407_v54  ;;  %v1770_v12 = vmul.f32 %v3782_v52, %v1737_v48  ;;  %v607_v54 = vld [vmem:[%s3363_s15 + $0x9c] sm:$0x1] }
  0x9f   : > { %v2258_v11 = vsel %vm2215_vm2, %v2197_v6, 0.0  ;;  %v681_v13 = vmul.f32 %v3719_v44, %v635_v58  ;;  %v990_v14 = vunpack.c.l.bf16 %v957_v1  ;;  %v570_v3 = vadd.f32 %v538_v8, %v440_v62  ;;  %v962_v8 = vld [vmem:[%s3378_s23 + $0x98] sm:$0xf] }
  0xa0   : > { %2259 = vadd.xlane.f32.xlu2 %v2258_v11  ;;  %v1540_v16 = vadd.f32 %v1440_v59, %v1186_v7  ;;  %v821_v17 = vrot.slane %v680_v9, 1  ;;  %v1120_v22 = vunpack.c.l.bf16 %v1087_v4  ;;  %v2056_v24 = vsel %vm784_vm0, %v2054_v60, %v2055_v61 }
  0xa1   : > { %v822_v34 = vrot.slane %v681_v13, 1  ;;  %v1250_v35 = vunpack.c.l.bf16 %v1217_v10  ;;  %v1295_v36 = vmul.f32 %v3732_v51, %v990_v14  ;;  %v1023_v40 = vmul.f32 %v3739_v63, %v990_v14  ;;  %v1092_v13 = vld [vmem:[%s3383_s29 + $0x98] sm:$0xf] }
  0xa2   : > { %v1671_v39 = vadd.f32 %v1639_v18, %v1540_v16  ;;  %v1153_v41 = vmul.f32 %v3745_v2, %v1120_v22  ;;  %v1605_v43 = vunpack.c.l.bf16 %v3150_v15  ;;  %v1866_v50 = vunpack.c.l.bf16 %v3214_v5 }
  0xa3   : > { %v823_v47 = vsel %vm784_vm0, %v821_v17, %v822_v34  ;;  %v1296_v48 = vmul.f32 %v3732_v51, %v1250_v35  ;;  %v1435_v49 = vrot.slane %v1295_v36, 1  ;;  %v1736_v58 = vunpack.c.l.bf16 %v3182_v30  ;;  %v1222_v17 = vld [vmem:[%s3378_s23 + $0x9c] sm:$0x1]  ;;  %v3155_v35 = vld [vmem:[%s3363_s15 + $0xa0] sm:$0xf] }
  0xa4   : > { %v1802_v56 = vadd.f32 %v1770_v12, %v1671_v39  ;;  %v925_v57 = vadd.f32 %v823_v47, %v570_v3  ;;  %v1638_v18 = vmul.f32 %v3756_v19, %v1605_v43  ;;  %v1911_v59 = vmul.f32 %v3762_v21, %v1605_v43 }
  0xa5   : > { %v1436_v1 = vrot.slane %v1296_v48, 1  ;;  %v1912_v60 = vmul.f32 %v3762_v21, %v1866_v50  ;;  %v412_v61 = vunpack.c.l.bf16 %v379_v45  ;;  %v510_v6 = vunpack.c.l.bf16 %v477_v0 }
  0xa6   : > { %v3891_v62 = vadd.f32 %v2056_v24, %v1802_v56  ;;  %v1055_v4 = vadd.f32 %v1023_v40, %v925_v57  ;;  %v640_v7 = vunpack.c.l.bf16 %v607_v54  ;;  %v2051_v10 = vrot.slane %v1911_v59, 1  ;;  %v378_v57 = vld [vmem:[%s3363_s15 + $0x90] sm:$0xf] }
  0xa7   : > { %v1437_v9 = vsel %vm784_vm0, %v1435_v49, %v1436_v1  ;;  %v2052_v11 = vrot.slane %v1912_v60, 1  ;;  %v445_v12 = vmul.f32 %v3703_v38, %v412_v61  ;;  %v543_v16 = vmul.f32 %v3713_v42, %v510_v6  ;;  %v3187_v49 = vld [vmem:[%s3368_s18 + $0xa0] sm:$0xf] }
  0xa8   : > { %v2196_v14 = vsel %vm2182_vm1, %v3891_v62, 0.0  ;;  %v1185_v15 = vadd.f32 %v1153_v41, %v1055_v4  ;;  %v690_v3 = vmul.f32 %v3719_v44, %v412_v61  ;;  %v1769_v5 = vmul.f32 %v3782_v52, %v1736_v58  ;;  %v3219_v41 = vld [vmem:[%s3363_s15 + $0xa4] sm:$0x1]  ;;  %v476_v61 = vld [vmem:[%s3368_s18 + $0x90] sm:$0xf] }
  0xa9   : > { %v2255_v22 = vsel %vm2215_vm2, %v2196_v14, 0.0  ;;  %v691_v24 = vmul.f32 %v3719_v44, %v640_v7  ;;  %v995_v34 = vunpack.c.l.bf16 %v962_v8  ;;  %v575_v30 = vadd.f32 %v543_v16, %v445_v12  ;;  %v606_v4 = vld [vmem:[%s3363_s15 + $0x94] sm:$0x1] }
  0xaa   : > { %2256 = vadd.xlane.f32.xlu1 %v2255_v22  ;;  %v1539_v36 = vadd.f32 %v1437_v9, %v1185_v15  ;;  %v836_v39 = vrot.slane %v690_v3, 1  ;;  %v1125_v40 = vunpack.c.l.bf16 %v1092_v13  ;;  %v2053_v43 = vsel %vm784_vm0, %v2051_v10, %v2052_v11  ;;  %v961_v3 = vld [vmem:[%s3378_s23 + $0x90] sm:$0xf] }
  0xab   : > { %v837_v45 = vrot.slane %v691_v24, 1  ;;  %v1255_v47 = vunpack.c.l.bf16 %v1222_v17  ;;  %v1305_v48 = vmul.f32 %v3732_v51, %v995_v34  ;;  %v1028_v0 = vmul.f32 %v3739_v63, %v995_v34  ;;  %v1091_v34 = vld [vmem:[%s3383_s29 + $0x90] sm:$0xf] }
  0xac   : > { %v1670_v50 = vadd.f32 %v1638_v18, %v1539_v36  ;;  %v1158_v54 = vmul.f32 %v3745_v2, %v1125_v40  ;;  %v1610_v56 = vunpack.c.l.bf16 %v3155_v35  ;;  %v1871_v60 = vunpack.c.l.bf16 %v3219_v41  ;;  %v1221_v40 = vld [vmem:[%s3378_s23 + $0x94] sm:$0x1] }
  0xad   : > { %v838_v58 = vsel %vm784_vm0, %v836_v39, %v837_v45  ;;  %v1306_v1 = vmul.f32 %v3732_v51, %v1255_v47  ;;  %v1450_v59 = vrot.slane %v1305_v48, 1  ;;  %v1741_v8 = vunpack.c.l.bf16 %v3187_v49  ;;  %v3154_v48 = vld [vmem:[%s3363_s15 + $0x98] sm:$0xf] }
  0xae   : > { %v1801_v6 = vadd.f32 %v1769_v5, %v1670_v50  ;;  %v930_v7 = vadd.f32 %v838_v58, %v575_v30  ;;  %v1643_v18 = vmul.f32 %v3756_v19, %v1610_v56  ;;  %v1921_v10 = vmul.f32 %v3762_v21, %v1610_v56  ;;  %v3218_v56 = vld [vmem:[%s3363_s15 + $0x9c] sm:$0x1] }
  0xaf   : > { %v1451_v9 = vrot.slane %v1306_v1, 1  ;;  %v1922_v11 = vmul.f32 %v3762_v21, %v1871_v60  ;;  %v411_v12 = vunpack.c.l.bf16 %v378_v57  ;;  %v509_v15 = vunpack.c.l.bf16 %v476_v61  ;;  %v3186_v60 = vld [vmem:[%s3368_s18 + $0x98] sm:$0xf] }
  0xb0   : > { %v3921_v13 = vadd.f32 %v2053_v43, %v1801_v6  ;;  %v1060_v14 = vadd.f32 %v1028_v0, %v930_v7  ;;  %v639_v16 = vunpack.c.l.bf16 %v606_v4  ;;  %v2066_v22 = vrot.slane %v1921_v10, 1 }
  0xb1   : > { %v1452_v17 = vsel %vm784_vm0, %v1450_v59, %v1451_v9  ;;  %v2067_v5 = vrot.slane %v1922_v11, 1  ;;  %v444_v24 = vmul.f32 %v3703_v38, %v411_v12  ;;  %v542_v30 = vmul.f32 %v3713_v42, %v509_v15  ;;  %v605_v15 = vld [vmem:[%s3363_s15 + $0x84] sm:$0x1] }
  0xb2   : > { %5428 = vst [vmem:[#allocation8_spill] sm:$0xff] %v3921_v13  ;;  %v2195_v35 = vsel %vm2182_vm1, %v3921_v13, 0.0  ;;  %v1190_v36 = vadd.f32 %v1158_v54, %v1060_v14  ;;  %v688_v39 = vmul.f32 %v3719_v44, %v411_v12  ;;  %v1774_v43 = vmul.f32 %v3782_v52, %v1741_v8  ;;  %v377_v8 = vld [vmem:[%s3363_s15 + $0x80] sm:$0xf] }
  0xb3   : > { %v2252_v41 = vsel %vm2215_vm2, %v2195_v35, 0.0  ;;  %v689_v45 = vmul.f32 %v3719_v44, %v639_v16  ;;  %v994_v47 = vunpack.c.l.bf16 %v961_v3  ;;  %v574_v50 = vadd.f32 %v542_v30, %v444_v24  ;;  %v475_v14 = vld [vmem:[%s3368_s18 + $0x80] sm:$0xf] }
  0xb4   : > { %2253 = vadd.xlane.f32.xlu0 %v2252_v41  ;;  %v1544_v49 = vadd.f32 %v1452_v17, %v1190_v36  ;;  %v833_v0 = vrot.slane %v688_v39, 1  ;;  %v1124_v54 = vunpack.c.l.bf16 %v1091_v34  ;;  %v2068_v57 = vsel %vm784_vm0, %v2066_v22, %v2067_v5 }
  0xb5   : > { %v834_v58 = vrot.slane %v689_v45, 1  ;;  %v1254_v1 = vunpack.c.l.bf16 %v1221_v40  ;;  %v1303_v59 = vmul.f32 %v3732_v51, %v994_v47  ;;  %v1027_v4 = vmul.f32 %v3739_v63, %v994_v47  ;;  %v960_v40 = vld [vmem:[%s3378_s23 + $0x80] sm:$0xf] }
  0xb6   : > { %v1675_v61 = vadd.f32 %v1643_v18, %v1544_v49  ;;  %v1157_v6 = vmul.f32 %v3745_v2, %v1124_v54  ;;  %v1609_v7 = vunpack.c.l.bf16 %v3154_v48  ;;  %v1870_v12 = vunpack.c.l.bf16 %v3218_v56  ;;  %v1090_v48 = vld [vmem:[%s3383_s29 + $0x80] sm:$0xf]  ;;  %v1220_v56 = vld [vmem:[%s3378_s23 + $0x84] sm:$0x1] }
  0xb7   : > { %v835_v9 = vsel %vm784_vm0, %v833_v0, %v834_v58  ;;  %v1304_v10 = vmul.f32 %v3732_v51, %v1254_v1  ;;  %v1447_v11 = vrot.slane %v1303_v59, 1  ;;  %v1740_v17 = vunpack.c.l.bf16 %v3186_v60  ;;  %v3153_v60 = vld [vmem:[%s3363_s15 + $0x88] sm:$0xf] }
  0xb8   : > { %v1806_v16 = vadd.f32 %v1774_v43, %v1675_v61  ;;  %v929_v3 = vadd.f32 %v835_v9, %v574_v50  ;;  %v1642_v18 = vmul.f32 %v3756_v19, %v1609_v7  ;;  %v1919_v5 = vmul.f32 %v3762_v21, %v1609_v7 }
  0xb9   : > { %v1448_v22 = vrot.slane %v1304_v10, 1  ;;  %v1920_v24 = vmul.f32 %v3762_v21, %v1870_v12  ;;  %v410_v34 = vunpack.c.l.bf16 %v377_v8  ;;  %v508_v30 = vunpack.c.l.bf16 %v475_v14  ;;  %v3217_v8 = vld [vmem:[%s3363_s15 + $0x8c] sm:$0x1]  ;;  %v3185_v14 = vld [vmem:[%s3368_s18 + $0x88] sm:$0xf] }
  0xba   : > { %v3951_v35 = vadd.f32 %v2068_v57, %v1806_v16  ;;  %v1059_v36 = vadd.f32 %v1027_v4, %v929_v3  ;;  %v638_v39 = vunpack.c.l.bf16 %v605_v15  ;;  %v2063_v43 = vrot.slane %v1919_v5, 1 }
  0xbb   : > { %v1449_v41 = vsel %vm784_vm0, %v1447_v11, %v1448_v22  ;;  %v2064_v45 = vrot.slane %v1920_v24, 1  ;;  %v443_v47 = vmul.f32 %v3703_v38, %v410_v34  ;;  %v541_v0 = vmul.f32 %v3713_v42, %v508_v30  ;;  %v382_v22 = vld [vmem:[%s3363_s15 + $0xb0] sm:$0xf] }
  0xbc   : > { %v2200_v49 = vsel %vm2182_vm1, %v3951_v35, 0.0  ;;  %v1189_v50 = vadd.f32 %v1157_v6, %v1059_v36  ;;  %v686_v54 = vmul.f32 %v3719_v44, %v410_v34  ;;  %v1773_v58 = vmul.f32 %v3782_v52, %v1740_v17  ;;  %v480_v30 = vld [vmem:[%s3368_s18 + $0xb0] sm:$0xf] }
  0xbd   : > { %v2267_v57 = vsel %vm2215_vm2, %v2200_v49, 0.0  ;;  %v687_v1 = vmul.f32 %v3719_v44, %v638_v39  ;;  %v993_v59 = vunpack.c.l.bf16 %v960_v40  ;;  %v573_v4 = vadd.f32 %v541_v0, %v443_v47  ;;  %v610_v39 = vld [vmem:[%s3363_s15 + $0xb4] sm:$0x1] }
  0xbe   : > { %2268 = vadd.xlane.f32.xlu2 %v2267_v57  ;;  %v1543_v61 = vadd.f32 %v1449_v41, %v1189_v50  ;;  %v830_v7 = vrot.slane %v686_v54, 1  ;;  %v1123_v6 = vunpack.c.l.bf16 %v1090_v48  ;;  %v2065_v9 = vsel %vm784_vm0, %v2063_v43, %v2064_v45  ;;  %v965_v57 = vld [vmem:[%s3378_s23 + $0xb0] sm:$0xf] }
  0xbf   : > { %v831_v10 = vrot.slane %v687_v1, 1  ;;  %v1253_v11 = vunpack.c.l.bf16 %v1220_v56  ;;  %v1301_v12 = vmul.f32 %v3732_v51, %v993_v59  ;;  %v1026_v16 = vmul.f32 %v3739_v63, %v993_v59 }
  0xc0   : > { %v1674_v15 = vadd.f32 %v1642_v18, %v1543_v61  ;;  %v1156_v3 = vmul.f32 %v3745_v2, %v1123_v6  ;;  %v1608_v17 = vunpack.c.l.bf16 %v3153_v60  ;;  %v1869_v36 = vunpack.c.l.bf16 %v3217_v8  ;;  %v1095_v61 = vld [vmem:[%s3383_s29 + $0xb0] sm:$0xf] }
  0xc1   : > { %v832_v5 = vsel %vm784_vm0, %v830_v7, %v831_v10  ;;  %v1302_v24 = vmul.f32 %v3732_v51, %v1253_v11  ;;  %v1444_v34 = vrot.slane %v1301_v12, 1  ;;  %v1739_v43 = vunpack.c.l.bf16 %v3185_v14 }
  0xc2   : > { %v1805_v40 = vadd.f32 %v1773_v58, %v1674_v15  ;;  %v928_v41 = vadd.f32 %v832_v5, %v573_v4  ;;  %v1641_v18 = vmul.f32 %v3756_v19, %v1608_v17  ;;  %v1917_v47 = vmul.f32 %v3762_v21, %v1608_v17  ;;  %v3158_v15 = vld [vmem:[%s3363_s15 + $0xb8] sm:$0xf]  ;;  %v3222_v5 = vld [vmem:[%s3363_s15 + $0xbc] sm:$0x1] }
  0xc3   : > { %v1445_v45 = vrot.slane %v1302_v24, 1  ;;  %v1918_v48 = vmul.f32 %v3762_v21, %v1869_v36  ;;  %v415_v49 = vunpack.c.l.bf16 %v382_v22  ;;  %v513_v54 = vunpack.c.l.bf16 %v480_v30 }
  0xc4   : > { %v3981_v50 = vadd.f32 %v2065_v9, %v1805_v40  ;;  %v1058_v0 = vadd.f32 %v1026_v16, %v928_v41  ;;  %v643_v56 = vunpack.c.l.bf16 %v610_v39  ;;  %v2060_v1 = vrot.slane %v1917_v47, 1  ;;  %v1225_v9 = vld [vmem:[%s3378_s23 + $0xb4] sm:$0x1]  ;;  %v3190_v39 = vld [vmem:[%s3368_s18 + $0xb8] sm:$0xf] }
  0xc5   : > { %v1446_v58 = vsel %vm784_vm0, %v1444_v34, %v1445_v45  ;;  %v2061_v59 = vrot.slane %v1918_v48, 1  ;;  %v448_v60 = vmul.f32 %v3703_v38, %v415_v49  ;;  %v546_v6 = vmul.f32 %v3713_v42, %v513_v54  ;;  %v381_v47 = vld [vmem:[%s3363_s15 + $0xa8] sm:$0xf] }
  0xc6   : > { %v2199_v4 = vsel %vm2182_vm1, %v3981_v50, 0.0  ;;  %v1188_v7 = vadd.f32 %v1156_v3, %v1058_v0  ;;  %v696_v8 = vmul.f32 %v3719_v44, %v415_v49  ;;  %v1772_v11 = vmul.f32 %v3782_v52, %v1739_v43 }
  0xc7   : > { %v2264_v10 = vsel %vm2215_vm2, %v2199_v4, 0.0  ;;  %v697_v12 = vmul.f32 %v3719_v44, %v643_v56  ;;  %v998_v14 = vunpack.c.l.bf16 %v965_v57  ;;  %v578_v17 = vadd.f32 %v546_v6, %v448_v60  ;;  %v479_v56 = vld [vmem:[%s3368_s18 + $0xa8] sm:$0xf]  ;;  %v609_v57 = vld [vmem:[%s3363_s15 + $0xac] sm:$0x1] }
  0xc8   : > { %2265 = vadd.xlane.f32.xlu1 %v2264_v10  ;;  %v1542_v16 = vadd.f32 %v1446_v58, %v1188_v7  ;;  %v845_v22 = vrot.slane %v696_v8, 1  ;;  %v1128_v3 = vunpack.c.l.bf16 %v1095_v61  ;;  %v2062_v24 = vsel %vm784_vm0, %v2060_v1, %v2061_v59 }
  0xc9   : > { %v846_v34 = vrot.slane %v697_v12, 1  ;;  %v1258_v36 = vunpack.c.l.bf16 %v1225_v9  ;;  %v1311_v30 = vmul.f32 %v3732_v51, %v998_v14  ;;  %v1031_v41 = vmul.f32 %v3739_v63, %v998_v14  ;;  %v964_v12 = vld [vmem:[%s3378_s23 + $0xa8] sm:$0xf] }
  0xca   : > { %v1673_v40 = vadd.f32 %v1641_v18, %v1542_v16  ;;  %v1161_v43 = vmul.f32 %v3745_v2, %v1128_v3  ;;  %v1613_v45 = vunpack.c.l.bf16 %v3158_v15  ;;  %v1874_v54 = vunpack.c.l.bf16 %v3222_v5 }
  0xcb   : > { %v847_v48 = vsel %vm784_vm0, %v845_v22, %v846_v34  ;;  %v1312_v49 = vmul.f32 %v3732_v51, %v1258_v36  ;;  %v1459_v0 = vrot.slane %v1311_v30, 1  ;;  %v1744_v59 = vunpack.c.l.bf16 %v3190_v39  ;;  %v1224_v34 = vld [vmem:[%s3378_s23 + $0xac] sm:$0x1] }
  0xcc   : > { %v1804_v58 = vadd.f32 %v1772_v11, %v1673_v40  ;;  %v933_v1 = vadd.f32 %v847_v48, %v578_v17  ;;  %v1646_v18 = vmul.f32 %v3756_v19, %v1613_v45  ;;  %v1927_v61 = vmul.f32 %v3762_v21, %v1613_v45  ;;  %v1094_v17 = vld [vmem:[%s3383_s29 + $0xa8] sm:$0xf] }
  0xcd   : > { %v1460_v60 = vrot.slane %v1312_v49, 1  ;;  %v1928_v4 = vmul.f32 %v3762_v21, %v1874_v54  ;;  %v414_v7 = vunpack.c.l.bf16 %v381_v47  ;;  %v512_v9 = vunpack.c.l.bf16 %v479_v56  ;;  %v3221_v49 = vld [vmem:[%s3363_s15 + $0xb4] sm:$0x1] }
  0xce   : > { %v4011_v6 = vadd.f32 %v2062_v24, %v1804_v58  ;;  %v1063_v8 = vadd.f32 %v1031_v41, %v933_v1  ;;  %v642_v10 = vunpack.c.l.bf16 %v609_v57  ;;  %v2075_v14 = vrot.slane %v1927_v61, 1  ;;  %v3157_v41 = vld [vmem:[%s3363_s15 + $0xb0] sm:$0xf] }
  0xcf   : > { %v1461_v11 = vsel %vm784_vm0, %v1459_v0, %v1460_v60  ;;  %v2076_v15 = vrot.slane %v1928_v4, 1  ;;  %v447_v16 = vmul.f32 %v3703_v38, %v414_v7  ;;  %v545_v5 = vmul.f32 %v3713_v42, %v512_v9  ;;  %v3189_v58 = vld [vmem:[%s3368_s18 + $0xb0] sm:$0xf]  ;;  %v380_v4 = vld [vmem:[%s3363_s15 + $0xa0] sm:$0xf] }
  0xd0   : > { %5429 = vst [vmem:[#allocation9_spill] sm:$0xff] %v4011_v6  ;;  %v2198_v22 = vsel %vm2182_vm1, %v4011_v6, 0.0  ;;  %v1193_v3 = vadd.f32 %v1161_v43, %v1063_v8  ;;  %v694_v24 = vmul.f32 %v3719_v44, %v414_v7  ;;  %v1777_v30 = vmul.f32 %v3782_v52, %v1744_v59 }
  0xd1   : > { %v2261_v36 = vsel %vm2215_vm2, %v2198_v22, 0.0  ;;  %v695_v39 = vmul.f32 %v3719_v44, %v642_v10  ;;  %v997_v40 = vunpack.c.l.bf16 %v964_v12  ;;  %v577_v47 = vadd.f32 %v545_v5, %v447_v16  ;;  %v478_v12 = vld [vmem:[%s3368_s18 + $0xa0] sm:$0xf] }
  0xd2   : > { %2262 = vadd.xlane.f32.xlu0 %v2261_v36  ;;  %v1547_v45 = vadd.f32 %v1461_v11, %v1193_v3  ;;  %v842_v48 = vrot.slane %v694_v24, 1  ;;  %v1127_v43 = vunpack.c.l.bf16 %v1094_v17  ;;  %v2077_v0 = vsel %vm784_vm0, %v2075_v14, %v2076_v15  ;;  %v608_v11 = vld [vmem:[%s3363_s15 + $0xa4] sm:$0x1] }
  0xd3   : > { %v843_v54 = vrot.slane %v695_v39, 1  ;;  %v1257_v56 = vunpack.c.l.bf16 %v1224_v34  ;;  %v1309_v57 = vmul.f32 %v3732_v51, %v997_v40  ;;  %v1030_v59 = vmul.f32 %v3739_v63, %v997_v40  ;;  %v963_v40 = vld [vmem:[%s3378_s23 + $0xa0] sm:$0xf] }
  0xd4   : > { %v1678_v1 = vadd.f32 %v1646_v18, %v1547_v45  ;;  %v1160_v60 = vmul.f32 %v3745_v2, %v1127_v43  ;;  %v1612_v61 = vunpack.c.l.bf16 %v3157_v41  ;;  %v1873_v10 = vunpack.c.l.bf16 %v3221_v49 }
  0xd5   : > { %v844_v7 = vsel %vm784_vm0, %v842_v48, %v843_v54  ;;  %v1310_v8 = vmul.f32 %v3732_v51, %v1257_v56  ;;  %v1456_v9 = vrot.slane %v1309_v57, 1  ;;  %v1743_v16 = vunpack.c.l.bf16 %v3189_v58  ;;  %v1093_v48 = vld [vmem:[%s3383_s29 + $0xa0] sm:$0xf]  ;;  %v1223_v56 = vld [vmem:[%s3378_s23 + $0xa4] sm:$0x1] }
  0xd6   : > { %v1809_v14 = vadd.f32 %v1777_v30, %v1678_v1  ;;  %v932_v15 = vadd.f32 %v844_v7, %v577_v47  ;;  %v1645_v18 = vmul.f32 %v3756_v19, %v1612_v61  ;;  %v1925_v22 = vmul.f32 %v3762_v21, %v1612_v61 }
  0xd7   : > { %v1457_v17 = vrot.slane %v1310_v8, 1  ;;  %v1926_v3 = vmul.f32 %v3762_v21, %v1873_v10  ;;  %v413_v5 = vunpack.c.l.bf16 %v380_v4  ;;  %v511_v36 = vunpack.c.l.bf16 %v478_v12 }
  0xd8   : > { %v4041_v24 = vadd.f32 %v2077_v0, %v1809_v14  ;;  %v1062_v34 = vadd.f32 %v1030_v59, %v932_v15  ;;  %v641_v39 = vunpack.c.l.bf16 %v608_v11  ;;  %v2072_v41 = vrot.slane %v1925_v22, 1  ;;  %v3156_v59 = vld [vmem:[%s3363_s15 + $0xa8] sm:$0xf] }
  0xd9   : > { %v1458_v30 = vsel %vm784_vm0, %v1456_v9, %v1457_v17  ;;  %v2073_v45 = vrot.slane %v1926_v3, 1  ;;  %v446_v47 = vmul.f32 %v3703_v38, %v413_v5  ;;  %v544_v0 = vmul.f32 %v3713_v42, %v511_v36  ;;  %v3220_v42 = vld [vmem:[%s3363_s15 + $0xac] sm:$0x1]  ;;  %v3188_v11 = vld [vmem:[%s3368_s18 + $0xa8] sm:$0xf] }
  0xda   : > { %v2203_v43 = vsel %vm2182_vm1, %v4041_v24, 0.0  ;;  %v1192_v49 = vadd.f32 %v1160_v60, %v1062_v34  ;;  %v692_v54 = vmul.f32 %v3719_v44, %v413_v5  ;;  %v1776_v58 = vmul.f32 %v3782_v52, %v1743_v16  ;;  %v385_v17 = vld [vmem:[%s3363_s15 + $0xc8] sm:$0xf] }
  0xdb   : > { %v2276_v57 = vsel %vm2215_vm2, %v2203_v43, 0.0  ;;  %v693_v1 = vmul.f32 %v3719_v44, %v641_v39  ;;  %v996_v38 = vunpack.c.l.bf16 %v963_v40  ;;  %v576_v4 = vadd.f32 %v544_v0, %v446_v47  ;;  %v483_v36 = vld [vmem:[%s3368_s18 + $0xc8] sm:$0xf]  ;;  %v613_v39 = vld [vmem:[%s3363_s15 + $0xcc] sm:$0x1] }
  0xdc   : > { %2277 = vadd.xlane.f32.xlu2 %v2276_v57  ;;  %v1546_v61 = vadd.f32 %v1458_v30, %v1192_v49  ;;  %v839_v7 = vrot.slane %v692_v54, 1  ;;  %v1126_v60 = vunpack.c.l.bf16 %v1093_v48  ;;  %v2074_v8 = vsel %vm784_vm0, %v2072_v41, %v2073_v45  ;;  %v968_v0 = vld [vmem:[%s3378_s23 + $0xc8] sm:$0xf]  ;;  %v4078_v57 = vld [vmem:[%s5401_s4] ss:$0 sm:$0xff] }
  0xdd   : > { %v840_v9 = vrot.slane %v693_v1, 1  ;;  %v1256_v10 = vunpack.c.l.bf16 %v1223_v56  ;;  %v1307_v12 = vmul.f32 %v3732_v51, %v996_v38  ;;  %v1029_v44 = vmul.f32 %v3739_v63, %v996_v38 }
  0xde   : > { %v1677_v14 = vadd.f32 %v1645_v18, %v1546_v61  ;;  %v1159_v15 = vmul.f32 %v3745_v2, %v1126_v60  ;;  %v1611_v16 = vunpack.c.l.bf16 %v3156_v59  ;;  %v1872_v34 = vunpack.c.l.bf16 %v3220_v42  ;;  %v4088_v59 = vld [vmem:[%s5401_s4 + $0x1] ss:$0 sm:$0xff]  ;;  %v1228_v60 = vld [vmem:[%s3378_s23 + $0xcc] sm:$0x1] }
  0xdf   : > { %v841_v22 = vsel %vm784_vm0, %v839_v7, %v840_v9  ;;  %v1308_v3 = vmul.f32 %v3732_v51, %v1256_v10  ;;  %v1453_v5 = vrot.slane %v1307_v12, 1  ;;  %v1742_v18 = vunpack.c.l.bf16 %v3188_v11  ;;  %v3161_v12 = vld [vmem:[%s3363_s15 + $0xd0] sm:$0xf] }
  0xe0   : > { %v1808_v40 = vadd.f32 %v1776_v58, %v1677_v14  ;;  %v931_v30 = vadd.f32 %v841_v22, %v576_v4  ;;  %v1644_v41 = vmul.f32 %v3756_v19, %v1611_v16  ;;  %v1923_v2 = vmul.f32 %v3762_v21, %v1611_v16  ;;  %v1098_v58 = vld [vmem:[%s3383_s29 + $0xc8] sm:$0xf]  ;;  %v4094_v4 = vld [vmem:[%s5401_s4 + $0x2] ss:$0 sm:$0xff]  ;;  %v3225_v16 = vld [vmem:[%s3363_s15 + $0xd4] sm:$0x1] }
  0xe1   : > { %v1454_v63 = vrot.slane %v1308_v3, 1  ;;  %v1924_v45 = vmul.f32 %v3762_v21, %v1872_v34  ;;  %v418_v47 = vunpack.c.l.bf16 %v385_v17  ;;  %v516_v43 = vunpack.c.l.bf16 %v483_v36  ;;  %v3193_v34 = vld [vmem:[%s3368_s18 + $0xd0] sm:$0xf] }
  0xe2   : > { %v4071_v48 = vadd.f32 %v2074_v8, %v1808_v40  ;;  %v1061_v51 = vadd.f32 %v1029_v44, %v931_v30  ;;  %v646_v49 = vunpack.c.l.bf16 %v613_v39  ;;  %v2069_v56 = vrot.slane %v1923_v2, 1  ;;  %v4114_v39 = vld [vmem:[%s5401_s4 + $0x3] ss:$0 sm:$0xff]  ;;  %v4120_v30 = vld [vmem:[%s5401_s4 + $0x4] ss:$0 sm:$0xff] }
  0xe3   : > { %v1455_v54 = vsel %vm784_vm0, %v1453_v5, %v1454_v63  ;;  %v2070_v19 = vrot.slane %v1924_v45, 1  ;;  %v451_v21 = vmul.f32 %v4078_v57, %v418_v47  ;;  %v549_v61 = vmul.f32 %v4088_v59, %v516_v43  ;;  %v384_v2 = vld [vmem:[%s3363_s15 + $0xc0] sm:$0xf] }
  0xe4   : > { %5430 = vst [vmem:[#allocation10_spill] sm:$0xff] %v4071_v48  ;;  %v2202_v1 = vsel %vm2182_vm1, %v4071_v48, 0.0  ;;  %v1191_v38 = vadd.f32 %v1159_v15, %v1061_v51  ;;  %v702_v7 = vmul.f32 %v4094_v4, %v418_v47  ;;  %v1775_v8 = vmul.f32 %v3782_v52, %v1742_v18  ;;  %v4107_v52 = vld [vmem:[%s5401_s4 + $0x5] ss:$0 sm:$0xff]  ;;  %v482_v43 = vld [vmem:[%s3368_s18 + $0xc0] sm:$0xf] }
  0xe5   : > { %v2273_v42 = vsel %vm2215_vm2, %v2202_v1, 0.0  ;;  %v703_v9 = vmul.f32 %v4094_v4, %v646_v49  ;;  %v1001_v10 = vunpack.c.l.bf16 %v968_v0  ;;  %v581_v14 = vadd.f32 %v549_v61, %v451_v21  ;;  %v612_v49 = vld [vmem:[%s3363_s15 + $0xc4] sm:$0x1]  ;;  %v4137_v1 = vld [vmem:[%s5401_s4 + $0x8] ss:$0 sm:$0xff] }
  0xe6   : > { %2274 = vadd.xlane.f32.xlu1 %v2273_v42  ;;  %v1545_v11 = vadd.f32 %v1455_v54, %v1191_v38  ;;  %v854_v44 = vrot.slane %v702_v7, 1  ;;  %v1131_v15 = vunpack.c.l.bf16 %v1098_v58  ;;  %v2071_v17 = vsel %vm784_vm0, %v2069_v56, %v2070_v19  ;;  %v4131_v56 = vld [vmem:[%s5401_s4 + $0x6] ss:$0 sm:$0xff] }
  0xe7   : > { %v855_v22 = vrot.slane %v703_v9, 1  ;;  %v1261_v3 = vunpack.c.l.bf16 %v1228_v60  ;;  %v1317_v5 = vmul.f32 %v4107_v52, %v1001_v10  ;;  %v1034_v40 = vmul.f32 %v4114_v39, %v1001_v10  ;;  %v967_v10 = vld [vmem:[%s3378_s23 + $0xc0] sm:$0xf] }
  0xe8   : > { %v1676_v36 = vadd.f32 %v1644_v41, %v1545_v11  ;;  %v1164_v18 = vmul.f32 %v4120_v30, %v1131_v15  ;;  %v1616_v63 = vunpack.c.l.bf16 %v3161_v12  ;;  %v1877_v51 = vunpack.c.l.bf16 %v3225_v16  ;;  %v1097_v15 = vld [vmem:[%s3383_s29 + $0xc0] sm:$0xf] }
  0xe9   : > { %v856_v45 = vsel %vm784_vm0, %v854_v44, %v855_v22  ;;  %v1318_v41 = vmul.f32 %v4107_v52, %v1261_v3  ;;  %v1468_v47 = vrot.slane %v1317_v5, 1  ;;  %v1747_v21 = vunpack.c.l.bf16 %v3193_v34  ;;  %v1227_v5 = vld [vmem:[%s3378_s23 + $0xc4] sm:$0x1] }
  0xea   : > { %v1807_v0 = vadd.f32 %v1775_v8, %v1676_v36  ;;  %v936_v54 = vadd.f32 %v856_v45, %v581_v14  ;;  %v1649_v19 = vmul.f32 %v4131_v56, %v1616_v63  ;;  %v1933_v38 = vmul.f32 %v4137_v1, %v1616_v63  ;;  %v4157_v36 = vld [vmem:[%s5401_s4 + $0x7] ss:$0 sm:$0xff]  ;;  %v3160_v45 = vld [vmem:[%s3363_s15 + $0xc8] sm:$0xf] }
  0xeb   : > { %v1469_v58 = vrot.slane %v1318_v41, 1  ;;  %v1934_v61 = vmul.f32 %v4137_v1, %v1877_v51  ;;  %v417_v7 = vunpack.c.l.bf16 %v384_v2  ;;  %v515_v8 = vunpack.c.l.bf16 %v482_v43  ;;  %v3224_v43 = vld [vmem:[%s3363_s15 + $0xcc] sm:$0x1] }
  0xec   : > { %v4141_v60 = vadd.f32 %v2071_v17, %v1807_v0  ;;  %v1066_v42 = vadd.f32 %v1034_v40, %v936_v54  ;;  %v645_v9 = vunpack.c.l.bf16 %v612_v49  ;;  %v2084_v11 = vrot.slane %v1933_v38, 1 }
  0xed   : > { %v1470_v12 = vsel %vm784_vm0, %v1468_v47, %v1469_v58  ;;  %v2085_v14 = vrot.slane %v1934_v61, 1  ;;  %v450_v44 = vmul.f32 %v4078_v57, %v417_v7  ;;  %v548_v17 = vmul.f32 %v4088_v59, %v515_v8  ;;  %v383_v8 = vld [vmem:[%s3363_s15 + $0xb8] sm:$0xf] }
  0xee   : > { %v2201_v16 = vsel %vm2182_vm1, %v4141_v60, 0.0  ;;  %v1196_v22 = vadd.f32 %v1164_v18, %v1066_v42  ;;  %v700_v3 = vmul.f32 %v4094_v4, %v417_v7  ;;  %v1780_v40 = vmul.f32 %v4157_v36, %v1747_v21  ;;  %v3192_v21 = vld [vmem:[%s3368_s18 + $0xc8] sm:$0xf] }
  0xef   : > { %v2270_v34 = vsel %vm2215_vm2, %v2201_v16, 0.0  ;;  %v701_v63 = vmul.f32 %v4094_v4, %v645_v9  ;;  %v1000_v2 = vunpack.c.l.bf16 %v967_v10  ;;  %v580_v41 = vadd.f32 %v548_v17, %v450_v44 }
  0xf0   : > { %2271 = vadd.xlane.f32.xlu0 %v2270_v34  ;;  %v1550_v18 = vadd.f32 %v1470_v12, %v1196_v22  ;;  %v851_v47 = vrot.slane %v700_v3, 1  ;;  %v1130_v51 = vunpack.c.l.bf16 %v1097_v15  ;;  %v2086_v49 = vsel %vm784_vm0, %v2084_v11, %v2085_v14  ;;  %v481_v11 = vld [vmem:[%s3368_s18 + $0xb8] sm:$0xf]  ;;  %v611_v14 = vld [vmem:[%s3363_s15 + $0xbc] sm:$0x1] }
  0xf1   : > { %v852_v0 = vrot.slane %v701_v63, 1  ;;  %v1260_v54 = vunpack.c.l.bf16 %v1227_v5  ;;  %v1315_v58 = vmul.f32 %v4107_v52, %v1000_v2  ;;  %v1033_v61 = vmul.f32 %v4114_v39, %v1000_v2 }
  0xf2   : > { %v1681_v38 = vadd.f32 %v1649_v19, %v1550_v18  ;;  %v1163_v7 = vmul.f32 %v4120_v30, %v1130_v51  ;;  %v1615_v42 = vunpack.c.l.bf16 %v3160_v45  ;;  %v1876_v44 = vunpack.c.l.bf16 %v3224_v43 }
  0xf3   : > { %v853_v9 = vsel %vm784_vm0, %v851_v47, %v852_v0  ;;  %v1316_v10 = vmul.f32 %v4107_v52, %v1260_v54  ;;  %v1465_v12 = vrot.slane %v1315_v58, 1  ;;  %v1746_v22 = vunpack.c.l.bf16 %v3192_v21  ;;  %v966_v47 = vld [vmem:[%s3378_s23 + $0xb8] sm:$0xf] }
  0xf4   : > { %v1812_v15 = vadd.f32 %v1780_v40, %v1681_v38  ;;  %v935_v16 = vadd.f32 %v853_v9, %v580_v41  ;;  %v1648_v19 = vmul.f32 %v4131_v56, %v1615_v42  ;;  %v1931_v3 = vmul.f32 %v4137_v1, %v1615_v42  ;;  %v1096_v0 = vld [vmem:[%s3383_s29 + $0xb8] sm:$0xf]  ;;  %v1226_v38 = vld [vmem:[%s3378_s23 + $0xbc] sm:$0x1] }
  0xf5   : > { %v1466_v17 = vrot.slane %v1316_v10, 1  ;;  %v1932_v5 = vmul.f32 %v4137_v1, %v1876_v44  ;;  %v416_v34 = vunpack.c.l.bf16 %v383_v8  ;;  %v514_v45 = vunpack.c.l.bf16 %v481_v11  ;;  %v3159_v10 = vld [vmem:[%s3363_s15 + $0xc0] sm:$0xf] }
  0xf6   : > { %v4176_v63 = vadd.f32 %v2086_v49, %v1812_v15  ;;  %v1065_v2 = vadd.f32 %v1033_v61, %v935_v16  ;;  %v644_v18 = vunpack.c.l.bf16 %v611_v14  ;;  %v2081_v41 = vrot.slane %v1931_v3, 1  ;;  %v3223_v14 = vld [vmem:[%s3363_s15 + $0xc4] sm:$0x1] }
  0xf7   : > { %v1467_v40 = vsel %vm784_vm0, %v1465_v12, %v1466_v17  ;;  %v2082_v51 = vrot.slane %v1932_v5, 1  ;;  %v449_v43 = vmul.f32 %v4078_v57, %v416_v34  ;;  %v547_v49 = vmul.f32 %v4088_v59, %v514_v45 }
  0xf8   : > { %v2206_v54 = vsel %vm2182_vm1, %v4176_v63, 0.0  ;;  %v1195_v58 = vadd.f32 %v1163_v7, %v1065_v2  ;;  %v698_v21 = vmul.f32 %v4094_v4, %v416_v34  ;;  %v1779_v42 = vmul.f32 %v4157_v36, %v1746_v22  ;;  %v3191_v22 = vld [vmem:[%s3368_s18 + $0xc0] sm:$0xf] }
  0xf9   : > { %v2285_v61 = vsel %vm2215_vm2, %v2206_v54, 0.0  ;;  %v699_v8 = vmul.f32 %v4094_v4, %v644_v18  ;;  %v999_v9 = vunpack.c.l.bf16 %v966_v47  ;;  %v579_v44 = vadd.f32 %v547_v49, %v449_v43  ;;  %v388_v18 = vld [vmem:[%s3363_s15 + $0xe8] sm:$0xf] }
  0xfa   : > { %2286 = vadd.xlane.f32.xlu2 %v2285_v61  ;;  %v1549_v12 = vadd.f32 %v1467_v40, %v1195_v58  ;;  %v848_v11 = vrot.slane %v698_v21, 1  ;;  %v1129_v7 = vunpack.c.l.bf16 %v1096_v0  ;;  %v2083_v15 = vsel %vm784_vm0, %v2081_v41, %v2082_v51  ;;  %v486_v41 = vld [vmem:[%s3368_s18 + $0xe8] sm:$0xf]  ;;  %v616_v51 = vld [vmem:[%s3363_s15 + $0xec] sm:$0x1] }
  0xfb   : > { %v849_v16 = vrot.slane %v699_v8, 1  ;;  %v1259_v17 = vunpack.c.l.bf16 %v1226_v38  ;;  %v1313_v3 = vmul.f32 %v4107_v52, %v999_v9  ;;  %v1032_v34 = vmul.f32 %v4114_v39, %v999_v9 }
  0xfc   : > { %v1680_v5 = vadd.f32 %v1648_v19, %v1549_v12  ;;  %v1162_v2 = vmul.f32 %v4120_v30, %v1129_v7  ;;  %v1614_v45 = vunpack.c.l.bf16 %v3159_v10  ;;  %v1875_v0 = vunpack.c.l.bf16 %v3223_v14  ;;  %v971_v7 = vld [vmem:[%s3378_s23 + $0xe8] sm:$0xf] }
  0xfd   : > { %v850_v47 = vsel %vm784_vm0, %v848_v11, %v849_v16  ;;  %v1314_v40 = vmul.f32 %v4107_v52, %v1259_v17  ;;  %v1462_v43 = vrot.slane %v1313_v3, 1  ;;  %v1745_v49 = vunpack.c.l.bf16 %v3191_v22  ;;  %v1101_v17 = vld [vmem:[%s3383_s29 + $0xe8] sm:$0xf] }
  0xfe   : > { %v1811_v54 = vadd.f32 %v1779_v42, %v1680_v5  ;;  %v934_v58 = vadd.f32 %v850_v47, %v579_v44  ;;  %v1647_v19 = vmul.f32 %v4131_v56, %v1614_v45  ;;  %v1929_v38 = vmul.f32 %v4137_v1, %v1614_v45 }
  0xff   : > { %v1463_v21 = vrot.slane %v1314_v40, 1  ;;  %v1930_v61 = vmul.f32 %v4137_v1, %v1875_v0  ;;  %v421_v8 = vunpack.c.l.bf16 %v388_v18  ;;  %v519_v12 = vunpack.c.l.bf16 %v486_v41 }
 0x100   : > { %v4206_v9 = vadd.f32 %v2083_v15, %v1811_v54  ;;  %v1064_v10 = vadd.f32 %v1032_v34, %v934_v58  ;;  %v649_v11 = vunpack.c.l.bf16 %v616_v51  ;;  %v2078_v44 = vrot.slane %v1929_v38, 1  ;;  %v1231_v34 = vld [vmem:[%s3378_s23 + $0xec] sm:$0x1]  ;;  %v3228_v54 = vld [vmem:[%s3363_s15 + $0xf4] sm:$0x1] }
 0x101   : > { %v1464_v42 = vsel %vm784_vm0, %v1462_v43, %v1463_v21  ;;  %v2079_v14 = vrot.slane %v1930_v61, 1  ;;  %v454_v16 = vmul.f32 %v4078_v57, %v421_v8  ;;  %v552_v15 = vmul.f32 %v4088_v59, %v519_v12  ;;  %v3164_v43 = vld [vmem:[%s3363_s15 + $0xf0] sm:$0xf] }
 0x102   : > { %5431 = vst [vmem:[#allocation11_spill] sm:$0xff] %v4206_v9  ;;  %v2205_v3 = vsel %vm2182_vm1, %v4206_v9, 0.0  ;;  %v1194_v22 = vadd.f32 %v1162_v2, %v1064_v10  ;;  %v708_v5 = vmul.f32 %v4094_v4, %v421_v8  ;;  %v1778_v18 = vmul.f32 %v4157_v36, %v1745_v49  ;;  %v3196_v49 = vld [vmem:[%s3368_s18 + $0xf0] sm:$0xf] }
 0x103   : > { %v2282_v45 = vsel %vm2215_vm2, %v2205_v3, 0.0  ;;  %v709_v47 = vmul.f32 %v4094_v4, %v649_v11  ;;  %v1004_v40 = vunpack.c.l.bf16 %v971_v7  ;;  %v584_v41 = vadd.f32 %v552_v15, %v454_v16  ;;  %v387_v7 = vld [vmem:[%s3363_s15 + $0xe0] sm:$0xf] }
 0x104   : > { %2283 = vadd.xlane.f32.xlu1 %v2282_v45  ;;  %v1548_v0 = vadd.f32 %v1464_v42, %v1194_v22  ;;  %v863_v51 = vrot.slane %v708_v5, 1  ;;  %v1134_v2 = vunpack.c.l.bf16 %v1101_v17  ;;  %v2080_v58 = vsel %vm784_vm0, %v2078_v44, %v2079_v14  ;;  %v485_v44 = vld [vmem:[%s3368_s18 + $0xe0] sm:$0xf]  ;;  %v615_v14 = vld [vmem:[%s3363_s15 + $0xe4] sm:$0x1] }
 0x105   : > { %v864_v21 = vrot.slane %v709_v47, 1  ;;  %v1264_v38 = vunpack.c.l.bf16 %v1231_v34  ;;  %v1323_v61 = vmul.f32 %v4107_v52, %v1004_v40  ;;  %v1037_v10 = vmul.f32 %v4114_v39, %v1004_v40 }
 0x106   : > { %v1679_v8 = vadd.f32 %v1647_v19, %v1548_v0  ;;  %v1167_v12 = vmul.f32 %v4120_v30, %v1134_v2  ;;  %v1619_v11 = vunpack.c.l.bf16 %v3164_v43  ;;  %v1880_v3 = vunpack.c.l.bf16 %v3228_v54  ;;  %v970_v54 = vld [vmem:[%s3378_s23 + $0xe0] sm:$0xf] }
 0x107   : > { %v865_v42 = vsel %vm784_vm0, %v863_v51, %v864_v21  ;;  %v1324_v16 = vmul.f32 %v4107_v52, %v1264_v38  ;;  %v1477_v17 = vrot.slane %v1323_v61, 1  ;;  %v1750_v5 = vunpack.c.l.bf16 %v3196_v49  ;;  %v1100_v61 = vld [vmem:[%s3383_s29 + $0xe0] sm:$0xf] }
 0x108   : > { %v1810_v22 = vadd.f32 %v1778_v18, %v1679_v8  ;;  %v939_v15 = vadd.f32 %v865_v42, %v584_v41  ;;  %v1652_v19 = vmul.f32 %v4131_v56, %v1619_v11  ;;  %v1939_v45 = vmul.f32 %v4137_v1, %v1619_v11  ;;  %v1230_v11 = vld [vmem:[%s3378_s23 + $0xe4] sm:$0x1] }
 0x109   : > { %v1478_v34 = vrot.slane %v1324_v16, 1  ;;  %v1940_v47 = vmul.f32 %v4137_v1, %v1880_v3  ;;  %v420_v40 = vunpack.c.l.bf16 %v387_v7  ;;  %v518_v51 = vunpack.c.l.bf16 %v485_v44  ;;  %v3163_v3 = vld [vmem:[%s3363_s15 + $0xe8] sm:$0xf] }
 0x10a   : > { %v4236_v43 = vadd.f32 %v2080_v58, %v1810_v22  ;;  %v1069_v0 = vadd.f32 %v1037_v10, %v939_v15  ;;  %v648_v2 = vunpack.c.l.bf16 %v615_v14  ;;  %v2093_v41 = vrot.slane %v1939_v45, 1  ;;  %v3227_v15 = vld [vmem:[%s3363_s15 + $0xec] sm:$0x1] }
 0x10b   : > { %v1479_v18 = vsel %vm784_vm0, %v1477_v17, %v1478_v34  ;;  %v2094_v21 = vrot.slane %v1940_v47, 1  ;;  %v453_v38 = vmul.f32 %v4078_v57, %v420_v40  ;;  %v551_v58 = vmul.f32 %v4088_v59, %v518_v51 }
 0x10c   : > { %v2204_v49 = vsel %vm2182_vm1, %v4236_v43, 0.0  ;;  %v1199_v8 = vadd.f32 %v1167_v12, %v1069_v0  ;;  %v706_v10 = vmul.f32 %v4094_v4, %v420_v40  ;;  %v1783_v42 = vmul.f32 %v4157_v36, %v1750_v5  ;;  %v3195_v5 = vld [vmem:[%s3368_s18 + $0xe8] sm:$0xf] }
 0x10d   : > { %v2279_v7 = vsel %vm2215_vm2, %v2204_v49, 0.0  ;;  %v707_v16 = vmul.f32 %v4094_v4, %v648_v2  ;;  %v1003_v17 = vunpack.c.l.bf16 %v970_v54  ;;  %v583_v14 = vadd.f32 %v551_v58, %v453_v38 }
 0x10e   : > { %2280 = vadd.xlane.f32.xlu0 %v2279_v7  ;;  %v1553_v44 = vadd.f32 %v1479_v18, %v1199_v8  ;;  %v860_v22 = vrot.slane %v706_v10, 1  ;;  %v1133_v12 = vunpack.c.l.bf16 %v1100_v61  ;;  %v2095_v34 = vsel %vm784_vm0, %v2093_v41, %v2094_v21  ;;  %v386_v18 = vld [vmem:[%s3363_s15 + $0xd8] sm:$0xf]  ;;  %v614_v21 = vld [vmem:[%s3363_s15 + $0xdc] sm:$0x1] }
 0x10f   : > { %v861_v45 = vrot.slane %v707_v16, 1  ;;  %v1263_v47 = vunpack.c.l.bf16 %v1230_v11  ;;  %v1321_v40 = vmul.f32 %v4107_v52, %v1003_v17  ;;  %v1036_v51 = vmul.f32 %v4114_v39, %v1003_v17  ;;  %v484_v41 = vld [vmem:[%s3368_s18 + $0xd8] sm:$0xf] }
 0x110   : > { %v1684_v0 = vadd.f32 %v1652_v19, %v1553_v44  ;;  %v1166_v2 = vmul.f32 %v4120_v30, %v1133_v12  ;;  %v1618_v54 = vunpack.c.l.bf16 %v3163_v3  ;;  %v1879_v8 = vunpack.c.l.bf16 %v3227_v15 }
 0x111   : > { %v862_v38 = vsel %vm784_vm0, %v860_v22, %v861_v45  ;;  %v1322_v61 = vmul.f32 %v4107_v52, %v1263_v47  ;;  %v1474_v49 = vrot.slane %v1321_v40, 1  ;;  %v1749_v11 = vunpack.c.l.bf16 %v3195_v5  ;;  %v969_v45 = vld [vmem:[%s3378_s23 + $0xd8] sm:$0xf] }
 0x112   : > { %v1815_v58 = vadd.f32 %v1783_v42, %v1684_v0  ;;  %v938_v10 = vadd.f32 %v862_v38, %v583_v14  ;;  %v1651_v19 = vmul.f32 %v4131_v56, %v1618_v54  ;;  %v1937_v16 = vmul.f32 %v4137_v1, %v1618_v54  ;;  %v1099_v5 = vld [vmem:[%s3383_s29 + $0xd8] sm:$0xf] }
 0x113   : > { %v1475_v7 = vrot.slane %v1322_v61, 1  ;;  %v1938_v17 = vmul.f32 %v4137_v1, %v1879_v8  ;;  %v419_v3 = vunpack.c.l.bf16 %v386_v18  ;;  %v517_v12 = vunpack.c.l.bf16 %v484_v41  ;;  %v1229_v18 = vld [vmem:[%s3378_s23 + $0xdc] sm:$0x1]  ;;  %v3162_v41 = vld [vmem:[%s3363_s15 + $0xe0] sm:$0xf] }
 0x114   : > { %v4266_v44 = vadd.f32 %v2095_v34, %v1815_v58  ;;  %v1068_v22 = vadd.f32 %v1036_v51, %v938_v10  ;;  %v647_v15 = vunpack.c.l.bf16 %v614_v21  ;;  %v2090_v14 = vrot.slane %v1937_v16, 1 }
 0x115   : > { %v1476_v42 = vsel %vm784_vm0, %v1474_v49, %v1475_v7  ;;  %v2091_v47 = vrot.slane %v1938_v17, 1  ;;  %v452_v40 = vmul.f32 %v4078_v57, %v419_v3  ;;  %v550_v34 = vmul.f32 %v4088_v59, %v517_v12  ;;  %v3226_v7 = vld [vmem:[%s3363_s15 + $0xe4] sm:$0x1] }
 0x116   : > { %v2209_v0 = vsel %vm2182_vm1, %v4266_v44, 0.0  ;;  %v1198_v54 = vadd.f32 %v1166_v2, %v1068_v22  ;;  %v704_v51 = vmul.f32 %v4094_v4, %v419_v3  ;;  %v1782_v61 = vmul.f32 %v4157_v36, %v1749_v11  ;;  %v3194_v11 = vld [vmem:[%s3368_s18 + $0xe0] sm:$0xf] }
 0x117   : > { %v2294_v38 = vsel %vm2215_vm2, %v2209_v0, 0.0  ;;  %v705_v49 = vmul.f32 %v4094_v4, %v647_v15  ;;  %v1002_v8 = vunpack.c.l.bf16 %v969_v45  ;;  %v582_v58 = vadd.f32 %v550_v34, %v452_v40 }
 0x118   : > { %2295 = vadd.xlane.f32.xlu2 %v2294_v38  ;;  %v1552_v21 = vadd.f32 %v1476_v42, %v1198_v54  ;;  %v857_v10 = vrot.slane %v704_v51, 1  ;;  %v1132_v2 = vunpack.c.l.bf16 %v1099_v5  ;;  %v2092_v16 = vsel %vm784_vm0, %v2090_v14, %v2091_v47  ;;  %v391_v42 = vld [vmem:[%s3363_s15 + $0x100] sm:$0xf]  ;;  %v619_v47 = vld [vmem:[%s3363_s15 + $0x104] sm:$0x1] }
 0x119   : > { %v858_v17 = vrot.slane %v705_v49, 1  ;;  %v1262_v3 = vunpack.c.l.bf16 %v1229_v18  ;;  %v1319_v22 = vmul.f32 %v4107_v52, %v1002_v8  ;;  %v1035_v15 = vmul.f32 %v4114_v39, %v1002_v8  ;;  %v489_v14 = vld [vmem:[%s3368_s18 + $0x100] sm:$0xf] }
 0x11a   : > { %v1683_v12 = vadd.f32 %v1651_v19, %v1552_v21  ;;  %v1165_v45 = vmul.f32 %v4120_v30, %v1132_v2  ;;  %v1617_v0 = vunpack.c.l.bf16 %v3162_v41  ;;  %v1878_v34 = vunpack.c.l.bf16 %v3226_v7 }
 0x11b   : > { %v859_v40 = vsel %vm784_vm0, %v857_v10, %v858_v17  ;;  %v1320_v5 = vmul.f32 %v4107_v52, %v1262_v3  ;;  %v1471_v54 = vrot.slane %v1319_v22, 1  ;;  %v1748_v38 = vunpack.c.l.bf16 %v3194_v11  ;;  %v974_v3 = vld [vmem:[%s3378_s23 + $0x100] sm:$0xf] }
 0x11c   : > { %v1814_v51 = vadd.f32 %v1782_v61, %v1683_v12  ;;  %v937_v18 = vadd.f32 %v859_v40, %v582_v58  ;;  %v1650_v19 = vmul.f32 %v4131_v56, %v1617_v0  ;;  %v1935_v8 = vmul.f32 %v4137_v1, %v1617_v0  ;;  %v1104_v12 = vld [vmem:[%s3383_s29 + $0x100] sm:$0xf]  ;;  %v1234_v40 = vld [vmem:[%s3378_s23 + $0x104] sm:$0x1] }
 0x11d   : > { %v1472_v49 = vrot.slane %v1320_v5, 1  ;;  %v1936_v41 = vmul.f32 %v4137_v1, %v1878_v34  ;;  %v424_v21 = vunpack.c.l.bf16 %v391_v42  ;;  %v522_v17 = vunpack.c.l.bf16 %v489_v14 }
 0x11e   : > { %v4296_v10 = vadd.f32 %v2092_v16, %v1814_v51  ;;  %v1067_v2 = vadd.f32 %v1035_v15, %v937_v18  ;;  %v652_v7 = vunpack.c.l.bf16 %v619_v47  ;;  %v2087_v58 = vrot.slane %v1935_v8, 1  ;;  %v3167_v47 = vld [vmem:[%s3363_s15 + $0x108] sm:$0xf]  ;;  %v3231_v8 = vld [vmem:[%s3363_s15 + $0x10c] sm:$0x1] }
 0x11f   : > { %v1473_v61 = vsel %vm784_vm0, %v1471_v54, %v1472_v49  ;;  %v2088_v22 = vrot.slane %v1936_v41, 1  ;;  %v457_v11 = vmul.f32 %v4078_v57, %v424_v21  ;;  %v555_v16 = vmul.f32 %v4088_v59, %v522_v17 }
 0x120   : > { %5432 = vst [vmem:[#allocation12_spill] sm:$0xff] %v4296_v10  ;;  %v2208_v0 = vsel %vm2182_vm1, %v4296_v10, 0.0  ;;  %v1197_v42 = vadd.f32 %v1165_v45, %v1067_v2  ;;  %v714_v15 = vmul.f32 %v4094_v4, %v424_v21  ;;  %v1781_v54 = vmul.f32 %v4157_v36, %v1748_v38  ;;  %v3199_v38 = vld [vmem:[%s3368_s18 + $0x108] sm:$0xf] }
 0x121   : > { %v2291_v5 = vsel %vm2215_vm2, %v2208_v0, 0.0  ;;  %v715_v34 = vmul.f32 %v4094_v4, %v652_v7  ;;  %v1007_v14 = vunpack.c.l.bf16 %v974_v3  ;;  %v587_v18 = vadd.f32 %v555_v16, %v457_v11 }
 0x122   : > { %2292 = vadd.xlane.f32.xlu1 %v2291_v5  ;;  %v1551_v51 = vadd.f32 %v1473_v61, %v1197_v42  ;;  %v872_v49 = vrot.slane %v714_v15, 1  ;;  %v1137_v45 = vunpack.c.l.bf16 %v1104_v12  ;;  %v2089_v41 = vsel %vm784_vm0, %v2087_v58, %v2088_v22  ;;  %v390_v61 = vld [vmem:[%s3363_s15 + $0xf8] sm:$0xf]  ;;  %v618_v22 = vld [vmem:[%s3363_s15 + $0xfc] sm:$0x1] }
 0x123   : > { %v873_v21 = vrot.slane %v715_v34, 1  ;;  %v1267_v2 = vunpack.c.l.bf16 %v1234_v40  ;;  %v1329_v17 = vmul.f32 %v4107_v52, %v1007_v14  ;;  %v1040_v7 = vmul.f32 %v4114_v39, %v1007_v14  ;;  %v488_v58 = vld [vmem:[%s3368_s18 + $0xf8] sm:$0xf] }
 0x124   : > { %v1682_v0 = vadd.f32 %v1650_v19, %v1551_v51  ;;  %v1170_v3 = vmul.f32 %v4120_v30, %v1137_v45  ;;  %v1622_v5 = vunpack.c.l.bf16 %v3167_v47  ;;  %v1883_v16 = vunpack.c.l.bf16 %v3231_v8 }
 0x125   : > { %v874_v11 = vsel %vm784_vm0, %v872_v49, %v873_v21  ;;  %v1330_v12 = vmul.f32 %v4107_v52, %v1267_v2  ;;  %v1486_v42 = vrot.slane %v1329_v17, 1  ;;  %v1753_v34 = vunpack.c.l.bf16 %v3199_v38  ;;  %v973_v17 = vld [vmem:[%s3378_s23 + $0xf8] sm:$0xf] }
 0x126   : > { %v1813_v15 = vadd.f32 %v1781_v54, %v1682_v0  ;;  %v942_v40 = vadd.f32 %v874_v11, %v587_v18  ;;  %v1655_v19 = vmul.f32 %v4131_v56, %v1622_v5  ;;  %v1945_v51 = vmul.f32 %v4137_v1, %v1622_v5  ;;  %v1103_v11 = vld [vmem:[%s3383_s29 + $0xf8] sm:$0xf] }
 0x127   : > { %v1487_v14 = vrot.slane %v1330_v12, 1  ;;  %v1946_v47 = vmul.f32 %v4137_v1, %v1883_v16  ;;  %v423_v49 = vunpack.c.l.bf16 %v390_v61  ;;  %v521_v2 = vunpack.c.l.bf16 %v488_v58  ;;  %v1233_v12 = vld [vmem:[%s3378_s23 + $0xfc] sm:$0x1] }
 0x128   : > { %v4326_v45 = vadd.f32 %v2089_v41, %v1813_v15  ;;  %v1072_v21 = vadd.f32 %v1040_v7, %v942_v40  ;;  %v651_v8 = vunpack.c.l.bf16 %v618_v22  ;;  %v2102_v18 = vrot.slane %v1945_v51, 1  ;;  %v3166_v15 = vld [vmem:[%s3363_s15 + $0x100] sm:$0xf] }
 0x129   : > { %v1488_v54 = vsel %vm784_vm0, %v1486_v42, %v1487_v14  ;;  %v2103_v0 = vrot.slane %v1946_v47, 1  ;;  %v456_v38 = vmul.f32 %v4078_v57, %v423_v49  ;;  %v554_v41 = vmul.f32 %v4088_v59, %v521_v2  ;;  %v3230_v47 = vld [vmem:[%s3363_s15 + $0x104] sm:$0x1] }
 0x12a   : > { %v2207_v5 = vsel %vm2182_vm1, %v4326_v45, 0.0  ;;  %v1202_v61 = vadd.f32 %v1170_v3, %v1072_v21  ;;  %v712_v7 = vmul.f32 %v4094_v4, %v423_v49  ;;  %v1786_v42 = vmul.f32 %v4157_v36, %v1753_v34  ;;  %v3198_v34 = vld [vmem:[%s3368_s18 + $0x100] sm:$0xf] }
 0x12b   : > { %v2288_v16 = vsel %vm2215_vm2, %v2207_v5, 0.0  ;;  %v713_v58 = vmul.f32 %v4094_v4, %v651_v8  ;;  %v1006_v22 = vunpack.c.l.bf16 %v973_v17  ;;  %v586_v14 = vadd.f32 %v554_v41, %v456_v38 }
 0x12c   : > { %2289 = vadd.xlane.f32.xlu0 %v2288_v16  ;;  %v1556_v40 = vadd.f32 %v1488_v54, %v1202_v61  ;;  %v869_v51 = vrot.slane %v712_v7, 1  ;;  %v1136_v3 = vunpack.c.l.bf16 %v1103_v11  ;;  %v2104_v49 = vsel %vm784_vm0, %v2102_v18, %v2103_v0  ;;  %v389_v54 = vld [vmem:[%s3363_s15 + $0xf0] sm:$0xf]  ;;  %v617_v0 = vld [vmem:[%s3363_s15 + $0xf4] sm:$0x1] }
 0x12d   : > { %v870_v21 = vrot.slane %v713_v58, 1  ;;  %v1266_v2 = vunpack.c.l.bf16 %v1233_v12  ;;  %v1327_v5 = vmul.f32 %v4107_v52, %v1006_v22  ;;  %v1039_v8 = vmul.f32 %v4114_v39, %v1006_v22  ;;  %v487_v18 = vld [vmem:[%s3368_s18 + $0xf0] sm:$0xf] }
 0x12e   : > { %v1687_v10 = vadd.f32 %v1655_v19, %v1556_v40  ;;  %v1169_v17 = vmul.f32 %v4120_v30, %v1136_v3  ;;  %v1621_v16 = vunpack.c.l.bf16 %v3166_v15  ;;  %v1882_v41 = vunpack.c.l.bf16 %v3230_v47 }
 0x12f   : > { %v871_v38 = vsel %vm784_vm0, %v869_v51, %v870_v21  ;;  %v1328_v11 = vmul.f32 %v4107_v52, %v1266_v2  ;;  %v1483_v61 = vrot.slane %v1327_v5, 1  ;;  %v1752_v58 = vunpack.c.l.bf16 %v3198_v34  ;;  %v972_v5 = vld [vmem:[%s3378_s23 + $0xf0] sm:$0xf] }
 0x130   : > { %v1818_v7 = vadd.f32 %v1786_v42, %v1687_v10  ;;  %v941_v12 = vadd.f32 %v871_v38, %v586_v14  ;;  %v1654_v19 = vmul.f32 %v4131_v56, %v1621_v16  ;;  %v1943_v40 = vmul.f32 %v4137_v1, %v1621_v16  ;;  %v1102_v38 = vld [vmem:[%s3383_s29 + $0xf0] sm:$0xf] }
 0x131   : > { %v1484_v22 = vrot.slane %v1328_v11, 1  ;;  %v1944_v15 = vmul.f32 %v4137_v1, %v1882_v41  ;;  %v422_v51 = vunpack.c.l.bf16 %v389_v54  ;;  %v520_v2 = vunpack.c.l.bf16 %v487_v18  ;;  %v1232_v11 = vld [vmem:[%s3378_s23 + $0xf4] sm:$0x1] }
 0x132   : > { %v4356_v3 = vadd.f32 %v2104_v49, %v1818_v7  ;;  %v1071_v21 = vadd.f32 %v1039_v8, %v941_v12  ;;  %v650_v47 = vunpack.c.l.bf16 %v617_v0  ;;  %v2099_v42 = vrot.slane %v1943_v40, 1  ;;  %v3165_v7 = vld [vmem:[%s3363_s15 + $0xf8] sm:$0xf] }
 0x133   : > { %v1485_v10 = vsel %vm784_vm0, %v1483_v61, %v1484_v22  ;;  %v2100_v14 = vrot.slane %v1944_v15, 1  ;;  %v455_v34 = vmul.f32 %v4078_v57, %v422_v51  ;;  %v553_v49 = vmul.f32 %v4088_v59, %v520_v2  ;;  %v3229_v15 = vld [vmem:[%s3363_s15 + $0xfc] sm:$0x1] }
 0x134   : > { %5433 = vst [vmem:[#allocation13_spill] sm:$0xff] %v4356_v3  ;;  %v2212_v16 = vsel %vm2182_vm1, %v4356_v3, 0.0  ;;  %v1201_v54 = vadd.f32 %v1169_v17, %v1071_v21  ;;  %v710_v8 = vmul.f32 %v4094_v4, %v422_v51  ;;  %v1785_v61 = vmul.f32 %v4157_v36, %v1752_v58  ;;  %v3197_v58 = vld [vmem:[%s3368_s18 + $0xf8] sm:$0xf] }
 0x135   : > { %v2303_v41 = vsel %vm2215_vm2, %v2212_v16, 0.0  ;;  %v711_v18 = vmul.f32 %v4094_v4, %v650_v47  ;;  %v1005_v0 = vunpack.c.l.bf16 %v972_v5  ;;  %v585_v22 = vadd.f32 %v553_v49, %v455_v34 }
 0x136   : > { %2304 = vadd.xlane.f32.xlu2 %v2303_v41  ;;  %v1555_v12 = vadd.f32 %v1485_v10, %v1201_v54  ;;  %v866_v40 = vrot.slane %v710_v8, 1  ;;  %v1135_v17 = vunpack.c.l.bf16 %v1102_v38  ;;  %v2101_v51 = vsel %vm784_vm0, %v2099_v42, %v2100_v14  ;;  %v393_v10 = vld [vmem:[%s3363_s15 + $0x110] sm:$0xf]  ;;  %v621_v14 = vld [vmem:[%s3363_s15 + $0x114] sm:$0x1] }
 0x137   : > { %v867_v21 = vrot.slane %v711_v18, 1  ;;  %v1265_v2 = vunpack.c.l.bf16 %v1232_v11  ;;  %v1325_v16 = vmul.f32 %v4107_v52, %v1005_v0  ;;  %v1038_v47 = vmul.f32 %v4114_v39, %v1005_v0  ;;  %v491_v42 = vld [vmem:[%s3368_s18 + $0x110] sm:$0xf] }
 0x138   : > { %v1686_v3 = vadd.f32 %v1654_v19, %v1555_v12  ;;  %v1168_v5 = vmul.f32 %v4120_v30, %v1135_v17  ;;  %v1620_v41 = vunpack.c.l.bf16 %v3165_v7  ;;  %v1881_v49 = vunpack.c.l.bf16 %v3229_v15 }
 0x139   : > { %v868_v34 = vsel %vm784_vm0, %v866_v40, %v867_v21  ;;  %v1326_v38 = vmul.f32 %v4107_v52, %v1265_v2  ;;  %v1480_v54 = vrot.slane %v1325_v16, 1  ;;  %v1751_v18 = vunpack.c.l.bf16 %v3197_v58  ;;  %v976_v16 = vld [vmem:[%s3378_s23 + $0x110] sm:$0xf] }
 0x13a   : > { %v1817_v8 = vadd.f32 %v1785_v61, %v1686_v3  ;;  %v940_v11 = vadd.f32 %v868_v34, %v585_v22  ;;  %v1653_v19 = vmul.f32 %v4131_v56, %v1620_v41  ;;  %v1941_v12 = vmul.f32 %v4137_v1, %v1620_v41  ;;  %v1106_v34 = vld [vmem:[%s3383_s29 + $0x110] sm:$0xf] }
 0x13b   : > { %v1481_v0 = vrot.slane %v1326_v38, 1  ;;  %v1942_v7 = vmul.f32 %v4137_v1, %v1881_v49  ;;  %v426_v40 = vunpack.c.l.bf16 %v393_v10  ;;  %v524_v2 = vunpack.c.l.bf16 %v491_v42  ;;  %v1236_v38 = vld [vmem:[%s3378_s23 + $0x114] sm:$0x1] }
 0x13c   : > { %v4386_v17 = vadd.f32 %v2101_v51, %v1817_v8  ;;  %v1070_v21 = vadd.f32 %v1038_v47, %v940_v11  ;;  %v654_v15 = vunpack.c.l.bf16 %v621_v14  ;;  %v2096_v61 = vrot.slane %v1941_v12, 1  ;;  %v3169_v8 = vld [vmem:[%s3363_s15 + $0x118] sm:$0xf] }
 0x13d   : > { %v1482_v3 = vsel %vm784_vm0, %v1480_v54, %v1481_v0  ;;  %v2097_v22 = vrot.slane %v1942_v7, 1  ;;  %v459_v58 = vmul.f32 %v4078_v57, %v426_v40  ;;  %v557_v51 = vmul.f32 %v4088_v59, %v524_v2  ;;  %v3233_v7 = vld [vmem:[%s3363_s15 + $0x11c] sm:$0x1] }
 0x13e   : > { %5434 = vst [vmem:[#allocation14_spill] sm:$0xff] %v4386_v17  ;;  %v2211_v41 = vsel %vm2182_vm1, %v4386_v17, 0.0  ;;  %v1200_v10 = vadd.f32 %v1168_v5, %v1070_v21  ;;  %v718_v47 = vmul.f32 %v4094_v4, %v426_v40  ;;  %v1784_v54 = vmul.f32 %v4157_v36, %v1751_v18 }
 0x13f   : > { %v2300_v49 = vsel %vm2215_vm2, %v2211_v41, 0.0  ;;  %v719_v42 = vmul.f32 %v4094_v4, %v654_v15  ;;  %v1009_v14 = vunpack.c.l.bf16 %v976_v16  ;;  %v589_v0 = vadd.f32 %v557_v51, %v459_v58  ;;  %v3201_v41 = vld [vmem:[%s3368_s18 + $0x118] sm:$0xf] }
 0x140   : > { %2301 = vadd.xlane.f32.xlu1 %v2300_v49  ;;  %v1554_v11 = vadd.f32 %v1482_v3, %v1200_v10  ;;  %v878_v12 = vrot.slane %v718_v47, 1  ;;  %v1139_v5 = vunpack.c.l.bf16 %v1106_v34  ;;  %v2098_v21 = vsel %vm784_vm0, %v2096_v61, %v2097_v22  ;;  %v392_v61 = vld [vmem:[%s3363_s15 + $0x108] sm:$0xf] }
 0x141   : > { %v879_v40 = vrot.slane %v719_v42, 1  ;;  %v1269_v2 = vunpack.c.l.bf16 %v1236_v38  ;;  %v1333_v17 = vmul.f32 %v4107_v52, %v1009_v14  ;;  %v1042_v18 = vmul.f32 %v4114_v39, %v1009_v14  ;;  %v490_v42 = vld [vmem:[%s3368_s18 + $0x108] sm:$0xf] }
 0x142   : > { %v1685_v9 = vadd.f32 %v1653_v19, %v1554_v11  ;;  %v1172_v15 = vmul.f32 %v4120_v30, %v1139_v5  ;;  %v1624_v16 = vunpack.c.l.bf16 %v3169_v8  ;;  %v1885_v10 = vunpack.c.l.bf16 %v3233_v7  ;;  %v975_v5 = vld [vmem:[%s3378_s23 + $0x108] sm:$0xf] }
 0x143   : > { %v880_v3 = vsel %vm784_vm0, %v878_v12, %v879_v40  ;;  %v1334_v58 = vmul.f32 %v4107_v52, %v1269_v2  ;;  %v1492_v34 = vrot.slane %v1333_v17, 1  ;;  %v1755_v19 = vunpack.c.l.bf16 %v3201_v41  ;;  %v1235_v41 = vld [vmem:[%s3378_s23 + $0x10c] sm:$0x1] }
 0x144   : > { %v1816_v22 = vadd.f32 %v1784_v54, %v1685_v9  ;;  %v944_v51 = vadd.f32 %v880_v3, %v589_v0  ;;  %v1657_v47 = vmul.f32 %v4131_v56, %v1624_v16  ;;  %v1949_v49 = vmul.f32 %v4137_v1, %v1624_v16  ;;  %v620_v56 = vld [vmem:[%s3363_s15 + $0x10c] sm:$0x1] }
 0x145   : > { %v1493_v38 = vrot.slane %v1334_v58, 1  ;;  %v1950_v30 = vmul.f32 %v4137_v1, %v1885_v10  ;;  %v2379_v9 = vsel %vm2378_vm3, %v3516_v33, 0.0  ;;  %v425_v54 = vunpack.c.l.bf16 %v392_v61  ;;  %v1105_v58 = vld [vmem:[%s3383_s29 + $0x108] sm:$0xf] }
 0x146   : > { %v4416_v14 = vadd.f32 %v2098_v21, %v1816_v22  ;;  %v1074_v17 = vadd.f32 %v1042_v18, %v944_v51  ;;  %v2108_v11 = vrot.slane %v1949_v49, 1  ;;  %v2411_v12 = vsel %vm2215_vm2, %v2379_v9, 0.0 }
 0x147   : > { %v1494_v8 = vsel %vm784_vm0, %v1492_v34, %v1493_v38  ;;  %v2109_v0 = vrot.slane %v1950_v30, 1  ;;  %2412 = vadd.xlane.f32.xlu2 %v2411_v12  ;;  %v458_v40 = vmul.f32 %v4078_v57, %v425_v54  ;;  %v523_v2 = vunpack.c.l.bf16 %v490_v42  ;;  %v3278_v57 = vld [vmem:[%s5401_s4 + $0x2] ss:$0 sm:$0xff]  ;;  %v3232_v30 = vld [vmem:[%s3363_s15 + $0x114] sm:$0x1] }
 0x148   : > { %v2210_v7 = vsel %vm2182_vm1, %v4416_v14, 0.0  ;;  %v1204_v21 = vadd.f32 %v1172_v15, %v1074_v17  ;;  %v653_v16 = vunpack.c.l.bf16 %v620_v56  ;;  %v716_v3 = vmul.f32 %v4094_v4, %v425_v54  ;;  %v3168_v15 = vld [vmem:[%s3363_s15 + $0x110] sm:$0xf] }
 0x149   : > { %v2297_v18 = vsel %vm2215_vm2, %v2210_v7, 0.0  ;;  %v1788_v10 = vmul.f32 %v4157_v36, %v1755_v19  ;;  %v556_v61 = vmul.f32 %v4088_v59, %v523_v2  ;;  %v1008_v22 = vunpack.c.l.bf16 %v975_v5 }
 0x14a   : > { %2298 = vadd.xlane.f32.xlu0 %v2297_v18  ;;  %v1558_v34 = vadd.f32 %v1494_v8, %v1204_v21  ;;  %v717_v51 = vmul.f32 %v3278_v57, %v653_v16  ;;  %v875_v38 = vrot.slane %v716_v3, 1  ;;  %v1268_v49 = vunpack.c.l.bf16 %v1235_v41  ;;  %v3200_v41 = vld [vmem:[%s3368_s18 + $0x110] sm:$0xf] }
 0x14b   : > { %v2110_v4 = vsel %vm784_vm0, %v2108_v11, %v2109_v0  ;;  %v588_v17 = vadd.f32 %v556_v61, %v458_v40  ;;  %v1138_v9 = vunpack.c.l.bf16 %v1105_v58  ;;  %v1331_v19 = vmul.f32 %v4107_v52, %v1008_v22  ;;  %v3279_v0 = vld [vmem:[%s5401_s4 + $0x4] ss:$0 sm:$0xff] }
 0x14c   : > { %v1689_v42 = vadd.f32 %v1657_v47, %v1558_v34  ;;  %v876_v54 = vrot.slane %v717_v51, 1  ;;  %v1332_v59 = vmul.f32 %v4107_v52, %v1268_v49  ;;  %v1623_v56 = vunpack.c.l.bf16 %v3168_v15 }
 0x14d   : > { %v1041_v12 = vmul.f32 %v4114_v39, %v1008_v22  ;;  %v1884_v5 = vunpack.c.l.bf16 %v3232_v30  ;;  %v1489_v21 = vrot.slane %v1331_v19, 1  ;;  %v1171_v40 = vmul.f32 %v3279_v0, %v1138_v9 }
 0x14e   : > { %v1820_v8 = vadd.f32 %v1788_v10, %v1689_v42  ;;  %v877_v7 = vsel %vm784_vm0, %v875_v38, %v876_v54  ;;  %v1490_v2 = vrot.slane %v1332_v59, 1  ;;  %v1947_v52 = vmul.f32 %v4137_v1, %v1623_v56 }
 0x14f   : > { %v943_v11 = vadd.f32 %v877_v7, %v588_v17  ;;  %v1948_v18 = vmul.f32 %v4137_v1, %v1884_v5  ;;  %v2382_v39 = vsel %vm2378_vm3, %v3576_v27, 0.0  ;;  %v1754_v58 = vunpack.c.l.bf16 %v3200_v41  ;;  %v3280_v1 = vld [vmem:[%s5401_s4 + $0x6] ss:$0 sm:$0xff]  ;;  %v4488_v7 = vpop.xlane.xlu2 %2229  ;;  %v4494_v41 = vpop.xlane.xlu1 %2223 }
 0x150   : > { %v4446_v47 = vadd.f32 %v2110_v4, %v1820_v8  ;;  %v2420_v34 = vsel %vm2215_vm2, %v2382_v39, 0.0  ;;  %v1491_v61 = vsel %vm784_vm0, %v1489_v21, %v1490_v2  ;;  %v1656_v15 = vmul.f32 %v3280_v1, %v1623_v56 }
 0x151   : > { %v1073_v3 = vadd.f32 %v1041_v12, %v943_v11  ;;  %2421 = vadd.xlane.f32.xlu2 %v2420_v34  ;;  %v2105_v57 = vrot.slane %v1947_v52, 1  ;;  %v2106_v51 = vrot.slane %v1948_v18, 1  ;;  %v2385_v38 = vsel %vm2378_vm3, %v3696_v23, 0.0 }
 0x152   : > { %v2214_v16 = vsel %vm2182_vm1, %v4446_v47, 0.0  ;;  %v1787_v30 = vmul.f32 %v4157_v36, %v1754_v58  ;;  %v2381_v42 = vsel %vm2378_vm3, %v3486_v37, 0.0  ;;  %v2429_v17 = vsel %vm2215_vm2, %v2385_v38, 0.0 }
 0x153   : > { %v2309_v10 = vsel %vm2215_vm2, %v2214_v16, 0.0  ;;  %v1203_v22 = vadd.f32 %v1171_v40, %v1073_v3  ;;  %v2107_v9 = vsel %vm784_vm0, %v2105_v57, %v2106_v51  ;;  %v2417_v54 = vsel %vm2215_vm2, %v2381_v42, 0.0 }
 0x154   : > { %2310 = vadd.xlane.f32.xlu1 %v2309_v10  ;;  %v2388_v36 = vsel %vm2378_vm3, %v3831_v46, 0.0  ;;  %v2384_v8 = vsel %vm2378_vm3, %v3546_v29, 0.0  ;;  %v2380_v2 = vsel %vm2378_vm3, %v3606_v25, 0.0  ;;  %v2391_v0 = vsel %vm2378_vm3, %v3921_v13, 0.0 }
 0x155   : > { %v1557_v49 = vadd.f32 %v1491_v61, %v1203_v22  ;;  %v2438_v5 = vsel %vm2215_vm2, %v2388_v36, 0.0  ;;  %v2426_v21 = vsel %vm2215_vm2, %v2384_v8, 0.0  ;;  %v2414_v11 = vsel %vm2215_vm2, %v2380_v2, 0.0  ;;  %v4519_v61 = vpop.xlane.xlu0 %2217 }
 0x156   : > { %v2387_v40 = vsel %vm2378_vm3, %v3636_v28, 0.0  ;;  %v2447_v52 = vsel %vm2215_vm2, %v2391_v0, 0.0  ;;  %v2383_v16 = vsel %vm2378_vm3, %v3461_v53, 0.0  ;;  %v2394_v58 = vsel %vm2378_vm3, %v4011_v6, 0.0 }
 0x157   : > { %v1688_v4 = vadd.f32 %v1656_v15, %v1557_v49  ;;  %v4504_v18 = vpop.xlane.xlu2 %2232  ;;  %v2435_v39 = vsel %vm2215_vm2, %v2387_v40, 0.0  ;;  %v2423_v3 = vsel %vm2215_vm2, %v2383_v16, 0.0  ;;  %v4514_v34 = vpop.xlane.xlu1 %2226  ;;  %v2390_v10 = vsel %vm2378_vm3, %v3766_v31, 0.0 }
 0x158   : > { %v2456_v22 = vsel %vm2215_vm2, %v2394_v58, 0.0  ;;  %v2444_v15 = vsel %vm2215_vm2, %v2390_v10, 0.0  ;;  %v2386_v57 = vsel %vm2378_vm3, %v3666_v32, 0.0  ;;  %v2397_v38 = vsel %vm2378_vm3, %v4141_v60, 0.0 }
 0x159   : > { %v1819_v19 = vadd.f32 %v1787_v30, %v1688_v4  ;;  %2430 = vadd.xlane.f32.xlu2 %v2429_v17  ;;  %v2432_v51 = vsel %vm2215_vm2, %v2386_v57, 0.0  ;;  %v2393_v49 = vsel %vm2378_vm3, %v3861_v55, 0.0  ;;  %v2465_v42 = vsel %vm2215_vm2, %v2397_v38, 0.0 }
 0x15a   : > { %v2453_v17 = vsel %vm2215_vm2, %v2393_v49, 0.0  ;;  %v2400_v36 = vsel %vm2378_vm3, %v4236_v43, 0.0  ;;  %v2392_v2 = vsel %vm2378_vm3, %v3891_v62, 0.0  ;;  %v2403_v40 = vsel %vm2378_vm3, %v4326_v45, 0.0 }
 0x15b   : > { %v4475_v59 = vadd.f32 %v2107_v9, %v1819_v19  ;;  %v2474_v8 = vsel %vm2215_vm2, %v2400_v36, 0.0  ;;  %v2450_v0 = vsel %vm2215_vm2, %v2392_v2, 0.0  ;;  %v2395_v58 = vsel %vm2378_vm3, %v3981_v50, 0.0 }
 0x15c   : > { %2418 = vadd.xlane.f32.xlu1 %v2417_v54  ;;  %v2389_v54 = vsel %vm2378_vm3, %v3801_v26, 0.0  ;;  %v2406_v57 = vsel %vm2378_vm3, %v4416_v14, 0.0 }
 0x15d   : > { %v2213_v56 = vsel %vm2182_vm1, %v4475_v59, 0.0  ;;  %v4541_v9 = vpop.xlane.xlu0 %2220  ;;  %v2441_v19 = vsel %vm2215_vm2, %v2389_v54, 0.0  ;;  %v2492_v38 = vsel %vm2215_vm2, %v2406_v57, 0.0  ;;  %v2409_v36 = vsel %vm2378_vm3, %v4475_v59, 0.0 }
 0x15e   : > { %v2306_v12 = vsel %vm2215_vm2, %v2213_v56, 0.0  ;;  %v2396_v56 = vsel %vm2378_vm3, %v3951_v35, 0.0 }
 0x15f   : > { %2307 = vadd.xlane.f32.xlu0 %v2306_v12  ;;  %v4522_v1 = vpop.xlane.xlu2 %2241  ;;  %v4535_v30 = vpop.xlane.xlu1 %2238 }
 0x161   : > { %2439 = vadd.xlane.f32.xlu2 %v2438_v5  ;;  %v2462_v5 = vsel %vm2215_vm2, %v2396_v56, 0.0  ;;  %v2405_v56 = vsel %vm2378_vm3, %v4266_v44, 0.0 }
 0x162   : > { %v2489_v2 = vsel %vm2215_vm2, %v2405_v56, 0.0  ;;  %v2578_v56 = vsel %vm2573_vm4, %v3461_v53, 0.0 }
 0x164   : > { %2427 = vadd.xlane.f32.xlu1 %v2426_v21 }
 0x167   : > { %2415 = vadd.xlane.f32.xlu0 %v2414_v11  ;;  %v4538_v4 = vpop.xlane.xlu2 %2250  ;;  %v4557_v21 = vpop.xlane.xlu1 %2247 }
 0x168   : > { %v4562_v11 = vpop.xlane.xlu0 %2235 }
 0x169   : > { %2448 = vadd.xlane.f32.xlu2 %v2447_v52  ;;  %v2399_v52 = vsel %vm2378_vm3, %v4041_v24, 0.0 }
 0x16a   : > { %v2471_v16 = vsel %vm2215_vm2, %v2399_v52, 0.0 }
 0x16c   : > { %2436 = vadd.xlane.f32.xlu1 %v2435_v39  ;;  %v2483_v39 = vsel %vm2215_vm2, %v2403_v40, 0.0 }
 0x16f   : > { %2424 = vadd.xlane.f32.xlu0 %v2423_v3  ;;  %v4554_v12 = vpop.xlane.xlu2 %2259  ;;  %v4578_v10 = vpop.xlane.xlu1 %2256 }
 0x171   : > { %2457 = vadd.xlane.f32.xlu2 %v2456_v22  ;;  %v2459_v22 = vsel %vm2215_vm2, %v2395_v58, 0.0  ;;  %v5436_v58 = vld [vmem:[#allocation13_spill] sm:$0xff] }
 0x174   : > { %2445 = vadd.xlane.f32.xlu1 %v2444_v15  ;;  %v4581_v15 = vpop.xlane.xlu0 %2244 }
 0x177   : > { %2433 = vadd.xlane.f32.xlu0 %v2432_v51  ;;  %v4573_v3 = vpop.xlane.xlu2 %2268  ;;  %v2402_v51 = vsel %vm2378_vm3, %v4176_v63, 0.0 }
 0x178   : > { %v2480_v49 = vsel %vm2215_vm2, %v2402_v51, 0.0 }
 0x179   : > { %2466 = vadd.xlane.f32.xlu2 %v2465_v42  ;;  %v2398_v42 = vsel %vm2378_vm3, %v4071_v48, 0.0 }
 0x17a   : > { %v2468_v54 = vsel %vm2215_vm2, %v2398_v42, 0.0  ;;  %v5438_v42 = vld [vmem:[#allocation12_spill] sm:$0xff] }
 0x17c   : > { %2454 = vadd.xlane.f32.xlu1 %v2453_v17 }
 0x17f   : > { %2442 = vadd.xlane.f32.xlu0 %v2441_v19  ;;  %v4594_v17 = vpop.xlane.xlu2 %2277  ;;  %v4597_v19 = vpop.xlane.xlu1 %2265 }
 0x181   : > { %2475 = vadd.xlane.f32.xlu2 %v2474_v8  ;;  %v4605_v8 = vpop.xlane.xlu0 %2253 }
 0x184   : > { %2463 = vadd.xlane.f32.xlu1 %v2462_v5  ;;  %v2501_v5 = vsel %vm2215_vm2, %v2409_v36, 0.0 }
 0x187   : > { %2451 = vadd.xlane.f32.xlu0 %v2450_v0  ;;  %v5435_v0 = vld [vmem:[#allocation11_spill] sm:$0xff]  ;;  %v4622_v57 = vpop.xlane.xlu1 %2274 }
 0x188   : > { %v2401_v40 = vsel %vm2378_vm3, %v5435_v0, 0.0  ;;  %5437 = vst [vmem:[#allocation11_spill] sm:$0xff] %v4622_v57 }
 0x189   : > { %2484 = vadd.xlane.f32.xlu2 %v2483_v39  ;;  %v2477_v52 = vsel %vm2215_vm2, %v2401_v40, 0.0  ;;  %v2575_v39 = vsel %vm2573_vm4, %v3606_v25, 0.0  ;;  %v2618_v40 = vsel %vm2215_vm2, %v2578_v56, 0.0  ;;  %v2577_v56 = vsel %vm2573_vm4, %v3576_v27, 0.0 }
 0x18a   : > { %v2609_v51 = vsel %vm2215_vm2, %v2575_v39, 0.0 }
 0x18c   : > { %2472 = vadd.xlane.f32.xlu1 %v2471_v16  ;;  %v4617_v16 = vpop.xlane.xlu2 %2286 }
 0x18f   : > { %2460 = vadd.xlane.f32.xlu0 %v2459_v22  ;;  %v2408_v22 = vsel %vm2378_vm3, %v5436_v58, 0.0  ;;  %v4642_v39 = vpop.xlane.xlu1 %2283 }
 0x190   : > { %5440 = vst [vmem:[#allocation12_spill] sm:$0xff] %v4642_v39  ;;  %v2615_v39 = vsel %vm2215_vm2, %v2577_v56, 0.0  ;;  %v2584_v56 = vsel %vm2573_vm4, %v3801_v26, 0.0 }
 0x191   : > { %2493 = vadd.xlane.f32.xlu2 %v2492_v38  ;;  %v4625_v38 = vpop.xlane.xlu0 %2262 }
 0x194   : > { %2481 = vadd.xlane.f32.xlu1 %v2480_v49  ;;  %v2498_v49 = vsel %vm2215_vm2, %v2408_v22, 0.0  ;;  %v5441_v22 = vld [vmem:[#allocation14_spill] sm:$0xff] }
 0x197   : > { %2469 = vadd.xlane.f32.xlu0 %v2468_v54  ;;  %v2404_v54 = vsel %vm2378_vm3, %v5438_v42, 0.0 }
 0x198   : > { %v2486_v36 = vsel %vm2215_vm2, %v2404_v54, 0.0 }
 0x199   : > { %2502 = vadd.xlane.f32.xlu2 %v2501_v5  ;;  %v2574_v5 = vsel %vm2573_vm4, %v3516_v33, 0.0  ;;  %v2587_v33 = vsel %vm2573_vm4, %v3891_v62, 0.0 }
 0x19c   : > { %2490 = vadd.xlane.f32.xlu1 %v2489_v2  ;;  %v4638_v2 = vpop.xlane.xlu2 %2295 }
 0x19d   : > { %5439 = vst [vmem:[#allocation13_spill] sm:$0xff] %v4638_v2 }
 0x19f   : > { %2478 = vadd.xlane.f32.xlu0 %v2477_v52  ;;  %v2606_v52 = vsel %vm2215_vm2, %v2574_v5, 0.0 }
 0x1a1   : > { %2610 = vadd.xlane.f32.xlu2 %v2609_v51  ;;  %v2407_v51 = vsel %vm2378_vm3, %v5441_v22, 0.0 }
 0x1a2   : > { %v2495_v54 = vsel %vm2215_vm2, %v2407_v51, 0.0  ;;  %v4668_v51 = vld [vmem:[%s5402_s5] ss:$0 sm:$0xff] }
 0x1a4   : > { %2499 = vadd.xlane.f32.xlu1 %v2498_v49  ;;  %v4647_v49 = vpop.xlane.xlu0 %2271 }
 0x1a7   : > { %2487 = vadd.xlane.f32.xlu0 %v2486_v36  ;;  %v2581_v36 = vsel %vm2573_vm4, %v3666_v32, 0.0 }
 0x1a8   : > { %v2627_v5 = vsel %vm2215_vm2, %v2581_v36, 0.0 }
 0x1a9   : > { %2619 = vadd.xlane.f32.xlu2 %v2618_v40  ;;  %v4658_v2 = vpop.xlane.xlu2 %2304  ;;  %v2410_v40 = vsel %vm2378_vm3, %v4446_v47, 0.0 }
 0x1aa   : > { %5442 = vst [vmem:[#allocation14_spill] sm:$0xff] %v4658_v2  ;;  %v2580_v2 = vsel %vm2573_vm4, %v3696_v23, 0.0  ;;  %v2576_v23 = vsel %vm2573_vm4, %v3486_v37, 0.0 }
 0x1ab   : > { %v2624_v26 = vsel %vm2215_vm2, %v2580_v2, 0.0  ;;  %v2583_v2 = vsel %vm2573_vm4, %v3831_v46, 0.0 }
 0x1ac   : > { %2607 = vadd.xlane.f32.xlu1 %v2606_v52  ;;  %v4663_v52 = vpop.xlane.xlu1 %2292  ;;  %v4671_v36 = vpop.xlane.xlu0 %2280 }
 0x1ad   : > { %5443 = vst [vmem:[#allocation15_spill] sm:$0xff] %v4663_v52  ;;  %v4690_v52 = vld [vmem:[%s5402_s5 + $0x1] ss:$0 sm:$0xff] }
 0x1af   : > { %2496 = vadd.xlane.f32.xlu0 %v2495_v54  ;;  %v2504_v54 = vsel %vm2215_vm2, %v2410_v40, 0.0  ;;  %v2636_v40 = vsel %vm2215_vm2, %v2584_v56, 0.0 }
 0x1b1   : > { %2628 = vadd.xlane.f32.xlu2 %v2627_v5  ;;  %v4682_v5 = vld [vmem:[%s5403_s6] ss:$0 sm:$0xff] }
 0x1b4   : > { %2616 = vadd.xlane.f32.xlu1 %v2615_v39  ;;  %v2314_v39 = vmul.f32 %v4668_v51, %v4519_v61  ;;  %v4699_v56 = vpop.xlane.xlu1 %2301 }
 0x1b6   : > { %v2346_v32 = vadd.f32 %v4682_v5, %v2314_v39  ;;  %v2317_v39 = vmul.f32 %v4668_v51, %v4514_v34 }
 0x1b7   : > { %2505 = vadd.xlane.f32.xlu0 %v2504_v54  ;;  %v2612_v54 = vsel %vm2215_vm2, %v2576_v23, 0.0  ;;  %v2579_v23 = vsel %vm2573_vm4, %v3546_v29, 0.0 }
 0x1b8   : > { %v2621_v46 = vsel %vm2215_vm2, %v2579_v23, 0.0 }
 0x1b9   : > { %2637 = vadd.xlane.f32.xlu2 %v2636_v40  ;;  %v4709_v40 = vpop.xlane.xlu0 %2289 }
 0x1ba   : > { %v2413_v27 = vpop.xlane.xlu2 %2412 }
 0x1bb   : > { %v2509_v61 = vmul.f32 %v4690_v52, %v2413_v27  ;;  %v2633_v27 = vsel %vm2215_vm2, %v2583_v2, 0.0 }
 0x1bc   : > { %2625 = vadd.xlane.f32.xlu1 %v2624_v26  ;;  %v2645_v26 = vsel %vm2215_vm2, %v2587_v33, 0.0  ;;  %v2586_v33 = vsel %vm2573_vm4, %v3921_v13, 0.0  ;;  %v2582_v13 = vsel %vm2573_vm4, %v3636_v28, 0.0 }
 0x1bd   : > { %v4707_v57 = vadd.f32 %v2509_v61, %v2346_v32  ;;  %v2590_v32 = vsel %vm2573_vm4, %v3981_v50, 0.0 }
 0x1be   : > { %v2654_v34 = vsel %vm2215_vm2, %v2590_v32, 0.0  ;;  %v2593_v32 = vsel %vm2573_vm4, %v4071_v48, 0.0 }
 0x1bf   : > { %5444 = vst [vmem:[#allocation16_spill] sm:$0xff] %v4707_v57  ;;  %2613 = vadd.xlane.f32.xlu0 %v2612_v54  ;;  %v2349_v54 = vadd.f32 %v4682_v5, %v2317_v39  ;;  %v2320_v39 = vmul.f32 %v4668_v51, %v4562_v11 }
 0x1c1   : > { %2646 = vadd.xlane.f32.xlu2 %v2645_v26  ;;  %v4730_v26 = vpop.xlane.xlu0 %2298 }
 0x1c4   : > { %2634 = vadd.xlane.f32.xlu1 %v2633_v27  ;;  %v2422_v61 = vpop.xlane.xlu2 %2421  ;;  %v2642_v27 = vsel %vm2215_vm2, %v2586_v33, 0.0 }
 0x1c5   : > { %v2512_v57 = vmul.f32 %v4690_v52, %v2422_v61  ;;  %v2316_v61 = vmul.f32 %v4668_v51, %v4494_v41 }
 0x1c7   : > { %v4726_v2 = vpop.xlane.xlu1 %2310  ;;  %2622 = vadd.xlane.f32.xlu0 %v2621_v46  ;;  %v4733_v23 = vadd.f32 %v2512_v57, %v2349_v54  ;;  %v2630_v46 = vsel %vm2215_vm2, %v2582_v13, 0.0  ;;  %v2589_v57 = vsel %vm2573_vm4, %v4011_v6, 0.0  ;;  %v2352_v54 = vadd.f32 %v4682_v5, %v2320_v39 }
 0x1c8   : > { %5445 = vst [vmem:[#allocation17_spill] sm:$0xff] %v4726_v2  ;;  %v2663_v13 = vsel %vm2215_vm2, %v2593_v32, 0.0  ;;  %v2585_v6 = vsel %vm2573_vm4, %v3766_v31, 0.0  ;;  %v2323_v39 = vmul.f32 %v4668_v51, %v4581_v15  ;;  %v2592_v32 = vsel %vm2573_vm4, %v4141_v60, 0.0 }
 0x1c9   : > { %5446 = vst [vmem:[#allocation18_spill] sm:$0xff] %v4733_v23  ;;  %2655 = vadd.xlane.f32.xlu2 %v2654_v34  ;;  %v2348_v34 = vadd.f32 %v4682_v5, %v2316_v61  ;;  %v2639_v61 = vsel %vm2215_vm2, %v2585_v6, 0.0 }
 0x1ca   : > { %v2355_v15 = vadd.f32 %v4682_v5, %v2323_v39  ;;  %v2588_v39 = vsel %vm2573_vm4, %v3861_v55, 0.0 }
 0x1cc   : > { %2643 = vadd.xlane.f32.xlu1 %v2642_v27  ;;  %v2431_v33 = vpop.xlane.xlu2 %2430  ;;  %v2651_v27 = vsel %vm2215_vm2, %v2589_v57, 0.0 }
 0x1cd   : > { %v2515_v11 = vmul.f32 %v4690_v52, %v2431_v33 }
 0x1cf   : > { %v2419_v23 = vpop.xlane.xlu1 %2418  ;;  %2631 = vadd.xlane.f32.xlu0 %v2630_v46  ;;  %v4755_v48 = vadd.f32 %v2515_v11, %v2352_v54  ;;  %v2596_v46 = vsel %vm2573_vm4, %v5435_v0, 0.0 }
 0x1d0   : > { %v2511_v41 = vmul.f32 %v4690_v52, %v2419_v23  ;;  %v2319_v23 = vmul.f32 %v4668_v51, %v4504_v18  ;;  %v2315_v18 = vmul.f32 %v4668_v51, %v4541_v9 }
 0x1d1   : > { %2664 = vadd.xlane.f32.xlu2 %v2663_v13  ;;  %v2660_v13 = vsel %vm2215_vm2, %v2592_v32, 0.0  ;;  %v2648_v32 = vsel %vm2215_vm2, %v2588_v39, 0.0 }
 0x1d2   : > { %v4760_v2 = vadd.f32 %v2511_v41, %v2348_v34  ;;  %v4764_v33 = vpop.xlane.xlu0 %2307  ;;  %v2351_v34 = vadd.f32 %v4682_v5, %v2319_v23  ;;  %v2672_v41 = vsel %vm2215_vm2, %v2596_v46, 0.0  ;;  %v2326_v23 = vmul.f32 %v4668_v51, %v4605_v8 }
 0x1d3   : > { %v2347_v9 = vadd.f32 %v4682_v5, %v2315_v18  ;;  %v2595_v8 = vsel %vm2573_vm4, %v4236_v43, 0.0 }
 0x1d4   : > { %5447 = vst [vmem:[#allocation19_spill] sm:$0xff] %v4760_v2  ;;  %2652 = vadd.xlane.f32.xlu1 %v2651_v27  ;;  %v2440_v57 = vpop.xlane.xlu2 %2439 }
 0x1d5   : > { %v2518_v11 = vmul.f32 %v4690_v52, %v2440_v57 }
 0x1d7   : > { %v2428_v54 = vpop.xlane.xlu1 %2427  ;;  %2640 = vadd.xlane.f32.xlu0 %v2639_v61  ;;  %v4783_v27 = vadd.f32 %v2518_v11, %v2355_v15  ;;  %v2322_v61 = vmul.f32 %v4668_v51, %v4522_v1  ;;  %v2599_v15 = vsel %vm2573_vm4, %v5438_v42, 0.0 }
 0x1d8   : > { %v2514_v6 = vmul.f32 %v4690_v52, %v2428_v54  ;;  %v2681_v39 = vsel %vm2215_vm2, %v2599_v15, 0.0 }
 0x1d9   : > { %2673 = vadd.xlane.f32.xlu2 %v2672_v41  ;;  %v2354_v41 = vadd.f32 %v4682_v5, %v2322_v61 }
 0x1da   : > { %v4788_v2 = vadd.f32 %v2514_v6, %v2351_v34  ;;  %v2416_v57 = vpop.xlane.xlu0 %2415  ;;  %v2358_v34 = vadd.f32 %v4682_v5, %v2326_v23  ;;  %v2318_v6 = vmul.f32 %v4668_v51, %v4488_v7  ;;  %v2591_v23 = vsel %vm2573_vm4, %v3951_v35, 0.0 }
 0x1db   : > { %v2510_v46 = vmul.f32 %v4690_v52, %v2416_v57  ;;  %v2669_v57 = vsel %vm2215_vm2, %v2595_v8, 0.0  ;;  %v2329_v7 = vmul.f32 %v4668_v51, %v4625_v38  ;;  %v2657_v8 = vsel %vm2215_vm2, %v2591_v23, 0.0 }
 0x1dc   : > { %2661 = vadd.xlane.f32.xlu1 %v2660_v13  ;;  %v2449_v11 = vpop.xlane.xlu2 %2448  ;;  %v2350_v61 = vadd.f32 %v4682_v5, %v2318_v6  ;;  %v2598_v38 = vsel %vm2573_vm4, %v4326_v45, 0.0 }
 0x1dd   : > { %v4800_v54 = vadd.f32 %v2510_v46, %v2347_v9  ;;  %v2521_v1 = vmul.f32 %v4690_v52, %v2449_v11  ;;  %v2361_v6 = vadd.f32 %v4682_v5, %v2329_v7  ;;  %v2594_v7 = vsel %vm2573_vm4, %v4041_v24, 0.0 }
 0x1df   : > { %v2437_v18 = vpop.xlane.xlu1 %2436  ;;  %2649 = vadd.xlane.f32.xlu0 %v2648_v32  ;;  %v4813_v9 = vadd.f32 %v2521_v1, %v2358_v34  ;;  %v2325_v32 = vmul.f32 %v4668_v51, %v4538_v4  ;;  %v2602_v34 = vsel %vm2573_vm4, %v5441_v22, 0.0 }
 0x1e0   : > { %v2517_v13 = vmul.f32 %v4690_v52, %v2437_v18  ;;  %v2690_v23 = vsel %vm2215_vm2, %v2602_v34, 0.0 }
 0x1e1   : > { %2682 = vadd.xlane.f32.xlu2 %v2681_v39  ;;  %v2357_v39 = vadd.f32 %v4682_v5, %v2325_v32 }
 0x1e2   : > { %v4818_v46 = vadd.f32 %v2517_v13, %v2354_v41  ;;  %v2425_v11 = vpop.xlane.xlu0 %2424  ;;  %v2321_v13 = vmul.f32 %v4668_v51, %v4535_v30  ;;  %v2332_v30 = vmul.f32 %v4668_v51, %v4647_v49  ;;  %v2601_v49 = vsel %vm2573_vm4, %v4416_v14, 0.0 }
 0x1e3   : > { %v2513_v15 = vmul.f32 %v4690_v52, %v2425_v11  ;;  %v2678_v11 = vsel %vm2215_vm2, %v2598_v38, 0.0  ;;  %v2666_v38 = vsel %vm2215_vm2, %v2594_v7, 0.0 }
 0x1e4   : > { %2670 = vadd.xlane.f32.xlu1 %v2669_v57  ;;  %v2458_v1 = vpop.xlane.xlu2 %2457  ;;  %v2353_v32 = vadd.f32 %v4682_v5, %v2321_v13  ;;  %v2364_v13 = vadd.f32 %v4682_v5, %v2332_v30  ;;  %v2597_v30 = vsel %vm2573_vm4, %v4176_v63, 0.0 }
 0x1e5   : > { %v4830_v18 = vadd.f32 %v2513_v15, %v2350_v61  ;;  %v2524_v4 = vmul.f32 %v4690_v52, %v2458_v1 }
 0x1e7   : > { %v2446_v41 = vpop.xlane.xlu1 %2445  ;;  %2658 = vadd.xlane.f32.xlu0 %v2657_v8  ;;  %v4843_v61 = vadd.f32 %v2524_v4, %v2361_v6  ;;  %v2328_v8 = vmul.f32 %v4668_v51, %v4554_v12  ;;  %v2605_v6 = vsel %vm2573_vm4, %v4446_v47, 0.0 }
 0x1e8   : > { %v2520_v57 = vmul.f32 %v4690_v52, %v2446_v41  ;;  %v2699_v7 = vsel %vm2215_vm2, %v2605_v6, 0.0  ;;  %v2331_v6 = vmul.f32 %v4668_v51, %v4573_v3 }
 0x1e9   : > { %2691 = vadd.xlane.f32.xlu2 %v2690_v23  ;;  %v2360_v23 = vadd.f32 %v4682_v5, %v2328_v8 }
 0x1ea   : > { %v4848_v15 = vadd.f32 %v2520_v57, %v2357_v39  ;;  %v2434_v1 = vpop.xlane.xlu0 %2433  ;;  %v2324_v57 = vmul.f32 %v4668_v51, %v4557_v21  ;;  %v2335_v21 = vmul.f32 %v4668_v51, %v4671_v36  ;;  %v2604_v36 = vsel %vm2573_vm4, %v4475_v59, 0.0 }
 0x1eb   : > { %v2516_v34 = vmul.f32 %v4690_v52, %v2434_v1  ;;  %v2687_v1 = vsel %vm2215_vm2, %v2601_v49, 0.0 }
 0x1ec   : > { %2679 = vadd.xlane.f32.xlu1 %v2678_v11  ;;  %v2467_v4 = vpop.xlane.xlu2 %2466 }
 0x1ed   : > { %v4860_v41 = vadd.f32 %v2516_v34, %v2353_v32  ;;  %v2527_v12 = vmul.f32 %v4690_v52, %v2467_v4  ;;  %v2675_v4 = vsel %vm2215_vm2, %v2597_v30, 0.0  ;;  %v2696_v30 = vsel %vm2215_vm2, %v2604_v36, 0.0 }
 0x1ef   : > { %v2455_v39 = vpop.xlane.xlu1 %2454  ;;  %2667 = vadd.xlane.f32.xlu0 %v2666_v38  ;;  %v4873_v32 = vadd.f32 %v2527_v12, %v2364_v13  ;;  %v2356_v38 = vadd.f32 %v4682_v5, %v2324_v57  ;;  %v2771_v13 = vsel %vm2768_vm5, %v3486_v37, 0.0  ;;  %v2367_v57 = vadd.f32 %v4682_v5, %v2335_v21 }
 0x1f0   : > { %v2523_v11 = vmul.f32 %v4690_v52, %v2455_v39  ;;  %v2600_v21 = vsel %vm2573_vm4, %v4266_v44, 0.0 }
 0x1f1   : > { %2700 = vadd.xlane.f32.xlu2 %v2699_v7  ;;  %v2363_v7 = vadd.f32 %v4682_v5, %v2331_v6  ;;  %v2684_v36 = vsel %vm2215_vm2, %v2600_v21, 0.0 }
 0x1f2   : > { %v4878_v34 = vadd.f32 %v2523_v11, %v2360_v23  ;;  %v2443_v8 = vpop.xlane.xlu0 %2442  ;;  %v2327_v11 = vmul.f32 %v4668_v51, %v4578_v10  ;;  %v2338_v10 = vmul.f32 %v4668_v51, %v4709_v40  ;;  %v2770_v40 = vsel %vm2768_vm5, %v3606_v25, 0.0 }
 0x1f3   : > { %v2519_v49 = vmul.f32 %v4690_v52, %v2443_v8  ;;  %v2603_v25 = vsel %vm2573_vm4, %v5436_v58, 0.0 }
 0x1f4   : > { %2688 = vadd.xlane.f32.xlu1 %v2687_v1  ;;  %v2476_v12 = vpop.xlane.xlu2 %2475  ;;  %v2807_v1 = vsel %vm2215_vm2, %v2771_v13, 0.0  ;;  %v2359_v6 = vadd.f32 %v4682_v5, %v2327_v11 }
 0x1f5   : > { %v4891_v39 = vadd.f32 %v2519_v49, %v2356_v38  ;;  %v2530_v3 = vmul.f32 %v4690_v52, %v2476_v12  ;;  %v2774_v12 = vsel %vm2768_vm5, %v3546_v29, 0.0 }
 0x1f7   : > { %v2464_v23 = vpop.xlane.xlu1 %2463  ;;  %2676 = vadd.xlane.f32.xlu0 %v2675_v4  ;;  %v4904_v8 = vadd.f32 %v2530_v3, %v2367_v57  ;;  %v2334_v4 = vmul.f32 %v4668_v51, %v4594_v17  ;;  %v2370_v3 = vadd.f32 %v4682_v5, %v2338_v10 }
 0x1f8   : > { %v2526_v37 = vmul.f32 %v4690_v52, %v2464_v23 }
 0x1f9   : > { %2808 = vadd.xlane.f32.xlu2 %v2807_v1  ;;  %v2816_v1 = vsel %vm2215_vm2, %v2774_v12, 0.0  ;;  %v2777_v12 = vsel %vm2768_vm5, %v3636_v28, 0.0 }
 0x1fa   : > { %v4909_v38 = vadd.f32 %v2526_v37, %v2363_v7  ;;  %v2452_v49 = vpop.xlane.xlu0 %2451  ;;  %v2330_v7 = vmul.f32 %v4668_v51, %v4597_v19  ;;  %v2366_v37 = vadd.f32 %v4682_v5, %v2334_v4  ;;  %v2341_v19 = vmul.f32 %v4668_v51, %v4730_v26 }
 0x1fb   : > { %v2522_v13 = vmul.f32 %v4690_v52, %v2452_v49  ;;  %v2337_v4 = vmul.f32 %v4668_v51, %v4617_v16  ;;  %v2773_v26 = vsel %vm2768_vm5, %v3461_v53, 0.0  ;;  %v5449_v53 = vld [vmem:[#allocation2_spill] sm:$0xff] }
 0x1fc   : > { %2697 = vadd.xlane.f32.xlu1 %v2696_v30  ;;  %v2485_v23 = vpop.xlane.xlu2 %2484  ;;  %v2804_v30 = vsel %vm2215_vm2, %v2770_v40, 0.0 }
 0x1fd   : > { %v4921_v57 = vadd.f32 %v2522_v13, %v2359_v6  ;;  %v2533_v17 = vmul.f32 %v4690_v52, %v2485_v23  ;;  %v2362_v6 = vadd.f32 %v4682_v5, %v2330_v7 }
 0x1ff   : > { %v2473_v11 = vpop.xlane.xlu1 %2472  ;;  %2685 = vadd.xlane.f32.xlu0 %v2684_v36  ;;  %v4934_v21 = vadd.f32 %v2533_v17, %v2370_v3  ;;  %v2693_v36 = vsel %vm2215_vm2, %v2603_v25, 0.0  ;;  %v2373_v3 = vadd.f32 %v4682_v5, %v2341_v19  ;;  %v5448_v17 = vld [vmem:[#allocation11_spill] sm:$0xff]  ;;  %v2769_v25 = vsel %vm2768_vm5, %v5449_v53, 0.0 }
 0x200   : > { %v2529_v29 = vmul.f32 %v4690_v52, %v2473_v11  ;;  %v2333_v7 = vmul.f32 %v4668_v51, %v5448_v17 }
 0x201   : > { %2817 = vadd.xlane.f32.xlu2 %v2816_v1  ;;  %v2813_v1 = vsel %vm2215_vm2, %v2773_v26, 0.0  ;;  %v2801_v26 = vsel %vm2215_vm2, %v2769_v25, 0.0 }
 0x202   : > { %v4939_v10 = vadd.f32 %v2529_v29, %v2366_v37  ;;  %v2461_v49 = vpop.xlane.xlu0 %2460  ;;  %v2369_v37 = vadd.f32 %v4682_v5, %v2337_v4  ;;  %v2825_v29 = vsel %vm2215_vm2, %v2777_v12, 0.0  ;;  %v2365_v4 = vadd.f32 %v4682_v5, %v2333_v7 }
 0x203   : > { %v2525_v13 = vmul.f32 %v4690_v52, %v2461_v49  ;;  %v2344_v49 = vmul.f32 %v4668_v51, %v4764_v33 }
 0x204   : > { %2805 = vadd.xlane.f32.xlu1 %v2804_v30  ;;  %v2494_v23 = vpop.xlane.xlu2 %2493 }
 0x205   : > { %v4951_v40 = vadd.f32 %v2525_v13, %v2362_v6  ;;  %v2536_v16 = vmul.f32 %v4690_v52, %v2494_v23  ;;  %v5450_v13 = vld [vmem:[#allocation13_spill] sm:$0xff]  ;;  %v2780_v23 = vsel %vm2768_vm5, %v3766_v31, 0.0  ;;  %v2376_v17 = vadd.f32 %v4682_v5, %v2344_v49 }
 0x206   : > { %v2834_v53 = vsel %vm2215_vm2, %v2780_v23, 0.0  ;;  %v5454_v23 = vld [vmem:[#allocation14_spill] sm:$0xff] }
 0x207   : > { %v2482_v11 = vpop.xlane.xlu1 %2481  ;;  %2694 = vadd.xlane.f32.xlu0 %v2693_v36  ;;  %v4964_v30 = vadd.f32 %v2536_v16, %v2373_v3  ;;  %v2340_v36 = vmul.f32 %v4668_v51, %v5450_v13 }
 0x208   : > { %v2532_v28 = vmul.f32 %v4690_v52, %v2482_v11  ;;  %v5451_v11 = vld [vmem:[#allocation4_spill] sm:$0xff] }
 0x209   : > { %2826 = vadd.xlane.f32.xlu2 %v2825_v29  ;;  %v2776_v33 = vsel %vm2768_vm5, %v5451_v11, 0.0  ;;  %v2343_v11 = vmul.f32 %v4668_v51, %v5454_v23  ;;  %v5457_v23 = vld [vmem:[#allocation5_spill] sm:$0xff] }
 0x20a   : > { %v4969_v19 = vadd.f32 %v2532_v28, %v2369_v37  ;;  %v2470_v6 = vpop.xlane.xlu0 %2469  ;;  %v5452_v28 = vld [vmem:[#allocation12_spill] sm:$0xff]  ;;  %v2822_v25 = vsel %vm2215_vm2, %v2776_v33, 0.0 }
 0x20b   : > { %v2528_v12 = vmul.f32 %v4690_v52, %v2470_v6  ;;  %v2336_v29 = vmul.f32 %v4668_v51, %v5452_v28 }
 0x20c   : > { %2814 = vadd.xlane.f32.xlu1 %v2813_v1  ;;  %v2503_v16 = vpop.xlane.xlu2 %2502  ;;  %v2372_v1 = vadd.f32 %v4682_v5, %v2340_v36  ;;  %v5004_v36 = vld [vmem:[%s5402_s5 + $0x2] ss:$0 sm:$0xff] }
 0x20d   : > { %v4981_v3 = vadd.f32 %v2528_v12, %v2365_v4  ;;  %v2539_v37 = vmul.f32 %v4690_v52, %v2503_v16  ;;  %v5453_v4 = vld [vmem:[#allocation3_spill] sm:$0xff] }
 0x20e   : > { %v2772_v49 = vsel %vm2768_vm5, %v5453_v4, 0.0 }
 0x20f   : > { %v2491_v7 = vpop.xlane.xlu1 %2490  ;;  %2802 = vadd.xlane.f32.xlu0 %v2801_v26  ;;  %v4994_v6 = vadd.f32 %v2539_v37, %v2376_v17  ;;  %v2368_v26 = vadd.f32 %v4682_v5, %v2336_v29  ;;  %v2810_v16 = vsel %vm2215_vm2, %v2772_v49, 0.0  ;;  %v2783_v17 = vsel %vm2768_vm5, %v3861_v55, 0.0  ;;  %v5455_v37 = vld [vmem:[#allocation6_spill] sm:$0xff] }
 0x210   : > { %v2535_v31 = vmul.f32 %v4690_v52, %v2491_v7  ;;  %v2779_v28 = vsel %vm2768_vm5, %v5455_v37, 0.0  ;;  %v2843_v55 = vsel %vm2215_vm2, %v2783_v17, 0.0 }
 0x211   : > { %2835 = vadd.xlane.f32.xlu2 %v2834_v53  ;;  %v5456_v53 = vld [vmem:[#allocation15_spill] sm:$0xff] }
 0x212   : > { %v4999_v13 = vadd.f32 %v2535_v31, %v2372_v1  ;;  %v2479_v12 = vpop.xlane.xlu0 %2478  ;;  %v2339_v4 = vmul.f32 %v4668_v51, %v5456_v53 }
 0x213   : > { %v2531_v33 = vmul.f32 %v4690_v52, %v2479_v12  ;;  %v2831_v12 = vsel %vm2215_vm2, %v2779_v28, 0.0 }
 0x214   : > { %2823 = vadd.xlane.f32.xlu1 %v2822_v25  ;;  %v2611_v1 = vpop.xlane.xlu2 %2610  ;;  %v2375_v25 = vadd.f32 %v4682_v5, %v2343_v11  ;;  %v2371_v11 = vadd.f32 %v4682_v5, %v2339_v4  ;;  %v2342_v4 = vmul.f32 %v4668_v51, %v4699_v56 }
 0x215   : > { %v5014_v7 = vadd.f32 %v2531_v33, %v2368_v26  ;;  %v2705_v31 = vmul.f32 %v5004_v36, %v2611_v1  ;;  %v2775_v33 = vsel %vm2768_vm5, %v5457_v23, 0.0  ;;  %v5458_v23 = vld [vmem:[#allocation7_spill] sm:$0xff] }
 0x216   : > { %v2819_v17 = vsel %vm2215_vm2, %v2775_v33, 0.0  ;;  %v5459_v33 = vld [vmem:[#allocation16_spill] sm:$0xff]  ;;  %v2374_v56 = vadd.f32 %v4682_v5, %v2342_v4  ;;  %v5460_v4 = vld [vmem:[#allocation17_spill] sm:$0xff] }
 0x217   : > { %v2500_v29 = vpop.xlane.xlu1 %2499  ;;  %2811 = vadd.xlane.f32.xlu0 %v2810_v16  ;;  %v5027_v26 = vadd.f32 %v2705_v31, %v4800_v54  ;;  %v2786_v54 = vsel %vm2768_vm5, %v3951_v35, 0.0 }
 0x218   : > { %v2538_v49 = vmul.f32 %v4690_v52, %v2500_v29  ;;  %v2782_v29 = vsel %vm2768_vm5, %v3891_v62, 0.0  ;;  %v2778_v62 = vsel %vm2768_vm5, %v5458_v23, 0.0 }
 0x219   : > { %2844 = vadd.xlane.f32.xlu2 %v2843_v55  ;;  %v2852_v55 = vsel %vm2215_vm2, %v2786_v54, 0.0  ;;  %v2840_v35 = vsel %vm2215_vm2, %v2782_v29, 0.0  ;;  %v2785_v29 = vsel %vm2768_vm5, %v3981_v50, 0.0 }
 0x21a   : > { %v5032_v37 = vadd.f32 %v2538_v49, %v2375_v25  ;;  %v2488_v1 = vpop.xlane.xlu0 %2487 }
 0x21b   : > { %v2534_v16 = vmul.f32 %v4690_v52, %v2488_v1 }
 0x21c   : > { %2832 = vadd.xlane.f32.xlu1 %v2831_v12  ;;  %v2620_v31 = vpop.xlane.xlu2 %2619 }
 0x21d   : > { %v5040_v28 = vadd.f32 %v2534_v16, %v2371_v11  ;;  %v2708_v25 = vmul.f32 %v5004_v36, %v2620_v31 }
 0x21f   : > { %v2608_v53 = vpop.xlane.xlu1 %2607  ;;  %2820 = vadd.xlane.f32.xlu0 %v2819_v17  ;;  %v5052_v12 = vadd.f32 %v2708_v25, %v4830_v18  ;;  %v2828_v17 = vsel %vm2215_vm2, %v2778_v62, 0.0  ;;  %v2789_v18 = vsel %vm2768_vm5, %v4041_v24, 0.0  ;;  %v2849_v24 = vsel %vm2215_vm2, %v2785_v29, 0.0  ;;  %v5461_v62 = vld [vmem:[#allocation8_spill] sm:$0xff]  ;;  %v5463_v29 = vld [vmem:[#allocation10_spill] sm:$0xff] }
 0x220   : > { %v2704_v49 = vmul.f32 %v5004_v36, %v2608_v53  ;;  %v2781_v50 = vsel %vm2768_vm5, %v5461_v62, 0.0 }
 0x221   : > { %2853 = vadd.xlane.f32.xlu2 %v2852_v55 }
 0x222   : > { %v5058_v1 = vadd.f32 %v2704_v49, %v5459_v33  ;;  %v2497_v11 = vpop.xlane.xlu0 %2496  ;;  %v2345_v49 = vmul.f32 %v4668_v51, %v5460_v4  ;;  %v5462_v33 = vld [vmem:[#allocation18_spill] sm:$0xff] }
 0x223   : > { %v2537_v16 = vmul.f32 %v4690_v52, %v2497_v11 }
 0x224   : > { %2841 = vadd.xlane.f32.xlu1 %v2840_v35  ;;  %v2629_v31 = vpop.xlane.xlu2 %2628  ;;  %v2861_v35 = vsel %vm2215_vm2, %v2789_v18, 0.0  ;;  %v2377_v51 = vadd.f32 %v4682_v5, %v2345_v49 }
 0x225   : > { %v5066_v54 = vadd.f32 %v2537_v16, %v2374_v56  ;;  %v2711_v25 = vmul.f32 %v5004_v36, %v2629_v31  ;;  %v2788_v31 = vsel %vm2768_vm5, %v5463_v29, 0.0 }
 0x226   : > { %v2858_v49 = vsel %vm2215_vm2, %v2788_v31, 0.0 }
 0x227   : > { %v2617_v53 = vpop.xlane.xlu1 %2616  ;;  %2829 = vadd.xlane.f32.xlu0 %v2828_v17  ;;  %v5078_v23 = vadd.f32 %v2711_v25, %v4860_v41  ;;  %v2837_v17 = vsel %vm2215_vm2, %v2781_v50, 0.0  ;;  %v2792_v41 = vsel %vm2768_vm5, %v4176_v63, 0.0  ;;  %v5464_v63 = vld [vmem:[#allocation9_spill] sm:$0xff] }
 0x228   : > { %v2707_v55 = vmul.f32 %v5004_v36, %v2617_v53  ;;  %v2870_v5 = vsel %vm2215_vm2, %v2792_v41, 0.0 }
 0x229   : > { %2862 = vadd.xlane.f32.xlu2 %v2861_v35  ;;  %v2784_v35 = vsel %vm2768_vm5, %v5464_v63, 0.0 }
 0x22a   : > { %v5084_v11 = vadd.f32 %v2707_v55, %v5462_v33  ;;  %v2506_v56 = vpop.xlane.xlu0 %2505  ;;  %v2846_v50 = vsel %vm2215_vm2, %v2784_v35, 0.0  ;;  %v2795_v33 = vsel %vm2768_vm5, %v4266_v44, 0.0  ;;  %v2787_v44 = vsel %vm2768_vm5, %v4141_v60, 0.0 }
 0x22b   : > { %v2540_v16 = vmul.f32 %v4690_v52, %v2506_v56 }
 0x22c   : > { %2850 = vadd.xlane.f32.xlu1 %v2849_v24  ;;  %v2638_v53 = vpop.xlane.xlu2 %2637 }
 0x22d   : > { %v5092_v18 = vadd.f32 %v2540_v16, %v2377_v51  ;;  %v2714_v4 = vmul.f32 %v5004_v36, %v2638_v53  ;;  %v2855_v53 = vsel %vm2215_vm2, %v2787_v44, 0.0 }
 0x22f   : > { %v2626_v25 = vpop.xlane.xlu1 %2625  ;;  %2838 = vadd.xlane.f32.xlu0 %v2837_v17  ;;  %v5102_v55 = vadd.f32 %v2714_v4, %v4891_v39  ;;  %v2791_v39 = vsel %vm2768_vm5, %v5435_v0, 0.0  ;;  %v2879_v17 = vsel %vm2215_vm2, %v2795_v33, 0.0  ;;  %v2797_v33 = vsel %vm2768_vm5, %v5441_v22, 0.0 }
 0x230   : > { %v2710_v52 = vmul.f32 %v5004_v36, %v2626_v25  ;;  %v2867_v41 = vsel %vm2215_vm2, %v2791_v39, 0.0  ;;  %v2798_v25 = vsel %vm2768_vm5, %v5436_v58, 0.0  ;;  %v2790_v58 = vsel %vm2768_vm5, %v4236_v43, 0.0 }
 0x231   : > { %2871 = vadd.xlane.f32.xlu2 %v2870_v5  ;;  %v2888_v5 = vsel %vm2215_vm2, %v2798_v25, 0.0 }
 0x232   : > { %v5108_v24 = vadd.f32 %v2710_v52, %v4755_v48  ;;  %v5110_v62 = vpop.xlane.xlu0 %2613 }
 0x234   : > { %2859 = vadd.xlane.f32.xlu1 %v2858_v49  ;;  %v2647_v56 = vpop.xlane.xlu2 %2646 }
 0x235   : > { %v2717_v16 = vmul.f32 %v5004_v36, %v2647_v56 }
 0x237   : > { %v2635_v51 = vpop.xlane.xlu1 %2634  ;;  %2847 = vadd.xlane.f32.xlu0 %v2846_v50  ;;  %v5124_v29 = vadd.f32 %v2717_v16, %v4921_v57  ;;  %v2794_v57 = vsel %vm2768_vm5, %v5438_v42, 0.0  ;;  %v2864_v50 = vsel %vm2215_vm2, %v2790_v58, 0.0  ;;  %v2793_v16 = vsel %vm2768_vm5, %v4326_v45, 0.0 }
 0x238   : > { %v2713_v48 = vmul.f32 %v5004_v36, %v2635_v51  ;;  %v2876_v49 = vsel %vm2215_vm2, %v2794_v57, 0.0  ;;  %v2796_v57 = vsel %vm2768_vm5, %v4416_v14, 0.0  ;;  %v2799_v14 = vsel %vm2768_vm5, %v4475_v59, 0.0 }
 0x239   : > { %2880 = vadd.xlane.f32.xlu2 %v2879_v17  ;;  %v2873_v17 = vsel %vm2215_vm2, %v2793_v16, 0.0 }
 0x23a   : > { %v5130_v0 = vadd.f32 %v2713_v48, %v4783_v27  ;;  %v5132_v31 = vpop.xlane.xlu0 %2622 }
 0x23c   : > { %2868 = vadd.xlane.f32.xlu1 %v2867_v41  ;;  %v2656_v4 = vpop.xlane.xlu2 %2655  ;;  %v2800_v41 = vsel %vm2768_vm5, %v4446_v47, 0.0 }
 0x23d   : > { %v2720_v60 = vmul.f32 %v5004_v36, %v2656_v4  ;;  %v2894_v45 = vsel %vm2215_vm2, %v2800_v41, 0.0 }
 0x23f   : > { %v2644_v52 = vpop.xlane.xlu1 %2643  ;;  %2856 = vadd.xlane.f32.xlu0 %v2855_v53  ;;  %v5146_v63 = vadd.f32 %v2720_v60, %v4951_v40 }
 0x240   : > { %v2716_v27 = vmul.f32 %v5004_v36, %v2644_v52  ;;  %v2882_v52 = vsel %vm2215_vm2, %v2796_v57, 0.0 }
 0x241   : > { %2889 = vadd.xlane.f32.xlu2 %v2888_v5 }
 0x242   : > { %v5152_v42 = vadd.f32 %v2716_v27, %v4813_v9  ;;  %v5154_v35 = vpop.xlane.xlu0 %2631  ;;  %v2885_v9 = vsel %vm2215_vm2, %v2797_v33, 0.0 }
 0x244   : > { %2877 = vadd.xlane.f32.xlu1 %v2876_v49  ;;  %v2665_v39 = vpop.xlane.xlu2 %2664 }
 0x245   : > { %v2723_v56 = vmul.f32 %v5004_v36, %v2665_v39 }
 0x247   : > { %v2653_v40 = vpop.xlane.xlu1 %2652  ;;  %2865 = vadd.xlane.f32.xlu0 %v2864_v50  ;;  %v5164_v51 = vadd.f32 %v2723_v56, %v4981_v3  ;;  %v2891_v50 = vsel %vm2215_vm2, %v2799_v14, 0.0 }
 0x248   : > { %v2719_v43 = vmul.f32 %v5004_v36, %v2653_v40 }
 0x24a   : > { %v5170_v48 = vadd.f32 %v2719_v43, %v4843_v61  ;;  %v5172_v22 = vpop.xlane.xlu0 %2640 }
 0x24c   : > { %2886 = vadd.xlane.f32.xlu1 %v2885_v9  ;;  %v2674_v44 = vpop.xlane.xlu2 %2673 }
 0x24d   : > { %v2726_v3 = vmul.f32 %v5004_v36, %v2674_v44 }
 0x24f   : > { %v2662_v53 = vpop.xlane.xlu1 %2661  ;;  %2874 = vadd.xlane.f32.xlu0 %v2873_v17  ;;  %v5182_v61 = vadd.f32 %v2726_v3, %v5014_v7  ;;  %v5465_v3 = vld [vmem:[#allocation19_spill] sm:$0xff] }
 0x250   : > { %v2722_v25 = vmul.f32 %v5004_v36, %v2662_v53 }
 0x252   : > { %v5188_v4 = vadd.f32 %v2722_v25, %v4873_v32  ;;  %v5190_v47 = vpop.xlane.xlu0 %2649 }
 0x254   : > { %2895 = vadd.xlane.f32.xlu1 %v2894_v45  ;;  %v2683_v60 = vpop.xlane.xlu2 %2682 }
 0x255   : > { %v2729_v5 = vmul.f32 %v5004_v36, %v2683_v60 }
 0x257   : > { %v2671_v27 = vpop.xlane.xlu1 %2670  ;;  %2883 = vadd.xlane.f32.xlu0 %v2882_v52  ;;  %v5196_v49 = vadd.f32 %v2729_v5, %v5040_v28 }
 0x258   : > { %v2725_v7 = vmul.f32 %v5004_v36, %v2671_v27 }
 0x25a   : > { %v5202_v32 = vadd.f32 %v2725_v7, %v4904_v8  ;;  %v5204_v58 = vpop.xlane.xlu0 %2658 }
 0x25c   : > { %v2692_v33 = vpop.xlane.xlu2 %2691 }
 0x25d   : > { %v2732_v40 = vmul.f32 %v5004_v36, %v2692_v33 }
 0x25f   : > { %v2680_v39 = vpop.xlane.xlu1 %2679  ;;  %2892 = vadd.xlane.f32.xlu0 %v2891_v50  ;;  %v5210_v28 = vadd.f32 %v2732_v40, %v5066_v54  ;;  %v2706_v54 = vmul.f32 %v5004_v36, %v5110_v62  ;;  %v2709_v62 = vmul.f32 %v5004_v36, %v5132_v31 }
 0x260   : > { %v2728_v56 = vmul.f32 %v5004_v36, %v2680_v39 }
 0x261   : > { %v2738_v25 = vadd.f32 %v2706_v54, %v5465_v3 }
 0x262   : > { %v5213_v20 = vadd.f32 %v2728_v56, %v4934_v21  ;;  %v5215_v59 = vpop.xlane.xlu0 %2667  ;;  %v5232_v21 = vld [vmem:[%s5402_s5 + $0x3] ss:$0 sm:$0xff] }
 0x264   : > { %v2701_v8 = vpop.xlane.xlu2 %2700 }
 0x265   : > { %v2735_v9 = vmul.f32 %v5004_v36, %v2701_v8  ;;  %v2712_v8 = vmul.f32 %v5004_v36, %v5154_v35 }
 0x267   : > { %v2689_v43 = vpop.xlane.xlu1 %2688  ;;  %v5220_v17 = vadd.f32 %v2735_v9, %v5092_v18 }
 0x268   : > { %v2731_v16 = vmul.f32 %v5004_v36, %v2689_v43 }
 0x26a   : > { %v5223_v41 = vadd.f32 %v2731_v16, %v4964_v30  ;;  %v5227_v44 = vpop.xlane.xlu0 %2676 }
 0x26c   : > { %v2809_v53 = vpop.xlane.xlu2 %2808 }
 0x26d   : > { %v2901_v18 = vmul.f32 %v5232_v21, %v2809_v53 }
 0x26f   : > { %v2698_v45 = vpop.xlane.xlu1 %2697  ;;  %v2933_v57 = vadd.f32 %v2901_v18, %v2738_v25 }
 0x270   : > { %v2734_v30 = vmul.f32 %v5004_v36, %v2698_v45  ;;  %v2715_v45 = vmul.f32 %v5004_v36, %v5172_v22 }
 0x271   : > { %v2965_v27 = vpack.c.bf16 %v2933_v57, %v2933_v57 }
 0x272   : > { %v5239_v52 = vadd.f32 %v2734_v30, %v4994_v6  ;;  %v5248_v60 = vpop.xlane.xlu0 %2685  ;;  %v2741_v6 = vadd.f32 %v2709_v62, %v4788_v2 }
 0x273   : > { %2998 = vst.msk [vmem:[%s5244_s14 + $0x8] sm:$0xf] %vm2995_vm6, %v2965_v27 }
 0x274   : > { %v2818_v5 = vpop.xlane.xlu2 %2817 }
 0x275   : > { %v2904_v14 = vmul.f32 %v5232_v21, %v2818_v5  ;;  %v2747_v5 = vadd.f32 %v2715_v45, %v4848_v15 }
 0x277   : > { %v2806_v7 = vpop.xlane.xlu1 %2805  ;;  %v2936_v33 = vadd.f32 %v2904_v14, %v2741_v6 }
 0x278   : > { %v2900_v50 = vmul.f32 %v5232_v21, %v2806_v7 }
 0x279   : > { %v2968_v31 = vpack.c.bf16 %v2936_v33, %v2936_v33 }
 0x27a   : > { %v2932_v39 = vadd.f32 %v2900_v50, %v5027_v26  ;;  %v5256_v40 = vpop.xlane.xlu0 %2694  ;;  %v2744_v26 = vadd.f32 %v2712_v8, %v4818_v46  ;;  %v2718_v50 = vmul.f32 %v5004_v36, %v5190_v47 }
 0x27b   : > { %3001 = vst.msk [vmem:[%s5244_s14 + $0x14] sm:$0xf] %vm2995_vm6, %v2968_v31 }
 0x27c   : > { %v2964_v56 = vpack.c.bf16 %v2932_v39, %v2932_v39  ;;  %v2827_v2 = vpop.xlane.xlu2 %2826 }
 0x27d   : > { %v2907_v9 = vmul.f32 %v5232_v21, %v2827_v2  ;;  %v2750_v2 = vadd.f32 %v2718_v50, %v4878_v34  ;;  %v2727_v50 = vmul.f32 %v5004_v36, %v5227_v44 }
 0x27e   : > { %2997 = vst.msk [vmem:[%s5244_s14 + $0x4] sm:$0xf] %vm2995_vm6, %v2964_v56 }
 0x27f   : > { %v2815_v43 = vpop.xlane.xlu1 %2814  ;;  %v2939_v3 = vadd.f32 %v2907_v9, %v2744_v26  ;;  %v2721_v26 = vmul.f32 %v5004_v36, %v5204_v58 }
 0x280   : > { %v2903_v16 = vmul.f32 %v5232_v21, %v2815_v43 }
 0x281   : > { %v2971_v46 = vpack.c.bf16 %v2939_v3, %v2939_v3  ;;  %v2753_v45 = vadd.f32 %v2721_v26, %v4909_v38 }
 0x282   : > { %v2935_v54 = vadd.f32 %v2903_v16, %v5052_v12  ;;  %v2803_v53 = vpop.xlane.xlu0 %2802 }
 0x283   : > { %v2899_v35 = vmul.f32 %v5232_v21, %v2803_v53  ;;  %3004 = vst.msk [vmem:[%s5244_s14 + $0x20] sm:$0xf] %vm2995_vm6, %v2971_v46  ;;  %v2724_v46 = vmul.f32 %v5004_v36, %v5215_v59 }
 0x284   : > { %v2967_v25 = vpack.c.bf16 %v2935_v54, %v2935_v54  ;;  %v2836_v30 = vpop.xlane.xlu2 %2835 }
 0x285   : > { %v2931_v18 = vadd.f32 %v2899_v35, %v5058_v1  ;;  %v2910_v62 = vmul.f32 %v5232_v21, %v2836_v30 }
 0x286   : > { %3000 = vst.msk [vmem:[%s5244_s14 + $0x10] sm:$0xf] %vm2995_vm6, %v2967_v25 }
 0x287   : > { %v2824_v57 = vpop.xlane.xlu1 %2823  ;;  %v2963_v12 = vpack.c.bf16 %v2931_v18, %v2931_v18  ;;  %v2942_v1 = vadd.f32 %v2910_v62, %v2747_v5 }
 0x288   : > { %v2906_v27 = vmul.f32 %v5232_v21, %v2824_v57 }
 0x289   : > { %2996 = vst.msk [vmem:[%s5244_s14] sm:$0xf] %vm2995_vm6, %v2963_v12 }
 0x28a   : > { %v2938_v6 = vadd.f32 %v2906_v27, %v5078_v23  ;;  %v2812_v22 = vpop.xlane.xlu0 %2811  ;;  %v2974_v23 = vpack.c.bf16 %v2942_v1, %v2942_v1 }
 0x28b   : > { %v2902_v7 = vmul.f32 %v5232_v21, %v2812_v22  ;;  %v2756_v22 = vadd.f32 %v2724_v46, %v4939_v10 }
 0x28c   : > { %v2970_v14 = vpack.c.bf16 %v2938_v6, %v2938_v6  ;;  %v2845_v15 = vpop.xlane.xlu2 %2844  ;;  %3007 = vst.msk [vmem:[%s5244_s14 + $0x2c] sm:$0xf] %vm2995_vm6, %v2974_v23 }
 0x28d   : > { %v2934_v33 = vadd.f32 %v2902_v7, %v5084_v11  ;;  %v2913_v31 = vmul.f32 %v5232_v21, %v2845_v15 }
 0x28e   : > { %3003 = vst.msk [vmem:[%s5244_s14 + $0x1c] sm:$0xf] %vm2995_vm6, %v2970_v14 }
 0x28f   : > { %v2833_v39 = vpop.xlane.xlu1 %2832  ;;  %v2966_v56 = vpack.c.bf16 %v2934_v33, %v2934_v33  ;;  %v2945_v11 = vadd.f32 %v2913_v31, %v2750_v2 }
 0x290   : > { %v2909_v8 = vmul.f32 %v5232_v21, %v2833_v39 }
 0x291   : > { %2999 = vst.msk [vmem:[%s5244_s14 + $0xc] sm:$0xf] %vm2995_vm6, %v2966_v56  ;;  %v2759_v56 = vadd.f32 %v2727_v50, %v4969_v19 }
 0x292   : > { %v2941_v43 = vadd.f32 %v2909_v8, %v5102_v55  ;;  %v2821_v47 = vpop.xlane.xlu0 %2820  ;;  %v2977_v55 = vpack.c.bf16 %v2945_v11, %v2945_v11 }
 0x293   : > { %v2905_v9 = vmul.f32 %v5232_v21, %v2821_v47  ;;  %v2730_v47 = vmul.f32 %v5004_v36, %v5248_v60 }
 0x294   : > { %v2973_v16 = vpack.c.bf16 %v2941_v43, %v2941_v43  ;;  %v2854_v34 = vpop.xlane.xlu2 %2853  ;;  %3010 = vst.msk [vmem:[%s5244_s14 + $0x38] sm:$0xf] %vm2995_vm6, %v2977_v55 }
 0x295   : > { %v2937_v54 = vadd.f32 %v2905_v9, %v5108_v24  ;;  %v2916_v3 = vmul.f32 %v5232_v21, %v2854_v34  ;;  %v2762_v34 = vadd.f32 %v2730_v47, %v4999_v13 }
 0x296   : > { %3006 = vst.msk [vmem:[%s5244_s14 + $0x28] sm:$0xf] %vm2995_vm6, %v2973_v16 }
 0x297   : > { %v2842_v53 = vpop.xlane.xlu1 %2841  ;;  %v2969_v35 = vpack.c.bf16 %v2937_v54, %v2937_v54  ;;  %v2948_v24 = vadd.f32 %v2916_v3, %v2753_v45 }
 0x298   : > { %v2912_v25 = vmul.f32 %v5232_v21, %v2842_v53 }
 0x299   : > { %3002 = vst.msk [vmem:[%s5244_s14 + $0x18] sm:$0xf] %vm2995_vm6, %v2969_v35  ;;  %v2733_v35 = vmul.f32 %v5004_v36, %v5256_v40 }
 0x29a   : > { %v2944_v18 = vadd.f32 %v2912_v25, %v5124_v29  ;;  %v2830_v58 = vpop.xlane.xlu0 %2829  ;;  %v2980_v29 = vpack.c.bf16 %v2948_v24, %v2948_v24 }
 0x29b   : > { %v2908_v30 = vmul.f32 %v5232_v21, %v2830_v58 }
 0x29c   : > { %v2976_v57 = vpack.c.bf16 %v2944_v18, %v2944_v18  ;;  %v2863_v38 = vpop.xlane.xlu2 %2862  ;;  %3013 = vst.msk [vmem:[%s5244_s14 + $0x44] sm:$0xf] %vm2995_vm6, %v2980_v29 }
 0x29d   : > { %v2940_v62 = vadd.f32 %v2908_v30, %v5130_v0  ;;  %v2919_v27 = vmul.f32 %v5232_v21, %v2863_v38  ;;  %v2765_v30 = vadd.f32 %v2733_v35, %v5032_v37 }
 0x29e   : > { %3009 = vst.msk [vmem:[%s5244_s14 + $0x34] sm:$0xf] %vm2995_vm6, %v2976_v57 }
 0x29f   : > { %v2851_v12 = vpop.xlane.xlu1 %2850  ;;  %v2972_v5 = vpack.c.bf16 %v2940_v62, %v2940_v62  ;;  %v2951_v0 = vadd.f32 %v2919_v27, %v2756_v22 }
 0x2a0   : > { %v2915_v6 = vmul.f32 %v5232_v21, %v2851_v12 }
 0x2a1   : > { %3005 = vst.msk [vmem:[%s5244_s14 + $0x24] sm:$0xf] %vm2995_vm6, %v2972_v5 }
 0x2a2   : > { %v2947_v1 = vadd.f32 %v2915_v6, %v5146_v63  ;;  %v2839_v59 = vpop.xlane.xlu0 %2838  ;;  %v2983_v63 = vpack.c.bf16 %v2951_v0, %v2951_v0 }
 0x2a3   : > { %v2911_v7 = vmul.f32 %v5232_v21, %v2839_v59 }
 0x2a4   : > { %v2979_v14 = vpack.c.bf16 %v2947_v1, %v2947_v1  ;;  %v2872_v10 = vpop.xlane.xlu2 %2871  ;;  %3016 = vst.msk [vmem:[%s5244_s14 + $0x50] sm:$0xf] %vm2995_vm6, %v2983_v63 }
 0x2a5   : > { %v2943_v33 = vadd.f32 %v2911_v7, %v5152_v42  ;;  %v2922_v39 = vmul.f32 %v5232_v21, %v2872_v10 }
 0x2a6   : > { %3012 = vst.msk [vmem:[%s5244_s14 + $0x40] sm:$0xf] %vm2995_vm6, %v2979_v14 }
 0x2a7   : > { %v2860_v15 = vpop.xlane.xlu1 %2859  ;;  %v2975_v23 = vpack.c.bf16 %v2943_v33, %v2943_v33  ;;  %v2954_v42 = vadd.f32 %v2922_v39, %v2759_v56 }
 0x2a8   : > { %v2918_v31 = vmul.f32 %v5232_v21, %v2860_v15 }
 0x2a9   : > { %3008 = vst.msk [vmem:[%s5244_s14 + $0x30] sm:$0xf] %vm2995_vm6, %v2975_v23 }
 0x2aa   : > { %v2950_v8 = vadd.f32 %v2918_v31, %v5164_v51  ;;  %v2848_v44 = vpop.xlane.xlu0 %2847  ;;  %v2986_v51 = vpack.c.bf16 %v2954_v42, %v2954_v42 }
 0x2ab   : > { %v2914_v2 = vmul.f32 %v5232_v21, %v2848_v44 }
 0x2ac   : > { %v2982_v43 = vpack.c.bf16 %v2950_v8, %v2950_v8  ;;  %v2881_v19 = vpop.xlane.xlu2 %2880  ;;  %3019 = vst.msk [vmem:[%s5244_s14 + $0x5c] sm:$0xf] %vm2995_vm6, %v2986_v51 }
 0x2ad   : > { %v2946_v11 = vadd.f32 %v2914_v2, %v5170_v48  ;;  %v2925_v16 = vmul.f32 %v5232_v21, %v2881_v19 }
 0x2ae   : > { %3015 = vst.msk [vmem:[%s5244_s14 + $0x4c] sm:$0xf] %vm2995_vm6, %v2982_v43 }
 0x2af   : > { %v2869_v9 = vpop.xlane.xlu1 %2868  ;;  %v2978_v26 = vpack.c.bf16 %v2946_v11, %v2946_v11  ;;  %v2957_v48 = vadd.f32 %v2925_v16, %v2762_v34 }
 0x2b0   : > { %v2921_v54 = vmul.f32 %v5232_v21, %v2869_v9 }
 0x2b1   : > { %3011 = vst.msk [vmem:[%s5244_s14 + $0x3c] sm:$0xf] %vm2995_vm6, %v2978_v26 }
 0x2b2   : > { %v2953_v53 = vadd.f32 %v2921_v54, %v5182_v61  ;;  %v2857_v60 = vpop.xlane.xlu0 %2856  ;;  %v2989_v61 = vpack.c.bf16 %v2957_v48, %v2957_v48 }
 0x2b3   : > { %v2917_v55 = vmul.f32 %v5232_v21, %v2857_v60 }
 0x2b4   : > { %v2985_v3 = vpack.c.bf16 %v2953_v53, %v2953_v53  ;;  %v2890_v13 = vpop.xlane.xlu2 %2889  ;;  %3022 = vst.msk [vmem:[%s5244_s14 + $0x68] sm:$0xf] %vm2995_vm6, %v2989_v61 }
 0x2b5   : > { %v2949_v25 = vadd.f32 %v2917_v55, %v5188_v4  ;;  %v2928_v18 = vmul.f32 %v5232_v21, %v2890_v13 }
 0x2b6   : > { %3018 = vst.msk [vmem:[%s5244_s14 + $0x58] sm:$0xf] %vm2995_vm6, %v2985_v3 }
 0x2b7   : > { %v2878_v45 = vpop.xlane.xlu1 %2877  ;;  %v2981_v58 = vpack.c.bf16 %v2949_v25, %v2949_v25  ;;  %v2960_v40 = vadd.f32 %v2928_v18, %v2765_v30 }
 0x2b8   : > { %v2924_v24 = vmul.f32 %v5232_v21, %v2878_v45 }
 0x2b9   : > { %3014 = vst.msk [vmem:[%s5244_s14 + $0x48] sm:$0xf] %vm2995_vm6, %v2981_v58  ;;  %v2992_v37 = vpack.c.bf16 %v2960_v40, %v2960_v40 }
 0x2ba   : > { %v2956_v36 = vadd.f32 %v2924_v24, %v5196_v49  ;;  %v2866_v4 = vpop.xlane.xlu0 %2865 }
 0x2bb   : > { %v2920_v57 = vmul.f32 %v5232_v21, %v2866_v4  ;;  %3025 = vst.msk [vmem:[%s5244_s14 + $0x74] sm:$0xf] %vm2995_vm6, %v2992_v37 }
 0x2bc   : > { %v2988_v46 = vpack.c.bf16 %v2956_v36, %v2956_v36 }
 0x2bd   : > { %v2952_v62 = vadd.f32 %v2920_v57, %v5202_v32 }
 0x2be   : > { %3021 = vst.msk [vmem:[%s5244_s14 + $0x64] sm:$0xf] %vm2995_vm6, %v2988_v46 }
 0x2bf   : > { %v2887_v38 = vpop.xlane.xlu1 %2886  ;;  %v2984_v12 = vpack.c.bf16 %v2952_v62, %v2952_v62 }
 0x2c0   : > { %v2927_v29 = vmul.f32 %v5232_v21, %v2887_v38 }
 0x2c1   : > { %3017 = vst.msk [vmem:[%s5244_s14 + $0x54] sm:$0xf] %vm2995_vm6, %v2984_v12 }
 0x2c2   : > { %v2959_v49 = vadd.f32 %v2927_v29, %v5210_v28  ;;  %v2875_v27 = vpop.xlane.xlu0 %2874 }
 0x2c3   : > { %v2923_v5 = vmul.f32 %v5232_v21, %v2875_v27 }
 0x2c4   : > { %v2991_v32 = vpack.c.bf16 %v2959_v49, %v2959_v49 }
 0x2c5   : > { %v2955_v6 = vadd.f32 %v2923_v5, %v5213_v20 }
 0x2c6   : > { %3024 = vst.msk [vmem:[%s5244_s14 + $0x70] sm:$0xf] %vm2995_vm6, %v2991_v32 }
 0x2c7   : > { %v2896_v22 = vpop.xlane.xlu1 %2895  ;;  %v2987_v1 = vpack.c.bf16 %v2955_v6, %v2955_v6 }
 0x2c8   : > { %v2930_v59 = vmul.f32 %v5232_v21, %v2896_v22 }
 0x2c9   : > { %3020 = vst.msk [vmem:[%s5244_s14 + $0x60] sm:$0xf] %vm2995_vm6, %v2987_v1 }
 0x2ca   : > { %v2962_v28 = vadd.f32 %v2930_v59, %v5220_v17  ;;  %v2884_v0 = vpop.xlane.xlu0 %2883 }
 0x2cb   : > { %v2926_v7 = vmul.f32 %v5232_v21, %v2884_v0 }
 0x2cc   : > { %v2994_v14 = vpack.c.bf16 %v2962_v28, %v2962_v28 }
 0x2cd   : > { %v2958_v50 = vadd.f32 %v2926_v7, %v5223_v41 }
 0x2ce   : > { %3027 = vst.msk [vmem:[%s5244_s14 + $0x7c] sm:$0xf] %vm2995_vm6, %v2994_v14 }
 0x2cf   : > { %v2990_v20 = vpack.c.bf16 %v2958_v50, %v2958_v50 }
 0x2d1   : > { %3023 = vst.msk [vmem:[%s5244_s14 + $0x6c] sm:$0xf] %vm2995_vm6, %v2990_v20 }
 0x2d2   : > { %v2893_v33 = vpop.xlane.xlu0 %2892 }
 0x2d3   : > { %v2929_v10 = vmul.f32 %v5232_v21, %v2893_v33 }
 0x2d5   : > { %v2961_v15 = vadd.f32 %v2929_v10, %v5239_v52 }
 0x2d7   : > { %v2993_v63 = vpack.c.bf16 %v2961_v15, %v2961_v15 }
 0x2d9   : > { %3026 = vst.msk [vmem:[%s5244_s14 + $0x78] sm:$0xf] %vm2995_vm6, %v2993_v63 }
 0x2da PF: > { %s17_s24 = sadd.s32 1, %s3287_s24  }
 0x2db   : > { %p14_p4 = scmp.ge.s32.totalorder %s17_s24, 4  }
 0x2dd   :  { %16 = sbr.rel (!%p14_p4) target bundleno = 1 (0x1), region = 89 }

// kernel: _lambda_.12
= control target key start
LH: loop header
LB: loop body
LE: loop exit
PB: predicated region body
PF: predicated region fallthrough
CT: control target
= control target key end

     0   :  { %v95_v7 = vmov 0.0   ;;  %s135_s0 = inlined_call_operand.vmem [shape: bf16[4,8,128], index: 0, kind: input, shape index: {}]   ;;  %s136_s1 = inlined_call_operand.vmem [shape: bf16[4,8,128], index: 1, kind: input, shape index: {}]   ;;  %s137_s2 = inlined_call_operand.vmem [shape: bf16[4,8,128], index: 2, kind: output, shape index: {}]  }
   0x1   :  { %v11_v0 = vld [vmem:[%s135_s0] sm:$0xff]   ;;  %v86_v14 = vld [vmem:[%s135_s0 + $0x8] sm:$0xff]  }
   0x2   :  { %v14_v1 = vld [vmem:[%s136_s1] sm:$0xff]   ;;  %v12_v2 = vunpack.c.l.bf16 %v11_v0  ;;  %v27_v5 = vunpack.c.h.bf16 %v11_v0  ;;  %v87_v15 = vld [vmem:[%s136_s1 + $0x8] sm:$0xff]   ;;  %v45_v17 = vunpack.c.l.bf16 %v86_v14  ;;  %v63_v26 = vunpack.c.h.bf16 %v86_v14 }
   0x3   :  { %v15_v3 = vunpack.c.l.bf16 %v14_v1  ;;  %v31_v6 = vunpack.c.h.bf16 %v14_v1  ;;  %v49_v18 = vunpack.c.l.bf16 %v87_v15  ;;  %v67_v27 = vunpack.c.h.bf16 %v87_v15 }
   0x5   :  { %v16_v4 = vadd.f32 %v15_v3, %v12_v2  ;;  %v32_v12 = vadd.f32 %v31_v6, %v27_v5  ;;  %v50_v23 = vadd.f32 %v49_v18, %v45_v17  ;;  %v68_v32 = vadd.f32 %v67_v27, %v63_v26 }
   0x7   :  { %vm18_vm0 = vcmp.ge.f32.partialorder %v16_v4, 1.0 }
   0x8   :  { %v81_v8 = vsel %vm18_vm0, 1.0, %v95_v7 }
   0x9   :  { %v21_v9 = vpack.c.bf16 %v81_v8, %v81_v8  ;;  %v23_v10 = vsub.f32 1.0, %v81_v8 }
   0xb   :  { %22 = vst [vmem:[%s137_s2] sm:$0xf] %v21_v9  ;;  %v24_v11 = vmul.f32 %v23_v10, %v16_v4 }
   0xd   :  { %v33_v13 = vmul.f32 0.5, %v24_v11 }
   0xf   :  { %v34_v16 = vadd.f32 %v33_v13, %v32_v12 }
  0x11   :  { %vm35_vm1 = vcmp.ge.f32.partialorder %v34_v16, 1.0 }
  0x12   :  { %v84_v19 = vsel %vm35_vm1, 1.0, %v95_v7 }
  0x13   :  { %v38_v20 = vpack.c.bf16 %v84_v19, %v84_v19  ;;  %v41_v21 = vsub.f32 1.0, %v84_v19 }
  0x15   :  { %85 = vst [vmem:[%s137_s2 + $0x4] sm:$0xf] %v38_v20  ;;  %v42_v22 = vmul.f32 %v41_v21, %v34_v16 }
  0x17   :  { %v51_v24 = vmul.f32 0.5, %v42_v22 }
  0x19   :  { %v52_v25 = vadd.f32 %v51_v24, %v50_v23 }
  0x1b   :  { %vm53_vm2 = vcmp.ge.f32.partialorder %v52_v25, 1.0 }
  0x1c   :  { %v88_v28 = vsel %vm53_vm2, 1.0, %v95_v7 }
  0x1d   :  { %v56_v29 = vpack.c.bf16 %v88_v28, %v88_v28  ;;  %v59_v30 = vsub.f32 1.0, %v88_v28 }
  0x1f   :  { %89 = vst [vmem:[%s137_s2 + $0x8] sm:$0xf] %v56_v29  ;;  %v60_v31 = vmul.f32 %v59_v30, %v52_v25 }
  0x21   :  { %v69_v33 = vmul.f32 0.5, %v60_v31 }
  0x23   :  { %v70_v34 = vadd.f32 %v69_v33, %v68_v32 }
  0x25   :  { %vm71_vm3 = vcmp.ge.f32.partialorder %v70_v34, 1.0 }
  0x26   :  { %v92_v35 = vsel %vm71_vm3, 1.0, %v95_v7 }
  0x27   :  { %v74_v36 = vpack.c.bf16 %v92_v35, %v92_v35 }
  0x29   :  { %93 = vst [vmem:[%s137_s2 + $0xc] sm:$0xf] %v74_v36 }

// kernel: _lambda_.14
= control target key start
LH: loop header
LB: loop body
LE: loop exit
PB: predicated region body
PF: predicated region fallthrough
CT: control target
= control target key end

     0   :  { %v111_v12 = vmov 0.0   ;;  %s168_s0 = inlined_call_operand.vmem [shape: bf16[4,8,128], index: 0, kind: input, shape index: {}]   ;;  %s169_s1 = inlined_call_operand.vmem [shape: bf16[4,8,128], index: 1, kind: input, shape index: {}]   ;;  %s170_s2 = inlined_call_operand.vmem [shape: bf16[4,8,128], index: 2, kind: input, shape index: {}]   ;;  %s171_s3 = inlined_call_operand.vmem [shape: bf16[4,8,128], index: 3, kind: output, shape index: {}]  }
   0x1   :  { %v14_v0 = vld [vmem:[%s168_s0] sm:$0xf]  ;;  %v96_v2 = vld [vmem:[%s168_s0 + $0x4] sm:$0xff]   ;;  %v105_v27 = vld [vmem:[%s168_s0 + $0xc] sm:$0xf] }
   0x2   :  { %v17_v1 = vld [vmem:[%s169_s1] sm:$0xf]  ;;  %v15_v3 = vunpack.c.l.bf16 %v14_v0  ;;  %v30_v5 = vunpack.c.l.bf16 %v96_v2  ;;  %v97_v6 = vld [vmem:[%s169_s1 + $0x4] sm:$0xff]   ;;  %v51_v19 = vunpack.c.h.bf16 %v96_v2  ;;  %v106_v28 = vld [vmem:[%s169_s1 + $0xc] sm:$0xf]  ;;  %v73_v32 = vunpack.c.l.bf16 %v105_v27 }
   0x3   :  { %v18_v4 = vunpack.c.l.bf16 %v17_v1  ;;  %v34_v7 = vunpack.c.l.bf16 %v97_v6  ;;  %v36_v8 = vld [vmem:[%s170_s2] sm:$0xff]   ;;  %v55_v20 = vunpack.c.h.bf16 %v97_v6  ;;  %v77_v33 = vunpack.c.l.bf16 %v106_v28  ;;  %v107_v34 = vld [vmem:[%s170_s2 + $0x8] sm:$0xf] }
   0x4   :  { %v37_v11 = vunpack.c.l.bf16 %v36_v8  ;;  %v59_v23 = vunpack.c.h.bf16 %v36_v8  ;;  %v81_v37 = vunpack.c.l.bf16 %v107_v34 }
   0x5   :  { %v19_v9 = vadd.f32 %v18_v4, %v15_v3  ;;  %v35_v10 = vadd.f32 %v34_v7, %v30_v5  ;;  %v56_v22 = vadd.f32 %v55_v20, %v51_v19  ;;  %v78_v36 = vadd.f32 %v77_v33, %v73_v32 }
   0x7   :  { %vm21_vm0 = vcmp.ge.f32.partialorder %v19_v9, 1.0  ;;  %v38_v17 = vadd.f32 %v37_v11, %v35_v10  ;;  %v60_v30 = vadd.f32 %v59_v23, %v56_v22  ;;  %v82_v42 = vadd.f32 %v81_v37, %v78_v36 }
   0x8   :  { %v95_v13 = vsel %vm21_vm0, 1.0, %v111_v12 }
   0x9   :  { %v24_v14 = vpack.c.bf16 %v95_v13, %v95_v13  ;;  %v26_v15 = vsub.f32 1.0, %v95_v13 }
   0xb   :  { %25 = vst [vmem:[%s171_s3] sm:$0xf] %v24_v14  ;;  %v27_v16 = vmul.f32 %v26_v15, %v19_v9 }
   0xd   :  { %v39_v18 = vmul.f32 0.5, %v27_v16 }
   0xf   :  { %v40_v21 = vadd.f32 %v39_v18, %v38_v17 }
  0x11   :  { %vm41_vm1 = vcmp.ge.f32.partialorder %v40_v21, 1.0 }
  0x12   :  { %v98_v24 = vsel %vm41_vm1, 1.0, %v111_v12 }
  0x13   :  { %v44_v25 = vpack.c.bf16 %v98_v24, %v98_v24  ;;  %v47_v26 = vsub.f32 1.0, %v98_v24 }
  0x15   :  { %99 = vst [vmem:[%s171_s3 + $0x4] sm:$0xf] %v44_v25  ;;  %v48_v29 = vmul.f32 %v47_v26, %v40_v21 }
  0x17   :  { %v61_v31 = vmul.f32 0.5, %v48_v29 }
  0x19   :  { %v62_v35 = vadd.f32 %v61_v31, %v60_v30 }
  0x1b   :  { %vm63_vm2 = vcmp.ge.f32.partialorder %v62_v35, 1.0 }
  0x1c   :  { %v103_v38 = vsel %vm63_vm2, 1.0, %v111_v12 }
  0x1d   :  { %v66_v39 = vpack.c.bf16 %v103_v38, %v103_v38  ;;  %v69_v40 = vsub.f32 1.0, %v103_v38 }
  0x1f   :  { %104 = vst [vmem:[%s171_s3 + $0x8] sm:$0xf] %v66_v39  ;;  %v70_v41 = vmul.f32 %v69_v40, %v62_v35 }
  0x21   :  { %v83_v43 = vmul.f32 0.5, %v70_v41 }
  0x23   :  { %v84_v44 = vadd.f32 %v83_v43, %v82_v42 }
  0x25   :  { %vm85_vm3 = vcmp.ge.f32.partialorder %v84_v44, 1.0 }
  0x26   :  { %v108_v45 = vsel %vm85_vm3, 1.0, %v111_v12 }
  0x27   :  { %v88_v46 = vpack.c.bf16 %v108_v45, %v108_v45 }
  0x29   :  { %109 = vst [vmem:[%s171_s3 + $0xc] sm:$0xf] %v88_v46 }

// kernel: _lambda_.11
= control target key start
LH: loop header
LB: loop body
LE: loop exit
PB: predicated region body
PF: predicated region fallthrough
CT: control target
= control target key end

     0   :  { %s4675_s15 = smov 0   ;;  %s8094_s0 = inlined_call_operand.vmem [shape: bf16[8,10,10,8], index: 0, kind: input, shape index: {}]   ;;  %s8095_s1 = inlined_call_operand.vmem [shape: f32[9,8], index: 1, kind: input, shape index: {}]   ;;  %s8096_s2 = inlined_call_operand.vmem [shape: f32[8,8], index: 2, kind: input, shape index: {}]   ;;  %s8097_s3 = inlined_call_operand.vmem [shape: f32[1,8], index: 3, kind: input, shape index: {}]   ;;  %s8098_s4 = inlined_call_operand.vmem [shape: bf16[8,8,8,8], index: 4, kind: output, shape index: {}]  }
   0x1 LB: > { %s4383_s16 = sadd.s32 4294967295, %s4648_s15   ;;  %p4387_p0 = scmp.ge.s32.totalorder %s4648_s15, 1  ;;  %s4648_s15 = sphi %s4675_s15, %s14_s15  }
   0x2   : > { %p164_p1 = scmp.lt.s32.totalorder %s4648_s15, 3 }
   0x4   : > { %p165_p2 = pnand %p4387_p0, %p164_p1 }
   0x6   : > { %168 = sbr.rel (%p165_p2) target bundleno = 1169 (0x491), region = 36 }
   0xb   : > { %s4388_s17 = sshll.u32 %s4383_s16, 2  ;;  %vm498_vm0 = vcmask 1046528   ;;  %v4689_v0 = vld [vmem:[%s8095_s1] ss:$0 sm:$0xff]  ;;  %v4694_v1 = vld [vmem:[%s8095_s1 + $0x1] ss:$0 sm:$0xff]  ;;  %v2692_v4 = vlaneseq }
   0xc   : > { %p193_p3 = scmp.lt.s32.totalorder %s4388_s17, 7  ;;  %v4699_v2 = vld [vmem:[%s8095_s1 + $0x2] ss:$0 sm:$0xff]  ;;  %vm853_vm1 = vcmask 1045504   ;;  %v4704_v3 = vld [vmem:[%s8095_s1 + $0x3] ss:$0 sm:$0xff] }
   0xd   : > { %v4714_v5 = vld [vmem:[%s8095_s1 + $0x4] ss:$0 sm:$0xff]  ;;  %v4719_v6 = vld [vmem:[%s8095_s1 + $0x5] ss:$0 sm:$0xff]  ;;  %v4727_v19 = vand.u32 127, %v2692_v4  ;;  %vm2732_vm3 = vcmask 64512  }
   0xe   : > { %s8471_s17 = smov (!%p193_p3, %s4388_s17), 7  ;;  %v4736_v24 = vld [vmem:[%s8095_s1 + $0x6] ss:$0 sm:$0xff]  ;;  %v4747_v31 = vld [vmem:[%s8095_s1 + $0x7] ss:$0 sm:$0xff]  ;;  %vm4292_vm11 = vcmask 60416  }
   0xf   : > { %s4588_s18 = smul.u32 80, %s8471_s17  ;;  %v4753_v36 = vld [vmem:[%s8095_s1 + $0x8] ss:$0 sm:$0xff]  ;;  %vm2699_vm2 = vcmp.eq.s32.totalorder %v4727_v19, 0  ;;  %vm2895_vm4 = vcmp.eq.s32.totalorder %v4727_v19, 1  ;;  %vm3090_vm5 = vcmp.eq.s32.totalorder %v4727_v19, 2 }
  0x10   : > { %vm3285_vm6 = vcmp.eq.s32.totalorder %v4727_v19, 3  ;;  %vm3480_vm7 = vcmp.eq.s32.totalorder %v4727_v19, 4  ;;  %vm3675_vm8 = vcmp.eq.s32.totalorder %v4727_v19, 5  ;;  %vm3870_vm9 = vcmp.eq.s32.totalorder %v4727_v19, 6 }
  0x11   : > { %s4709_s29 = scalar_lea.vmem %s8094_s0, %s4588_s18  ;;  %vm4065_vm10 = vcmp.eq.s32.totalorder %v4727_v19, 7  ;;  %s4587_s18 = sshll.u32 %s8471_s17, 5 }
  0x12   : > { %v210_v7 = vld [vmem:[%s4709_s29 + $0x20] sm:$0xf]  ;;  %v308_v8 = vld [vmem:[%s4709_s29 + $0x24] sm:$0x1]  ;;  %v4397_v13 = vld [vmem:[%s4709_s29 + $0x28] sm:$0xf]  ;;  %s7935_s21 = scalar_lea.vmem %s8098_s4, %s4587_s18 }
  0x13   : > { %v663_v9 = vld [vmem:[%s4709_s29 + $0x20] sm:$0xe]  ;;  %v243_v10 = vunpack.c.l.bf16 %v210_v7  ;;  %v341_v11 = vunpack.c.l.bf16 %v308_v8  ;;  %v4429_v14 = vld [vmem:[%s4709_s29 + $0x2c] sm:$0x1]  ;;  %v4461_v15 = vld [vmem:[%s4709_s29 + $0x28] sm:$0xe]  ;;  %v1052_v16 = vunpack.c.l.bf16 %v4397_v13 }
  0x14   : > { %v696_v12 = vunpack.c.l.bf16 %v663_v9  ;;  %v1182_v17 = vunpack.c.l.bf16 %v4429_v14  ;;  %v1536_v18 = vunpack.c.l.bf16 %v4461_v15  ;;  %v4493_v29 = vld [vmem:[%s4709_s29 + $0x30] sm:$0xf]  ;;  %v4525_v30 = vld [vmem:[%s4709_s29 + $0x34] sm:$0x1]  ;;  %v4395_v7 = vld [vmem:[%s4709_s29 + $0x18] sm:$0xf] }
  0x15   : > { %v276_v20 = vmul.f32 %v4689_v0, %v243_v10  ;;  %v378_v21 = vmul.f32 %v4694_v1, %v243_v10  ;;  %v379_v22 = vmul.f32 %v4694_v1, %v341_v11  ;;  %v734_v25 = vmul.f32 %v4699_v2, %v341_v11  ;;  %v4557_v41 = vld [vmem:[%s4709_s29 + $0x30] sm:$0xe]  ;;  %v306_v51 = vld [vmem:[%s4709_s29 + $0x14] sm:$0x1] }
  0x16   : > { %v733_v23 = vmul.f32 %v4699_v2, %v696_v12  ;;  %v1085_v26 = vmul.f32 %v4704_v3, %v1052_v16  ;;  %v1219_v27 = vmul.f32 %v4714_v5, %v1052_v16  ;;  %v1220_v28 = vmul.f32 %v4714_v5, %v1182_v17  ;;  %v208_v46 = vld [vmem:[%s4709_s29 + $0x10] sm:$0xf]  ;;  %v4427_v12 = vld [vmem:[%s4709_s29 + $0x1c] sm:$0x1] }
  0x17   : > { %v511_v32 = vrot.slane %v378_v21, 1  ;;  %v512_v33 = vrot.slane %v379_v22, 1  ;;  %v1573_v35 = vmul.f32 %v4719_v6, %v1536_v18  ;;  %v867_v37 = vrot.slane %v734_v25, 2  ;;  %v661_v60 = vld [vmem:[%s4709_s29 + $0x10] sm:$0xe] }
  0x18   : > { %v866_v34 = vrot.slane %v733_v23, 2  ;;  %v1351_v38 = vrot.slane %v1219_v27, 1  ;;  %v1352_v39 = vrot.slane %v1220_v28, 1  ;;  %v1574_v40 = vmul.f32 %v4719_v6, %v1182_v17  ;;  %v4459_v22 = vld [vmem:[%s4709_s29 + $0x18] sm:$0xe] }
  0x19   : > { %v513_v42 = vsel %vm498_vm0, %v511_v32, %v512_v33  ;;  %v1705_v43 = vrot.slane %v1573_v35, 2  ;;  %v1891_v44 = vunpack.c.l.bf16 %v4493_v29  ;;  %v2021_v45 = vunpack.c.l.bf16 %v4525_v30  ;;  %v4491_v33 = vld [vmem:[%s4709_s29 + $0x20] sm:$0xf] }
  0x1a   : > { %v631_v47 = vadd.f32 %v513_v42, %v276_v20  ;;  %v868_v48 = vsel %vm853_vm1, %v866_v34, %v867_v37  ;;  %v1353_v49 = vsel %vm498_vm0, %v1351_v38, %v1352_v39  ;;  %v1706_v50 = vrot.slane %v1574_v40, 2  ;;  %v4523_v39 = vld [vmem:[%s4709_s29 + $0x24] sm:$0x1] }
  0x1b   : > { %v1924_v52 = vmul.f32 %v4736_v24, %v1891_v44  ;;  %v2058_v53 = vmul.f32 %v4747_v31, %v1891_v44  ;;  %v2059_v54 = vmul.f32 %v4747_v31, %v2021_v45  ;;  %v2375_v55 = vunpack.c.l.bf16 %v4557_v41  ;;  %v4555_v44 = vld [vmem:[%s4709_s29 + $0x20] sm:$0xe] }
  0x1c   : > { %v986_v56 = vadd.f32 %v868_v48, %v631_v47  ;;  %v1707_v57 = vsel %vm853_vm1, %v1705_v43, %v1706_v50  ;;  %v2413_v58 = vmul.f32 %v4753_v36, %v2021_v45  ;;  %v241_v59 = vunpack.c.l.bf16 %v208_v46 }
  0x1d   : > { %v2190_v61 = vrot.slane %v2058_v53, 1  ;;  %v2191_v62 = vrot.slane %v2059_v54, 1  ;;  %v2412_v63 = vmul.f32 %v4753_v36, %v2375_v55  ;;  %v339_v4 = vunpack.c.l.bf16 %v306_v51  ;;  %v206_v54 = vld [vmem:[%s4709_s29] sm:$0xf] }
  0x1e   : > { %v1117_v8 = vadd.f32 %v1085_v26, %v986_v56  ;;  %v2545_v9 = vrot.slane %v2413_v58, 2  ;;  %v274_v10 = vmul.f32 %v4689_v0, %v241_v59  ;;  %v374_v11 = vmul.f32 %v4694_v1, %v241_v59 }
  0x1f   : > { %v2192_v13 = vsel %vm498_vm0, %v2190_v61, %v2191_v62  ;;  %v2544_v14 = vrot.slane %v2412_v63, 2  ;;  %v375_v15 = vmul.f32 %v4694_v1, %v339_v4  ;;  %v694_v16 = vunpack.c.l.bf16 %v661_v60  ;;  %v304_v62 = vld [vmem:[%s4709_s29 + $0x4] sm:$0x1] }
  0x20   : > { %v1471_v17 = vadd.f32 %v1353_v49, %v1117_v8  ;;  %v505_v18 = vrot.slane %v374_v11, 1  ;;  %v730_v20 = vmul.f32 %v4699_v2, %v339_v4  ;;  %v1050_v21 = vunpack.c.l.bf16 %v4395_v7 }
  0x21   : > { %v2546_v23 = vsel %vm853_vm1, %v2544_v14, %v2545_v9  ;;  %v506_v25 = vrot.slane %v375_v15, 1  ;;  %v729_v26 = vmul.f32 %v4699_v2, %v694_v16  ;;  %v1180_v27 = vunpack.c.l.bf16 %v4427_v12  ;;  %v4393_v14 = vld [vmem:[%s4709_s29 + $0x8] sm:$0xf] }
  0x22   : > { %v1825_v28 = vadd.f32 %v1707_v57, %v1471_v17  ;;  %v861_v29 = vrot.slane %v730_v20, 2  ;;  %v1083_v30 = vmul.f32 %v4704_v3, %v1050_v21  ;;  %v1215_v32 = vmul.f32 %v4714_v5, %v1050_v21  ;;  %v4425_v20 = vld [vmem:[%s4709_s29 + $0xc] sm:$0x1] }
  0x23   : > { %v507_v34 = vsel %vm498_vm0, %v505_v18, %v506_v25  ;;  %v860_v35 = vrot.slane %v729_v26, 2  ;;  %v1216_v37 = vmul.f32 %v4714_v5, %v1180_v27  ;;  %v1534_v38 = vunpack.c.l.bf16 %v4459_v22 }
  0x24   : > { %v1956_v40 = vadd.f32 %v1924_v52, %v1825_v28  ;;  %v629_v41 = vadd.f32 %v507_v34, %v274_v10  ;;  %v1345_v42 = vrot.slane %v1215_v32, 1  ;;  %v1570_v43 = vmul.f32 %v4719_v6, %v1180_v27 }
  0x25   : > { %v862_v45 = vsel %vm853_vm1, %v860_v35, %v861_v29  ;;  %v1346_v46 = vrot.slane %v1216_v37, 1  ;;  %v1569_v47 = vmul.f32 %v4719_v6, %v1534_v38  ;;  %v1889_v48 = vunpack.c.l.bf16 %v4491_v33  ;;  %v4489_v37 = vld [vmem:[%s4709_s29 + $0x10] sm:$0xf] }
  0x26   : > { %v2310_v49 = vadd.f32 %v2192_v13, %v1956_v40  ;;  %v984_v50 = vadd.f32 %v862_v45, %v629_v41  ;;  %v1700_v51 = vrot.slane %v1570_v43, 2  ;;  %v2019_v53 = vunpack.c.l.bf16 %v4523_v39  ;;  %v659_v13 = vld [vmem:[%s4709_s29] sm:$0xe] }
  0x27   : > { %v1347_v55 = vsel %vm498_vm0, %v1345_v42, %v1346_v46  ;;  %v1699_v52 = vrot.slane %v1569_v47, 2  ;;  %v1922_v56 = vmul.f32 %v4736_v24, %v1889_v48  ;;  %v2054_v57 = vmul.f32 %v4747_v31, %v1889_v48 }
  0x28   : > { %v4794_v58 = vadd.f32 %v2546_v23, %v2310_v49  ;;  %v1115_v59 = vadd.f32 %v1083_v30, %v984_v50  ;;  %v2055_v60 = vmul.f32 %v4747_v31, %v2019_v53  ;;  %v2373_v61 = vunpack.c.l.bf16 %v4555_v44  ;;  %v4457_v30 = vld [vmem:[%s4709_s29 + $0x8] sm:$0xe]  ;;  %v4521_v50 = vld [vmem:[%s4709_s29 + $0x14] sm:$0x1] }
  0x29   : > { %v1701_v63 = vsel %vm853_vm1, %v1699_v52, %v1700_v51  ;;  %v2184_v4 = vrot.slane %v2054_v57, 1  ;;  %v2409_v7 = vmul.f32 %v4753_v36, %v2019_v53  ;;  %v239_v8 = vunpack.c.l.bf16 %v206_v54  ;;  %v4553_v52 = vld [vmem:[%s4709_s29 + $0x10] sm:$0xe] }
  0x2a   : > { %v2704_v9 = vsel %vm2699_vm2, %v4794_v58, 0.0  ;;  %v1469_v10 = vadd.f32 %v1347_v55, %v1115_v59  ;;  %v2185_v11 = vrot.slane %v2055_v60, 1  ;;  %v2408_v12 = vmul.f32 %v4753_v36, %v2373_v61  ;;  %v211_v61 = vld [vmem:[%s4709_s29 + $0x28] sm:$0xf] }
  0x2b   : > { %v2745_v15 = vsel %vm2732_vm3, %v2704_v9, 0.0  ;;  %v2539_v16 = vrot.slane %v2409_v7, 2  ;;  %v272_v17 = vmul.f32 %v4689_v0, %v239_v8  ;;  %v337_v18 = vunpack.c.l.bf16 %v304_v62 }
  0x2c   : > { %2746 = vadd.xlane.f32.xlu2 %v2745_v15  ;;  %v1823_v21 = vadd.f32 %v1701_v63, %v1469_v10  ;;  %v2186_v22 = vsel %vm498_vm0, %v2184_v4, %v2185_v11  ;;  %v2538_v23 = vrot.slane %v2408_v12, 2  ;;  %v370_v25 = vmul.f32 %v4694_v1, %v239_v8  ;;  %v309_v8 = vld [vmem:[%s4709_s29 + $0x2c] sm:$0x1] }
  0x2d   : > { %v371_v26 = vmul.f32 %v4694_v1, %v337_v18  ;;  %v692_v27 = vunpack.c.l.bf16 %v659_v13  ;;  %v726_v28 = vmul.f32 %v4699_v2, %v337_v18  ;;  %v1048_v29 = vunpack.c.l.bf16 %v4393_v14 }
  0x2e   : > { %v1954_v32 = vadd.f32 %v1922_v56, %v1823_v21  ;;  %v2540_v33 = vsel %vm853_vm1, %v2538_v23, %v2539_v16  ;;  %v499_v34 = vrot.slane %v370_v25, 1  ;;  %v1178_v35 = vunpack.c.l.bf16 %v4425_v20  ;;  %v4398_v23 = vld [vmem:[%s4709_s29 + $0x30] sm:$0xf] }
  0x2f   : > { %v500_v38 = vrot.slane %v371_v26, 1  ;;  %v725_v39 = vmul.f32 %v4699_v2, %v692_v27  ;;  %v855_v40 = vrot.slane %v726_v28, 2  ;;  %v1081_v41 = vmul.f32 %v4704_v3, %v1048_v29 }
  0x30   : > { %v2308_v42 = vadd.f32 %v2186_v22, %v1954_v32  ;;  %v1211_v43 = vmul.f32 %v4714_v5, %v1048_v29  ;;  %v1212_v44 = vmul.f32 %v4714_v5, %v1178_v35  ;;  %v1532_v45 = vunpack.c.l.bf16 %v4457_v30 }
  0x31   : > { %v501_v46 = vsel %vm498_vm0, %v499_v34, %v500_v38  ;;  %v854_v47 = vrot.slane %v725_v39, 2  ;;  %v1566_v48 = vmul.f32 %v4719_v6, %v1178_v35  ;;  %v1887_v49 = vunpack.c.l.bf16 %v4489_v37  ;;  %v4430_v34 = vld [vmem:[%s4709_s29 + $0x34] sm:$0x1] }
  0x32   : > { %v4823_v51 = vadd.f32 %v2540_v33, %v2308_v42  ;;  %v627_v53 = vadd.f32 %v501_v46, %v272_v17  ;;  %v1339_v54 = vrot.slane %v1211_v43, 1  ;;  %v1340_v55 = vrot.slane %v1212_v44, 1  ;;  %v664_v17 = vld [vmem:[%s4709_s29 + $0x28] sm:$0xe] }
  0x33   : > { %v856_v56 = vsel %vm853_vm1, %v854_v47, %v855_v40  ;;  %v1565_v57 = vmul.f32 %v4719_v6, %v1532_v45  ;;  %v1694_v59 = vrot.slane %v1566_v48, 2  ;;  %v1920_v60 = vmul.f32 %v4736_v24, %v1887_v49  ;;  %v4462_v40 = vld [vmem:[%s4709_s29 + $0x30] sm:$0xe] }
  0x34   : > { %v2702_v62 = vsel %vm2699_vm2, %v4823_v51, 0.0  ;;  %v982_v63 = vadd.f32 %v856_v56, %v627_v53  ;;  %v1341_v4 = vsel %vm498_vm0, %v1339_v54, %v1340_v55  ;;  %v2017_v7 = vunpack.c.l.bf16 %v4521_v50 }
  0x35   : > { %v2739_v9 = vsel %vm2732_vm3, %v2702_v62, 0.0  ;;  %v1693_v10 = vrot.slane %v1565_v57, 2  ;;  %v2050_v11 = vmul.f32 %v4747_v31, %v1887_v49  ;;  %v2371_v12 = vunpack.c.l.bf16 %v4553_v52  ;;  %v4494_v49 = vld [vmem:[%s4709_s29 + $0x38] sm:$0xf] }
  0x36   : > { %2740 = vadd.xlane.f32.xlu1 %v2739_v9  ;;  %v1113_v13 = vadd.f32 %v1081_v41, %v982_v63  ;;  %v2051_v14 = vmul.f32 %v4747_v31, %v2017_v7  ;;  %v2405_v15 = vmul.f32 %v4753_v36, %v2017_v7  ;;  %v244_v16 = vunpack.c.l.bf16 %v211_v61  ;;  %v4558_v7 = vld [vmem:[%s4709_s29 + $0x38] sm:$0xe] }
  0x37   : > { %v1695_v18 = vsel %vm853_vm1, %v1693_v10, %v1694_v59  ;;  %v2178_v20 = vrot.slane %v2050_v11, 1  ;;  %v2404_v21 = vmul.f32 %v4753_v36, %v2371_v12  ;;  %v342_v22 = vunpack.c.l.bf16 %v309_v8 }
  0x38   : > { %v1467_v25 = vadd.f32 %v1341_v4, %v1113_v13  ;;  %v2179_v26 = vrot.slane %v2051_v14, 1  ;;  %v2533_v27 = vrot.slane %v2405_v15, 2  ;;  %v277_v28 = vmul.f32 %v4689_v0, %v244_v16 }
  0x39   : > { %v2532_v29 = vrot.slane %v2404_v21, 2  ;;  %v380_v30 = vmul.f32 %v4694_v1, %v244_v16  ;;  %v381_v32 = vmul.f32 %v4694_v1, %v342_v22  ;;  %v697_v33 = vunpack.c.l.bf16 %v664_v17  ;;  %v209_v16 = vld [vmem:[%s4709_s29 + $0x18] sm:$0xf]  ;;  %v307_v17 = vld [vmem:[%s4709_s29 + $0x1c] sm:$0x1] }
  0x3a   : > { %v1821_v35 = vadd.f32 %v1695_v18, %v1467_v25  ;;  %v2180_v37 = vsel %vm498_vm0, %v2178_v20, %v2179_v26  ;;  %v736_v38 = vmul.f32 %v4699_v2, %v342_v22  ;;  %v1053_v39 = vunpack.c.l.bf16 %v4398_v23  ;;  %v662_v23 = vld [vmem:[%s4709_s29 + $0x18] sm:$0xe]  ;;  %v4396_v25 = vld [vmem:[%s4709_s29 + $0x20] sm:$0xf] }
  0x3b   : > { %v2534_v41 = vsel %vm853_vm1, %v2532_v29, %v2533_v27  ;;  %v514_v42 = vrot.slane %v380_v30, 1  ;;  %v515_v43 = vrot.slane %v381_v32, 1  ;;  %v735_v44 = vmul.f32 %v4699_v2, %v697_v33 }
  0x3c   : > { %v1952_v45 = vadd.f32 %v1920_v60, %v1821_v35  ;;  %v870_v46 = vrot.slane %v736_v38, 2  ;;  %v1086_v47 = vmul.f32 %v4704_v3, %v1053_v39  ;;  %v1183_v48 = vunpack.c.l.bf16 %v4430_v34  ;;  %v4526_v60 = vld [vmem:[%s4709_s29 + $0x3c] sm:$0x1] }
  0x3d   : > { %v516_v50 = vsel %vm498_vm0, %v514_v42, %v515_v43  ;;  %v869_v53 = vrot.slane %v735_v44, 2  ;;  %v1221_v54 = vmul.f32 %v4714_v5, %v1053_v39  ;;  %v1537_v55 = vunpack.c.l.bf16 %v4462_v40  ;;  %v4428_v44 = vld [vmem:[%s4709_s29 + $0x24] sm:$0x1] }
  0x3e   : > { %v2306_v52 = vadd.f32 %v2180_v37, %v1952_v45  ;;  %v632_v56 = vadd.f32 %v516_v50, %v277_v28  ;;  %v1222_v57 = vmul.f32 %v4714_v5, %v1183_v48  ;;  %v1576_v59 = vmul.f32 %v4719_v6, %v1183_v48 }
  0x3f   : > { %v871_v61 = vsel %vm853_vm1, %v869_v53, %v870_v46  ;;  %v1354_v62 = vrot.slane %v1221_v54, 1  ;;  %v1575_v63 = vmul.f32 %v4719_v6, %v1537_v55  ;;  %v1892_v4 = vunpack.c.l.bf16 %v4494_v49  ;;  %v4460_v49 = vld [vmem:[%s4709_s29 + $0x20] sm:$0xe] }
  0x40   : > { %v4862_v8 = vadd.f32 %v2534_v41, %v2306_v52  ;;  %v987_v9 = vadd.f32 %v871_v61, %v632_v56  ;;  %v1355_v10 = vrot.slane %v1222_v57, 1  ;;  %v1709_v11 = vrot.slane %v1576_v59, 2  ;;  %v4492_v52 = vld [vmem:[%s4709_s29 + $0x28] sm:$0xf] }
  0x41   : > { %v1708_v12 = vrot.slane %v1575_v63, 2  ;;  %v1925_v13 = vmul.f32 %v4736_v24, %v1892_v4  ;;  %v2022_v14 = vunpack.c.l.bf16 %v4526_v60  ;;  %v2060_v15 = vmul.f32 %v4747_v31, %v1892_v4 }
  0x42   : > { %8155 = vst [vmem:[#allocation2_spill] sm:$0xff] %v4862_v8  ;;  %v2700_v18 = vsel %vm2699_vm2, %v4862_v8, 0.0  ;;  %v1118_v20 = vadd.f32 %v1086_v47, %v987_v9  ;;  %v1356_v21 = vsel %vm498_vm0, %v1354_v62, %v1355_v10  ;;  %v2376_v22 = vunpack.c.l.bf16 %v4558_v7 }
  0x43   : > { %v2733_v26 = vsel %vm2732_vm3, %v2700_v18, 0.0  ;;  %v1710_v27 = vsel %vm853_vm1, %v1708_v12, %v1709_v11  ;;  %v2061_v28 = vmul.f32 %v4747_v31, %v2022_v14  ;;  %v2193_v29 = vrot.slane %v2060_v15, 1  ;;  %v4524_v12 = vld [vmem:[%s4709_s29 + $0x2c] sm:$0x1] }
  0x44   : > { %2734 = vadd.xlane.f32.xlu0 %v2733_v26  ;;  %v1472_v30 = vadd.f32 %v1356_v21, %v1118_v20  ;;  %v2414_v32 = vmul.f32 %v4753_v36, %v2376_v22  ;;  %v2415_v33 = vmul.f32 %v4753_v36, %v2022_v14  ;;  %v242_v34 = vunpack.c.l.bf16 %v209_v16 }
  0x45   : > { %v2194_v35 = vrot.slane %v2061_v28, 1  ;;  %v340_v37 = vunpack.c.l.bf16 %v307_v17  ;;  %v695_v38 = vunpack.c.l.bf16 %v662_v23  ;;  %v1051_v39 = vunpack.c.l.bf16 %v4396_v25  ;;  %v4556_v17 = vld [vmem:[%s4709_s29 + $0x28] sm:$0xe] }
  0x46   : > { %v1826_v40 = vadd.f32 %v1710_v27, %v1472_v30  ;;  %v2547_v41 = vrot.slane %v2414_v32, 2  ;;  %v2548_v42 = vrot.slane %v2415_v33, 2  ;;  %v275_v43 = vmul.f32 %v4689_v0, %v242_v34  ;;  %v207_v28 = vld [vmem:[%s4709_s29 + $0x8] sm:$0xf] }
  0x47   : > { %v2195_v45 = vsel %vm498_vm0, %v2193_v29, %v2194_v35  ;;  %v376_v46 = vmul.f32 %v4694_v1, %v242_v34  ;;  %v377_v47 = vmul.f32 %v4694_v1, %v340_v37  ;;  %v731_v48 = vmul.f32 %v4699_v2, %v695_v38  ;;  %v305_v29 = vld [vmem:[%s4709_s29 + $0xc] sm:$0x1]  ;;  %v660_v35 = vld [vmem:[%s4709_s29 + $0x8] sm:$0xe] }
  0x48   : > { %v1957_v50 = vadd.f32 %v1925_v13, %v1826_v40  ;;  %v2549_v53 = vsel %vm853_vm1, %v2547_v41, %v2548_v42  ;;  %v732_v54 = vmul.f32 %v4699_v2, %v340_v37  ;;  %v1084_v55 = vmul.f32 %v4704_v3, %v1051_v39 }
  0x49   : > { %v508_v56 = vrot.slane %v376_v46, 1  ;;  %v509_v57 = vrot.slane %v377_v47, 1  ;;  %v863_v59 = vrot.slane %v731_v48, 2  ;;  %v1181_v60 = vunpack.c.l.bf16 %v4428_v44 }
  0x4a   : > { %v2311_v61 = vadd.f32 %v2195_v45, %v1957_v50  ;;  %v864_v62 = vrot.slane %v732_v54, 2  ;;  %v1217_v63 = vmul.f32 %v4714_v5, %v1051_v39  ;;  %v1535_v4 = vunpack.c.l.bf16 %v4460_v49  ;;  %v4394_v49 = vld [vmem:[%s4709_s29 + $0x10] sm:$0xf] }
  0x4b   : > { %v510_v7 = vsel %vm498_vm0, %v508_v56, %v509_v57  ;;  %v1218_v9 = vmul.f32 %v4714_v5, %v1181_v60  ;;  %v1572_v10 = vmul.f32 %v4719_v6, %v1181_v60  ;;  %v1890_v11 = vunpack.c.l.bf16 %v4492_v52  ;;  %v4426_v52 = vld [vmem:[%s4709_s29 + $0x14] sm:$0x1] }
  0x4c   : > { %v4895_v13 = vadd.f32 %v2549_v53, %v2311_v61  ;;  %v630_v14 = vadd.f32 %v510_v7, %v275_v43  ;;  %v865_v15 = vsel %vm853_vm1, %v863_v59, %v864_v62  ;;  %v1348_v16 = vrot.slane %v1217_v63, 1  ;;  %v4458_v61 = vld [vmem:[%s4709_s29 + $0x10] sm:$0xe] }
  0x4d   : > { %v1349_v18 = vrot.slane %v1218_v9, 1  ;;  %v1571_v20 = vmul.f32 %v4719_v6, %v1535_v4  ;;  %v1703_v21 = vrot.slane %v1572_v10, 2  ;;  %v1923_v22 = vmul.f32 %v4736_v24, %v1890_v11 }
  0x4e   : > { %v2705_v23 = vsel %vm2699_vm2, %v4895_v13, 0.0  ;;  %v985_v25 = vadd.f32 %v865_v15, %v630_v14  ;;  %v2020_v26 = vunpack.c.l.bf16 %v4524_v12  ;;  %v2056_v27 = vmul.f32 %v4747_v31, %v1890_v11  ;;  %v4490_v14 = vld [vmem:[%s4709_s29 + $0x18] sm:$0xf] }
  0x4f   : > { %v2748_v30 = vsel %vm2732_vm3, %v2705_v23, 0.0  ;;  %v1350_v32 = vsel %vm498_vm0, %v1348_v16, %v1349_v18  ;;  %v1702_v33 = vrot.slane %v1571_v20, 2  ;;  %v2374_v34 = vunpack.c.l.bf16 %v4556_v17  ;;  %v4522_v20 = vld [vmem:[%s4709_s29 + $0x1c] sm:$0x1] }
  0x50   : > { %2749 = vadd.xlane.f32.xlu2 %v2748_v30  ;;  %v1116_v37 = vadd.f32 %v1084_v55, %v985_v25  ;;  %v2057_v38 = vmul.f32 %v4747_v31, %v2020_v26  ;;  %v2187_v39 = vrot.slane %v2056_v27, 1  ;;  %v2411_v40 = vmul.f32 %v4753_v36, %v2020_v26 }
  0x51   : > { %v1704_v41 = vsel %vm853_vm1, %v1702_v33, %v1703_v21  ;;  %v2410_v42 = vmul.f32 %v4753_v36, %v2374_v34  ;;  %v240_v43 = vunpack.c.l.bf16 %v207_v28  ;;  %v338_v44 = vunpack.c.l.bf16 %v305_v29 }
  0x52   : > { %v1470_v45 = vadd.f32 %v1350_v32, %v1116_v37  ;;  %v2188_v46 = vrot.slane %v2057_v38, 1  ;;  %v2542_v47 = vrot.slane %v2411_v40, 2  ;;  %v693_v48 = vunpack.c.l.bf16 %v660_v35  ;;  %v4554_v35 = vld [vmem:[%s4709_s29 + $0x18] sm:$0xe] }
  0x53   : > { %v2541_v50 = vrot.slane %v2410_v42, 2  ;;  %v273_v53 = vmul.f32 %v4689_v0, %v240_v43  ;;  %v372_v54 = vmul.f32 %v4694_v1, %v240_v43  ;;  %v373_v55 = vmul.f32 %v4694_v1, %v338_v44  ;;  %v312_v42 = vld [vmem:[%s4709_s29 + $0x54] sm:$0x1] }
  0x54   : > { %v1824_v56 = vadd.f32 %v1704_v41, %v1470_v45  ;;  %v2189_v57 = vsel %vm498_vm0, %v2187_v39, %v2188_v46  ;;  %v727_v59 = vmul.f32 %v4699_v2, %v693_v48  ;;  %v728_v60 = vmul.f32 %v4699_v2, %v338_v44  ;;  %v214_v41 = vld [vmem:[%s4709_s29 + $0x50] sm:$0xf]  ;;  %v4401_v48 = vld [vmem:[%s4709_s29 + $0x58] sm:$0xf] }
  0x55   : > { %v2543_v62 = vsel %vm853_vm1, %v2541_v50, %v2542_v47  ;;  %v502_v63 = vrot.slane %v372_v54, 1  ;;  %v503_v4 = vrot.slane %v373_v55, 1  ;;  %v1049_v7 = vunpack.c.l.bf16 %v4394_v49  ;;  %v667_v47 = vld [vmem:[%s4709_s29 + $0x50] sm:$0xe] }
  0x56   : > { %v1955_v9 = vadd.f32 %v1923_v22, %v1824_v56  ;;  %v857_v10 = vrot.slane %v727_v59, 2  ;;  %v858_v11 = vrot.slane %v728_v60, 2  ;;  %v1179_v12 = vunpack.c.l.bf16 %v4426_v52 }
  0x57   : > { %v504_v15 = vsel %vm498_vm0, %v502_v63, %v503_v4  ;;  %v1082_v16 = vmul.f32 %v4704_v3, %v1049_v7  ;;  %v1213_v17 = vmul.f32 %v4714_v5, %v1049_v7  ;;  %v1533_v18 = vunpack.c.l.bf16 %v4458_v61  ;;  %v4433_v63 = vld [vmem:[%s4709_s29 + $0x5c] sm:$0x1] }
  0x58   : > { %v2309_v21 = vadd.f32 %v2189_v57, %v1955_v9  ;;  %v628_v23 = vadd.f32 %v504_v15, %v273_v53  ;;  %v859_v25 = vsel %vm853_vm1, %v857_v10, %v858_v11  ;;  %v1214_v22 = vmul.f32 %v4714_v5, %v1179_v12 }
  0x59   : > { %v1342_v26 = vrot.slane %v1213_v17, 1  ;;  %v1567_v27 = vmul.f32 %v4719_v6, %v1533_v18  ;;  %v1568_v28 = vmul.f32 %v4719_v6, %v1179_v12  ;;  %v1888_v29 = vunpack.c.l.bf16 %v4490_v14 }
  0x5a   : > { %v4933_v30 = vadd.f32 %v2543_v62, %v2309_v21  ;;  %v983_v32 = vadd.f32 %v859_v25, %v628_v23  ;;  %v1343_v33 = vrot.slane %v1214_v22, 1  ;;  %v2018_v34 = vunpack.c.l.bf16 %v4522_v20  ;;  %v4465_v21 = vld [vmem:[%s4709_s29 + $0x58] sm:$0xe]  ;;  %v4497_v23 = vld [vmem:[%s4709_s29 + $0x60] sm:$0xf] }
  0x5b   : > { %v1696_v37 = vrot.slane %v1567_v27, 2  ;;  %v1697_v38 = vrot.slane %v1568_v28, 2  ;;  %v1921_v39 = vmul.f32 %v4736_v24, %v1888_v29  ;;  %v2052_v40 = vmul.f32 %v4747_v31, %v1888_v29 }
  0x5c   : > { %8156 = vst [vmem:[#allocation3_spill] sm:$0xff] %v4933_v30  ;;  %v2703_v43 = vsel %vm2699_vm2, %v4933_v30, 0.0  ;;  %v1114_v44 = vadd.f32 %v1082_v16, %v983_v32  ;;  %v1344_v45 = vsel %vm498_vm0, %v1342_v26, %v1343_v33  ;;  %v2053_v46 = vmul.f32 %v4747_v31, %v2018_v34 }
  0x5d   : > { %v2742_v49 = vsel %vm2732_vm3, %v2703_v43, 0.0  ;;  %v1698_v50 = vsel %vm853_vm1, %v1696_v37, %v1697_v38  ;;  %v2181_v53 = vrot.slane %v2052_v40, 1  ;;  %v2372_v54 = vunpack.c.l.bf16 %v4554_v35 }
  0x5e   : > { %2743 = vadd.xlane.f32.xlu1 %v2742_v49  ;;  %v1468_v55 = vadd.f32 %v1344_v45, %v1114_v44  ;;  %v2182_v52 = vrot.slane %v2053_v46, 1  ;;  %v2407_v56 = vmul.f32 %v4753_v36, %v2018_v34  ;;  %v247_v57 = vunpack.c.l.bf16 %v214_v41  ;;  %v4561_v44 = vld [vmem:[%s4709_s29 + $0x60] sm:$0xe] }
  0x5f   : > { %v2406_v59 = vmul.f32 %v4753_v36, %v2372_v54  ;;  %v345_v60 = vunpack.c.l.bf16 %v312_v42  ;;  %v700_v61 = vunpack.c.l.bf16 %v667_v47  ;;  %v1056_v62 = vunpack.c.l.bf16 %v4401_v48 }
  0x60   : > { %v1822_v4 = vadd.f32 %v1698_v50, %v1468_v55  ;;  %v2183_v7 = vsel %vm498_vm0, %v2181_v53, %v2182_v52  ;;  %v2536_v9 = vrot.slane %v2407_v56, 2  ;;  %v280_v10 = vmul.f32 %v4689_v0, %v247_v57  ;;  %v213_v55 = vld [vmem:[%s4709_s29 + $0x38] sm:$0xf]  ;;  %v311_v52 = vld [vmem:[%s4709_s29 + $0x3c] sm:$0x1] }
  0x61   : > { %v2535_v11 = vrot.slane %v2406_v59, 2  ;;  %v386_v12 = vmul.f32 %v4694_v1, %v247_v57  ;;  %v387_v14 = vmul.f32 %v4694_v1, %v345_v60  ;;  %v741_v15 = vmul.f32 %v4699_v2, %v700_v61  ;;  %v666_v61 = vld [vmem:[%s4709_s29 + $0x38] sm:$0xe] }
  0x62   : > { %v1953_v16 = vadd.f32 %v1921_v39, %v1822_v4  ;;  %v742_v17 = vmul.f32 %v4699_v2, %v345_v60  ;;  %v1089_v18 = vmul.f32 %v4704_v3, %v1056_v62  ;;  %v1186_v20 = vunpack.c.l.bf16 %v4433_v63  ;;  %v4529_v39 = vld [vmem:[%s4709_s29 + $0x64] sm:$0x1] }
  0x63   : > { %v2537_v25 = vsel %vm853_vm1, %v2535_v11, %v2536_v9  ;;  %v523_v22 = vrot.slane %v386_v12, 1  ;;  %v524_v26 = vrot.slane %v387_v14, 1  ;;  %v878_v27 = vrot.slane %v741_v15, 2 }
  0x64   : > { %v2307_v28 = vadd.f32 %v2183_v7, %v1953_v16  ;;  %v879_v29 = vrot.slane %v742_v17, 2  ;;  %v1227_v32 = vmul.f32 %v4714_v5, %v1056_v62  ;;  %v1228_v33 = vmul.f32 %v4714_v5, %v1186_v20 }
  0x65   : > { %v525_v34 = vsel %vm498_vm0, %v523_v22, %v524_v26  ;;  %v1540_v35 = vunpack.c.l.bf16 %v4465_v21  ;;  %v1582_v37 = vmul.f32 %v4719_v6, %v1186_v20  ;;  %v1895_v38 = vunpack.c.l.bf16 %v4497_v23  ;;  %v4400_v20 = vld [vmem:[%s4709_s29 + $0x40] sm:$0xf]  ;;  %v4432_v22 = vld [vmem:[%s4709_s29 + $0x44] sm:$0x1] }
  0x66   : > { %v4967_v40 = vadd.f32 %v2537_v25, %v2307_v28  ;;  %v635_v41 = vadd.f32 %v525_v34, %v280_v10  ;;  %v880_v42 = vsel %vm853_vm1, %v878_v27, %v879_v29  ;;  %v1363_v43 = vrot.slane %v1227_v32, 1  ;;  %v4464_v32 = vld [vmem:[%s4709_s29 + $0x40] sm:$0xe] }
  0x67   : > { %v1364_v45 = vrot.slane %v1228_v33, 1  ;;  %v1581_v46 = vmul.f32 %v4719_v6, %v1540_v35  ;;  %v1718_v47 = vrot.slane %v1582_v37, 2  ;;  %v1928_v48 = vmul.f32 %v4736_v24, %v1895_v38 }
  0x68   : > { %8157 = vst [vmem:[#allocation4_spill] sm:$0xff] %v4967_v40  ;;  %v2701_v49 = vsel %vm2699_vm2, %v4967_v40, 0.0  ;;  %v990_v50 = vadd.f32 %v880_v42, %v635_v41  ;;  %v2025_v53 = vunpack.c.l.bf16 %v4529_v39  ;;  %v2066_v54 = vmul.f32 %v4747_v31, %v1895_v38 }
  0x69   : > { %v2736_v56 = vsel %vm2732_vm3, %v2701_v49, 0.0  ;;  %v1365_v57 = vsel %vm498_vm0, %v1363_v43, %v1364_v45  ;;  %v1717_v59 = vrot.slane %v1581_v46, 2  ;;  %v2379_v60 = vunpack.c.l.bf16 %v4561_v44 }
  0x6a   : > { %2737 = vadd.xlane.f32.xlu0 %v2736_v56  ;;  %v1121_v62 = vadd.f32 %v1089_v18, %v990_v50  ;;  %v2067_v63 = vmul.f32 %v4747_v31, %v2025_v53  ;;  %v2202_v4 = vrot.slane %v2066_v54, 1  ;;  %v2421_v7 = vmul.f32 %v4753_v36, %v2025_v53 }
  0x6b   : > { %v1719_v9 = vsel %vm853_vm1, %v1717_v59, %v1718_v47  ;;  %v2420_v10 = vmul.f32 %v4753_v36, %v2379_v60  ;;  %v246_v11 = vunpack.c.l.bf16 %v213_v55  ;;  %v344_v12 = vunpack.c.l.bf16 %v311_v52  ;;  %v4560_v59 = vld [vmem:[%s4709_s29 + $0x48] sm:$0xe] }
  0x6c   : > { %v1475_v14 = vadd.f32 %v1365_v57, %v1121_v62  ;;  %v2203_v15 = vrot.slane %v2067_v63, 1  ;;  %v2557_v16 = vrot.slane %v2421_v7, 2  ;;  %v699_v17 = vunpack.c.l.bf16 %v666_v61  ;;  %v212_v63 = vld [vmem:[%s4709_s29 + $0x30] sm:$0xf] }
  0x6d   : > { %v2556_v21 = vrot.slane %v2420_v10, 2  ;;  %v279_v18 = vmul.f32 %v4689_v0, %v246_v11  ;;  %v384_v23 = vmul.f32 %v4694_v1, %v246_v11  ;;  %v385_v25 = vmul.f32 %v4694_v1, %v344_v12  ;;  %v4496_v1 = vld [vmem:[%s4709_s29 + $0x48] sm:$0xf]  ;;  %v665_v11 = vld [vmem:[%s4709_s29 + $0x30] sm:$0xe] }
  0x6e   : > { %v1829_v26 = vadd.f32 %v1719_v9, %v1475_v14  ;;  %v2204_v27 = vsel %vm498_vm0, %v2202_v4, %v2203_v15  ;;  %v739_v28 = vmul.f32 %v4699_v2, %v699_v17  ;;  %v740_v29 = vmul.f32 %v4699_v2, %v344_v12  ;;  %v4528_v2 = vld [vmem:[%s4709_s29 + $0x4c] sm:$0x1]  ;;  %v310_v4 = vld [vmem:[%s4709_s29 + $0x34] sm:$0x1]  ;;  %v4399_v12 = vld [vmem:[%s4709_s29 + $0x38] sm:$0xf] }
  0x6f   : > { %v2558_v33 = vsel %vm853_vm1, %v2556_v21, %v2557_v16  ;;  %v520_v34 = vrot.slane %v384_v23, 1  ;;  %v521_v35 = vrot.slane %v385_v25, 1  ;;  %v1055_v0 = vunpack.c.l.bf16 %v4400_v20 }
  0x70   : > { %v1960_v37 = vadd.f32 %v1928_v48, %v1829_v26  ;;  %v875_v38 = vrot.slane %v739_v28, 2  ;;  %v876_v39 = vrot.slane %v740_v29, 2  ;;  %v1185_v41 = vunpack.c.l.bf16 %v4432_v22  ;;  %v4431_v26 = vld [vmem:[%s4709_s29 + $0x3c] sm:$0x1] }
  0x71   : > { %v522_v42 = vsel %vm498_vm0, %v520_v34, %v521_v35  ;;  %v1088_v43 = vmul.f32 %v4704_v3, %v1055_v0  ;;  %v1225_v44 = vmul.f32 %v4714_v5, %v1055_v0  ;;  %v1539_v45 = vunpack.c.l.bf16 %v4464_v32  ;;  %v5028_v32 = vld [vmem:[%s8095_s1] ss:$0 sm:$0xff] }
  0x72   : > { %v2314_v46 = vadd.f32 %v2204_v27, %v1960_v37  ;;  %v634_v47 = vadd.f32 %v522_v42, %v279_v18  ;;  %v877_v49 = vsel %vm853_vm1, %v875_v38, %v876_v39  ;;  %v1226_v48 = vmul.f32 %v4714_v5, %v1185_v41  ;;  %v5041_v37 = vld [vmem:[%s8095_s1 + $0x2] ss:$0 sm:$0xff] }
  0x73   : > { %v1360_v50 = vrot.slane %v1225_v44, 1  ;;  %v1579_v53 = vmul.f32 %v4719_v6, %v1539_v45  ;;  %v1580_v54 = vmul.f32 %v4719_v6, %v1185_v41  ;;  %v1894_v55 = vunpack.c.l.bf16 %v4496_v1  ;;  %v5048_v1 = vld [vmem:[%s8095_s1 + $0x3] ss:$0 sm:$0xff]  ;;  %v4463_v44 = vld [vmem:[%s4709_s29 + $0x38] sm:$0xe] }
  0x74   : > { %v5005_v3 = vadd.f32 %v2558_v33, %v2314_v46  ;;  %v989_v52 = vadd.f32 %v877_v49, %v634_v47  ;;  %v1361_v56 = vrot.slane %v1226_v48, 1  ;;  %v2024_v57 = vunpack.c.l.bf16 %v4528_v2  ;;  %v4495_v45 = vld [vmem:[%s4709_s29 + $0x40] sm:$0xf] }
  0x75   : > { %v1714_v60 = vrot.slane %v1579_v53, 2  ;;  %v1715_v61 = vrot.slane %v1580_v54, 2  ;;  %v1927_v62 = vmul.f32 %v4736_v24, %v1894_v55  ;;  %v2064_v5 = vmul.f32 %v4747_v31, %v1894_v55  ;;  %v5057_v53 = vld [vmem:[%s8095_s1 + $0x4] ss:$0 sm:$0xff] }
  0x76   : > { %v2708_v6 = vsel %vm2699_vm2, %v5005_v3, 0.0  ;;  %v1120_v7 = vadd.f32 %v1088_v43, %v989_v52  ;;  %v1362_v9 = vsel %vm498_vm0, %v1360_v50, %v1361_v56  ;;  %v2065_v10 = vmul.f32 %v4747_v31, %v2024_v57 }
  0x77   : > { %v2757_v14 = vsel %vm2732_vm3, %v2708_v6, 0.0  ;;  %v1716_v24 = vsel %vm853_vm1, %v1714_v60, %v1715_v61  ;;  %v2199_v15 = vrot.slane %v2064_v5, 1  ;;  %v2378_v16 = vunpack.c.l.bf16 %v4560_v59  ;;  %v4527_v61 = vld [vmem:[%s4709_s29 + $0x44] sm:$0x1]  ;;  %v4559_v6 = vld [vmem:[%s4709_s29 + $0x40] sm:$0xe] }
  0x78   : > { %2758 = vadd.xlane.f32.xlu2 %v2757_v14  ;;  %v1474_v17 = vadd.f32 %v1362_v9, %v1120_v7  ;;  %v2200_v20 = vrot.slane %v2065_v10, 1  ;;  %v2419_v21 = vmul.f32 %v4753_v36, %v2024_v57  ;;  %v245_v18 = vunpack.c.l.bf16 %v212_v63  ;;  %v5065_v57 = vld [vmem:[%s8095_s1 + $0x5] ss:$0 sm:$0xff] }
  0x79   : > { %v2418_v23 = vmul.f32 %v4753_v36, %v2378_v16  ;;  %v343_v25 = vunpack.c.l.bf16 %v310_v4  ;;  %v698_v22 = vunpack.c.l.bf16 %v665_v11  ;;  %v1054_v31 = vunpack.c.l.bf16 %v4399_v12  ;;  %v5034_v36 = vld [vmem:[%s8095_s1 + $0x1] ss:$0 sm:$0xff]  ;;  %v5077_v11 = vld [vmem:[%s8095_s1 + $0x6] ss:$0 sm:$0xff]  ;;  %v5086_v16 = vld [vmem:[%s8095_s1 + $0x7] ss:$0 sm:$0xff] }
  0x7a   : > { %v1828_v27 = vadd.f32 %v1716_v24, %v1474_v17  ;;  %v2201_v28 = vsel %vm498_vm0, %v2199_v15, %v2200_v20  ;;  %v2554_v29 = vrot.slane %v2419_v21, 2  ;;  %v278_v33 = vmul.f32 %v5028_v32, %v245_v18  ;;  %v217_v20 = vld [vmem:[%s4709_s29 + $0x68] sm:$0xf]  ;;  %v315_v21 = vld [vmem:[%s4709_s29 + $0x6c] sm:$0x1] }
  0x7b   : > { %v2553_v34 = vrot.slane %v2418_v23, 2  ;;  %v382_v35 = vmul.f32 %v5034_v36, %v245_v18  ;;  %v383_v0 = vmul.f32 %v5034_v36, %v343_v25  ;;  %v737_v38 = vmul.f32 %v5041_v37, %v698_v22 }
  0x7c   : > { %v1959_v39 = vadd.f32 %v1927_v62, %v1828_v27  ;;  %v738_v41 = vmul.f32 %v5041_v37, %v343_v25  ;;  %v1087_v42 = vmul.f32 %v5048_v1, %v1054_v31  ;;  %v1184_v43 = vunpack.c.l.bf16 %v4431_v26 }
  0x7d   : > { %v2555_v2 = vsel %vm853_vm1, %v2553_v34, %v2554_v29  ;;  %v517_v46 = vrot.slane %v382_v35, 1  ;;  %v518_v47 = vrot.slane %v383_v0, 1  ;;  %v872_v49 = vrot.slane %v737_v38, 2  ;;  %v5098_v29 = vld [vmem:[%s8095_s1 + $0x8] ss:$0 sm:$0xff] }
  0x7e   : > { %v2313_v48 = vadd.f32 %v2201_v28, %v1959_v39  ;;  %v873_v50 = vrot.slane %v738_v41, 2  ;;  %v1223_v54 = vmul.f32 %v5057_v53, %v1054_v31  ;;  %v1224_v55 = vmul.f32 %v5057_v53, %v1184_v43  ;;  %v670_v31 = vld [vmem:[%s4709_s29 + $0x68] sm:$0xe] }
  0x7f   : > { %v519_v52 = vsel %vm498_vm0, %v517_v46, %v518_v47  ;;  %v1538_v56 = vunpack.c.l.bf16 %v4463_v44  ;;  %v1578_v59 = vmul.f32 %v5065_v57, %v1184_v43  ;;  %v1893_v60 = vunpack.c.l.bf16 %v4495_v45  ;;  %v4404_v44 = vld [vmem:[%s4709_s29 + $0x70] sm:$0xf] }
  0x80   : > { %v5069_v62 = vadd.f32 %v2555_v2, %v2313_v48  ;;  %v633_v5 = vadd.f32 %v519_v52, %v278_v33  ;;  %v874_v63 = vsel %vm853_vm1, %v872_v49, %v873_v50  ;;  %v1357_v4 = vrot.slane %v1223_v54, 1  ;;  %v4436_v49 = vld [vmem:[%s4709_s29 + $0x74] sm:$0x1]  ;;  %v4468_v52 = vld [vmem:[%s4709_s29 + $0x70] sm:$0xe] }
  0x81   : > { %v1358_v7 = vrot.slane %v1224_v55, 1  ;;  %v1577_v9 = vmul.f32 %v5065_v57, %v1538_v56  ;;  %v1712_v10 = vrot.slane %v1578_v59, 2  ;;  %v1926_v12 = vmul.f32 %v5077_v11, %v1893_v60 }
  0x82   : > { %8158 = vst [vmem:[#allocation5_spill] sm:$0xff] %v5069_v62  ;;  %v2707_v14 = vsel %vm2699_vm2, %v5069_v62, 0.0  ;;  %v988_v24 = vadd.f32 %v874_v63, %v633_v5  ;;  %v2023_v15 = vunpack.c.l.bf16 %v4527_v61  ;;  %v2062_v17 = vmul.f32 %v5086_v16, %v1893_v60 }
  0x83   : > { %v2754_v18 = vsel %vm2732_vm3, %v2707_v14, 0.0  ;;  %v1359_v23 = vsel %vm498_vm0, %v1357_v4, %v1358_v7  ;;  %v1711_v25 = vrot.slane %v1577_v9, 2  ;;  %v2377_v22 = vunpack.c.l.bf16 %v4559_v6  ;;  %v4500_v7 = vld [vmem:[%s4709_s29 + $0x78] sm:$0xf] }
  0x84   : > { %2755 = vadd.xlane.f32.xlu1 %v2754_v18  ;;  %v1119_v26 = vadd.f32 %v1087_v42, %v988_v24  ;;  %v2063_v27 = vmul.f32 %v5086_v16, %v2023_v15  ;;  %v2196_v28 = vrot.slane %v2062_v17, 1  ;;  %v2417_v33 = vmul.f32 %v5098_v29, %v2023_v15  ;;  %v4532_v15 = vld [vmem:[%s4709_s29 + $0x7c] sm:$0x1] }
  0x85   : > { %v1713_v34 = vsel %vm853_vm1, %v1711_v25, %v1712_v10  ;;  %v2416_v35 = vmul.f32 %v5098_v29, %v2377_v22  ;;  %v250_v0 = vunpack.c.l.bf16 %v217_v20  ;;  %v348_v38 = vunpack.c.l.bf16 %v315_v21 }
  0x86   : > { %v1473_v39 = vadd.f32 %v1359_v23, %v1119_v26  ;;  %v2197_v41 = vrot.slane %v2063_v27, 1  ;;  %v2551_v42 = vrot.slane %v2417_v33, 2  ;;  %v703_v43 = vunpack.c.l.bf16 %v670_v31  ;;  %v4564_v33 = vld [vmem:[%s4709_s29 + $0x78] sm:$0xe] }
  0x87   : > { %v2550_v45 = vrot.slane %v2416_v35, 2  ;;  %v283_v2 = vmul.f32 %v5028_v32, %v250_v0  ;;  %v392_v46 = vmul.f32 %v5034_v36, %v250_v0  ;;  %v393_v47 = vmul.f32 %v5034_v36, %v348_v38 }
  0x88   : > { %v1827_v48 = vadd.f32 %v1713_v34, %v1473_v39  ;;  %v2198_v50 = vsel %vm498_vm0, %v2196_v28, %v2197_v41  ;;  %v747_v54 = vmul.f32 %v5041_v37, %v703_v43  ;;  %v748_v55 = vmul.f32 %v5041_v37, %v348_v38  ;;  %v216_v39 = vld [vmem:[%s4709_s29 + $0x60] sm:$0xf]  ;;  %v314_v41 = vld [vmem:[%s4709_s29 + $0x64] sm:$0x1] }
  0x89   : > { %v2552_v56 = vsel %vm853_vm1, %v2550_v45, %v2551_v42  ;;  %v532_v59 = vrot.slane %v392_v46, 1  ;;  %v533_v60 = vrot.slane %v393_v47, 1  ;;  %v1059_v61 = vunpack.c.l.bf16 %v4404_v44  ;;  %v4403_v46 = vld [vmem:[%s4709_s29 + $0x68] sm:$0xf] }
  0x8a   : > { %v1958_v5 = vadd.f32 %v1926_v12, %v1827_v48  ;;  %v887_v63 = vrot.slane %v747_v54, 2  ;;  %v888_v4 = vrot.slane %v748_v55, 2  ;;  %v1189_v6 = vunpack.c.l.bf16 %v4436_v49 }
  0x8b   : > { %v534_v9 = vsel %vm498_vm0, %v532_v59, %v533_v60  ;;  %v1092_v10 = vmul.f32 %v5048_v1, %v1059_v61  ;;  %v1233_v14 = vmul.f32 %v5057_v53, %v1059_v61  ;;  %v1543_v24 = vunpack.c.l.bf16 %v4468_v52 }
  0x8c   : > { %v2312_v17 = vadd.f32 %v2198_v50, %v1958_v5  ;;  %v638_v20 = vadd.f32 %v534_v9, %v283_v2  ;;  %v889_v21 = vsel %vm853_vm1, %v887_v63, %v888_v4  ;;  %v1234_v12 = vmul.f32 %v5057_v53, %v1189_v6  ;;  %v669_v2 = vld [vmem:[%s4709_s29 + $0x60] sm:$0xe]  ;;  %v4435_v63 = vld [vmem:[%s4709_s29 + $0x6c] sm:$0x1] }
  0x8d   : > { %v1372_v18 = vrot.slane %v1233_v14, 1  ;;  %v1587_v23 = vmul.f32 %v5065_v57, %v1543_v24  ;;  %v1588_v25 = vmul.f32 %v5065_v57, %v1189_v6  ;;  %v1898_v22 = vunpack.c.l.bf16 %v4500_v7 }
  0x8e   : > { %v5122_v31 = vadd.f32 %v2552_v56, %v2312_v17  ;;  %v993_v26 = vadd.f32 %v889_v21, %v638_v20  ;;  %v1373_v27 = vrot.slane %v1234_v12, 1  ;;  %v2028_v28 = vunpack.c.l.bf16 %v4532_v15 }
  0x8f   : > { %v1726_v34 = vrot.slane %v1587_v23, 2  ;;  %v1727_v35 = vrot.slane %v1588_v25, 2  ;;  %v1931_v0 = vmul.f32 %v5077_v11, %v1898_v22  ;;  %v2072_v38 = vmul.f32 %v5086_v16, %v1898_v22  ;;  %v4499_v23 = vld [vmem:[%s4709_s29 + $0x70] sm:$0xf] }
  0x90   : > { %8159 = vst [vmem:[#allocation6_spill] sm:$0xff] %v5122_v31  ;;  %v2706_v42 = vsel %vm2699_vm2, %v5122_v31, 0.0  ;;  %v1124_v43 = vadd.f32 %v1092_v10, %v993_v26  ;;  %v1374_v44 = vsel %vm498_vm0, %v1372_v18, %v1373_v27  ;;  %v2073_v45 = vmul.f32 %v5086_v16, %v2028_v28  ;;  %v4467_v18 = vld [vmem:[%s4709_s29 + $0x68] sm:$0xe] }
  0x91   : > { %v2751_v47 = vsel %vm2732_vm3, %v2706_v42, 0.0  ;;  %v1728_v49 = vsel %vm853_vm1, %v1726_v34, %v1727_v35  ;;  %v2211_v48 = vrot.slane %v2072_v38, 1  ;;  %v2382_v50 = vunpack.c.l.bf16 %v4564_v33  ;;  %v4531_v42 = vld [vmem:[%s4709_s29 + $0x74] sm:$0x1] }
  0x92   : > { %2752 = vadd.xlane.f32.xlu0 %v2751_v47  ;;  %v1478_v54 = vadd.f32 %v1374_v44, %v1124_v43  ;;  %v2212_v55 = vrot.slane %v2073_v45, 1  ;;  %v2427_v52 = vmul.f32 %v5098_v29, %v2028_v28  ;;  %v249_v56 = vunpack.c.l.bf16 %v216_v39 }
  0x93   : > { %v2426_v59 = vmul.f32 %v5098_v29, %v2382_v50  ;;  %v347_v60 = vunpack.c.l.bf16 %v314_v41  ;;  %v702_v61 = vunpack.c.l.bf16 %v669_v2  ;;  %v1058_v5 = vunpack.c.l.bf16 %v4403_v46  ;;  %v4563_v46 = vld [vmem:[%s4709_s29 + $0x70] sm:$0xe] }
  0x94   : > { %v1832_v4 = vadd.f32 %v1728_v49, %v1478_v54  ;;  %v2213_v6 = vsel %vm498_vm0, %v2211_v48, %v2212_v55  ;;  %v2566_v7 = vrot.slane %v2427_v52, 2  ;;  %v282_v9 = vmul.f32 %v5028_v32, %v249_v56 }
  0x95   : > { %v2565_v10 = vrot.slane %v2426_v59, 2  ;;  %v390_v14 = vmul.f32 %v5034_v36, %v249_v56  ;;  %v391_v24 = vmul.f32 %v5034_v36, %v347_v60  ;;  %v745_v15 = vmul.f32 %v5041_v37, %v702_v61  ;;  %v215_v59 = vld [vmem:[%s4709_s29 + $0x58] sm:$0xf] }
  0x96   : > { %v1963_v17 = vadd.f32 %v1931_v0, %v1832_v4  ;;  %v746_v20 = vmul.f32 %v5041_v37, %v347_v60  ;;  %v1091_v21 = vmul.f32 %v5048_v1, %v1058_v5  ;;  %v1188_v12 = vunpack.c.l.bf16 %v4435_v63  ;;  %v313_v60 = vld [vmem:[%s4709_s29 + $0x5c] sm:$0x1] }
  0x97   : > { %v2567_v25 = vsel %vm853_vm1, %v2565_v10, %v2566_v7  ;;  %v529_v22 = vrot.slane %v390_v14, 1  ;;  %v530_v26 = vrot.slane %v391_v24, 1  ;;  %v884_v27 = vrot.slane %v745_v15, 2 }
  0x98   : > { %v2317_v28 = vadd.f32 %v2213_v6, %v1963_v17  ;;  %v885_v33 = vrot.slane %v746_v20, 2  ;;  %v1231_v34 = vmul.f32 %v5057_v53, %v1058_v5  ;;  %v1232_v35 = vmul.f32 %v5057_v53, %v1188_v12  ;;  %v668_v6 = vld [vmem:[%s4709_s29 + $0x58] sm:$0xe] }
  0x99   : > { %v531_v0 = vsel %vm498_vm0, %v529_v22, %v530_v26  ;;  %v1542_v38 = vunpack.c.l.bf16 %v4467_v18  ;;  %v1586_v39 = vmul.f32 %v5065_v57, %v1188_v12  ;;  %v1897_v41 = vunpack.c.l.bf16 %v4499_v23  ;;  %v4402_v22 = vld [vmem:[%s4709_s29 + $0x60] sm:$0xf] }
  0x9a   : > { %v5156_v43 = vadd.f32 %v2567_v25, %v2317_v28  ;;  %v637_v44 = vadd.f32 %v531_v0, %v282_v9  ;;  %v886_v45 = vsel %vm853_vm1, %v884_v27, %v885_v33  ;;  %v1369_v2 = vrot.slane %v1231_v34, 1  ;;  %v4434_v33 = vld [vmem:[%s4709_s29 + $0x64] sm:$0x1] }
  0x9b   : > { %v1370_v47 = vrot.slane %v1232_v35, 1  ;;  %v1585_v49 = vmul.f32 %v5065_v57, %v1542_v38  ;;  %v1724_v48 = vrot.slane %v1586_v39, 2  ;;  %v1930_v50 = vmul.f32 %v5077_v11, %v1897_v41  ;;  %v4466_v39 = vld [vmem:[%s4709_s29 + $0x60] sm:$0xe] }
  0x9c   : > { %v2711_v54 = vsel %vm2699_vm2, %v5156_v43, 0.0  ;;  %v992_v55 = vadd.f32 %v886_v45, %v637_v44  ;;  %v2027_v52 = vunpack.c.l.bf16 %v4531_v42  ;;  %v2070_v56 = vmul.f32 %v5086_v16, %v1897_v41 }
  0x9d   : > { %v2766_v61 = vsel %vm2732_vm3, %v2711_v54, 0.0  ;;  %v1371_v5 = vsel %vm498_vm0, %v1369_v2, %v1370_v47  ;;  %v1723_v63 = vrot.slane %v1585_v49, 2  ;;  %v2381_v4 = vunpack.c.l.bf16 %v4563_v46 }
  0x9e   : > { %2767 = vadd.xlane.f32.xlu2 %v2766_v61  ;;  %v1123_v7 = vadd.f32 %v1091_v21, %v992_v55  ;;  %v2071_v9 = vmul.f32 %v5086_v16, %v2027_v52  ;;  %v2208_v10 = vrot.slane %v2070_v56, 1  ;;  %v2425_v14 = vmul.f32 %v5098_v29, %v2027_v52 }
  0x9f   : > { %v1725_v24 = vsel %vm853_vm1, %v1723_v63, %v1724_v48  ;;  %v2424_v15 = vmul.f32 %v5098_v29, %v2381_v4  ;;  %v248_v17 = vunpack.c.l.bf16 %v215_v59  ;;  %v346_v20 = vunpack.c.l.bf16 %v313_v60  ;;  %v4498_v48 = vld [vmem:[%s4709_s29 + $0x68] sm:$0xf]  ;;  %v4530_v59 = vld [vmem:[%s4709_s29 + $0x6c] sm:$0x1] }
  0xa0   : > { %v1477_v12 = vadd.f32 %v1371_v5, %v1123_v7  ;;  %v2209_v18 = vrot.slane %v2071_v9, 1  ;;  %v2563_v23 = vrot.slane %v2425_v14, 2  ;;  %v701_v25 = vunpack.c.l.bf16 %v668_v6 }
  0xa1   : > { %v2562_v26 = vrot.slane %v2424_v15, 2  ;;  %v281_v21 = vmul.f32 %v5028_v32, %v248_v17  ;;  %v388_v27 = vmul.f32 %v5034_v36, %v248_v17  ;;  %v389_v28 = vmul.f32 %v5034_v36, %v346_v20  ;;  %v4562_v15 = vld [vmem:[%s4709_s29 + $0x68] sm:$0xe] }
  0xa2   : > { %v1831_v34 = vadd.f32 %v1725_v24, %v1477_v12  ;;  %v2210_v35 = vsel %vm498_vm0, %v2208_v10, %v2209_v18  ;;  %v743_v0 = vmul.f32 %v5041_v37, %v701_v25  ;;  %v744_v38 = vmul.f32 %v5041_v37, %v346_v20  ;;  %v318_v25 = vld [vmem:[%s4709_s29 + $0x84] sm:$0x1] }
  0xa3   : > { %v2564_v41 = vsel %vm853_vm1, %v2562_v26, %v2563_v23  ;;  %v526_v42 = vrot.slane %v388_v27, 1  ;;  %v527_v44 = vrot.slane %v389_v28, 1  ;;  %v1057_v45 = vunpack.c.l.bf16 %v4402_v22  ;;  %v220_v23 = vld [vmem:[%s4709_s29 + $0x80] sm:$0xf] }
  0xa4   : > { %v1962_v2 = vadd.f32 %v1930_v50, %v1831_v34  ;;  %v881_v46 = vrot.slane %v743_v0, 2  ;;  %v882_v47 = vrot.slane %v744_v38, 2  ;;  %v1187_v49 = vunpack.c.l.bf16 %v4434_v33  ;;  %v673_v28 = vld [vmem:[%s4709_s29 + $0x80] sm:$0xe]  ;;  %v4407_v33 = vld [vmem:[%s4709_s29 + $0x88] sm:$0xf] }
  0xa5   : > { %v528_v54 = vsel %vm498_vm0, %v526_v42, %v527_v44  ;;  %v1090_v55 = vmul.f32 %v5048_v1, %v1057_v45  ;;  %v1229_v52 = vmul.f32 %v5057_v53, %v1057_v45  ;;  %v1541_v56 = vunpack.c.l.bf16 %v4466_v39 }
  0xa6   : > { %v2316_v60 = vadd.f32 %v2210_v35, %v1962_v2  ;;  %v636_v61 = vadd.f32 %v528_v54, %v281_v21  ;;  %v883_v5 = vsel %vm853_vm1, %v881_v46, %v882_v47  ;;  %v1230_v50 = vmul.f32 %v5057_v53, %v1187_v49 }
  0xa7   : > { %v1366_v63 = vrot.slane %v1229_v52, 1  ;;  %v1583_v4 = vmul.f32 %v5065_v57, %v1541_v56  ;;  %v1584_v6 = vmul.f32 %v5065_v57, %v1187_v49  ;;  %v1896_v7 = vunpack.c.l.bf16 %v4498_v48  ;;  %v4439_v49 = vld [vmem:[%s4709_s29 + $0x8c] sm:$0x1] }
  0xa8   : > { %v5194_v9 = vadd.f32 %v2564_v41, %v2316_v60  ;;  %v991_v10 = vadd.f32 %v883_v5, %v636_v61  ;;  %v1367_v14 = vrot.slane %v1230_v50, 1  ;;  %v2026_v24 = vunpack.c.l.bf16 %v4530_v59 }
  0xa9   : > { %v1720_v17 = vrot.slane %v1583_v4, 2  ;;  %v1721_v20 = vrot.slane %v1584_v6, 2  ;;  %v1929_v12 = vmul.f32 %v5077_v11, %v1896_v7  ;;  %v2068_v18 = vmul.f32 %v5086_v16, %v1896_v7  ;;  %v4471_v6 = vld [vmem:[%s4709_s29 + $0x88] sm:$0xe]  ;;  %v4503_v7 = vld [vmem:[%s4709_s29 + $0x90] sm:$0xf] }
  0xaa   : > { %8160 = vst [vmem:[#allocation7_spill] sm:$0xff] %v5194_v9  ;;  %v2710_v22 = vsel %vm2699_vm2, %v5194_v9, 0.0  ;;  %v1122_v26 = vadd.f32 %v1090_v55, %v991_v10  ;;  %v1368_v21 = vsel %vm498_vm0, %v1366_v63, %v1367_v14  ;;  %v2069_v27 = vmul.f32 %v5086_v16, %v2026_v24 }
  0xab   : > { %v2763_v34 = vsel %vm2732_vm3, %v2710_v22, 0.0  ;;  %v1722_v35 = vsel %vm853_vm1, %v1720_v17, %v1721_v20  ;;  %v2205_v0 = vrot.slane %v2068_v18, 1  ;;  %v2380_v38 = vunpack.c.l.bf16 %v4562_v15 }
  0xac   : > { %2764 = vadd.xlane.f32.xlu1 %v2763_v34  ;;  %v1476_v39 = vadd.f32 %v1368_v21, %v1122_v26  ;;  %v2206_v41 = vrot.slane %v2069_v27, 1  ;;  %v2423_v42 = vmul.f32 %v5098_v29, %v2026_v24  ;;  %v253_v44 = vunpack.c.l.bf16 %v220_v23  ;;  %v4535_v21 = vld [vmem:[%s4709_s29 + $0x94] sm:$0x1] }
  0xad   : > { %v2422_v45 = vmul.f32 %v5098_v29, %v2380_v38  ;;  %v351_v2 = vunpack.c.l.bf16 %v318_v25  ;;  %v706_v46 = vunpack.c.l.bf16 %v673_v28  ;;  %v1062_v47 = vunpack.c.l.bf16 %v4407_v33 }
  0xae   : > { %v1830_v48 = vadd.f32 %v1722_v35, %v1476_v39  ;;  %v2207_v54 = vsel %vm498_vm0, %v2205_v0, %v2206_v41  ;;  %v2560_v55 = vrot.slane %v2423_v42, 2  ;;  %v286_v52 = vmul.f32 %v5028_v32, %v253_v44  ;;  %v4567_v35 = vld [vmem:[%s4709_s29 + $0x90] sm:$0xe] }
  0xaf   : > { %v2559_v56 = vrot.slane %v2422_v45, 2  ;;  %v398_v59 = vmul.f32 %v5034_v36, %v253_v44  ;;  %v399_v60 = vmul.f32 %v5034_v36, %v351_v2  ;;  %v753_v61 = vmul.f32 %v5041_v37, %v706_v46  ;;  %v219_v46 = vld [vmem:[%s4709_s29 + $0x78] sm:$0xf] }
  0xb0   : > { %v1961_v5 = vadd.f32 %v1929_v12, %v1830_v48  ;;  %v754_v50 = vmul.f32 %v5041_v37, %v351_v2  ;;  %v1095_v63 = vmul.f32 %v5048_v1, %v1062_v47  ;;  %v1192_v4 = vunpack.c.l.bf16 %v4439_v49 }
  0xb1   : > { %v2561_v10 = vsel %vm853_vm1, %v2559_v56, %v2560_v55  ;;  %v541_v14 = vrot.slane %v398_v59, 1  ;;  %v542_v24 = vrot.slane %v399_v60, 1  ;;  %v896_v15 = vrot.slane %v753_v61, 2 }
  0xb2   : > { %v2315_v17 = vadd.f32 %v2207_v54, %v1961_v5  ;;  %v897_v20 = vrot.slane %v754_v50, 2  ;;  %v1239_v18 = vmul.f32 %v5057_v53, %v1062_v47  ;;  %v1240_v12 = vmul.f32 %v5057_v53, %v1192_v4  ;;  %v317_v47 = vld [vmem:[%s4709_s29 + $0x7c] sm:$0x1] }
  0xb3   : > { %v543_v23 = vsel %vm498_vm0, %v541_v14, %v542_v24  ;;  %v1546_v25 = vunpack.c.l.bf16 %v4471_v6  ;;  %v1594_v22 = vmul.f32 %v5065_v57, %v1192_v4  ;;  %v1901_v26 = vunpack.c.l.bf16 %v4503_v7 }
  0xb4   : > { %v5228_v27 = vadd.f32 %v2561_v10, %v2315_v17  ;;  %v641_v28 = vadd.f32 %v543_v23, %v286_v52  ;;  %v898_v33 = vsel %vm853_vm1, %v896_v15, %v897_v20  ;;  %v1381_v34 = vrot.slane %v1239_v18, 1  ;;  %v672_v52 = vld [vmem:[%s4709_s29 + $0x78] sm:$0xe]  ;;  %v4406_v15 = vld [vmem:[%s4709_s29 + $0x80] sm:$0xf] }
  0xb5   : > { %v1382_v0 = vrot.slane %v1240_v12, 1  ;;  %v1593_v38 = vmul.f32 %v5065_v57, %v1546_v25  ;;  %v1736_v39 = vrot.slane %v1594_v22, 2  ;;  %v1934_v41 = vmul.f32 %v5077_v11, %v1901_v26  ;;  %v4438_v12 = vld [vmem:[%s4709_s29 + $0x84] sm:$0x1] }
  0xb6   : > { %8161 = vst [vmem:[#allocation8_spill] sm:$0xff] %v5228_v27  ;;  %v2709_v42 = vsel %vm2699_vm2, %v5228_v27, 0.0  ;;  %v996_v44 = vadd.f32 %v898_v33, %v641_v28  ;;  %v2031_v45 = vunpack.c.l.bf16 %v4535_v21  ;;  %v2078_v2 = vmul.f32 %v5086_v16, %v1901_v26  ;;  %v4470_v21 = vld [vmem:[%s4709_s29 + $0x80] sm:$0xe] }
  0xb7   : > { %v2760_v49 = vsel %vm2732_vm3, %v2709_v42, 0.0  ;;  %v1383_v48 = vsel %vm498_vm0, %v1381_v34, %v1382_v0  ;;  %v1735_v54 = vrot.slane %v1593_v38, 2  ;;  %v2385_v55 = vunpack.c.l.bf16 %v4567_v35 }
  0xb8   : > { %2761 = vadd.xlane.f32.xlu0 %v2760_v49  ;;  %v1127_v56 = vadd.f32 %v1095_v63, %v996_v44  ;;  %v2079_v59 = vmul.f32 %v5086_v16, %v2031_v45  ;;  %v2220_v60 = vrot.slane %v2078_v2, 1  ;;  %v2433_v61 = vmul.f32 %v5098_v29, %v2031_v45  ;;  %v4502_v44 = vld [vmem:[%s4709_s29 + $0x88] sm:$0xf]  ;;  %v4534_v49 = vld [vmem:[%s4709_s29 + $0x8c] sm:$0x1] }
  0xb9   : > { %v1737_v5 = vsel %vm853_vm1, %v1735_v54, %v1736_v39  ;;  %v2432_v50 = vmul.f32 %v5098_v29, %v2385_v55  ;;  %v252_v4 = vunpack.c.l.bf16 %v219_v46  ;;  %v350_v6 = vunpack.c.l.bf16 %v317_v47 }
  0xba   : > { %v1481_v7 = vadd.f32 %v1383_v48, %v1127_v56  ;;  %v2221_v10 = vrot.slane %v2079_v59, 1  ;;  %v2575_v14 = vrot.slane %v2433_v61, 2  ;;  %v705_v24 = vunpack.c.l.bf16 %v672_v52 }
  0xbb   : > { %v2574_v17 = vrot.slane %v2432_v50, 2  ;;  %v285_v63 = vmul.f32 %v5028_v32, %v252_v4  ;;  %v396_v20 = vmul.f32 %v5034_v36, %v252_v4  ;;  %v397_v18 = vmul.f32 %v5034_v36, %v350_v6 }
  0xbc   : > { %v1835_v23 = vadd.f32 %v1737_v5, %v1481_v7  ;;  %v2222_v25 = vsel %vm498_vm0, %v2220_v60, %v2221_v10  ;;  %v751_v22 = vmul.f32 %v5041_v37, %v705_v24  ;;  %v752_v26 = vmul.f32 %v5041_v37, %v350_v6  ;;  %v4566_v6 = vld [vmem:[%s4709_s29 + $0x88] sm:$0xe] }
  0xbd   : > { %v2576_v28 = vsel %vm853_vm1, %v2574_v17, %v2575_v14  ;;  %v538_v33 = vrot.slane %v396_v20, 1  ;;  %v539_v34 = vrot.slane %v397_v18, 1  ;;  %v1061_v35 = vunpack.c.l.bf16 %v4406_v15  ;;  %v218_v15 = vld [vmem:[%s4709_s29 + $0x70] sm:$0xf]  ;;  %v316_v17 = vld [vmem:[%s4709_s29 + $0x74] sm:$0x1] }
  0xbe   : > { %v1966_v0 = vadd.f32 %v1934_v41, %v1835_v23  ;;  %v893_v38 = vrot.slane %v751_v22, 2  ;;  %v894_v39 = vrot.slane %v752_v26, 2  ;;  %v1191_v42 = vunpack.c.l.bf16 %v4438_v12  ;;  %v671_v23 = vld [vmem:[%s4709_s29 + $0x70] sm:$0xe] }
  0xbf   : > { %v540_v45 = vsel %vm498_vm0, %v538_v33, %v539_v34  ;;  %v1094_v2 = vmul.f32 %v5048_v1, %v1061_v35  ;;  %v1237_v46 = vmul.f32 %v5057_v53, %v1061_v35  ;;  %v1545_v47 = vunpack.c.l.bf16 %v4470_v21 }
  0xc0   : > { %v2320_v48 = vadd.f32 %v2222_v25, %v1966_v0  ;;  %v640_v54 = vadd.f32 %v540_v45, %v285_v63  ;;  %v895_v55 = vsel %vm853_vm1, %v893_v38, %v894_v39  ;;  %v1238_v41 = vmul.f32 %v5057_v53, %v1191_v42  ;;  %v4405_v25 = vld [vmem:[%s4709_s29 + $0x78] sm:$0xf]  ;;  %v4437_v45 = vld [vmem:[%s4709_s29 + $0x7c] sm:$0x1] }
  0xc1   : > { %v1378_v52 = vrot.slane %v1237_v46, 1  ;;  %v1591_v56 = vmul.f32 %v5065_v57, %v1545_v47  ;;  %v1592_v59 = vmul.f32 %v5065_v57, %v1191_v42  ;;  %v1900_v60 = vunpack.c.l.bf16 %v4502_v44 }
  0xc2   : > { %v5266_v61 = vadd.f32 %v2576_v28, %v2320_v48  ;;  %v995_v5 = vadd.f32 %v895_v55, %v640_v54  ;;  %v1379_v50 = vrot.slane %v1238_v41, 1  ;;  %v2030_v4 = vunpack.c.l.bf16 %v4534_v49 }
  0xc3   : > { %v1732_v7 = vrot.slane %v1591_v56, 2  ;;  %v1733_v10 = vrot.slane %v1592_v59, 2  ;;  %v1933_v14 = vmul.f32 %v5077_v11, %v1900_v60  ;;  %v2076_v24 = vmul.f32 %v5086_v16, %v1900_v60 }
  0xc4   : > { %8162 = vst [vmem:[#allocation9_spill] sm:$0xff] %v5266_v61  ;;  %v2714_v63 = vsel %vm2699_vm2, %v5266_v61, 0.0  ;;  %v1126_v20 = vadd.f32 %v1094_v2, %v995_v5  ;;  %v1380_v18 = vsel %vm498_vm0, %v1378_v52, %v1379_v50  ;;  %v2077_v12 = vmul.f32 %v5086_v16, %v2030_v4  ;;  %v4469_v5 = vld [vmem:[%s4709_s29 + $0x78] sm:$0xe]  ;;  %v4501_v50 = vld [vmem:[%s4709_s29 + $0x80] sm:$0xf] }
  0xc5   : > { %v2775_v22 = vsel %vm2732_vm3, %v2714_v63, 0.0  ;;  %v1734_v26 = vsel %vm853_vm1, %v1732_v7, %v1733_v10  ;;  %v2217_v21 = vrot.slane %v2076_v24, 1  ;;  %v2384_v28 = vunpack.c.l.bf16 %v4566_v6 }
  0xc6   : > { %2776 = vadd.xlane.f32.xlu2 %v2775_v22  ;;  %v1480_v33 = vadd.f32 %v1380_v18, %v1126_v20  ;;  %v2218_v34 = vrot.slane %v2077_v12, 1  ;;  %v2431_v35 = vmul.f32 %v5098_v29, %v2030_v4  ;;  %v251_v0 = vunpack.c.l.bf16 %v218_v15 }
  0xc7   : > { %v2430_v38 = vmul.f32 %v5098_v29, %v2384_v28  ;;  %v349_v39 = vunpack.c.l.bf16 %v316_v17  ;;  %v704_v42 = vunpack.c.l.bf16 %v671_v23  ;;  %v1060_v44 = vunpack.c.l.bf16 %v4405_v25  ;;  %v4533_v23 = vld [vmem:[%s4709_s29 + $0x84] sm:$0x1]  ;;  %v4565_v28 = vld [vmem:[%s4709_s29 + $0x80] sm:$0xe] }
  0xc8   : > { %v1834_v2 = vadd.f32 %v1734_v26, %v1480_v33  ;;  %v2219_v46 = vsel %vm498_vm0, %v2217_v21, %v2218_v34  ;;  %v2572_v47 = vrot.slane %v2431_v35, 2  ;;  %v284_v49 = vmul.f32 %v5028_v32, %v251_v0 }
  0xc9   : > { %v2571_v48 = vrot.slane %v2430_v38, 2  ;;  %v394_v54 = vmul.f32 %v5034_v36, %v251_v0  ;;  %v395_v55 = vmul.f32 %v5034_v36, %v349_v39  ;;  %v749_v41 = vmul.f32 %v5041_v37, %v704_v42 }
  0xca   : > { %v1965_v52 = vadd.f32 %v1933_v14, %v1834_v2  ;;  %v750_v56 = vmul.f32 %v5041_v37, %v349_v39  ;;  %v1093_v59 = vmul.f32 %v5048_v1, %v1060_v44  ;;  %v1190_v60 = vunpack.c.l.bf16 %v4437_v45  ;;  %v223_v45 = vld [vmem:[%s4709_s29 + $0xa8] sm:$0xf]  ;;  %v321_v2 = vld [vmem:[%s4709_s29 + $0xac] sm:$0x1] }
  0xcb   : > { %v2573_v4 = vsel %vm853_vm1, %v2571_v48, %v2572_v47  ;;  %v535_v6 = vrot.slane %v394_v54, 1  ;;  %v536_v7 = vrot.slane %v395_v55, 1  ;;  %v890_v10 = vrot.slane %v749_v41, 2  ;;  %v676_v54 = vld [vmem:[%s4709_s29 + $0xa8] sm:$0xe] }
  0xcc   : > { %v2319_v24 = vadd.f32 %v2219_v46, %v1965_v52  ;;  %v891_v15 = vrot.slane %v750_v56, 2  ;;  %v1235_v17 = vmul.f32 %v5057_v53, %v1060_v44  ;;  %v1236_v14 = vmul.f32 %v5057_v53, %v1190_v60 }
  0xcd   : > { %v537_v63 = vsel %vm498_vm0, %v535_v6, %v536_v7  ;;  %v1544_v20 = vunpack.c.l.bf16 %v4469_v5  ;;  %v1590_v18 = vmul.f32 %v5065_v57, %v1190_v60  ;;  %v1899_v12 = vunpack.c.l.bf16 %v4501_v50 }
  0xce   : > { %v5300_v25 = vadd.f32 %v2573_v4, %v2319_v24  ;;  %v639_v22 = vadd.f32 %v537_v63, %v284_v49  ;;  %v892_v26 = vsel %vm853_vm1, %v890_v10, %v891_v15  ;;  %v1375_v21 = vrot.slane %v1235_v17, 1  ;;  %v4410_v15 = vld [vmem:[%s4709_s29 + $0xb0] sm:$0xf] }
  0xcf   : > { %v1376_v33 = vrot.slane %v1236_v14, 1  ;;  %v1589_v34 = vmul.f32 %v5065_v57, %v1544_v20  ;;  %v1730_v35 = vrot.slane %v1590_v18, 2  ;;  %v1932_v0 = vmul.f32 %v5077_v11, %v1899_v12  ;;  %v4442_v20 = vld [vmem:[%s4709_s29 + $0xb4] sm:$0x1] }
  0xd0   : > { %8163 = vst [vmem:[#allocation10_spill] sm:$0xff] %v5300_v25  ;;  %v2713_v38 = vsel %vm2699_vm2, %v5300_v25, 0.0  ;;  %v994_v39 = vadd.f32 %v892_v26, %v639_v22  ;;  %v2029_v42 = vunpack.c.l.bf16 %v4533_v23  ;;  %v2074_v44 = vmul.f32 %v5086_v16, %v1899_v12  ;;  %v4474_v26 = vld [vmem:[%s4709_s29 + $0xb0] sm:$0xe] }
  0xd1   : > { %v2772_v46 = vsel %vm2732_vm3, %v2713_v38, 0.0  ;;  %v1377_v47 = vsel %vm498_vm0, %v1375_v21, %v1376_v33  ;;  %v1729_v49 = vrot.slane %v1589_v34, 2  ;;  %v2383_v48 = vunpack.c.l.bf16 %v4565_v28 }
  0xd2   : > { %2773 = vadd.xlane.f32.xlu1 %v2772_v46  ;;  %v1125_v55 = vadd.f32 %v1093_v59, %v994_v39  ;;  %v2075_v41 = vmul.f32 %v5086_v16, %v2029_v42  ;;  %v2214_v52 = vrot.slane %v2074_v44, 1  ;;  %v2429_v56 = vmul.f32 %v5098_v29, %v2029_v42  ;;  %v4506_v44 = vld [vmem:[%s4709_s29 + $0xb8] sm:$0xf] }
  0xd3   : > { %v1731_v60 = vsel %vm853_vm1, %v1729_v49, %v1730_v35  ;;  %v2428_v5 = vmul.f32 %v5098_v29, %v2383_v48  ;;  %v256_v50 = vunpack.c.l.bf16 %v223_v45  ;;  %v354_v4 = vunpack.c.l.bf16 %v321_v2  ;;  %v4538_v49 = vld [vmem:[%s4709_s29 + $0xbc] sm:$0x1] }
  0xd4   : > { %v1479_v6 = vadd.f32 %v1377_v47, %v1125_v55  ;;  %v2215_v7 = vrot.slane %v2075_v41, 1  ;;  %v2569_v10 = vrot.slane %v2429_v56, 2  ;;  %v709_v24 = vunpack.c.l.bf16 %v676_v54 }
  0xd5   : > { %v2568_v17 = vrot.slane %v2428_v5, 2  ;;  %v289_v59 = vmul.f32 %v5028_v32, %v256_v50  ;;  %v404_v14 = vmul.f32 %v5034_v36, %v256_v50  ;;  %v405_v63 = vmul.f32 %v5034_v36, %v354_v4 }
  0xd6   : > { %v1833_v18 = vadd.f32 %v1731_v60, %v1479_v6  ;;  %v2216_v12 = vsel %vm498_vm0, %v2214_v52, %v2215_v7  ;;  %v759_v23 = vmul.f32 %v5041_v37, %v709_v24  ;;  %v760_v22 = vmul.f32 %v5041_v37, %v354_v4  ;;  %v4570_v7 = vld [vmem:[%s4709_s29 + $0xb8] sm:$0xe] }
  0xd7   : > { %v2570_v21 = vsel %vm853_vm1, %v2568_v17, %v2569_v10  ;;  %v550_v28 = vrot.slane %v404_v14, 1  ;;  %v551_v33 = vrot.slane %v405_v63, 1  ;;  %v1065_v34 = vunpack.c.l.bf16 %v4410_v15  ;;  %v320_v14 = vld [vmem:[%s4709_s29 + $0xa4] sm:$0x1] }
  0xd8   : > { %v1964_v35 = vadd.f32 %v1932_v0, %v1833_v18  ;;  %v905_v38 = vrot.slane %v759_v23, 2  ;;  %v906_v39 = vrot.slane %v760_v22, 2  ;;  %v1195_v42 = vunpack.c.l.bf16 %v4442_v20  ;;  %v675_v23 = vld [vmem:[%s4709_s29 + $0xa0] sm:$0xe]  ;;  %v4409_v22 = vld [vmem:[%s4709_s29 + $0xa8] sm:$0xf] }
  0xd9   : > { %v552_v45 = vsel %vm498_vm0, %v550_v28, %v551_v33  ;;  %v1098_v2 = vmul.f32 %v5048_v1, %v1065_v34  ;;  %v1245_v46 = vmul.f32 %v5057_v53, %v1065_v34  ;;  %v1549_v47 = vunpack.c.l.bf16 %v4474_v26 }
  0xda   : > { %v2318_v48 = vadd.f32 %v2216_v12, %v1964_v35  ;;  %v644_v54 = vadd.f32 %v552_v45, %v289_v59  ;;  %v907_v55 = vsel %vm853_vm1, %v905_v38, %v906_v39  ;;  %v1246_v0 = vmul.f32 %v5057_v53, %v1195_v42  ;;  %v222_v59 = vld [vmem:[%s4709_s29 + $0xa0] sm:$0xf] }
  0xdb   : > { %v1390_v41 = vrot.slane %v1245_v46, 1  ;;  %v1599_v52 = vmul.f32 %v5065_v57, %v1549_v47  ;;  %v1600_v56 = vmul.f32 %v5065_v57, %v1195_v42  ;;  %v1904_v60 = vunpack.c.l.bf16 %v4506_v44  ;;  %v4441_v46 = vld [vmem:[%s4709_s29 + $0xac] sm:$0x1] }
  0xdc   : > { %v5338_v5 = vadd.f32 %v2570_v21, %v2318_v48  ;;  %v999_v50 = vadd.f32 %v907_v55, %v644_v54  ;;  %v1391_v4 = vrot.slane %v1246_v0, 1  ;;  %v2034_v6 = vunpack.c.l.bf16 %v4538_v49 }
  0xdd   : > { %v1744_v10 = vrot.slane %v1599_v52, 2  ;;  %v1745_v24 = vrot.slane %v1600_v56, 2  ;;  %v1937_v15 = vmul.f32 %v5077_v11, %v1904_v60  ;;  %v2084_v17 = vmul.f32 %v5086_v16, %v1904_v60 }
  0xde   : > { %8164 = vst [vmem:[#allocation11_spill] sm:$0xff] %v5338_v5  ;;  %v2712_v63 = vsel %vm2699_vm2, %v5338_v5, 0.0  ;;  %v1130_v20 = vadd.f32 %v1098_v2, %v999_v50  ;;  %v1392_v18 = vsel %vm498_vm0, %v1390_v41, %v1391_v4  ;;  %v2085_v12 = vmul.f32 %v5086_v16, %v2034_v6 }
  0xdf   : > { %v2769_v26 = vsel %vm2732_vm3, %v2712_v63, 0.0  ;;  %v1746_v21 = vsel %vm853_vm1, %v1744_v10, %v1745_v24  ;;  %v2229_v28 = vrot.slane %v2084_v17, 1  ;;  %v2388_v33 = vunpack.c.l.bf16 %v4570_v7  ;;  %v4505_v7 = vld [vmem:[%s4709_s29 + $0xb0] sm:$0xf] }
  0xe0   : > { %2770 = vadd.xlane.f32.xlu0 %v2769_v26  ;;  %v1484_v34 = vadd.f32 %v1392_v18, %v1130_v20  ;;  %v2230_v35 = vrot.slane %v2085_v12, 1  ;;  %v2439_v38 = vmul.f32 %v5098_v29, %v2034_v6  ;;  %v255_v39 = vunpack.c.l.bf16 %v222_v59  ;;  %v4473_v6 = vld [vmem:[%s4709_s29 + $0xa8] sm:$0xe]  ;;  %v4537_v18 = vld [vmem:[%s4709_s29 + $0xb4] sm:$0x1] }
  0xe1   : > { %v2438_v42 = vmul.f32 %v5098_v29, %v2388_v33  ;;  %v353_v44 = vunpack.c.l.bf16 %v320_v14  ;;  %v708_v45 = vunpack.c.l.bf16 %v675_v23  ;;  %v1064_v2 = vunpack.c.l.bf16 %v4409_v22 }
  0xe2   : > { %v1838_v47 = vadd.f32 %v1746_v21, %v1484_v34  ;;  %v2231_v49 = vsel %vm498_vm0, %v2229_v28, %v2230_v35  ;;  %v2584_v48 = vrot.slane %v2439_v38, 2  ;;  %v288_v54 = vmul.f32 %v5028_v32, %v255_v39  ;;  %v4569_v21 = vld [vmem:[%s4709_s29 + $0xb0] sm:$0xe] }
  0xe3   : > { %v2583_v55 = vrot.slane %v2438_v42, 2  ;;  %v402_v0 = vmul.f32 %v5034_v36, %v255_v39  ;;  %v403_v41 = vmul.f32 %v5034_v36, %v353_v44  ;;  %v757_v52 = vmul.f32 %v5041_v37, %v708_v45  ;;  %v319_v45 = vld [vmem:[%s4709_s29 + $0x8c] sm:$0x1] }
  0xe4   : > { %v1969_v56 = vadd.f32 %v1937_v15, %v1838_v47  ;;  %v758_v60 = vmul.f32 %v5041_v37, %v353_v44  ;;  %v1097_v50 = vmul.f32 %v5048_v1, %v1064_v2  ;;  %v1194_v4 = vunpack.c.l.bf16 %v4441_v46  ;;  %v221_v44 = vld [vmem:[%s4709_s29 + $0x88] sm:$0xf] }
  0xe5   : > { %v2585_v10 = vsel %vm853_vm1, %v2583_v55, %v2584_v48  ;;  %v547_v24 = vrot.slane %v402_v0, 1  ;;  %v548_v32 = vrot.slane %v403_v41, 1  ;;  %v902_v17 = vrot.slane %v757_v52, 2 }
  0xe6   : > { %v2323_v59 = vadd.f32 %v2231_v49, %v1969_v56  ;;  %v903_v14 = vrot.slane %v758_v60, 2  ;;  %v1243_v36 = vmul.f32 %v5057_v53, %v1064_v2  ;;  %v1244_v15 = vmul.f32 %v5057_v53, %v1194_v4  ;;  %v674_v49 = vld [vmem:[%s4709_s29 + $0x88] sm:$0xe] }
  0xe7   : > { %v549_v37 = vsel %vm498_vm0, %v547_v24, %v548_v32  ;;  %v1548_v63 = vunpack.c.l.bf16 %v4473_v6  ;;  %v1598_v1 = vmul.f32 %v5065_v57, %v1194_v4  ;;  %v1903_v20 = vunpack.c.l.bf16 %v4505_v7 }
  0xe8   : > { %v5372_v12 = vadd.f32 %v2585_v10, %v2323_v59  ;;  %v643_v23 = vadd.f32 %v549_v37, %v288_v54  ;;  %v904_v22 = vsel %vm853_vm1, %v902_v17, %v903_v14  ;;  %v1387_v26 = vrot.slane %v1243_v36, 1  ;;  %v4408_v10 = vld [vmem:[%s4709_s29 + $0x90] sm:$0xf]  ;;  %v4440_v59 = vld [vmem:[%s4709_s29 + $0x94] sm:$0x1] }
  0xe9   : > { %v1388_v28 = vrot.slane %v1244_v15, 1  ;;  %v1597_v53 = vmul.f32 %v5065_v57, %v1548_v63  ;;  %v1742_v33 = vrot.slane %v1598_v1, 2  ;;  %v1936_v34 = vmul.f32 %v5077_v11, %v1903_v20  ;;  %v5410_v15 = vld [vmem:[%s8095_s1 + $0x2] ss:$0 sm:$0xff]  ;;  %v4472_v1 = vld [vmem:[%s4709_s29 + $0x90] sm:$0xe] }
  0xea   : > { %8165 = vst [vmem:[#allocation12_spill] sm:$0xff] %v5372_v12  ;;  %v2717_v35 = vsel %vm2699_vm2, %v5372_v12, 0.0  ;;  %v998_v38 = vadd.f32 %v904_v22, %v643_v23  ;;  %v2033_v39 = vunpack.c.l.bf16 %v4537_v18  ;;  %v2082_v42 = vmul.f32 %v5086_v16, %v1903_v20 }
  0xeb   : > { %v2784_v2 = vsel %vm2732_vm3, %v2717_v35, 0.0  ;;  %v1389_v46 = vsel %vm498_vm0, %v1387_v26, %v1388_v28  ;;  %v1741_v47 = vrot.slane %v1597_v53, 2  ;;  %v2387_v57 = vunpack.c.l.bf16 %v4569_v21 }
  0xec   : > { %2785 = vadd.xlane.f32.xlu2 %v2784_v2  ;;  %v1129_v11 = vadd.f32 %v1097_v50, %v998_v38  ;;  %v2083_v48 = vmul.f32 %v5086_v16, %v2033_v39  ;;  %v2226_v54 = vrot.slane %v2082_v42, 1  ;;  %v2437_v55 = vmul.f32 %v5098_v29, %v2033_v39  ;;  %v5395_v16 = vld [vmem:[%s8095_s1] ss:$0 sm:$0xff]  ;;  %v5421_v38 = vld [vmem:[%s8095_s1 + $0x3] ss:$0 sm:$0xff] }
  0xed   : > { %v1743_v0 = vsel %vm853_vm1, %v1741_v47, %v1742_v33  ;;  %v2436_v41 = vmul.f32 %v5098_v29, %v2387_v57  ;;  %v254_v52 = vunpack.c.l.bf16 %v221_v44  ;;  %v352_v56 = vunpack.c.l.bf16 %v319_v45  ;;  %v5401_v29 = vld [vmem:[%s8095_s1 + $0x1] ss:$0 sm:$0xff]  ;;  %v4504_v33 = vld [vmem:[%s4709_s29 + $0x98] sm:$0xf]  ;;  %v5427_v42 = vld [vmem:[%s8095_s1 + $0x4] ss:$0 sm:$0xff] }
  0xee   : > { %v1483_v60 = vadd.f32 %v1389_v46, %v1129_v11  ;;  %v2227_v4 = vrot.slane %v2083_v48, 1  ;;  %v2581_v6 = vrot.slane %v2437_v55, 2  ;;  %v707_v7 = vunpack.c.l.bf16 %v674_v49  ;;  %v4536_v45 = vld [vmem:[%s4709_s29 + $0x9c] sm:$0x1]  ;;  %v5436_v11 = vld [vmem:[%s8095_s1 + $0x5] ss:$0 sm:$0xff] }
  0xef   : > { %v2580_v24 = vrot.slane %v2436_v41, 2  ;;  %v287_v50 = vmul.f32 %v5395_v16, %v254_v52  ;;  %v400_v32 = vmul.f32 %v5401_v29, %v254_v52  ;;  %v401_v17 = vmul.f32 %v5401_v29, %v352_v56 }
  0xf0   : > { %v1837_v14 = vadd.f32 %v1743_v0, %v1483_v60  ;;  %v2228_v36 = vsel %vm498_vm0, %v2226_v54, %v2227_v4  ;;  %v755_v37 = vmul.f32 %v5410_v15, %v707_v7  ;;  %v756_v63 = vmul.f32 %v5410_v15, %v352_v56  ;;  %v4568_v60 = vld [vmem:[%s4709_s29 + $0x98] sm:$0xe]  ;;  %v5446_v7 = vld [vmem:[%s8095_s1 + $0x6] ss:$0 sm:$0xff] }
  0xf1   : > { %v2582_v20 = vsel %vm853_vm1, %v2580_v24, %v2581_v6  ;;  %v544_v18 = vrot.slane %v400_v32, 1  ;;  %v545_v23 = vrot.slane %v401_v17, 1  ;;  %v1063_v22 = vunpack.c.l.bf16 %v4408_v10  ;;  %v5452_v24 = vld [vmem:[%s8095_s1 + $0x7] ss:$0 sm:$0xff]  ;;  %v226_v32 = vld [vmem:[%s4709_s29 + $0xc0] sm:$0xf] }
  0xf2   : > { %v1968_v26 = vadd.f32 %v1936_v34, %v1837_v14  ;;  %v899_v21 = vrot.slane %v755_v37, 2  ;;  %v900_v28 = vrot.slane %v756_v63, 2  ;;  %v1193_v53 = vunpack.c.l.bf16 %v4440_v59  ;;  %v324_v17 = vld [vmem:[%s4709_s29 + $0xc4] sm:$0x1]  ;;  %v679_v63 = vld [vmem:[%s4709_s29 + $0xc0] sm:$0xe] }
  0xf3   : > { %v546_v35 = vsel %vm498_vm0, %v544_v18, %v545_v23  ;;  %v1096_v39 = vmul.f32 %v5421_v38, %v1063_v22  ;;  %v1241_v34 = vmul.f32 %v5427_v42, %v1063_v22  ;;  %v1547_v44 = vunpack.c.l.bf16 %v4472_v1  ;;  %v4413_v1 = vld [vmem:[%s4709_s29 + $0xc8] sm:$0xf] }
  0xf4   : > { %v2322_v2 = vadd.f32 %v2228_v36, %v1968_v26  ;;  %v642_v46 = vadd.f32 %v546_v35, %v287_v50  ;;  %v901_v47 = vsel %vm853_vm1, %v899_v21, %v900_v28  ;;  %v1242_v57 = vmul.f32 %v5427_v42, %v1193_v53  ;;  %v5469_v28 = vld [vmem:[%s8095_s1 + $0x8] ss:$0 sm:$0xff] }
  0xf5   : > { %v1384_v49 = vrot.slane %v1241_v34, 1  ;;  %v1595_v48 = vmul.f32 %v5436_v11, %v1547_v44  ;;  %v1596_v54 = vmul.f32 %v5436_v11, %v1193_v53  ;;  %v1902_v55 = vunpack.c.l.bf16 %v4504_v33 }
  0xf6   : > { %v5440_v0 = vadd.f32 %v2582_v20, %v2322_v2  ;;  %v997_v41 = vadd.f32 %v901_v47, %v642_v46  ;;  %v1385_v52 = vrot.slane %v1242_v57, 1  ;;  %v2032_v56 = vunpack.c.l.bf16 %v4536_v45  ;;  %v4445_v45 = vld [vmem:[%s4709_s29 + $0xcc] sm:$0x1] }
  0xf7   : > { %v1738_v4 = vrot.slane %v1595_v48, 2  ;;  %v1739_v6 = vrot.slane %v1596_v54, 2  ;;  %v1935_v10 = vmul.f32 %v5446_v7, %v1902_v55  ;;  %v2080_v50 = vmul.f32 %v5452_v24, %v1902_v55 }
  0xf8   : > { %8166 = vst [vmem:[#allocation13_spill] sm:$0xff] %v5440_v0  ;;  %v2716_v59 = vsel %vm2699_vm2, %v5440_v0, 0.0  ;;  %v1128_v14 = vadd.f32 %v1096_v39, %v997_v41  ;;  %v1386_v36 = vsel %vm498_vm0, %v1384_v49, %v1385_v52  ;;  %v2081_v37 = vmul.f32 %v5452_v24, %v2032_v56 }
  0xf9   : > { %v2781_v20 = vsel %vm2732_vm3, %v2716_v59, 0.0  ;;  %v1740_v18 = vsel %vm853_vm1, %v1738_v4, %v1739_v6  ;;  %v2223_v23 = vrot.slane %v2080_v50, 1  ;;  %v2386_v22 = vunpack.c.l.bf16 %v4568_v60  ;;  %v4477_v4 = vld [vmem:[%s4709_s29 + $0xc8] sm:$0xe]  ;;  %v4509_v6 = vld [vmem:[%s4709_s29 + $0xd0] sm:$0xf] }
  0xfa   : > { %2782 = vadd.xlane.f32.xlu1 %v2781_v20  ;;  %v1482_v26 = vadd.f32 %v1386_v36, %v1128_v14  ;;  %v2224_v21 = vrot.slane %v2081_v37, 1  ;;  %v2435_v53 = vmul.f32 %v5469_v28, %v2032_v56  ;;  %v259_v33 = vunpack.c.l.bf16 %v226_v32 }
  0xfb   : > { %v2434_v35 = vmul.f32 %v5469_v28, %v2386_v22  ;;  %v357_v39 = vunpack.c.l.bf16 %v324_v17  ;;  %v712_v34 = vunpack.c.l.bf16 %v679_v63  ;;  %v1068_v44 = vunpack.c.l.bf16 %v4413_v1 }
  0xfc   : > { %v1836_v2 = vadd.f32 %v1740_v18, %v1482_v26  ;;  %v2225_v46 = vsel %vm498_vm0, %v2223_v23, %v2224_v21  ;;  %v2578_v47 = vrot.slane %v2435_v53, 2  ;;  %v292_v57 = vmul.f32 %v5395_v16, %v259_v33  ;;  %v4541_v23 = vld [vmem:[%s4709_s29 + $0xd4] sm:$0x1] }
  0xfd   : > { %v2577_v49 = vrot.slane %v2434_v35, 2  ;;  %v410_v48 = vmul.f32 %v5401_v29, %v259_v33  ;;  %v411_v54 = vmul.f32 %v5401_v29, %v357_v39  ;;  %v765_v55 = vmul.f32 %v5410_v15, %v712_v34  ;;  %v4573_v33 = vld [vmem:[%s4709_s29 + $0xd0] sm:$0xe] }
  0xfe   : > { %v1967_v41 = vadd.f32 %v1935_v10, %v1836_v2  ;;  %v766_v52 = vmul.f32 %v5410_v15, %v357_v39  ;;  %v1101_v56 = vmul.f32 %v5421_v38, %v1068_v44  ;;  %v1198_v60 = vunpack.c.l.bf16 %v4445_v45 }
  0xff   : > { %v2579_v50 = vsel %vm853_vm1, %v2577_v49, %v2578_v47  ;;  %v559_v32 = vrot.slane %v410_v48, 1  ;;  %v560_v17 = vrot.slane %v411_v54, 1  ;;  %v914_v59 = vrot.slane %v765_v55, 2  ;;  %v323_v49 = vld [vmem:[%s4709_s29 + $0xbc] sm:$0x1] }
 0x100   : > { %v2321_v14 = vadd.f32 %v2225_v46, %v1967_v41  ;;  %v915_v36 = vrot.slane %v766_v52, 2  ;;  %v1251_v37 = vmul.f32 %v5427_v42, %v1068_v44  ;;  %v1252_v10 = vmul.f32 %v5427_v42, %v1198_v60  ;;  %v678_v52 = vld [vmem:[%s4709_s29 + $0xb8] sm:$0xe] }
 0x101   : > { %v561_v63 = vsel %vm498_vm0, %v559_v32, %v560_v17  ;;  %v1552_v1 = vunpack.c.l.bf16 %v4477_v4  ;;  %v1606_v20 = vmul.f32 %v5436_v11, %v1198_v60  ;;  %v1907_v18 = vunpack.c.l.bf16 %v4509_v6 }
 0x102   : > { %v5489_v22 = vadd.f32 %v2579_v50, %v2321_v14  ;;  %v647_v26 = vadd.f32 %v561_v63, %v292_v57  ;;  %v916_v21 = vsel %vm853_vm1, %v914_v59, %v915_v36  ;;  %v1399_v53 = vrot.slane %v1251_v37, 1  ;;  %v225_v57 = vld [vmem:[%s4709_s29 + $0xb8] sm:$0xf] }
 0x103   : > { %v1400_v35 = vrot.slane %v1252_v10, 1  ;;  %v1605_v39 = vmul.f32 %v5436_v11, %v1552_v1  ;;  %v1754_v34 = vrot.slane %v1606_v20, 2  ;;  %v1940_v44 = vmul.f32 %v5446_v7, %v1907_v18  ;;  %v4412_v1 = vld [vmem:[%s4709_s29 + $0xc0] sm:$0xf] }
 0x104   : > { %8167 = vst [vmem:[#allocation14_spill] sm:$0xff] %v5489_v22  ;;  %v2715_v45 = vsel %vm2699_vm2, %v5489_v22, 0.0  ;;  %v1002_v2 = vadd.f32 %v916_v21, %v647_v26  ;;  %v2037_v46 = vunpack.c.l.bf16 %v4541_v23  ;;  %v2090_v47 = vmul.f32 %v5452_v24, %v1907_v18  ;;  %v4444_v26 = vld [vmem:[%s4709_s29 + $0xc4] sm:$0x1] }
 0x105   : > { %v2778_v48 = vsel %vm2732_vm3, %v2715_v45, 0.0  ;;  %v1401_v54 = vsel %vm498_vm0, %v1399_v53, %v1400_v35  ;;  %v1753_v55 = vrot.slane %v1605_v39, 2  ;;  %v2391_v41 = vunpack.c.l.bf16 %v4573_v33  ;;  %v4476_v39 = vld [vmem:[%s4709_s29 + $0xc0] sm:$0xe] }
 0x106   : > { %2779 = vadd.xlane.f32.xlu0 %v2778_v48  ;;  %v1133_v60 = vadd.f32 %v1101_v56, %v1002_v2  ;;  %v2091_v4 = vmul.f32 %v5452_v24, %v2037_v46  ;;  %v2238_v6 = vrot.slane %v2090_v47, 1  ;;  %v2445_v50 = vmul.f32 %v5469_v28, %v2037_v46 }
 0x107   : > { %v1755_v32 = vsel %vm853_vm1, %v1753_v55, %v1754_v34  ;;  %v2444_v17 = vmul.f32 %v5469_v28, %v2391_v41  ;;  %v258_v59 = vunpack.c.l.bf16 %v225_v57  ;;  %v356_v14 = vunpack.c.l.bf16 %v323_v49 }
 0x108   : > { %v1487_v36 = vadd.f32 %v1401_v54, %v1133_v60  ;;  %v2239_v37 = vrot.slane %v2091_v4, 1  ;;  %v2593_v10 = vrot.slane %v2445_v50, 2  ;;  %v711_v63 = vunpack.c.l.bf16 %v678_v52  ;;  %v4508_v54 = vld [vmem:[%s4709_s29 + $0xc8] sm:$0xf]  ;;  %v4540_v4 = vld [vmem:[%s4709_s29 + $0xcc] sm:$0x1] }
 0x109   : > { %v2592_v20 = vrot.slane %v2444_v17, 2  ;;  %v291_v56 = vmul.f32 %v5395_v16, %v258_v59  ;;  %v408_v18 = vmul.f32 %v5401_v29, %v258_v59  ;;  %v409_v23 = vmul.f32 %v5401_v29, %v356_v14 }
 0x10a   : > { %v1841_v21 = vadd.f32 %v1755_v32, %v1487_v36  ;;  %v2240_v53 = vsel %vm498_vm0, %v2238_v6, %v2239_v37  ;;  %v763_v33 = vmul.f32 %v5410_v15, %v711_v63  ;;  %v764_v35 = vmul.f32 %v5410_v15, %v356_v14 }
 0x10b   : > { %v2594_v34 = vsel %vm853_vm1, %v2592_v20, %v2593_v10  ;;  %v556_v45 = vrot.slane %v408_v18, 1  ;;  %v557_v2 = vrot.slane %v409_v23, 1  ;;  %v1067_v46 = vunpack.c.l.bf16 %v4412_v1  ;;  %v4572_v20 = vld [vmem:[%s4709_s29 + $0xc8] sm:$0xe] }
 0x10c   : > { %v1972_v47 = vadd.f32 %v1940_v44, %v1841_v21  ;;  %v911_v57 = vrot.slane %v763_v33, 2  ;;  %v912_v49 = vrot.slane %v764_v35, 2  ;;  %v1197_v48 = vunpack.c.l.bf16 %v4444_v26  ;;  %v224_v21 = vld [vmem:[%s4709_s29 + $0xb0] sm:$0xf] }
 0x10d   : > { %v558_v55 = vsel %vm498_vm0, %v556_v45, %v557_v2  ;;  %v1100_v41 = vmul.f32 %v5421_v38, %v1067_v46  ;;  %v1249_v52 = vmul.f32 %v5427_v42, %v1067_v46  ;;  %v1551_v60 = vunpack.c.l.bf16 %v4476_v39  ;;  %v677_v45 = vld [vmem:[%s4709_s29 + $0xb0] sm:$0xe]  ;;  %v4411_v2 = vld [vmem:[%s4709_s29 + $0xb8] sm:$0xf] }
 0x10e   : > { %v2326_v6 = vadd.f32 %v2240_v53, %v1972_v47  ;;  %v646_v50 = vadd.f32 %v558_v55, %v291_v56  ;;  %v913_v32 = vsel %vm853_vm1, %v911_v57, %v912_v49  ;;  %v1250_v44 = vmul.f32 %v5427_v42, %v1197_v48  ;;  %v322_v53 = vld [vmem:[%s4709_s29 + $0xb4] sm:$0x1] }
 0x10f   : > { %v1396_v17 = vrot.slane %v1249_v52, 1  ;;  %v1603_v59 = vmul.f32 %v5436_v11, %v1551_v60  ;;  %v1604_v14 = vmul.f32 %v5436_v11, %v1197_v48  ;;  %v1906_v36 = vunpack.c.l.bf16 %v4508_v54 }
 0x110   : > { %v5527_v37 = vadd.f32 %v2594_v34, %v2326_v6  ;;  %v1001_v10 = vadd.f32 %v913_v32, %v646_v50  ;;  %v1397_v63 = vrot.slane %v1250_v44, 1  ;;  %v2036_v1 = vunpack.c.l.bf16 %v4540_v4  ;;  %v4443_v50 = vld [vmem:[%s4709_s29 + $0xbc] sm:$0x1] }
 0x111   : > { %v1750_v56 = vrot.slane %v1603_v59, 2  ;;  %v1751_v18 = vrot.slane %v1604_v14, 2  ;;  %v1939_v23 = vmul.f32 %v5446_v7, %v1906_v36  ;;  %v2088_v26 = vmul.f32 %v5452_v24, %v1906_v36 }
 0x112   : > { %8168 = vst [vmem:[#allocation15_spill] sm:$0xff] %v5527_v37  ;;  %v2720_v33 = vsel %vm2699_vm2, %v5527_v37, 0.0  ;;  %v1132_v35 = vadd.f32 %v1100_v41, %v1001_v10  ;;  %v1398_v39 = vsel %vm498_vm0, %v1396_v17, %v1397_v63  ;;  %v2089_v34 = vmul.f32 %v5452_v24, %v2036_v1 }
 0x113   : > { %v2793_v46 = vsel %vm2732_vm3, %v2720_v33, 0.0  ;;  %v1752_v47 = vsel %vm853_vm1, %v1750_v56, %v1751_v18  ;;  %v2235_v57 = vrot.slane %v2088_v26, 1  ;;  %v2390_v49 = vunpack.c.l.bf16 %v4572_v20  ;;  %v4475_v26 = vld [vmem:[%s4709_s29 + $0xb8] sm:$0xe] }
 0x114   : > { %2794 = vadd.xlane.f32.xlu2 %v2793_v46  ;;  %v1486_v48 = vadd.f32 %v1398_v39, %v1132_v35  ;;  %v2236_v54 = vrot.slane %v2089_v34, 1  ;;  %v2443_v55 = vmul.f32 %v5469_v28, %v2036_v1  ;;  %v257_v52 = vunpack.c.l.bf16 %v224_v21  ;;  %v4507_v21 = vld [vmem:[%s4709_s29 + $0xc0] sm:$0xf] }
 0x115   : > { %v2442_v41 = vmul.f32 %v5469_v28, %v2390_v49  ;;  %v355_v60 = vunpack.c.l.bf16 %v322_v53  ;;  %v710_v4 = vunpack.c.l.bf16 %v677_v45  ;;  %v1066_v6 = vunpack.c.l.bf16 %v4411_v2 }
 0x116   : > { %v1840_v32 = vadd.f32 %v1752_v47, %v1486_v48  ;;  %v2237_v44 = vsel %vm498_vm0, %v2235_v57, %v2236_v54  ;;  %v2590_v17 = vrot.slane %v2443_v55, 2  ;;  %v290_v59 = vmul.f32 %v5395_v16, %v257_v52  ;;  %v4539_v48 = vld [vmem:[%s4709_s29 + $0xc4] sm:$0x1] }
 0x117   : > { %v2589_v14 = vrot.slane %v2442_v41, 2  ;;  %v406_v36 = vmul.f32 %v5401_v29, %v257_v52  ;;  %v407_v10 = vmul.f32 %v5401_v29, %v355_v60  ;;  %v761_v63 = vmul.f32 %v5410_v15, %v710_v4 }
 0x118   : > { %v1971_v1 = vadd.f32 %v1939_v23, %v1840_v32  ;;  %v762_v20 = vmul.f32 %v5410_v15, %v355_v60  ;;  %v1099_v56 = vmul.f32 %v5421_v38, %v1066_v6  ;;  %v1196_v18 = vunpack.c.l.bf16 %v4443_v50  ;;  %v4571_v60 = vld [vmem:[%s4709_s29 + $0xc0] sm:$0xe] }
 0x119   : > { %v2591_v53 = vsel %vm853_vm1, %v2589_v14, %v2590_v17  ;;  %v553_v33 = vrot.slane %v406_v36, 1  ;;  %v554_v35 = vrot.slane %v407_v10, 1  ;;  %v908_v39 = vrot.slane %v761_v63, 2  ;;  %v327_v10 = vld [vmem:[%s4709_s29 + $0xdc] sm:$0x1] }
 0x11a   : > { %v2325_v34 = vadd.f32 %v2237_v44, %v1971_v1  ;;  %v909_v45 = vrot.slane %v762_v20, 2  ;;  %v1247_v2 = vmul.f32 %v5427_v42, %v1066_v6  ;;  %v1248_v23 = vmul.f32 %v5427_v42, %v1196_v18 }
 0x11b   : > { %v555_v46 = vsel %vm498_vm0, %v553_v33, %v554_v35  ;;  %v1550_v47 = vunpack.c.l.bf16 %v4475_v26  ;;  %v1602_v57 = vmul.f32 %v5436_v11, %v1196_v18  ;;  %v1905_v49 = vunpack.c.l.bf16 %v4507_v21  ;;  %v682_v26 = vld [vmem:[%s4709_s29 + $0xd8] sm:$0xe] }
 0x11c   : > { %v5561_v54 = vadd.f32 %v2591_v53, %v2325_v34  ;;  %v645_v55 = vadd.f32 %v555_v46, %v290_v59  ;;  %v910_v52 = vsel %vm853_vm1, %v908_v39, %v909_v45  ;;  %v1393_v41 = vrot.slane %v1247_v2, 1  ;;  %v229_v59 = vld [vmem:[%s4709_s29 + $0xd8] sm:$0xf] }
 0x11d   : > { %v1394_v4 = vrot.slane %v1248_v23, 1  ;;  %v1601_v6 = vmul.f32 %v5436_v11, %v1550_v47  ;;  %v1748_v50 = vrot.slane %v1602_v57, 2  ;;  %v1938_v32 = vmul.f32 %v5446_v7, %v1905_v49 }
 0x11e   : > { %8169 = vst [vmem:[#allocation16_spill] sm:$0xff] %v5561_v54  ;;  %v2719_v44 = vsel %vm2699_vm2, %v5561_v54, 0.0  ;;  %v1000_v17 = vadd.f32 %v910_v52, %v645_v55  ;;  %v2035_v14 = vunpack.c.l.bf16 %v4539_v48  ;;  %v2086_v36 = vmul.f32 %v5452_v24, %v1905_v49  ;;  %v4416_v49 = vld [vmem:[%s4709_s29 + $0xe0] sm:$0xf] }
 0x11f   : > { %v2790_v63 = vsel %vm2732_vm3, %v2719_v44, 0.0  ;;  %v1395_v1 = vsel %vm498_vm0, %v1393_v41, %v1394_v4  ;;  %v1747_v20 = vrot.slane %v1601_v6, 2  ;;  %v2389_v18 = vunpack.c.l.bf16 %v4571_v60  ;;  %v4448_v41 = vld [vmem:[%s4709_s29 + $0xe4] sm:$0x1]  ;;  %v4480_v44 = vld [vmem:[%s4709_s29 + $0xe0] sm:$0xe] }
 0x120   : > { %2791 = vadd.xlane.f32.xlu1 %v2790_v63  ;;  %v1131_v21 = vadd.f32 %v1099_v56, %v1000_v17  ;;  %v2087_v53 = vmul.f32 %v5452_v24, %v2035_v14  ;;  %v2232_v33 = vrot.slane %v2086_v36, 1  ;;  %v2441_v35 = vmul.f32 %v5469_v28, %v2035_v14 }
 0x121   : > { %v1749_v39 = vsel %vm853_vm1, %v1747_v20, %v1748_v50  ;;  %v2440_v34 = vmul.f32 %v5469_v28, %v2389_v18  ;;  %v262_v45 = vunpack.c.l.bf16 %v229_v59  ;;  %v360_v2 = vunpack.c.l.bf16 %v327_v10  ;;  %v4512_v18 = vld [vmem:[%s4709_s29 + $0xe8] sm:$0xf] }
 0x122   : > { %v1485_v23 = vadd.f32 %v1395_v1, %v1131_v21  ;;  %v2233_v46 = vrot.slane %v2087_v53, 1  ;;  %v2587_v47 = vrot.slane %v2441_v35, 2  ;;  %v715_v57 = vunpack.c.l.bf16 %v682_v26  ;;  %v4544_v35 = vld [vmem:[%s4709_s29 + $0xec] sm:$0x1] }
 0x123   : > { %v2586_v48 = vrot.slane %v2440_v34, 2  ;;  %v295_v56 = vmul.f32 %v5395_v16, %v262_v45  ;;  %v416_v55 = vmul.f32 %v5401_v29, %v262_v45  ;;  %v417_v52 = vmul.f32 %v5401_v29, %v360_v2 }
 0x124   : > { %v1839_v60 = vadd.f32 %v1749_v39, %v1485_v23  ;;  %v2234_v4 = vsel %vm498_vm0, %v2232_v33, %v2233_v46  ;;  %v771_v6 = vmul.f32 %v5410_v15, %v715_v57  ;;  %v772_v50 = vmul.f32 %v5410_v15, %v360_v2 }
 0x125   : > { %v2588_v17 = vsel %vm853_vm1, %v2586_v48, %v2587_v47  ;;  %v568_v14 = vrot.slane %v416_v55, 1  ;;  %v569_v36 = vrot.slane %v417_v52, 1  ;;  %v1071_v59 = vunpack.c.l.bf16 %v4416_v49 }
 0x126   : > { %v1970_v10 = vadd.f32 %v1938_v32, %v1839_v60  ;;  %v923_v63 = vrot.slane %v771_v6, 2  ;;  %v924_v1 = vrot.slane %v772_v50, 2  ;;  %v1201_v20 = vunpack.c.l.bf16 %v4448_v41  ;;  %v228_v6 = vld [vmem:[%s4709_s29 + $0xd0] sm:$0xf]  ;;  %v326_v50 = vld [vmem:[%s4709_s29 + $0xd4] sm:$0x1] }
 0x127   : > { %v570_v26 = vsel %vm498_vm0, %v568_v14, %v569_v36  ;;  %v1104_v21 = vmul.f32 %v5421_v38, %v1071_v59  ;;  %v1257_v53 = vmul.f32 %v5427_v42, %v1071_v59  ;;  %v1555_v33 = vunpack.c.l.bf16 %v4480_v44  ;;  %v681_v59 = vld [vmem:[%s4709_s29 + $0xd0] sm:$0xe] }
 0x128   : > { %v2324_v39 = vadd.f32 %v2234_v4, %v1970_v10  ;;  %v650_v34 = vadd.f32 %v570_v26, %v295_v56  ;;  %v925_v45 = vsel %vm853_vm1, %v923_v63, %v924_v1  ;;  %v1258_v32 = vmul.f32 %v5427_v42, %v1201_v20  ;;  %v4576_v56 = vld [vmem:[%s4709_s29 + $0xe8] sm:$0xe]  ;;  %v4415_v10 = vld [vmem:[%s4709_s29 + $0xd8] sm:$0xf] }
 0x129   : > { %v1408_v2 = vrot.slane %v1257_v53, 1  ;;  %v1611_v23 = vmul.f32 %v5436_v11, %v1555_v33  ;;  %v1612_v46 = vmul.f32 %v5436_v11, %v1201_v20  ;;  %v1910_v47 = vunpack.c.l.bf16 %v4512_v18 }
 0x12a   : > { %v5599_v57 = vadd.f32 %v2588_v17, %v2324_v39  ;;  %v1005_v49 = vadd.f32 %v925_v45, %v650_v34  ;;  %v1409_v48 = vrot.slane %v1258_v32, 1  ;;  %v2040_v55 = vunpack.c.l.bf16 %v4544_v35  ;;  %v4447_v32 = vld [vmem:[%s4709_s29 + $0xdc] sm:$0x1] }
 0x12b   : > { %v1762_v52 = vrot.slane %v1611_v23, 2  ;;  %v1763_v41 = vrot.slane %v1612_v46, 2  ;;  %v1943_v60 = vmul.f32 %v5446_v7, %v1910_v47  ;;  %v2096_v4 = vmul.f32 %v5452_v24, %v1910_v47 }
 0x12c   : > { %8170 = vst [vmem:[#allocation17_spill] sm:$0xff] %v5599_v57  ;;  %v2718_v44 = vsel %vm2699_vm2, %v5599_v57, 0.0  ;;  %v1136_v14 = vadd.f32 %v1104_v21, %v1005_v49  ;;  %v1410_v17 = vsel %vm498_vm0, %v1408_v2, %v1409_v48  ;;  %v2097_v36 = vmul.f32 %v5452_v24, %v2040_v55 }
 0x12d   : > { %v2787_v63 = vsel %vm2732_vm3, %v2718_v44, 0.0  ;;  %v1764_v1 = vsel %vm853_vm1, %v1762_v52, %v1763_v41  ;;  %v2247_v20 = vrot.slane %v2096_v4, 1  ;;  %v2394_v18 = vunpack.c.l.bf16 %v4576_v56  ;;  %v4511_v44 = vld [vmem:[%s4709_s29 + $0xe0] sm:$0xf] }
 0x12e   : > { %2788 = vadd.xlane.f32.xlu0 %v2787_v63  ;;  %v1490_v26 = vadd.f32 %v1410_v17, %v1136_v14  ;;  %v2248_v53 = vrot.slane %v2097_v36, 1  ;;  %v2451_v33 = vmul.f32 %v5469_v28, %v2040_v55  ;;  %v261_v35 = vunpack.c.l.bf16 %v228_v6 }
 0x12f   : > { %v2450_v21 = vmul.f32 %v5469_v28, %v2394_v18  ;;  %v359_v39 = vunpack.c.l.bf16 %v326_v50  ;;  %v714_v34 = vunpack.c.l.bf16 %v681_v59  ;;  %v1070_v45 = vunpack.c.l.bf16 %v4415_v10  ;;  %v4479_v50 = vld [vmem:[%s4709_s29 + $0xd8] sm:$0xe] }
 0x130   : > { %v1844_v2 = vadd.f32 %v1764_v1, %v1490_v26  ;;  %v2249_v23 = vsel %vm498_vm0, %v2247_v20, %v2248_v53  ;;  %v2602_v46 = vrot.slane %v2451_v33, 2  ;;  %v294_v47 = vmul.f32 %v5395_v16, %v261_v35  ;;  %v4543_v33 = vld [vmem:[%s4709_s29 + $0xe4] sm:$0x1] }
 0x131   : > { %v2601_v49 = vrot.slane %v2450_v21, 2  ;;  %v414_v48 = vmul.f32 %v5401_v29, %v261_v35  ;;  %v415_v55 = vmul.f32 %v5401_v29, %v359_v39  ;;  %v769_v56 = vmul.f32 %v5410_v15, %v714_v34 }
 0x132   : > { %v1975_v52 = vadd.f32 %v1943_v60, %v1844_v2  ;;  %v770_v41 = vmul.f32 %v5410_v15, %v359_v39  ;;  %v1103_v4 = vmul.f32 %v5421_v38, %v1070_v45  ;;  %v1200_v6 = vunpack.c.l.bf16 %v4447_v32  ;;  %v4575_v32 = vld [vmem:[%s4709_s29 + $0xe0] sm:$0xe] }
 0x133   : > { %v2603_v14 = vsel %vm853_vm1, %v2601_v49, %v2602_v46  ;;  %v565_v17 = vrot.slane %v414_v48, 1  ;;  %v566_v36 = vrot.slane %v415_v55, 1  ;;  %v920_v59 = vrot.slane %v769_v56, 2 }
 0x134   : > { %v2329_v10 = vadd.f32 %v2249_v23, %v1975_v52  ;;  %v921_v63 = vrot.slane %v770_v41, 2  ;;  %v1255_v1 = vmul.f32 %v5427_v42, %v1070_v45  ;;  %v1256_v60 = vmul.f32 %v5427_v42, %v1200_v6  ;;  %v325_v52 = vld [vmem:[%s4709_s29 + $0xcc] sm:$0x1] }
 0x135   : > { %v567_v20 = vsel %vm498_vm0, %v565_v17, %v566_v36  ;;  %v1554_v18 = vunpack.c.l.bf16 %v4479_v50  ;;  %v1610_v26 = vmul.f32 %v5436_v11, %v1200_v6  ;;  %v1909_v53 = vunpack.c.l.bf16 %v4511_v44 }
 0x136   : > { %v5633_v35 = vadd.f32 %v2603_v14, %v2329_v10  ;;  %v649_v21 = vadd.f32 %v567_v20, %v294_v47  ;;  %v922_v39 = vsel %vm853_vm1, %v920_v59, %v921_v63  ;;  %v1405_v34 = vrot.slane %v1255_v1, 1  ;;  %v227_v47 = vld [vmem:[%s4709_s29 + $0xc8] sm:$0xf] }
 0x137   : > { %v1406_v45 = vrot.slane %v1256_v60, 1  ;;  %v1609_v2 = vmul.f32 %v5436_v11, %v1554_v18  ;;  %v1760_v23 = vrot.slane %v1610_v26, 2  ;;  %v1942_v46 = vmul.f32 %v5446_v7, %v1909_v53  ;;  %v680_v14 = vld [vmem:[%s4709_s29 + $0xc8] sm:$0xe] }
 0x138   : > { %8171 = vst [vmem:[#allocation18_spill] sm:$0xff] %v5633_v35  ;;  %v2723_v49 = vsel %vm2699_vm2, %v5633_v35, 0.0  ;;  %v1004_v48 = vadd.f32 %v922_v39, %v649_v21  ;;  %v2039_v55 = vunpack.c.l.bf16 %v4543_v33  ;;  %v2094_v56 = vmul.f32 %v5452_v24, %v1909_v53  ;;  %v4414_v21 = vld [vmem:[%s4709_s29 + $0xd0] sm:$0xf] }
 0x139   : > { %v2802_v41 = vsel %vm2732_vm3, %v2723_v49, 0.0  ;;  %v1407_v6 = vsel %vm498_vm0, %v1405_v34, %v1406_v45  ;;  %v1759_v50 = vrot.slane %v1609_v2, 2  ;;  %v2393_v44 = vunpack.c.l.bf16 %v4575_v32  ;;  %v4446_v45 = vld [vmem:[%s4709_s29 + $0xd4] sm:$0x1] }
 0x13a   : > { %2803 = vadd.xlane.f32.xlu2 %v2802_v41  ;;  %v1135_v17 = vadd.f32 %v1103_v4, %v1004_v48  ;;  %v2095_v36 = vmul.f32 %v5452_v24, %v2039_v55  ;;  %v2244_v59 = vrot.slane %v2094_v56, 1  ;;  %v2449_v10 = vmul.f32 %v5469_v28, %v2039_v55  ;;  %v4478_v55 = vld [vmem:[%s4709_s29 + $0xd0] sm:$0xe] }
 0x13b   : > { %v1761_v63 = vsel %vm853_vm1, %v1759_v50, %v1760_v23  ;;  %v2448_v1 = vmul.f32 %v5469_v28, %v2393_v44  ;;  %v260_v60 = vunpack.c.l.bf16 %v227_v47  ;;  %v358_v20 = vunpack.c.l.bf16 %v325_v52 }
 0x13c   : > { %v1489_v18 = vadd.f32 %v1407_v6, %v1135_v17  ;;  %v2245_v26 = vrot.slane %v2095_v36, 1  ;;  %v2599_v53 = vrot.slane %v2449_v10, 2  ;;  %v713_v33 = vunpack.c.l.bf16 %v680_v14  ;;  %v4510_v17 = vld [vmem:[%s4709_s29 + $0xd8] sm:$0xf] }
 0x13d   : > { %v2598_v39 = vrot.slane %v2448_v1, 2  ;;  %v293_v4 = vmul.f32 %v5395_v16, %v260_v60  ;;  %v412_v34 = vmul.f32 %v5401_v29, %v260_v60  ;;  %v413_v32 = vmul.f32 %v5401_v29, %v358_v20  ;;  %v4542_v1 = vld [vmem:[%s4709_s29 + $0xdc] sm:$0x1] }
 0x13e   : > { %v1843_v2 = vadd.f32 %v1761_v63, %v1489_v18  ;;  %v2246_v23 = vsel %vm498_vm0, %v2244_v59, %v2245_v26  ;;  %v767_v49 = vmul.f32 %v5410_v15, %v713_v33  ;;  %v768_v48 = vmul.f32 %v5410_v15, %v358_v20 }
 0x13f   : > { %v2600_v56 = vsel %vm853_vm1, %v2598_v39, %v2599_v53  ;;  %v562_v47 = vrot.slane %v412_v34, 1  ;;  %v563_v52 = vrot.slane %v413_v32, 1  ;;  %v1069_v41 = vunpack.c.l.bf16 %v4414_v21 }
 0x140   : > { %v1974_v6 = vadd.f32 %v1942_v46, %v1843_v2  ;;  %v917_v50 = vrot.slane %v767_v49, 2  ;;  %v918_v44 = vrot.slane %v768_v48, 2  ;;  %v1199_v14 = vunpack.c.l.bf16 %v4446_v45 }
 0x141   : > { %v564_v36 = vsel %vm498_vm0, %v562_v47, %v563_v52  ;;  %v1102_v59 = vmul.f32 %v5421_v38, %v1069_v41  ;;  %v1253_v10 = vmul.f32 %v5427_v42, %v1069_v41  ;;  %v1553_v63 = vunpack.c.l.bf16 %v4478_v55  ;;  %v232_v55 = vld [vmem:[%s4709_s29 + $0x100] sm:$0xf]  ;;  %v330_v47 = vld [vmem:[%s4709_s29 + $0x104] sm:$0x1] }
 0x142   : > { %v2328_v60 = vadd.f32 %v2246_v23, %v1974_v6  ;;  %v648_v20 = vadd.f32 %v564_v36, %v293_v4  ;;  %v919_v18 = vsel %vm853_vm1, %v917_v50, %v918_v44  ;;  %v1254_v46 = vmul.f32 %v5427_v42, %v1199_v14  ;;  %v4574_v4 = vld [vmem:[%s4709_s29 + $0xd8] sm:$0xe]  ;;  %v685_v50 = vld [vmem:[%s4709_s29 + $0x100] sm:$0xe]  ;;  %v4419_v44 = vld [vmem:[%s4709_s29 + $0x108] sm:$0xf] }
 0x143   : > { %v1402_v26 = vrot.slane %v1253_v10, 1  ;;  %v1607_v53 = vmul.f32 %v5436_v11, %v1553_v63  ;;  %v1608_v33 = vmul.f32 %v5436_v11, %v1199_v14  ;;  %v1908_v21 = vunpack.c.l.bf16 %v4510_v17 }
 0x144   : > { %v5671_v39 = vadd.f32 %v2600_v56, %v2328_v60  ;;  %v1003_v34 = vadd.f32 %v919_v18, %v648_v20  ;;  %v1403_v32 = vrot.slane %v1254_v46, 1  ;;  %v2038_v45 = vunpack.c.l.bf16 %v4542_v1 }
 0x145   : > { %v1756_v2 = vrot.slane %v1607_v53, 2  ;;  %v1757_v23 = vrot.slane %v1608_v33, 2  ;;  %v1941_v49 = vmul.f32 %v5446_v7, %v1908_v21  ;;  %v2092_v48 = vmul.f32 %v5452_v24, %v1908_v21  ;;  %v4451_v53 = vld [vmem:[%s4709_s29 + $0x10c] sm:$0x1] }
 0x146   : > { %8172 = vst [vmem:[#allocation19_spill] sm:$0xff] %v5671_v39  ;;  %v2722_v52 = vsel %vm2699_vm2, %v5671_v39, 0.0  ;;  %v1134_v41 = vadd.f32 %v1102_v59, %v1003_v34  ;;  %v1404_v56 = vsel %vm498_vm0, %v1402_v26, %v1403_v32  ;;  %v2093_v6 = vmul.f32 %v5452_v24, %v2038_v45 }
 0x147   : > { %v2799_v14 = vsel %vm2732_vm3, %v2722_v52, 0.0  ;;  %v1758_v17 = vsel %vm853_vm1, %v1756_v2, %v1757_v23  ;;  %v2241_v36 = vrot.slane %v2092_v48, 1  ;;  %v2392_v10 = vunpack.c.l.bf16 %v4574_v4 }
 0x148   : > { %2800 = vadd.xlane.f32.xlu1 %v2799_v14  ;;  %v1488_v63 = vadd.f32 %v1404_v56, %v1134_v41  ;;  %v2242_v1 = vrot.slane %v2093_v6, 1  ;;  %v2447_v60 = vmul.f32 %v5469_v28, %v2038_v45  ;;  %v265_v20 = vunpack.c.l.bf16 %v232_v55  ;;  %v4483_v41 = vld [vmem:[%s4709_s29 + $0x108] sm:$0xe]  ;;  %v4515_v56 = vld [vmem:[%s4709_s29 + $0x110] sm:$0xf] }
 0x149   : > { %v2446_v59 = vmul.f32 %v5469_v28, %v2392_v10  ;;  %v363_v18 = vunpack.c.l.bf16 %v330_v47  ;;  %v718_v46 = vunpack.c.l.bf16 %v685_v50  ;;  %v1074_v26 = vunpack.c.l.bf16 %v4419_v44 }
 0x14a   : > { %v1842_v33 = vadd.f32 %v1758_v17, %v1488_v63  ;;  %v2243_v21 = vsel %vm498_vm0, %v2241_v36, %v2242_v1  ;;  %v2596_v34 = vrot.slane %v2447_v60, 2  ;;  %v298_v32 = vmul.f32 %v5395_v16, %v265_v20 }
 0x14b   : > { %v2595_v4 = vrot.slane %v2446_v59, 2  ;;  %v422_v2 = vmul.f32 %v5401_v29, %v265_v20  ;;  %v423_v45 = vmul.f32 %v5401_v29, %v363_v18  ;;  %v777_v23 = vmul.f32 %v5410_v15, %v718_v46  ;;  %v4547_v59 = vld [vmem:[%s4709_s29 + $0x114] sm:$0x1] }
 0x14c   : > { %v1973_v48 = vadd.f32 %v1941_v49, %v1842_v33  ;;  %v778_v55 = vmul.f32 %v5410_v15, %v363_v18  ;;  %v1107_v47 = vmul.f32 %v5421_v38, %v1074_v26  ;;  %v1204_v52 = vunpack.c.l.bf16 %v4451_v53 }
 0x14d   : > { %v2597_v6 = vsel %vm853_vm1, %v2595_v4, %v2596_v34  ;;  %v577_v50 = vrot.slane %v422_v2, 1  ;;  %v578_v44 = vrot.slane %v423_v45, 1  ;;  %v932_v14 = vrot.slane %v777_v23, 2 }
 0x14e   : > { %v2327_v17 = vadd.f32 %v2243_v21, %v1973_v48  ;;  %v933_v36 = vrot.slane %v778_v55, 2  ;;  %v1263_v10 = vmul.f32 %v5427_v42, %v1074_v26  ;;  %v1264_v49 = vmul.f32 %v5427_v42, %v1204_v52  ;;  %v4579_v21 = vld [vmem:[%s4709_s29 + $0x110] sm:$0xe] }
 0x14f   : > { %v579_v63 = vsel %vm498_vm0, %v577_v50, %v578_v44  ;;  %v1558_v1 = vunpack.c.l.bf16 %v4483_v41  ;;  %v1618_v60 = vmul.f32 %v5436_v11, %v1204_v52  ;;  %v1913_v20 = vunpack.c.l.bf16 %v4515_v56  ;;  %v329_v52 = vld [vmem:[%s4709_s29 + $0xfc] sm:$0x1]  ;;  %v684_v44 = vld [vmem:[%s4709_s29 + $0xf8] sm:$0xe] }
 0x150   : > { %v5705_v18 = vadd.f32 %v2597_v6, %v2327_v17  ;;  %v653_v46 = vadd.f32 %v579_v63, %v298_v32  ;;  %v934_v53 = vsel %vm853_vm1, %v932_v14, %v933_v36  ;;  %v1417_v33 = vrot.slane %v1263_v10, 1  ;;  %v231_v32 = vld [vmem:[%s4709_s29 + $0xf8] sm:$0xf] }
 0x151   : > { %v1418_v26 = vrot.slane %v1264_v49, 1  ;;  %v1617_v34 = vmul.f32 %v5436_v11, %v1558_v1  ;;  %v1772_v4 = vrot.slane %v1618_v60, 2  ;;  %v1946_v2 = vmul.f32 %v5446_v7, %v1913_v20 }
 0x152   : > { %8173 = vst [vmem:[#allocation20_spill] sm:$0xff] %v5705_v18  ;;  %v2721_v45 = vsel %vm2699_vm2, %v5705_v18, 0.0  ;;  %v1008_v23 = vadd.f32 %v934_v53, %v653_v46  ;;  %v2043_v48 = vunpack.c.l.bf16 %v4547_v59  ;;  %v2102_v55 = vmul.f32 %v5452_v24, %v1913_v20 }
 0x153   : > { %v2796_v41 = vsel %vm2732_vm3, %v2721_v45, 0.0  ;;  %v1419_v56 = vsel %vm498_vm0, %v1417_v33, %v1418_v26  ;;  %v1771_v6 = vrot.slane %v1617_v34, 2  ;;  %v2397_v50 = vunpack.c.l.bf16 %v4579_v21  ;;  %v4418_v33 = vld [vmem:[%s4709_s29 + $0x100] sm:$0xf]  ;;  %v4450_v45 = vld [vmem:[%s4709_s29 + $0x104] sm:$0x1] }
 0x154   : > { %2797 = vadd.xlane.f32.xlu0 %v2796_v41  ;;  %v1139_v14 = vadd.f32 %v1107_v47, %v1008_v23  ;;  %v2103_v17 = vmul.f32 %v5452_v24, %v2043_v48  ;;  %v2256_v36 = vrot.slane %v2102_v55, 1  ;;  %v2457_v10 = vmul.f32 %v5469_v28, %v2043_v48 }
 0x155   : > { %v1773_v49 = vsel %vm853_vm1, %v1771_v6, %v1772_v4  ;;  %v2456_v63 = vmul.f32 %v5469_v28, %v2397_v50  ;;  %v264_v1 = vunpack.c.l.bf16 %v231_v32  ;;  %v362_v60 = vunpack.c.l.bf16 %v329_v52  ;;  %v4482_v32 = vld [vmem:[%s4709_s29 + $0x100] sm:$0xe] }
 0x156   : > { %v1493_v20 = vadd.f32 %v1419_v56, %v1139_v14  ;;  %v2257_v59 = vrot.slane %v2103_v17, 1  ;;  %v2611_v46 = vrot.slane %v2457_v10, 2  ;;  %v717_v53 = vunpack.c.l.bf16 %v684_v44 }
 0x157   : > { %v2610_v21 = vrot.slane %v2456_v63, 2  ;;  %v297_v47 = vmul.f32 %v5395_v16, %v264_v1  ;;  %v420_v26 = vmul.f32 %v5401_v29, %v264_v1  ;;  %v421_v34 = vmul.f32 %v5401_v29, %v362_v60  ;;  %v4514_v29 = vld [vmem:[%s4709_s29 + $0x108] sm:$0xf] }
 0x158   : > { %v1847_v4 = vadd.f32 %v1773_v49, %v1493_v20  ;;  %v2258_v23 = vsel %vm498_vm0, %v2256_v36, %v2257_v59  ;;  %v775_v48 = vmul.f32 %v5410_v15, %v717_v53  ;;  %v776_v55 = vmul.f32 %v5410_v15, %v362_v60  ;;  %v4546_v15 = vld [vmem:[%s4709_s29 + $0x10c] sm:$0x1] }
 0x159   : > { %v2612_v52 = vsel %vm853_vm1, %v2610_v21, %v2611_v46  ;;  %v574_v41 = vrot.slane %v420_v26, 1  ;;  %v575_v56 = vrot.slane %v421_v34, 1  ;;  %v1073_v16 = vunpack.c.l.bf16 %v4418_v33 }
 0x15a   : > { %v1978_v6 = vadd.f32 %v1946_v2, %v1847_v4  ;;  %v929_v50 = vrot.slane %v775_v48, 2  ;;  %v930_v44 = vrot.slane %v776_v55, 2  ;;  %v1203_v14 = vunpack.c.l.bf16 %v4450_v45  ;;  %v328_v48 = vld [vmem:[%s4709_s29 + $0xf4] sm:$0x1] }
 0x15b   : > { %v576_v17 = vsel %vm498_vm0, %v574_v41, %v575_v56  ;;  %v1106_v36 = vmul.f32 %v5421_v38, %v1073_v16  ;;  %v1261_v10 = vmul.f32 %v5427_v42, %v1073_v16  ;;  %v1557_v49 = vunpack.c.l.bf16 %v4482_v32  ;;  %v683_v41 = vld [vmem:[%s4709_s29 + $0xf0] sm:$0xe]  ;;  %v4417_v56 = vld [vmem:[%s4709_s29 + $0xf8] sm:$0xf] }
 0x15c   : > { %v2332_v63 = vadd.f32 %v2258_v23, %v1978_v6  ;;  %v652_v1 = vadd.f32 %v576_v17, %v297_v47  ;;  %v931_v60 = vsel %vm853_vm1, %v929_v50, %v930_v44  ;;  %v1262_v2 = vmul.f32 %v5427_v42, %v1203_v14  ;;  %v4578_v47 = vld [vmem:[%s4709_s29 + $0x108] sm:$0xe]  ;;  %v230_v23 = vld [vmem:[%s4709_s29 + $0xf0] sm:$0xf] }
 0x15d   : > { %v1414_v20 = vrot.slane %v1261_v10, 1  ;;  %v1615_v59 = vmul.f32 %v5436_v11, %v1557_v49  ;;  %v1616_v46 = vmul.f32 %v5436_v11, %v1203_v14  ;;  %v1912_v53 = vunpack.c.l.bf16 %v4514_v29 }
 0x15e   : > { %v5743_v38 = vadd.f32 %v2612_v52, %v2332_v63  ;;  %v1007_v33 = vadd.f32 %v931_v60, %v652_v1  ;;  %v1415_v21 = vrot.slane %v1262_v2, 1  ;;  %v2042_v26 = vunpack.c.l.bf16 %v4546_v15  ;;  %v4449_v15 = vld [vmem:[%s4709_s29 + $0xfc] sm:$0x1]  ;;  %v5766_v2 = vld [vmem:[%s8095_s1] ss:$0 sm:$0xff] }
 0x15f   : > { %v1768_v34 = vrot.slane %v1615_v59, 2  ;;  %v1769_v45 = vrot.slane %v1616_v46, 2  ;;  %v1945_v4 = vmul.f32 %v5446_v7, %v1912_v53  ;;  %v2100_v42 = vmul.f32 %v5452_v24, %v1912_v53 }
 0x160   : > { %8174 = vst [vmem:[#allocation21_spill] sm:$0xff] %v5743_v38  ;;  %v2726_v11 = vsel %vm2699_vm2, %v5743_v38, 0.0  ;;  %v1138_v55 = vadd.f32 %v1106_v36, %v1007_v33  ;;  %v1416_v32 = vsel %vm498_vm0, %v1414_v20, %v1415_v21  ;;  %v2101_v52 = vmul.f32 %v5452_v24, %v2042_v26  ;;  %v5779_v33 = vld [vmem:[%s8095_s1 + $0x2] ss:$0 sm:$0xff] }
 0x161   : > { %v2811_v16 = vsel %vm2732_vm3, %v2726_v11, 0.0  ;;  %v1770_v7 = vsel %vm853_vm1, %v1768_v34, %v1769_v45  ;;  %v2253_v6 = vrot.slane %v2100_v42, 1  ;;  %v2396_v50 = vunpack.c.l.bf16 %v4578_v47  ;;  %v5786_v34 = vld [vmem:[%s8095_s1 + $0x3] ss:$0 sm:$0xff] }
 0x162   : > { %2812 = vadd.xlane.f32.xlu2 %v2811_v16  ;;  %v1492_v44 = vadd.f32 %v1416_v32, %v1138_v55  ;;  %v2254_v14 = vrot.slane %v2101_v52, 1  ;;  %v2455_v29 = vmul.f32 %v5469_v28, %v2042_v26  ;;  %v263_v17 = vunpack.c.l.bf16 %v230_v23  ;;  %v4481_v23 = vld [vmem:[%s4709_s29 + $0xf8] sm:$0xe] }
 0x163   : > { %v2454_v36 = vmul.f32 %v5469_v28, %v2396_v50  ;;  %v361_v10 = vunpack.c.l.bf16 %v328_v48  ;;  %v716_v49 = vunpack.c.l.bf16 %v683_v41  ;;  %v1072_v24 = vunpack.c.l.bf16 %v4417_v56  ;;  %v5772_v28 = vld [vmem:[%s8095_s1 + $0x1] ss:$0 sm:$0xff]  ;;  %v5795_v56 = vld [vmem:[%s8095_s1 + $0x4] ss:$0 sm:$0xff] }
 0x164   : > { %v1846_v63 = vadd.f32 %v1770_v7, %v1492_v44  ;;  %v2255_v1 = vsel %vm498_vm0, %v2253_v6, %v2254_v14  ;;  %v2608_v60 = vrot.slane %v2455_v29, 2  ;;  %v296_v20 = vmul.f32 %v5766_v2, %v263_v17  ;;  %v4513_v48 = vld [vmem:[%s4709_s29 + $0x100] sm:$0xf]  ;;  %v5803_v44 = vld [vmem:[%s8095_s1 + $0x5] ss:$0 sm:$0xff] }
 0x165   : > { %v2607_v59 = vrot.slane %v2454_v36, 2  ;;  %v418_v46 = vmul.f32 %v5772_v28, %v263_v17  ;;  %v419_v53 = vmul.f32 %v5772_v28, %v361_v10  ;;  %v773_v21 = vmul.f32 %v5779_v33, %v716_v49  ;;  %v4545_v17 = vld [vmem:[%s4709_s29 + $0x104] sm:$0x1] }
 0x166   : > { %v1977_v26 = vadd.f32 %v1945_v4, %v1846_v63  ;;  %v774_v47 = vmul.f32 %v5779_v33, %v361_v10  ;;  %v1105_v45 = vmul.f32 %v5786_v34, %v1072_v24  ;;  %v1202_v42 = vunpack.c.l.bf16 %v4449_v15  ;;  %v4577_v15 = vld [vmem:[%s4709_s29 + $0x100] sm:$0xe] }
 0x167   : > { %v2609_v11 = vsel %vm853_vm1, %v2607_v59, %v2608_v60  ;;  %v571_v55 = vrot.slane %v418_v46, 1  ;;  %v572_v32 = vrot.slane %v419_v53, 1  ;;  %v926_v52 = vrot.slane %v773_v21, 2  ;;  %v5815_v59 = vld [vmem:[%s8095_s1 + $0x6] ss:$0 sm:$0xff] }
 0x168   : > { %v2331_v4 = vadd.f32 %v2255_v1, %v1977_v26  ;;  %v927_v41 = vrot.slane %v774_v47, 2  ;;  %v1259_v16 = vmul.f32 %v5795_v56, %v1072_v24  ;;  %v1260_v7 = vmul.f32 %v5795_v56, %v1202_v42  ;;  %v5824_v26 = vld [vmem:[%s8095_s1 + $0x7] ss:$0 sm:$0xff] }
 0x169   : > { %v573_v6 = vsel %vm498_vm0, %v571_v55, %v572_v32  ;;  %v1556_v50 = vunpack.c.l.bf16 %v4481_v23  ;;  %v1614_v14 = vmul.f32 %v5803_v44, %v1202_v42  ;;  %v1911_v29 = vunpack.c.l.bf16 %v4513_v48  ;;  %v235_v42 = vld [vmem:[%s4709_s29 + $0x118] sm:$0xf]  ;;  %v333_v23 = vld [vmem:[%s4709_s29 + $0x11c] sm:$0x1] }
 0x16a   : > { %v5807_v36 = vadd.f32 %v2609_v11, %v2331_v4  ;;  %v651_v10 = vadd.f32 %v573_v6, %v296_v20  ;;  %v928_v49 = vsel %vm853_vm1, %v926_v52, %v927_v41  ;;  %v1411_v24 = vrot.slane %v1259_v16, 1  ;;  %v688_v52 = vld [vmem:[%s4709_s29 + $0x118] sm:$0xe] }
 0x16b   : > { %v1412_v63 = vrot.slane %v1260_v7, 1  ;;  %v1613_v1 = vmul.f32 %v5803_v44, %v1556_v50  ;;  %v1766_v60 = vrot.slane %v1614_v14, 2  ;;  %v1944_v46 = vmul.f32 %v5815_v59, %v1911_v29  ;;  %v5836_v7 = vld [vmem:[%s8095_s1 + $0x8] ss:$0 sm:$0xff] }
 0x16c   : > { %8175 = vst [vmem:[#allocation22_spill] sm:$0xff] %v5807_v36  ;;  %v2725_v20 = vsel %vm2699_vm2, %v5807_v36, 0.0  ;;  %v1006_v53 = vadd.f32 %v928_v49, %v651_v10  ;;  %v2041_v21 = vunpack.c.l.bf16 %v4545_v17  ;;  %v2098_v47 = vmul.f32 %v5824_v26, %v1911_v29 }
 0x16d   : > { %v2808_v48 = vsel %vm2732_vm3, %v2725_v20, 0.0  ;;  %v1413_v11 = vsel %vm498_vm0, %v1411_v24, %v1412_v63  ;;  %v1765_v55 = vrot.slane %v1613_v1, 2  ;;  %v2395_v32 = vunpack.c.l.bf16 %v4577_v15  ;;  %v4422_v15 = vld [vmem:[%s4709_s29 + $0x120] sm:$0xf] }
 0x16e   : > { %2809 = vadd.xlane.f32.xlu1 %v2808_v48  ;;  %v1137_v4 = vadd.f32 %v1105_v45, %v1006_v53  ;;  %v2099_v41 = vmul.f32 %v5824_v26, %v2041_v21  ;;  %v2250_v16 = vrot.slane %v2098_v47, 1  ;;  %v2453_v6 = vmul.f32 %v5836_v7, %v2041_v21  ;;  %v4454_v21 = vld [vmem:[%s4709_s29 + $0x124] sm:$0x1]  ;;  %v4486_v48 = vld [vmem:[%s4709_s29 + $0x120] sm:$0xe] }
 0x16f   : > { %v1767_v50 = vsel %vm853_vm1, %v1765_v55, %v1766_v60  ;;  %v2452_v14 = vmul.f32 %v5836_v7, %v2395_v32  ;;  %v268_v29 = vunpack.c.l.bf16 %v235_v42  ;;  %v366_v17 = vunpack.c.l.bf16 %v333_v23 }
 0x170   : > { %v1491_v10 = vadd.f32 %v1413_v11, %v1137_v4  ;;  %v2251_v45 = vrot.slane %v2099_v41, 1  ;;  %v2605_v49 = vrot.slane %v2453_v6, 2  ;;  %v721_v24 = vunpack.c.l.bf16 %v688_v52 }
 0x171   : > { %v2604_v63 = vrot.slane %v2452_v14, 2  ;;  %v301_v1 = vmul.f32 %v5766_v2, %v268_v29  ;;  %v428_v20 = vmul.f32 %v5772_v28, %v268_v29  ;;  %v429_v53 = vmul.f32 %v5772_v28, %v366_v17  ;;  %v4518_v29 = vld [vmem:[%s4709_s29 + $0x128] sm:$0xf] }
 0x172   : > { %v1845_v60 = vadd.f32 %v1767_v50, %v1491_v10  ;;  %v2252_v47 = vsel %vm498_vm0, %v2250_v16, %v2251_v45  ;;  %v783_v42 = vmul.f32 %v5779_v33, %v721_v24  ;;  %v784_v23 = vmul.f32 %v5779_v33, %v366_v17  ;;  %v4550_v17 = vld [vmem:[%s4709_s29 + $0x12c] sm:$0x1] }
 0x173   : > { %v2606_v11 = vsel %vm853_vm1, %v2604_v63, %v2605_v49  ;;  %v586_v55 = vrot.slane %v428_v20, 1  ;;  %v587_v32 = vrot.slane %v429_v53, 1  ;;  %v1077_v52 = vunpack.c.l.bf16 %v4422_v15 }
 0x174   : > { %v1976_v4 = vadd.f32 %v1944_v46, %v1845_v60  ;;  %v941_v41 = vrot.slane %v783_v42, 2  ;;  %v942_v6 = vrot.slane %v784_v23, 2  ;;  %v1207_v14 = vunpack.c.l.bf16 %v4454_v21 }
 0x175   : > { %v588_v50 = vsel %vm498_vm0, %v586_v55, %v587_v32  ;;  %v1110_v16 = vmul.f32 %v5786_v34, %v1077_v52  ;;  %v1269_v10 = vmul.f32 %v5795_v56, %v1077_v52  ;;  %v1561_v45 = vunpack.c.l.bf16 %v4486_v48  ;;  %v234_v52 = vld [vmem:[%s4709_s29 + $0x110] sm:$0xf] }
 0x176   : > { %v2330_v24 = vadd.f32 %v2252_v47, %v1976_v4  ;;  %v656_v36 = vadd.f32 %v588_v50, %v301_v1  ;;  %v943_v49 = vsel %vm853_vm1, %v941_v41, %v942_v6  ;;  %v1270_v46 = vmul.f32 %v5795_v56, %v1207_v14  ;;  %v4582_v1 = vld [vmem:[%s4709_s29 + $0x128] sm:$0xe]  ;;  %v332_v4 = vld [vmem:[%s4709_s29 + $0x114] sm:$0x1] }
 0x177   : > { %v1426_v15 = vrot.slane %v1269_v10, 1  ;;  %v1623_v63 = vmul.f32 %v5803_v44, %v1561_v45  ;;  %v1624_v20 = vmul.f32 %v5803_v44, %v1207_v14  ;;  %v1916_v53 = vunpack.c.l.bf16 %v4518_v29  ;;  %v687_v14 = vld [vmem:[%s4709_s29 + $0x110] sm:$0xe]  ;;  %v4421_v29 = vld [vmem:[%s4709_s29 + $0x118] sm:$0xf] }
 0x178   : > { %v5860_v21 = vadd.f32 %v2606_v11, %v2330_v24  ;;  %v1011_v60 = vadd.f32 %v943_v49, %v656_v36  ;;  %v1427_v42 = vrot.slane %v1270_v46, 1  ;;  %v2046_v47 = vunpack.c.l.bf16 %v4550_v17 }
 0x179   : > { %v1780_v23 = vrot.slane %v1623_v63, 2  ;;  %v1781_v48 = vrot.slane %v1624_v20, 2  ;;  %v1949_v55 = vmul.f32 %v5815_v59, %v1916_v53  ;;  %v2108_v32 = vmul.f32 %v5824_v26, %v1916_v53 }
 0x17a   : > { %8176 = vst [vmem:[#allocation23_spill] sm:$0xff] %v5860_v21  ;;  %v2724_v41 = vsel %vm2699_vm2, %v5860_v21, 0.0  ;;  %v1142_v6 = vadd.f32 %v1110_v16, %v1011_v60  ;;  %v1428_v11 = vsel %vm498_vm0, %v1426_v15, %v1427_v42  ;;  %v2109_v36 = vmul.f32 %v5824_v26, %v2046_v47  ;;  %v4453_v60 = vld [vmem:[%s4709_s29 + $0x11c] sm:$0x1] }
 0x17b   : > { %v2805_v50 = vsel %vm2732_vm3, %v2724_v41, 0.0  ;;  %v1782_v10 = vsel %vm853_vm1, %v1780_v23, %v1781_v48  ;;  %v2265_v45 = vrot.slane %v2108_v32, 1  ;;  %v2400_v17 = vunpack.c.l.bf16 %v4582_v1 }
 0x17c   : > { %2806 = vadd.xlane.f32.xlu0 %v2805_v50  ;;  %v1496_v24 = vadd.f32 %v1428_v11, %v1142_v6  ;;  %v2266_v49 = vrot.slane %v2109_v36, 1  ;;  %v2463_v46 = vmul.f32 %v5836_v7, %v2046_v47  ;;  %v267_v63 = vunpack.c.l.bf16 %v234_v52 }
 0x17d   : > { %v2462_v16 = vmul.f32 %v5836_v7, %v2400_v17  ;;  %v365_v15 = vunpack.c.l.bf16 %v332_v4  ;;  %v720_v20 = vunpack.c.l.bf16 %v687_v14  ;;  %v1076_v53 = vunpack.c.l.bf16 %v4421_v29  ;;  %v4485_v14 = vld [vmem:[%s4709_s29 + $0x118] sm:$0xe]  ;;  %v4517_v29 = vld [vmem:[%s4709_s29 + $0x120] sm:$0xf] }
 0x17e   : > { %v1850_v42 = vadd.f32 %v1782_v10, %v1496_v24  ;;  %v2267_v41 = vsel %vm498_vm0, %v2265_v45, %v2266_v49  ;;  %v2620_v23 = vrot.slane %v2463_v46, 2  ;;  %v300_v1 = vmul.f32 %v5766_v2, %v267_v63 }
 0x17f   : > { %v2619_v48 = vrot.slane %v2462_v16, 2  ;;  %v426_v32 = vmul.f32 %v5772_v28, %v267_v63  ;;  %v427_v47 = vmul.f32 %v5772_v28, %v365_v15  ;;  %v781_v52 = vmul.f32 %v5779_v33, %v720_v20 }
 0x180   : > { %v1981_v6 = vadd.f32 %v1949_v55, %v1850_v42  ;;  %v782_v4 = vmul.f32 %v5779_v33, %v365_v15  ;;  %v1109_v11 = vmul.f32 %v5786_v34, %v1076_v53  ;;  %v1206_v36 = vunpack.c.l.bf16 %v4453_v60  ;;  %v4549_v60 = vld [vmem:[%s4709_s29 + $0x124] sm:$0x1] }
 0x181   : > { %v2621_v50 = vsel %vm853_vm1, %v2619_v48, %v2620_v23  ;;  %v583_v10 = vrot.slane %v426_v32, 1  ;;  %v584_v45 = vrot.slane %v427_v47, 1  ;;  %v938_v17 = vrot.slane %v781_v52, 2  ;;  %v4581_v32 = vld [vmem:[%s4709_s29 + $0x120] sm:$0xe] }
 0x182   : > { %v2335_v24 = vadd.f32 %v2267_v41, %v1981_v6  ;;  %v939_v49 = vrot.slane %v782_v4, 2  ;;  %v1267_v46 = vmul.f32 %v5795_v56, %v1076_v53  ;;  %v1268_v55 = vmul.f32 %v5795_v56, %v1206_v36 }
 0x183   : > { %v585_v63 = vsel %vm498_vm0, %v583_v10, %v584_v45  ;;  %v1560_v16 = vunpack.c.l.bf16 %v4485_v14  ;;  %v1622_v15 = vmul.f32 %v5803_v44, %v1206_v36  ;;  %v1915_v20 = vunpack.c.l.bf16 %v4517_v29 }
 0x184   : > { %v5894_v42 = vadd.f32 %v2621_v50, %v2335_v24  ;;  %v655_v23 = vadd.f32 %v585_v63, %v300_v1  ;;  %v940_v48 = vsel %vm853_vm1, %v938_v17, %v939_v49  ;;  %v1423_v41 = vrot.slane %v1267_v46, 1  ;;  %v233_v1 = vld [vmem:[%s4709_s29 + $0x108] sm:$0xf]  ;;  %v331_v50 = vld [vmem:[%s4709_s29 + $0x10c] sm:$0x1] }
 0x185   : > { %v1424_v53 = vrot.slane %v1268_v55, 1  ;;  %v1621_v47 = vmul.f32 %v5803_v44, %v1560_v16  ;;  %v1778_v52 = vrot.slane %v1622_v15, 2  ;;  %v1948_v6 = vmul.f32 %v5815_v59, %v1915_v20  ;;  %v686_v49 = vld [vmem:[%s4709_s29 + $0x108] sm:$0xe] }
 0x186   : > { %8177 = vst [vmem:[#allocation24_spill] sm:$0xff] %v5894_v42  ;;  %v2729_v4 = vsel %vm2699_vm2, %v5894_v42, 0.0  ;;  %v1010_v36 = vadd.f32 %v940_v48, %v655_v23  ;;  %v2045_v14 = vunpack.c.l.bf16 %v4549_v60  ;;  %v2106_v29 = vmul.f32 %v5824_v26, %v1915_v20  ;;  %v4516_v42 = vld [vmem:[%s4709_s29 + $0x118] sm:$0xf] }
 0x187   : > { %v2820_v10 = vsel %vm2732_vm3, %v2729_v4, 0.0  ;;  %v1425_v45 = vsel %vm498_vm0, %v1423_v41, %v1424_v53  ;;  %v1777_v17 = vrot.slane %v1621_v47, 2  ;;  %v2399_v24 = vunpack.c.l.bf16 %v4581_v32  ;;  %v4420_v47 = vld [vmem:[%s4709_s29 + $0x110] sm:$0xf] }
 0x188   : > { %2821 = vadd.xlane.f32.xlu2 %v2820_v10  ;;  %v1141_v46 = vadd.f32 %v1109_v11, %v1010_v36  ;;  %v2107_v55 = vmul.f32 %v5824_v26, %v2045_v14  ;;  %v2262_v63 = vrot.slane %v2106_v29, 1  ;;  %v2461_v16 = vmul.f32 %v5836_v7, %v2045_v14  ;;  %v4452_v29 = vld [vmem:[%s4709_s29 + $0x114] sm:$0x1] }
 0x189   : > { %v1779_v15 = vsel %vm853_vm1, %v1777_v17, %v1778_v52  ;;  %v2460_v20 = vmul.f32 %v5836_v7, %v2399_v24  ;;  %v266_v60 = vunpack.c.l.bf16 %v233_v1  ;;  %v364_v23 = vunpack.c.l.bf16 %v331_v50 }
 0x18a   : > { %v1495_v48 = vadd.f32 %v1425_v45, %v1141_v46  ;;  %v2263_v41 = vrot.slane %v2107_v55, 1  ;;  %v2617_v53 = vrot.slane %v2461_v16, 2  ;;  %v719_v32 = vunpack.c.l.bf16 %v686_v49  ;;  %v4484_v45 = vld [vmem:[%s4709_s29 + $0x110] sm:$0xe] }
 0x18b   : > { %v2616_v4 = vrot.slane %v2460_v20, 2  ;;  %v299_v11 = vmul.f32 %v5766_v2, %v266_v60  ;;  %v424_v36 = vmul.f32 %v5772_v28, %v266_v60  ;;  %v425_v14 = vmul.f32 %v5772_v28, %v364_v23 }
 0x18c   : > { %v1849_v52 = vadd.f32 %v1779_v15, %v1495_v48  ;;  %v2264_v10 = vsel %vm498_vm0, %v2262_v63, %v2263_v41  ;;  %v779_v1 = vmul.f32 %v5779_v33, %v719_v32  ;;  %v780_v50 = vmul.f32 %v5779_v33, %v364_v23  ;;  %v4548_v23 = vld [vmem:[%s4709_s29 + $0x11c] sm:$0x1] }
 0x18d   : > { %v2618_v17 = vsel %vm853_vm1, %v2616_v4, %v2617_v53  ;;  %v580_v24 = vrot.slane %v424_v36, 1  ;;  %v581_v49 = vrot.slane %v425_v14, 1  ;;  %v1075_v46 = vunpack.c.l.bf16 %v4420_v47 }
 0x18e   : > { %v1980_v55 = vadd.f32 %v1948_v6, %v1849_v52  ;;  %v935_v16 = vrot.slane %v779_v1, 2  ;;  %v936_v20 = vrot.slane %v780_v50, 2  ;;  %v1205_v60 = vunpack.c.l.bf16 %v4452_v29 }
 0x18f   : > { %v582_v15 = vsel %vm498_vm0, %v580_v24, %v581_v49  ;;  %v1108_v63 = vmul.f32 %v5786_v34, %v1075_v46  ;;  %v1265_v48 = vmul.f32 %v5795_v56, %v1075_v46  ;;  %v1559_v41 = vunpack.c.l.bf16 %v4484_v45  ;;  %v237_v46 = vld [vmem:[%s4709_s29 + $0x128] sm:$0xf] }
 0x190   : > { %v2334_v32 = vadd.f32 %v2264_v10, %v1980_v55  ;;  %v654_v39 = vadd.f32 %v582_v15, %v299_v11  ;;  %v937_v53 = vsel %vm853_vm1, %v935_v16, %v936_v20  ;;  %v1266_v6 = vmul.f32 %v5795_v56, %v1205_v60  ;;  %v4580_v11 = vld [vmem:[%s4709_s29 + $0x118] sm:$0xe]  ;;  %v335_v55 = vld [vmem:[%s4709_s29 + $0x12c] sm:$0x1]  ;;  %v690_v20 = vld [vmem:[%s4709_s29 + $0x128] sm:$0xe] }
 0x191   : > { %v1420_v47 = vrot.slane %v1265_v48, 1  ;;  %v1619_v4 = vmul.f32 %v5803_v44, %v1559_v41  ;;  %v1620_v36 = vmul.f32 %v5803_v44, %v1205_v60  ;;  %v1914_v14 = vunpack.c.l.bf16 %v4516_v42  ;;  %v4424_v60 = vld [vmem:[%s4709_s29 + $0x130] sm:$0xf] }
 0x192   : > { %v5932_v29 = vadd.f32 %v2618_v17, %v2334_v32  ;;  %v1009_v52 = vadd.f32 %v937_v53, %v654_v39  ;;  %v1421_v1 = vrot.slane %v1266_v6, 1  ;;  %v2044_v10 = vunpack.c.l.bf16 %v4548_v23 }
 0x193   : > { %v1774_v50 = vrot.slane %v1619_v4, 2  ;;  %v1775_v45 = vrot.slane %v1620_v36, 2  ;;  %v1947_v24 = vmul.f32 %v5815_v59, %v1914_v14  ;;  %v2104_v49 = vmul.f32 %v5824_v26, %v1914_v14 }
 0x194   : > { %8178 = vst [vmem:[#allocation25_spill] sm:$0xff] %v5932_v29  ;;  %v2728_v42 = vsel %vm2699_vm2, %v5932_v29, 0.0  ;;  %v1140_v16 = vadd.f32 %v1108_v63, %v1009_v52  ;;  %v1422_v17 = vsel %vm498_vm0, %v1420_v47, %v1421_v1  ;;  %v2105_v39 = vmul.f32 %v5824_v26, %v2044_v10  ;;  %v4456_v52 = vld [vmem:[%s4709_s29 + $0x134] sm:$0x1] }
 0x195   : > { %v2817_v15 = vsel %vm2732_vm3, %v2728_v42, 0.0  ;;  %v1776_v48 = vsel %vm853_vm1, %v1774_v50, %v1775_v45  ;;  %v2259_v41 = vrot.slane %v2104_v49, 1  ;;  %v2398_v23 = vunpack.c.l.bf16 %v4580_v11 }
 0x196   : > { %2818 = vadd.xlane.f32.xlu1 %v2817_v15  ;;  %v1494_v32 = vadd.f32 %v1422_v17, %v1140_v16  ;;  %v2260_v53 = vrot.slane %v2105_v39, 1  ;;  %v2459_v6 = vmul.f32 %v5836_v7, %v2044_v10  ;;  %v270_v4 = vunpack.c.l.bf16 %v237_v46 }
 0x197   : > { %v2458_v63 = vmul.f32 %v5836_v7, %v2398_v23  ;;  %v368_v47 = vunpack.c.l.bf16 %v335_v55  ;;  %v723_v36 = vunpack.c.l.bf16 %v690_v20  ;;  %v1079_v14 = vunpack.c.l.bf16 %v4424_v60  ;;  %v4488_v20 = vld [vmem:[%s4709_s29 + $0x130] sm:$0xe]  ;;  %v4520_v60 = vld [vmem:[%s4709_s29 + $0x138] sm:$0xf] }
 0x198   : > { %v1848_v1 = vadd.f32 %v1776_v48, %v1494_v32  ;;  %v2261_v42 = vsel %vm498_vm0, %v2259_v41, %v2260_v53  ;;  %v2614_v50 = vrot.slane %v2459_v6, 2  ;;  %v303_v11 = vmul.f32 %v5766_v2, %v270_v4 }
 0x199   : > { %v2613_v45 = vrot.slane %v2458_v63, 2  ;;  %v432_v49 = vmul.f32 %v5772_v28, %v270_v4  ;;  %v433_v10 = vmul.f32 %v5772_v28, %v368_v47  ;;  %v787_v46 = vmul.f32 %v5779_v33, %v723_v36 }
 0x19a   : > { %v1979_v16 = vadd.f32 %v1947_v24, %v1848_v1  ;;  %v788_v55 = vmul.f32 %v5779_v33, %v368_v47  ;;  %v1112_v17 = vmul.f32 %v5786_v34, %v1079_v14  ;;  %v1209_v39 = vunpack.c.l.bf16 %v4456_v52  ;;  %v4552_v52 = vld [vmem:[%s4709_s29 + $0x13c] sm:$0x1] }
 0x19b   : > { %v2615_v15 = vsel %vm853_vm1, %v2613_v45, %v2614_v50  ;;  %v592_v48 = vrot.slane %v432_v49, 1  ;;  %v593_v41 = vrot.slane %v433_v10, 1  ;;  %v947_v23 = vrot.slane %v787_v46, 2 }
 0x19c   : > { %v2333_v32 = vadd.f32 %v2261_v42, %v1979_v16  ;;  %v948_v53 = vrot.slane %v788_v55, 2  ;;  %v1273_v6 = vmul.f32 %v5795_v56, %v1079_v14  ;;  %v1274_v24 = vmul.f32 %v5795_v56, %v1209_v39  ;;  %v4584_v42 = vld [vmem:[%s4709_s29 + $0x138] sm:$0xe] }
 0x19d   : > { %v594_v4 = vsel %vm498_vm0, %v592_v48, %v593_v41  ;;  %v1563_v63 = vunpack.c.l.bf16 %v4488_v20  ;;  %v1628_v47 = vmul.f32 %v5803_v44, %v1209_v39  ;;  %v1918_v36 = vunpack.c.l.bf16 %v4520_v60 }
 0x19e   : > { %v5966_v1 = vadd.f32 %v2615_v15, %v2333_v32  ;;  %v658_v50 = vadd.f32 %v594_v4, %v303_v11  ;;  %v949_v45 = vsel %vm853_vm1, %v947_v23, %v948_v53  ;;  %v1432_v49 = vrot.slane %v1273_v6, 1  ;;  %v236_v11 = vld [vmem:[%s4709_s29 + $0x120] sm:$0xf]  ;;  %v334_v4 = vld [vmem:[%s4709_s29 + $0x124] sm:$0x1] }
 0x19f   : > { %v1433_v10 = vrot.slane %v1274_v24, 1  ;;  %v1627_v14 = vmul.f32 %v5803_v44, %v1563_v63  ;;  %v1787_v46 = vrot.slane %v1628_v47, 2  ;;  %v1951_v16 = vmul.f32 %v5815_v59, %v1918_v36 }
 0x1a0   : > { %8179 = vst [vmem:[#allocation26_spill] sm:$0xff] %v5966_v1  ;;  %v2727_v55 = vsel %vm2699_vm2, %v5966_v1, 0.0  ;;  %v1013_v39 = vadd.f32 %v949_v45, %v658_v50  ;;  %v2048_v20 = vunpack.c.l.bf16 %v4552_v52  ;;  %v2112_v60 = vmul.f32 %v5824_v26, %v1918_v36  ;;  %v689_v52 = vld [vmem:[%s4709_s29 + $0x120] sm:$0xe] }
 0x1a1   : > { %v2814_v15 = vsel %vm2732_vm3, %v2727_v55, 0.0  ;;  %v1434_v48 = vsel %vm498_vm0, %v1432_v49, %v1433_v10  ;;  %v1786_v41 = vrot.slane %v1627_v14, 2  ;;  %v2402_v23 = vunpack.c.l.bf16 %v4584_v42  ;;  %v4423_v42 = vld [vmem:[%s4709_s29 + $0x128] sm:$0xf] }
 0x1a2   : > { %2815 = vadd.xlane.f32.xlu0 %v2814_v15  ;;  %v1144_v32 = vadd.f32 %v1112_v17, %v1013_v39  ;;  %v2113_v53 = vmul.f32 %v5824_v26, %v2048_v20  ;;  %v2271_v6 = vrot.slane %v2112_v60, 1  ;;  %v2467_v24 = vmul.f32 %v5836_v7, %v2048_v20  ;;  %v4455_v39 = vld [vmem:[%s4709_s29 + $0x12c] sm:$0x1] }
 0x1a3   : > { %v1788_v63 = vsel %vm853_vm1, %v1786_v41, %v1787_v46  ;;  %v2466_v47 = vmul.f32 %v5836_v7, %v2402_v23  ;;  %v269_v36 = vunpack.c.l.bf16 %v236_v11  ;;  %v2896_v17 = vsel %vm2895_vm4, %v4862_v8, 0.0 }
 0x1a4   : > { %v1498_v50 = vadd.f32 %v1434_v48, %v1144_v32  ;;  %v2272_v45 = vrot.slane %v2113_v53, 1  ;;  %v2626_v49 = vrot.slane %v2467_v24, 2  ;;  %v2928_v14 = vsel %vm2732_vm3, %v2896_v17, 0.0  ;;  %v4487_v53 = vld [vmem:[%s4709_s29 + $0x128] sm:$0xe] }
 0x1a5   : > { %v2625_v10 = vrot.slane %v2466_v47, 2  ;;  %v302_v46 = vmul.f32 %v5766_v2, %v269_v36  ;;  %v367_v55 = vunpack.c.l.bf16 %v334_v4  ;;  %2929 = vadd.xlane.f32.xlu2 %v2928_v14  ;;  %v430_v11 = vmul.f32 %v5772_v28, %v269_v36  ;;  %v4519_v47 = vld [vmem:[%s4709_s29 + $0x130] sm:$0xf] }
 0x1a6   : > { %v1852_v20 = vadd.f32 %v1788_v63, %v1498_v50  ;;  %v2273_v60 = vsel %vm498_vm0, %v2271_v6, %v2272_v45  ;;  %v722_v15 = vunpack.c.l.bf16 %v689_v52  ;;  %v1078_v32 = vunpack.c.l.bf16 %v4423_v42  ;;  %v4551_v42 = vld [vmem:[%s4709_s29 + $0x134] sm:$0x1] }
 0x1a7   : > { %v2627_v48 = vsel %vm853_vm1, %v2625_v10, %v2626_v49  ;;  %v431_v41 = vmul.f32 %v5772_v28, %v367_v55  ;;  %v786_v23 = vmul.f32 %v5779_v33, %v367_v55  ;;  %v589_v24 = vrot.slane %v430_v11, 1  ;;  %v4583_v11 = vld [vmem:[%s4709_s29 + $0x130] sm:$0xe] }
 0x1a8   : > { %v1983_v2 = vadd.f32 %v1951_v16, %v1852_v20  ;;  %v785_v4 = vmul.f32 %v5779_v33, %v722_v15  ;;  %v1208_v63 = vunpack.c.l.bf16 %v4455_v39  ;;  %v1111_v36 = vmul.f32 %v5786_v34, %v1078_v32 }
 0x1a9   : > { %v590_v6 = vrot.slane %v431_v41, 1  ;;  %v945_v50 = vrot.slane %v786_v23, 2  ;;  %v1271_v52 = vmul.f32 %v5795_v56, %v1078_v32  ;;  %v1562_v17 = vunpack.c.l.bf16 %v4487_v53 }
 0x1aa   : > { %v2337_v45 = vadd.f32 %v2273_v60, %v1983_v2  ;;  %v944_v28 = vrot.slane %v785_v4, 2  ;;  %v1272_v49 = vmul.f32 %v5795_v56, %v1208_v63  ;;  %v1626_v33 = vmul.f32 %v5803_v44, %v1208_v63 }
 0x1ab   : > { %v591_v16 = vsel %vm498_vm0, %v589_v24, %v590_v6  ;;  %v1429_v10 = vrot.slane %v1271_v52, 1  ;;  %v1917_v14 = vunpack.c.l.bf16 %v4519_v47  ;;  %v1625_v60 = vmul.f32 %v5803_v44, %v1562_v17 }
 0x1ac   : > { %v6007_v55 = vadd.f32 %v2627_v48, %v2337_v45  ;;  %v657_v39 = vadd.f32 %v591_v16, %v302_v46  ;;  %v946_v20 = vsel %vm853_vm1, %v944_v28, %v945_v50  ;;  %v1430_v34 = vrot.slane %v1272_v49, 1 }
 0x1ad   : > { %v1784_v15 = vrot.slane %v1626_v33, 2  ;;  %v2047_v41 = vunpack.c.l.bf16 %v4551_v42  ;;  %v2110_v53 = vmul.f32 %v5824_v26, %v1917_v14  ;;  %v1783_v46 = vrot.slane %v1625_v60, 2 }
 0x1ae   : > { %v2731_v56 = vsel %vm2699_vm2, %v6007_v55, 0.0  ;;  %v1012_v23 = vadd.f32 %v946_v20, %v657_v39  ;;  %v1431_v32 = vsel %vm498_vm0, %v1429_v10, %v1430_v34  ;;  %v2401_v24 = vunpack.c.l.bf16 %v4583_v11 }
 0x1af   : > { %v2826_v48 = vsel %vm2732_vm3, %v2731_v56, 0.0  ;;  %v2111_v2 = vmul.f32 %v5824_v26, %v2047_v41  ;;  %v2465_v44 = vmul.f32 %v5836_v7, %v2047_v41  ;;  %v1785_v63 = vsel %vm853_vm1, %v1783_v46, %v1784_v15  ;;  %v6050_v56 = vpop.xlane.xlu2 %2746 }
 0x1b0   : > { %2827 = vadd.xlane.f32.xlu1 %v2826_v48  ;;  %v1143_v4 = vadd.f32 %v1111_v36, %v1012_v23  ;;  %v2268_v47 = vrot.slane %v2110_v53, 1  ;;  %v2464_v50 = vmul.f32 %v5836_v7, %v2401_v24  ;;  %v1950_v45 = vmul.f32 %v5815_v59, %v1917_v14  ;;  %v6052_v23 = vpop.xlane.xlu1 %2740 }
 0x1b1   : > { %v2269_v6 = vrot.slane %v2111_v2, 1  ;;  %v2898_v28 = vsel %vm2895_vm4, %v4823_v51, 0.0  ;;  %v2899_v26 = vsel %vm2895_vm4, %v4933_v30, 0.0  ;;  %v2623_v49 = vrot.slane %v2465_v44, 2 }
 0x1b2   : > { %v1497_v52 = vadd.f32 %v1431_v32, %v1143_v4  ;;  %v2622_v36 = vrot.slane %v2464_v50, 2  ;;  %v2937_v17 = vsel %vm2732_vm3, %v2899_v26, 0.0  ;;  %v2934_v7 = vsel %vm2732_vm3, %v2898_v28, 0.0 }
 0x1b3   : > { %2938 = vadd.xlane.f32.xlu2 %v2937_v17  ;;  %v2270_v16 = vsel %vm498_vm0, %v2268_v47, %v2269_v6  ;;  %v2902_v59 = vsel %vm2895_vm4, %v5122_v31, 0.0  ;;  %v2901_v34 = vsel %vm2895_vm4, %v4895_v13, 0.0  ;;  %v2905_v41 = vsel %vm2895_vm4, %v5228_v27, 0.0 }
 0x1b4   : > { %v1851_v42 = vadd.f32 %v1785_v63, %v1497_v52  ;;  %v2624_v33 = vsel %vm853_vm1, %v2622_v36, %v2623_v49  ;;  %v2946_v39 = vsel %vm2732_vm3, %v2902_v59, 0.0  ;;  %v2943_v15 = vsel %vm2732_vm3, %v2901_v34, 0.0 }
 0x1b5   : > { %v2897_v32 = vsel %vm2895_vm4, %v4967_v40, 0.0  ;;  %v2955_v53 = vsel %vm2732_vm3, %v2905_v41, 0.0  ;;  %v2904_v48 = vsel %vm2895_vm4, %v5005_v3, 0.0  ;;  %v2908_v24 = vsel %vm2895_vm4, %v5338_v5, 0.0 }
 0x1b6   : > { %v1982_v10 = vadd.f32 %v1950_v45, %v1851_v42  ;;  %v2931_v46 = vsel %vm2732_vm3, %v2897_v32, 0.0  ;;  %v2952_v2 = vsel %vm2732_vm3, %v2904_v48, 0.0  ;;  %v2900_v44 = vsel %vm2895_vm4, %v4794_v58, 0.0  ;;  %v6079_v45 = vpop.xlane.xlu0 %2734 }
 0x1b7   : > { %v6066_v4 = vpop.xlane.xlu2 %2749  ;;  %v2964_v63 = vsel %vm2732_vm3, %v2908_v24, 0.0  ;;  %v2907_v6 = vsel %vm2895_vm4, %v5156_v43, 0.0  ;;  %v2940_v50 = vsel %vm2732_vm3, %v2900_v44, 0.0  ;;  %v2911_v28 = vsel %vm2895_vm4, %v5489_v22, 0.0 }
 0x1b8   : > { %v2336_v14 = vadd.f32 %v2270_v16, %v1982_v10  ;;  %2935 = vadd.xlane.f32.xlu1 %v2934_v7  ;;  %v6072_v47 = vpop.xlane.xlu1 %2743  ;;  %v2961_v52 = vsel %vm2732_vm3, %v2907_v6, 0.0  ;;  %v2903_v36 = vsel %vm2895_vm4, %v5069_v62, 0.0  ;;  %v2973_v49 = vsel %vm2732_vm3, %v2911_v28, 0.0 }
 0x1b9   : > { %v2910_v17 = vsel %vm2895_vm4, %v5266_v61, 0.0  ;;  %v2949_v42 = vsel %vm2732_vm3, %v2903_v36, 0.0  ;;  %v2914_v10 = vsel %vm2895_vm4, %v5599_v57, 0.0  ;;  %v2913_v34 = vsel %vm2895_vm4, %v5372_v12, 0.0 }
 0x1ba   : > { %v6037_v20 = vadd.f32 %v2624_v33, %v2336_v14  ;;  %v2970_v7 = vsel %vm2732_vm3, %v2910_v17, 0.0  ;;  %v2906_v14 = vsel %vm2895_vm4, %v5194_v9, 0.0  ;;  %v2917_v41 = vsel %vm2895_vm4, %v5705_v18, 0.0 }
 0x1bb   : > { %2947 = vadd.xlane.f32.xlu2 %v2946_v39  ;;  %v2982_v39 = vsel %vm2732_vm3, %v2914_v10, 0.0  ;;  %v2909_v32 = vsel %vm2895_vm4, %v5300_v25, 0.0  ;;  %v2991_v48 = vsel %vm2732_vm3, %v2917_v41, 0.0  ;;  %v2919_v28 = vsel %vm2895_vm4, %v5633_v35, 0.0 }
 0x1bc   : > { %8180 = vst [vmem:[#allocation27_spill] sm:$0xff] %v6037_v20  ;;  %v2730_v11 = vsel %vm2699_vm2, %v6037_v20, 0.0  ;;  %v2967_v24 = vsel %vm2732_vm3, %v2909_v32, 0.0  ;;  %v2915_v10 = vsel %vm2895_vm4, %v5561_v54, 0.0 }
 0x1bd   : > { %v2823_v60 = vsel %vm2732_vm3, %v2730_v11, 0.0  ;;  %v2958_v11 = vsel %vm2732_vm3, %v2906_v14, 0.0 }
 0x1be   : > { %2824 = vadd.xlane.f32.xlu0 %v2823_v60  ;;  %v6100_v59 = vpop.xlane.xlu0 %2737  ;;  %v2979_v60 = vsel %vm2732_vm3, %v2913_v34, 0.0  ;;  %v2922_v34 = vsel %vm2895_vm4, %v5743_v38, 0.0 }
 0x1bf   : > { %v6084_v26 = vpop.xlane.xlu2 %2758  ;;  %v3006_v41 = vsel %vm2732_vm3, %v2922_v34, 0.0 }
 0x1c0   : > { %2944 = vadd.xlane.f32.xlu1 %v2943_v15  ;;  %8181 = vst [vmem:[#allocation28_spill] sm:$0xff] %v6084_v26  ;;  %v6094_v16 = vpop.xlane.xlu1 %2755 }
 0x1c3   : > { %2956 = vadd.xlane.f32.xlu2 %v2955_v53 }
 0x1c6   : > { %2932 = vadd.xlane.f32.xlu0 %v2931_v46  ;;  %v6121_v53 = vpop.xlane.xlu0 %2752 }
 0x1c7   : > { %v6102_v33 = vpop.xlane.xlu2 %2767 }
 0x1c8   : > { %2953 = vadd.xlane.f32.xlu1 %v2952_v2  ;;  %8182 = vst [vmem:[#allocation29_spill] sm:$0xff] %v6102_v33  ;;  %v6113_v15 = vpop.xlane.xlu1 %2764  ;;  %v2916_v2 = vsel %vm2895_vm4, %v5527_v37, 0.0 }
 0x1c9   : > { %v2988_v44 = vsel %vm2732_vm3, %v2916_v2, 0.0  ;;  %v8184_v2 = vld [vmem:[#allocation19_spill] sm:$0xff] }
 0x1cb   : > { %2965 = vadd.xlane.f32.xlu2 %v2964_v63  ;;  %v2920_v63 = vsel %vm2895_vm4, %v5860_v21, 0.0 }
 0x1ce   : > { %2941 = vadd.xlane.f32.xlu0 %v2940_v50  ;;  %v2912_v50 = vsel %vm2895_vm4, %v5440_v0, 0.0 }
 0x1cf   : > { %v6124_v46 = vpop.xlane.xlu2 %2776  ;;  %v2976_v36 = vsel %vm2732_vm3, %v2912_v50, 0.0 }
 0x1d0   : > { %2962 = vadd.xlane.f32.xlu1 %v2961_v52  ;;  %v6134_v6 = vpop.xlane.xlu1 %2773  ;;  %v3000_v52 = vsel %vm2732_vm3, %v2920_v63, 0.0  ;;  %v8185_v63 = vld [vmem:[#allocation24_spill] sm:$0xff] }
 0x1d1   : > { %v2925_v50 = vsel %vm2895_vm4, %v8185_v63, 0.0 }
 0x1d3   : > { %2974 = vadd.xlane.f32.xlu2 %v2973_v49  ;;  %v6144_v49 = vpop.xlane.xlu0 %2761 }
 0x1d6   : > { %2950 = vadd.xlane.f32.xlu0 %v2949_v42  ;;  %v2997_v42 = vsel %vm2732_vm3, %v2919_v28, 0.0 }
 0x1d7   : > { %v6146_v17 = vpop.xlane.xlu2 %2785 }
 0x1d8   : > { %2971 = vadd.xlane.f32.xlu1 %v2970_v7  ;;  %v2923_v7 = vsel %vm2895_vm4, %v5966_v1, 0.0 }
 0x1d9   : > { %v3009_v14 = vsel %vm2732_vm3, %v2923_v7, 0.0 }
 0x1db   : > { %2983 = vadd.xlane.f32.xlu2 %v2982_v39  ;;  %v6156_v39 = vpop.xlane.xlu1 %2782 }
 0x1de   : > { %2959 = vadd.xlane.f32.xlu0 %v2958_v11  ;;  %v2985_v11 = vsel %vm2732_vm3, %v2915_v10, 0.0 }
 0x1df   : > { %v6165_v32 = vpop.xlane.xlu2 %2794 }
 0x1e0   : > { %2980 = vadd.xlane.f32.xlu1 %v2979_v60  ;;  %v6162_v60 = vpop.xlane.xlu0 %2770 }
 0x1e1   : > { %8183 = vst [vmem:[#allocation30_spill] sm:$0xff] %v6162_v60 }
 0x1e3   : > { %2992 = vadd.xlane.f32.xlu2 %v2991_v48  ;;  %v2926_v48 = vsel %vm2895_vm4, %v6037_v20, 0.0  ;;  %v6178_v28 = vpop.xlane.xlu1 %2791 }
 0x1e6   : > { %2968 = vadd.xlane.f32.xlu0 %v2967_v24  ;;  %v2918_v24 = vsel %vm2895_vm4, %v8184_v2, 0.0 }
 0x1e7   : > { %v6187_v10 = vpop.xlane.xlu2 %2803 }
 0x1e8   : > { %2989 = vadd.xlane.f32.xlu1 %v2988_v44  ;;  %v3018_v44 = vsel %vm2732_vm3, %v2926_v48, 0.0  ;;  %v6185_v7 = vpop.xlane.xlu0 %2779 }
 0x1eb   : > { %3001 = vadd.xlane.f32.xlu2 %v3000_v52  ;;  %v2994_v52 = vsel %vm2732_vm3, %v2918_v24, 0.0 }
 0x1ee   : > { %2977 = vadd.xlane.f32.xlu0 %v2976_v36  ;;  %v3015_v36 = vsel %vm2732_vm3, %v2925_v50, 0.0  ;;  %v3095_v50 = vsel %vm3090_vm5, %v4794_v58, 0.0 }
 0x1f0   : > { %2998 = vadd.xlane.f32.xlu1 %v2997_v42  ;;  %v3092_v42 = vsel %vm3090_vm5, %v4967_v40, 0.0 }
 0x1f3   : > { %3010 = vadd.xlane.f32.xlu2 %v3009_v14  ;;  %v8186_v14 = vld [vmem:[#allocation22_spill] sm:$0xff] }
 0x1f4   : > { %v2921_v34 = vsel %vm2895_vm4, %v8186_v14, 0.0 }
 0x1f5   : > { %v3003_v48 = vsel %vm2732_vm3, %v2921_v34, 0.0  ;;  %v6209_v34 = vpop.xlane.xlu2 %2812 }
 0x1f6   : > { %2986 = vadd.xlane.f32.xlu0 %v2985_v11  ;;  %v3126_v11 = vsel %vm2732_vm3, %v3092_v42, 0.0  ;;  %v3135_v42 = vsel %vm2732_vm3, %v3095_v50, 0.0  ;;  %8187 = vst [vmem:[#allocation31_spill] sm:$0xff] %v6209_v34  ;;  %v2927_v50 = vsel %vm2895_vm4, %v6007_v55, 0.0 }
 0x1f8   : > { %3007 = vadd.xlane.f32.xlu1 %v3006_v41  ;;  %v3091_v41 = vsel %vm3090_vm5, %v4862_v8, 0.0 }
 0x1f9   : > { %v3123_v24 = vsel %vm2732_vm3, %v3091_v41, 0.0 }
 0x1fb   : > { %3019 = vadd.xlane.f32.xlu2 %v3018_v44  ;;  %v6198_v44 = vpop.xlane.xlu1 %2800 }
 0x1fe   : > { %2995 = vadd.xlane.f32.xlu0 %v2994_v52  ;;  %v2924_v52 = vsel %vm2895_vm4, %v5932_v29, 0.0 }
 0x1ff   : > { %v3012_v41 = vsel %vm2732_vm3, %v2924_v52, 0.0  ;;  %v3097_v52 = vsel %vm3090_vm5, %v5122_v31, 0.0 }
 0x200   : > { %3016 = vadd.xlane.f32.xlu1 %v3015_v36  ;;  %v6206_v36 = vpop.xlane.xlu0 %2788  ;;  %v3141_v60 = vsel %vm2732_vm3, %v3097_v52, 0.0 }
 0x203   : > { %3127 = vadd.xlane.f32.xlu2 %v3126_v11  ;;  %v3094_v11 = vsel %vm3090_vm5, %v4933_v30, 0.0  ;;  %v6219_v33 = vpop.xlane.xlu1 %2809 }
 0x204   : > { %8188 = vst [vmem:[#allocation32_spill] sm:$0xff] %v6219_v33 }
 0x206   : > { %3004 = vadd.xlane.f32.xlu0 %v3003_v48  ;;  %v3132_v48 = vsel %vm2732_vm3, %v3094_v11, 0.0 }
 0x208   : > { %3124 = vadd.xlane.f32.xlu1 %v3123_v24  ;;  %v3098_v24 = vsel %vm3090_vm5, %v5069_v62, 0.0  ;;  %v6229_v11 = vpop.xlane.xlu0 %2797 }
 0x209   : > { %v3144_v26 = vsel %vm2732_vm3, %v3098_v24, 0.0  ;;  %8189 = vst [vmem:[#allocation33_spill] sm:$0xff] %v6229_v11  ;;  %v3093_v24 = vsel %vm3090_vm5, %v4823_v51, 0.0 }
 0x20a   : > { %v3129_v52 = vsel %vm2732_vm3, %v3093_v24, 0.0  ;;  %v3103_v24 = vsel %vm3090_vm5, %v5338_v5, 0.0 }
 0x20b   : > { %3136 = vadd.xlane.f32.xlu2 %v3135_v42  ;;  %v3021_v42 = vsel %vm2732_vm3, %v2927_v50, 0.0  ;;  %v6240_v33 = vpop.xlane.xlu1 %2818 }
 0x20c   : > { %8191 = vst [vmem:[#allocation35_spill] sm:$0xff] %v6240_v33 }
 0x20e   : > { %3013 = vadd.xlane.f32.xlu0 %v3012_v41  ;;  %v6231_v41 = vpop.xlane.xlu2 %2821 }
 0x20f   : > { %8190 = vst [vmem:[#allocation34_spill] sm:$0xff] %v6231_v41 }
 0x210   : > { %3133 = vadd.xlane.f32.xlu1 %v3132_v48  ;;  %v3101_v48 = vsel %vm3090_vm5, %v5194_v9, 0.0 }
 0x211   : > { %v3153_v50 = vsel %vm2732_vm3, %v3101_v48, 0.0  ;;  %v3096_v48 = vsel %vm3090_vm5, %v4895_v13, 0.0 }
 0x213   : > { %3145 = vadd.xlane.f32.xlu2 %v3144_v26  ;;  %v3100_v26 = vsel %vm3090_vm5, %v5228_v27, 0.0 }
 0x214   : > { %v3150_v41 = vsel %vm2732_vm3, %v3100_v26, 0.0 }
 0x216   : > { %3022 = vadd.xlane.f32.xlu0 %v3021_v42  ;;  %v6247_v42 = vpop.xlane.xlu0 %2806 }
 0x217   : > { %8192 = vst [vmem:[#allocation36_spill] sm:$0xff] %v6247_v42 }
 0x218   : > { %3142 = vadd.xlane.f32.xlu1 %v3141_v60  ;;  %v6250_v34 = vpop.xlane.xlu2 %2929  ;;  %v3104_v60 = vsel %vm3090_vm5, %v5300_v25, 0.0 }
 0x219   : > { %8193 = vst [vmem:[#allocation37_spill] sm:$0xff] %v6250_v34  ;;  %v3162_v33 = vsel %vm2732_vm3, %v3104_v60, 0.0  ;;  %v3107_v34 = vsel %vm3090_vm5, %v5440_v0, 0.0  ;;  %v3099_v60 = vsel %vm3090_vm5, %v5005_v3, 0.0 }
 0x21b   : > { %3154 = vadd.xlane.f32.xlu2 %v3153_v50  ;;  %v3138_v50 = vsel %vm2732_vm3, %v3096_v48, 0.0  ;;  %v3171_v48 = vsel %vm2732_vm3, %v3107_v34, 0.0  ;;  %v3102_v34 = vsel %vm3090_vm5, %v5156_v43, 0.0 }
 0x21e   : > { %3130 = vadd.xlane.f32.xlu0 %v3129_v52  ;;  %v3159_v52 = vsel %vm2732_vm3, %v3103_v24, 0.0  ;;  %v6269_v42 = vpop.xlane.xlu0 %2815  ;;  %v3147_v24 = vsel %vm2732_vm3, %v3099_v60, 0.0 }
 0x21f   : > { %8195 = vst [vmem:[#allocation39_spill] sm:$0xff] %v6269_v42 }
 0x220   : > { %3151 = vadd.xlane.f32.xlu1 %v3150_v41 }
 0x223   : > { %v6263_v26 = vpop.xlane.xlu1 %2827  ;;  %3163 = vadd.xlane.f32.xlu2 %v3162_v33  ;;  %v3106_v33 = vsel %vm3090_vm5, %v5489_v22, 0.0 }
 0x224   : > { %8194 = vst [vmem:[#allocation38_spill] sm:$0xff] %v6263_v26  ;;  %v3168_v26 = vsel %vm2732_vm3, %v3106_v33, 0.0  ;;  %v3156_v33 = vsel %vm2732_vm3, %v3102_v34, 0.0 }
 0x226   : > { %3139 = vadd.xlane.f32.xlu0 %v3138_v50  ;;  %v6271_v41 = vpop.xlane.xlu2 %2938 }
 0x227   : > { %8196 = vst [vmem:[#allocation40_spill] sm:$0xff] %v6271_v41  ;;  %v3110_v41 = vsel %vm3090_vm5, %v5561_v54, 0.0 }
 0x228   : > { %3160 = vadd.xlane.f32.xlu1 %v3159_v52  ;;  %v3180_v60 = vsel %vm2732_vm3, %v3110_v41, 0.0  ;;  %v3105_v41 = vsel %vm3090_vm5, %v5266_v61, 0.0 }
 0x22b   : > { %v6281_v50 = vpop.xlane.xlu1 %2935  ;;  %3172 = vadd.xlane.f32.xlu2 %v3171_v48  ;;  %v3109_v48 = vsel %vm3090_vm5, %v5599_v57, 0.0 }
 0x22c   : > { %8197 = vst [vmem:[#allocation41_spill] sm:$0xff] %v6281_v50 }
 0x22e   : > { %3148 = vadd.xlane.f32.xlu0 %v3147_v24  ;;  %v6287_v42 = vpop.xlane.xlu2 %2947 }
 0x22f   : > { %8198 = vst [vmem:[#allocation42_spill] sm:$0xff] %v6287_v42  ;;  %v3177_v42 = vsel %vm2732_vm3, %v3109_v48, 0.0  ;;  %v3165_v48 = vsel %vm2732_vm3, %v3105_v41, 0.0 }
 0x230   : > { %3169 = vadd.xlane.f32.xlu1 %v3168_v26  ;;  %v3113_v26 = vsel %vm3090_vm5, %v8184_v2, 0.0 }
 0x231   : > { %v6292_v52 = vpop.xlane.xlu0 %2824  ;;  %v3189_v34 = vsel %vm2732_vm3, %v3113_v26, 0.0  ;;  %v3108_v26 = vsel %vm3090_vm5, %v5372_v12, 0.0 }
 0x232   : > { %8199 = vst [vmem:[#allocation43_spill] sm:$0xff] %v6292_v52 }
 0x233   : > { %v6299_v24 = vpop.xlane.xlu1 %2944  ;;  %3181 = vadd.xlane.f32.xlu2 %v3180_v60  ;;  %v3112_v60 = vsel %vm3090_vm5, %v5705_v18, 0.0 }
 0x234   : > { %8200 = vst [vmem:[#allocation44_spill] sm:$0xff] %v6299_v24  ;;  %v3186_v24 = vsel %vm2732_vm3, %v3112_v60, 0.0  ;;  %v3174_v60 = vsel %vm2732_vm3, %v3108_v26, 0.0 }
 0x236   : > { %3157 = vadd.xlane.f32.xlu0 %v3156_v33  ;;  %v6305_v50 = vpop.xlane.xlu2 %2956 }
 0x237   : > { %8201 = vst [vmem:[#allocation45_spill] sm:$0xff] %v6305_v50 }
 0x238   : > { %3178 = vadd.xlane.f32.xlu1 %v3177_v42  ;;  %v3116_v42 = vsel %vm3090_vm5, %v8186_v14, 0.0 }
 0x239   : > { %v6310_v52 = vpop.xlane.xlu0 %2932  ;;  %v3198_v41 = vsel %vm2732_vm3, %v3116_v42, 0.0  ;;  %v3111_v42 = vsel %vm3090_vm5, %v5527_v37, 0.0 }
 0x23a   : > { %8202 = vst [vmem:[#allocation46_spill] sm:$0xff] %v6310_v52 }
 0x23b   : > { %v6317_v33 = vpop.xlane.xlu1 %2953  ;;  %3190 = vadd.xlane.f32.xlu2 %v3189_v34  ;;  %v3115_v34 = vsel %vm3090_vm5, %v5860_v21, 0.0 }
 0x23c   : > { %8203 = vst [vmem:[#allocation47_spill] sm:$0xff] %v6317_v33  ;;  %v3195_v33 = vsel %vm2732_vm3, %v3115_v34, 0.0  ;;  %v3183_v34 = vsel %vm2732_vm3, %v3111_v42, 0.0 }
 0x23e   : > { %3166 = vadd.xlane.f32.xlu0 %v3165_v48  ;;  %v6323_v50 = vpop.xlane.xlu2 %2965 }
 0x23f   : > { %8204 = vst [vmem:[#allocation48_spill] sm:$0xff] %v6323_v50 }
 0x240   : > { %3187 = vadd.xlane.f32.xlu1 %v3186_v24  ;;  %v3119_v24 = vsel %vm3090_vm5, %v5932_v29, 0.0 }
 0x241   : > { %v6328_v52 = vpop.xlane.xlu0 %2941  ;;  %v3207_v26 = vsel %vm2732_vm3, %v3119_v24, 0.0  ;;  %v3114_v24 = vsel %vm3090_vm5, %v5633_v35, 0.0 }
 0x242   : > { %8205 = vst [vmem:[#allocation49_spill] sm:$0xff] %v6328_v52 }
 0x243   : > { %v6335_v48 = vpop.xlane.xlu1 %2962  ;;  %3199 = vadd.xlane.f32.xlu2 %v3198_v41  ;;  %v3118_v41 = vsel %vm3090_vm5, %v5966_v1, 0.0 }
 0x244   : > { %8206 = vst [vmem:[#allocation50_spill] sm:$0xff] %v6335_v48  ;;  %v3204_v48 = vsel %vm2732_vm3, %v3118_v41, 0.0  ;;  %v3192_v41 = vsel %vm2732_vm3, %v3114_v24, 0.0 }
 0x246   : > { %3175 = vadd.xlane.f32.xlu0 %v3174_v60  ;;  %v6341_v50 = vpop.xlane.xlu2 %2974 }
 0x248   : > { %3196 = vadd.xlane.f32.xlu1 %v3195_v33  ;;  %v3122_v33 = vsel %vm3090_vm5, %v6007_v55, 0.0 }
 0x249   : > { %v6346_v52 = vpop.xlane.xlu0 %2950  ;;  %v3216_v42 = vsel %vm2732_vm3, %v3122_v33, 0.0  ;;  %v3117_v33 = vsel %vm3090_vm5, %v5743_v38, 0.0 }
 0x24a   : > { %8207 = vst [vmem:[#allocation51_spill] sm:$0xff] %v6346_v52 }
 0x24b   : > { %v6353_v60 = vpop.xlane.xlu1 %2971  ;;  %3208 = vadd.xlane.f32.xlu2 %v3207_v26  ;;  %v3121_v26 = vsel %vm3090_vm5, %v6037_v20, 0.0 }
 0x24c   : > { %8208 = vst [vmem:[#allocation52_spill] sm:$0xff] %v6353_v60 }
 0x24e   : > { %3184 = vadd.xlane.f32.xlu0 %v3183_v34  ;;  %v6359_v11 = vpop.xlane.xlu2 %2983 }
 0x24f   : > { %8209 = vst [vmem:[#allocation53_spill] sm:$0xff] %v6359_v11  ;;  %v3213_v11 = vsel %vm2732_vm3, %v3121_v26, 0.0  ;;  %v3201_v26 = vsel %vm2732_vm3, %v3117_v33, 0.0 }
 0x250   : > { %3205 = vadd.xlane.f32.xlu1 %v3204_v48  ;;  %v3288_v48 = vsel %vm3285_vm6, %v4823_v51, 0.0 }
 0x251   : > { %v6364_v52 = vpop.xlane.xlu0 %2959 }
 0x252   : > { %8210 = vst [vmem:[#allocation54_spill] sm:$0xff] %v6364_v52 }
 0x253   : > { %v6371_v34 = vpop.xlane.xlu1 %2980  ;;  %3217 = vadd.xlane.f32.xlu2 %v3216_v42  ;;  %v3287_v42 = vsel %vm3285_vm6, %v4967_v40, 0.0 }
 0x254   : > { %8211 = vst [vmem:[#allocation55_spill] sm:$0xff] %v6371_v34  ;;  %v3324_v34 = vsel %vm2732_vm3, %v3288_v48, 0.0  ;;  %v3120_v48 = vsel %vm3090_vm5, %v8185_v63, 0.0 }
 0x256   : > { %3193 = vadd.xlane.f32.xlu0 %v3192_v41  ;;  %v6378_v52 = vpop.xlane.xlu2 %2992 }
 0x257   : > { %8212 = vst [vmem:[#allocation56_spill] sm:$0xff] %v6378_v52  ;;  %v3321_v52 = vsel %vm2732_vm3, %v3287_v42, 0.0  ;;  %v3210_v42 = vsel %vm2732_vm3, %v3120_v48, 0.0 }
 0x258   : > { %3214 = vadd.xlane.f32.xlu1 %v3213_v11  ;;  %v3291_v11 = vsel %vm3285_vm6, %v4895_v13, 0.0 }
 0x259   : > { %v6383_v24 = vpop.xlane.xlu0 %2968  ;;  %v3333_v33 = vsel %vm2732_vm3, %v3291_v11, 0.0  ;;  %v3286_v11 = vsel %vm3285_vm6, %v4862_v8, 0.0 }
 0x25a   : > { %8213 = vst [vmem:[#allocation57_spill] sm:$0xff] %v6383_v24 }
 0x25b   : > { %v6390_v41 = vpop.xlane.xlu1 %2989  ;;  %3325 = vadd.xlane.f32.xlu2 %v3324_v34  ;;  %v3290_v34 = vsel %vm3285_vm6, %v4794_v58, 0.0 }
 0x25c   : > { %8214 = vst [vmem:[#allocation58_spill] sm:$0xff] %v6390_v41 }
 0x25e   : > { %3202 = vadd.xlane.f32.xlu0 %v3201_v26  ;;  %v6396_v60 = vpop.xlane.xlu2 %3001 }
 0x25f   : > { %8215 = vst [vmem:[#allocation59_spill] sm:$0xff] %v6396_v60  ;;  %v3330_v60 = vsel %vm2732_vm3, %v3290_v34, 0.0  ;;  %v3318_v34 = vsel %vm2732_vm3, %v3286_v11, 0.0 }
 0x260   : > { %3322 = vadd.xlane.f32.xlu1 %v3321_v52  ;;  %v3294_v52 = vsel %vm3285_vm6, %v5005_v3, 0.0 }
 0x261   : > { %v6401_v24 = vpop.xlane.xlu0 %2977  ;;  %v3342_v48 = vsel %vm2732_vm3, %v3294_v52, 0.0  ;;  %v3289_v52 = vsel %vm3285_vm6, %v4933_v30, 0.0 }
 0x262   : > { %8216 = vst [vmem:[#allocation60_spill] sm:$0xff] %v6401_v24 }
 0x263   : > { %v6408_v26 = vpop.xlane.xlu1 %2998  ;;  %3334 = vadd.xlane.f32.xlu2 %v3333_v33  ;;  %v3293_v33 = vsel %vm3285_vm6, %v5069_v62, 0.0 }
 0x264   : > { %8217 = vst [vmem:[#allocation61_spill] sm:$0xff] %v6408_v26 }
 0x266   : > { %3211 = vadd.xlane.f32.xlu0 %v3210_v42  ;;  %v6414_v41 = vpop.xlane.xlu2 %3010 }
 0x267   : > { %8218 = vst [vmem:[#allocation62_spill] sm:$0xff] %v6414_v41  ;;  %v3339_v41 = vsel %vm2732_vm3, %v3293_v33, 0.0  ;;  %v3327_v33 = vsel %vm2732_vm3, %v3289_v52, 0.0 }
 0x268   : > { %3331 = vadd.xlane.f32.xlu1 %v3330_v60  ;;  %v3297_v60 = vsel %vm3285_vm6, %v5156_v43, 0.0 }
 0x269   : > { %v6419_v24 = vpop.xlane.xlu0 %2986  ;;  %v3351_v11 = vsel %vm2732_vm3, %v3297_v60, 0.0  ;;  %v3292_v60 = vsel %vm3285_vm6, %v5122_v31, 0.0 }
 0x26a   : > { %8219 = vst [vmem:[#allocation63_spill] sm:$0xff] %v6419_v24 }
 0x26b   : > { %v6426_v42 = vpop.xlane.xlu1 %3007  ;;  %3343 = vadd.xlane.f32.xlu2 %v3342_v48  ;;  %v3296_v48 = vsel %vm3285_vm6, %v5194_v9, 0.0 }
 0x26c   : > { %8220 = vst [vmem:[#allocation64_spill] sm:$0xff] %v6426_v42 }
 0x26e   : > { %3319 = vadd.xlane.f32.xlu0 %v3318_v34  ;;  %v6432_v26 = vpop.xlane.xlu2 %3019 }
 0x26f   : > { %8221 = vst [vmem:[#allocation65_spill] sm:$0xff] %v6432_v26  ;;  %v3348_v26 = vsel %vm2732_vm3, %v3296_v48, 0.0  ;;  %v3336_v48 = vsel %vm2732_vm3, %v3292_v60, 0.0 }
 0x270   : > { %3340 = vadd.xlane.f32.xlu1 %v3339_v41  ;;  %v3300_v41 = vsel %vm3285_vm6, %v5266_v61, 0.0 }
 0x271   : > { %v6437_v24 = vpop.xlane.xlu0 %2995  ;;  %v3360_v52 = vsel %vm2732_vm3, %v3300_v41, 0.0  ;;  %v3295_v41 = vsel %vm3285_vm6, %v5228_v27, 0.0 }
 0x272   : > { %8222 = vst [vmem:[#allocation66_spill] sm:$0xff] %v6437_v24 }
 0x273   : > { %v6444_v34 = vpop.xlane.xlu1 %3016  ;;  %3352 = vadd.xlane.f32.xlu2 %v3351_v11  ;;  %v3299_v11 = vsel %vm3285_vm6, %v5300_v25, 0.0 }
 0x274   : > { %8223 = vst [vmem:[#allocation67_spill] sm:$0xff] %v6444_v34 }
 0x276   : > { %3328 = vadd.xlane.f32.xlu0 %v3327_v33  ;;  %v6450_v42 = vpop.xlane.xlu2 %3127 }
 0x277   : > { %8224 = vst [vmem:[#allocation68_spill] sm:$0xff] %v6450_v42  ;;  %v3357_v42 = vsel %vm2732_vm3, %v3299_v11, 0.0  ;;  %v3345_v11 = vsel %vm2732_vm3, %v3295_v41, 0.0 }
 0x278   : > { %3349 = vadd.xlane.f32.xlu1 %v3348_v26  ;;  %v3303_v26 = vsel %vm3285_vm6, %v5372_v12, 0.0 }
 0x279   : > { %v6455_v24 = vpop.xlane.xlu0 %3004  ;;  %v3369_v60 = vsel %vm2732_vm3, %v3303_v26, 0.0  ;;  %v3298_v26 = vsel %vm3285_vm6, %v5338_v5, 0.0 }
 0x27a   : > { %8225 = vst [vmem:[#allocation69_spill] sm:$0xff] %v6455_v24 }
 0x27b   : > { %v6462_v33 = vpop.xlane.xlu1 %3124  ;;  %3361 = vadd.xlane.f32.xlu2 %v3360_v52  ;;  %v3302_v52 = vsel %vm3285_vm6, %v5440_v0, 0.0 }
 0x27c   : > { %8226 = vst [vmem:[#allocation70_spill] sm:$0xff] %v6462_v33 }
 0x27e   : > { %3337 = vadd.xlane.f32.xlu0 %v3336_v48  ;;  %v6468_v34 = vpop.xlane.xlu2 %3136 }
 0x27f   : > { %8227 = vst [vmem:[#allocation71_spill] sm:$0xff] %v6468_v34  ;;  %v3366_v34 = vsel %vm2732_vm3, %v3302_v52, 0.0  ;;  %v3354_v52 = vsel %vm2732_vm3, %v3298_v26, 0.0 }
 0x280   : > { %3358 = vadd.xlane.f32.xlu1 %v3357_v42  ;;  %v3306_v42 = vsel %vm3285_vm6, %v5527_v37, 0.0 }
 0x281   : > { %v6473_v24 = vpop.xlane.xlu0 %3013  ;;  %v3378_v41 = vsel %vm2732_vm3, %v3306_v42, 0.0  ;;  %v3301_v42 = vsel %vm3285_vm6, %v5489_v22, 0.0 }
 0x282   : > { %8228 = vst [vmem:[#allocation72_spill] sm:$0xff] %v6473_v24 }
 0x283   : > { %v6480_v48 = vpop.xlane.xlu1 %3133  ;;  %3370 = vadd.xlane.f32.xlu2 %v3369_v60  ;;  %v3305_v60 = vsel %vm3285_vm6, %v5561_v54, 0.0 }
 0x284   : > { %8229 = vst [vmem:[#allocation73_spill] sm:$0xff] %v6480_v48 }
 0x286   : > { %3346 = vadd.xlane.f32.xlu0 %v3345_v11  ;;  %v6486_v33 = vpop.xlane.xlu2 %3145 }
 0x287   : > { %8230 = vst [vmem:[#allocation74_spill] sm:$0xff] %v6486_v33  ;;  %v3375_v33 = vsel %vm2732_vm3, %v3305_v60, 0.0  ;;  %v3363_v60 = vsel %vm2732_vm3, %v3301_v42, 0.0 }
 0x288   : > { %3367 = vadd.xlane.f32.xlu1 %v3366_v34  ;;  %v3309_v34 = vsel %vm3285_vm6, %v5633_v35, 0.0 }
 0x289   : > { %v6491_v24 = vpop.xlane.xlu0 %3022  ;;  %v3387_v26 = vsel %vm2732_vm3, %v3309_v34, 0.0  ;;  %v3304_v34 = vsel %vm3285_vm6, %v5599_v57, 0.0 }
 0x28a   : > { %8231 = vst [vmem:[#allocation75_spill] sm:$0xff] %v6491_v24 }
 0x28b   : > { %v6498_v11 = vpop.xlane.xlu1 %3142  ;;  %3379 = vadd.xlane.f32.xlu2 %v3378_v41  ;;  %v3308_v41 = vsel %vm3285_vm6, %v8184_v2, 0.0 }
 0x28c   : > { %8232 = vst [vmem:[#allocation76_spill] sm:$0xff] %v6498_v11 }
 0x28e   : > { %3355 = vadd.xlane.f32.xlu0 %v3354_v52  ;;  %v6504_v48 = vpop.xlane.xlu2 %3154 }
 0x28f   : > { %8233 = vst [vmem:[#allocation77_spill] sm:$0xff] %v6504_v48  ;;  %v3384_v48 = vsel %vm2732_vm3, %v3308_v41, 0.0  ;;  %v3372_v41 = vsel %vm2732_vm3, %v3304_v34, 0.0 }
 0x290   : > { %3376 = vadd.xlane.f32.xlu1 %v3375_v33  ;;  %v3312_v33 = vsel %vm3285_vm6, %v5743_v38, 0.0 }
 0x291   : > { %v6509_v24 = vpop.xlane.xlu0 %3130  ;;  %v3396_v42 = vsel %vm2732_vm3, %v3312_v33, 0.0  ;;  %v3307_v33 = vsel %vm3285_vm6, %v5705_v18, 0.0 }
 0x292   : > { %8234 = vst [vmem:[#allocation78_spill] sm:$0xff] %v6509_v24 }
 0x293   : > { %v6516_v52 = vpop.xlane.xlu1 %3151  ;;  %3388 = vadd.xlane.f32.xlu2 %v3387_v26  ;;  %v3311_v26 = vsel %vm3285_vm6, %v8186_v14, 0.0 }
 0x294   : > { %8235 = vst [vmem:[#allocation79_spill] sm:$0xff] %v6516_v52  ;;  %v3393_v52 = vsel %vm2732_vm3, %v3311_v26, 0.0  ;;  %v3381_v26 = vsel %vm2732_vm3, %v3307_v33, 0.0 }
 0x296   : > { %3364 = vadd.xlane.f32.xlu0 %v3363_v60  ;;  %v6522_v11 = vpop.xlane.xlu2 %3163 }
 0x297   : > { %8236 = vst [vmem:[#allocation80_spill] sm:$0xff] %v6522_v11 }
 0x298   : > { %3385 = vadd.xlane.f32.xlu1 %v3384_v48  ;;  %v3315_v48 = vsel %vm3285_vm6, %v8185_v63, 0.0 }
 0x299   : > { %v6527_v24 = vpop.xlane.xlu0 %3139  ;;  %v3405_v34 = vsel %vm2732_vm3, %v3315_v48, 0.0  ;;  %v3310_v48 = vsel %vm3285_vm6, %v5860_v21, 0.0 }
 0x29a   : > { %8237 = vst [vmem:[#allocation81_spill] sm:$0xff] %v6527_v24 }
 0x29b   : > { %v6534_v60 = vpop.xlane.xlu1 %3160  ;;  %3397 = vadd.xlane.f32.xlu2 %v3396_v42  ;;  %v3314_v42 = vsel %vm3285_vm6, %v5932_v29, 0.0 }
 0x29c   : > { %8238 = vst [vmem:[#allocation82_spill] sm:$0xff] %v6534_v60  ;;  %v3402_v60 = vsel %vm2732_vm3, %v3314_v42, 0.0  ;;  %v3390_v42 = vsel %vm2732_vm3, %v3310_v48, 0.0 }
 0x29e   : > { %3373 = vadd.xlane.f32.xlu0 %v3372_v41  ;;  %v6540_v11 = vpop.xlane.xlu2 %3172 }
 0x29f   : > { %8239 = vst [vmem:[#allocation83_spill] sm:$0xff] %v6540_v11 }
 0x2a0   : > { %3394 = vadd.xlane.f32.xlu1 %v3393_v52  ;;  %v3481_v52 = vsel %vm3480_vm7, %v4862_v8, 0.0 }
 0x2a1   : > { %v6545_v24 = vpop.xlane.xlu0 %3148  ;;  %v3513_v11 = vsel %vm2732_vm3, %v3481_v52, 0.0  ;;  %v3313_v52 = vsel %vm3285_vm6, %v5966_v1, 0.0 }
 0x2a2   : > { %8240 = vst [vmem:[#allocation84_spill] sm:$0xff] %v6545_v24 }
 0x2a3   : > { %v6552_v41 = vpop.xlane.xlu1 %3169  ;;  %3406 = vadd.xlane.f32.xlu2 %v3405_v34  ;;  %v3317_v34 = vsel %vm3285_vm6, %v6007_v55, 0.0 }
 0x2a4   : > { %8241 = vst [vmem:[#allocation85_spill] sm:$0xff] %v6552_v41 }
 0x2a6   : > { %3382 = vadd.xlane.f32.xlu0 %v3381_v26  ;;  %v6559_v24 = vpop.xlane.xlu2 %3181 }
 0x2a7   : > { %8242 = vst [vmem:[#allocation86_spill] sm:$0xff] %v6559_v24  ;;  %v3411_v24 = vsel %vm2732_vm3, %v3317_v34, 0.0  ;;  %v3399_v34 = vsel %vm2732_vm3, %v3313_v52, 0.0 }
 0x2a8   : > { %3403 = vadd.xlane.f32.xlu1 %v3402_v60  ;;  %v3484_v60 = vsel %vm3480_vm7, %v4933_v30, 0.0 }
 0x2a9   : > { %v6564_v33 = vpop.xlane.xlu0 %3157  ;;  %v3522_v48 = vsel %vm2732_vm3, %v3484_v60, 0.0  ;;  %v3316_v60 = vsel %vm3285_vm6, %v6037_v20, 0.0 }
 0x2aa   : > { %8243 = vst [vmem:[#allocation87_spill] sm:$0xff] %v6564_v33 }
 0x2ab   : > { %v6571_v26 = vpop.xlane.xlu1 %3178  ;;  %3514 = vadd.xlane.f32.xlu2 %v3513_v11  ;;  %v3483_v11 = vsel %vm3480_vm7, %v4823_v51, 0.0 }
 0x2ac   : > { %8244 = vst [vmem:[#allocation88_spill] sm:$0xff] %v6571_v26 }
 0x2ae   : > { %3391 = vadd.xlane.f32.xlu0 %v3390_v42  ;;  %v6577_v41 = vpop.xlane.xlu2 %3190 }
 0x2af   : > { %8245 = vst [vmem:[#allocation89_spill] sm:$0xff] %v6577_v41  ;;  %v3519_v41 = vsel %vm2732_vm3, %v3483_v11, 0.0  ;;  %v3408_v11 = vsel %vm2732_vm3, %v3316_v60, 0.0 }
 0x2b0   : > { %3412 = vadd.xlane.f32.xlu1 %v3411_v24  ;;  %v3487_v24 = vsel %vm3480_vm7, %v5122_v31, 0.0 }
 0x2b1   : > { %v6582_v33 = vpop.xlane.xlu0 %3166  ;;  %v3531_v52 = vsel %vm2732_vm3, %v3487_v24, 0.0  ;;  %v3482_v24 = vsel %vm3480_vm7, %v4967_v40, 0.0 }
 0x2b2   : > { %8246 = vst [vmem:[#allocation90_spill] sm:$0xff] %v6582_v33 }
 0x2b3   : > { %v6589_v42 = vpop.xlane.xlu1 %3187  ;;  %3523 = vadd.xlane.f32.xlu2 %v3522_v48  ;;  %v3486_v48 = vsel %vm3480_vm7, %v4895_v13, 0.0 }
 0x2b4   : > { %8247 = vst [vmem:[#allocation91_spill] sm:$0xff] %v6589_v42 }
 0x2b6   : > { %3400 = vadd.xlane.f32.xlu0 %v3399_v34  ;;  %v6595_v26 = vpop.xlane.xlu2 %3199 }
 0x2b7   : > { %8248 = vst [vmem:[#allocation92_spill] sm:$0xff] %v6595_v26  ;;  %v3528_v26 = vsel %vm2732_vm3, %v3486_v48, 0.0  ;;  %v3516_v48 = vsel %vm2732_vm3, %v3482_v24, 0.0 }
 0x2b8   : > { %3520 = vadd.xlane.f32.xlu1 %v3519_v41  ;;  %v3490_v41 = vsel %vm3480_vm7, %v5228_v27, 0.0 }
 0x2b9   : > { %v6600_v33 = vpop.xlane.xlu0 %3175  ;;  %v3540_v60 = vsel %vm2732_vm3, %v3490_v41, 0.0  ;;  %v3485_v41 = vsel %vm3480_vm7, %v4794_v58, 0.0 }
 0x2ba   : > { %8249 = vst [vmem:[#allocation93_spill] sm:$0xff] %v6600_v33 }
 0x2bb   : > { %v6607_v34 = vpop.xlane.xlu1 %3196  ;;  %3532 = vadd.xlane.f32.xlu2 %v3531_v52  ;;  %v3489_v52 = vsel %vm3480_vm7, %v5005_v3, 0.0 }
 0x2bc   : > { %8250 = vst [vmem:[#allocation94_spill] sm:$0xff] %v6607_v34 }
 0x2be   : > { %3409 = vadd.xlane.f32.xlu0 %v3408_v11  ;;  %v6613_v42 = vpop.xlane.xlu2 %3208 }
 0x2bf   : > { %8251 = vst [vmem:[#allocation95_spill] sm:$0xff] %v6613_v42  ;;  %v3537_v42 = vsel %vm2732_vm3, %v3489_v52, 0.0  ;;  %v3525_v52 = vsel %vm2732_vm3, %v3485_v41, 0.0 }
 0x2c0   : > { %3529 = vadd.xlane.f32.xlu1 %v3528_v26  ;;  %v3493_v26 = vsel %vm3480_vm7, %v5338_v5, 0.0 }
 0x2c1   : > { %v6618_v33 = vpop.xlane.xlu0 %3184  ;;  %v3549_v24 = vsel %vm2732_vm3, %v3493_v26, 0.0  ;;  %v3488_v26 = vsel %vm3480_vm7, %v5069_v62, 0.0 }
 0x2c2   : > { %8252 = vst [vmem:[#allocation96_spill] sm:$0xff] %v6618_v33 }
 0x2c3   : > { %v6625_v11 = vpop.xlane.xlu1 %3205  ;;  %3541 = vadd.xlane.f32.xlu2 %v3540_v60  ;;  %v3492_v60 = vsel %vm3480_vm7, %v5156_v43, 0.0 }
 0x2c4   : > { %8253 = vst [vmem:[#allocation97_spill] sm:$0xff] %v6625_v11 }
 0x2c6   : > { %3517 = vadd.xlane.f32.xlu0 %v3516_v48  ;;  %v6631_v34 = vpop.xlane.xlu2 %3217 }
 0x2c7   : > { %8254 = vst [vmem:[#allocation98_spill] sm:$0xff] %v6631_v34  ;;  %v3546_v34 = vsel %vm2732_vm3, %v3492_v60, 0.0  ;;  %v3534_v60 = vsel %vm2732_vm3, %v3488_v26, 0.0 }
 0x2c8   : > { %3538 = vadd.xlane.f32.xlu1 %v3537_v42  ;;  %v3496_v42 = vsel %vm3480_vm7, %v5489_v22, 0.0 }
 0x2c9   : > { %v6636_v33 = vpop.xlane.xlu0 %3193  ;;  %v3558_v41 = vsel %vm2732_vm3, %v3496_v42, 0.0  ;;  %v3491_v42 = vsel %vm3480_vm7, %v5194_v9, 0.0 }
 0x2ca   : > { %8255 = vst [vmem:[#allocation99_spill] sm:$0xff] %v6636_v33 }
 0x2cb   : > { %v6643_v48 = vpop.xlane.xlu1 %3214  ;;  %3550 = vadd.xlane.f32.xlu2 %v3549_v24  ;;  %v3495_v24 = vsel %vm3480_vm7, %v5266_v61, 0.0 }
 0x2cc   : > { %8256 = vst [vmem:[#allocation100_spill] sm:$0xff] %v6643_v48 }
 0x2ce   : > { %3526 = vadd.xlane.f32.xlu0 %v3525_v52  ;;  %v6649_v11 = vpop.xlane.xlu2 %3325 }
 0x2cf   : > { %8257 = vst [vmem:[#allocation101_spill] sm:$0xff] %v6649_v11  ;;  %v3555_v11 = vsel %vm2732_vm3, %v3495_v24, 0.0  ;;  %v3543_v24 = vsel %vm2732_vm3, %v3491_v42, 0.0 }
 0x2d0   : > { %3547 = vadd.xlane.f32.xlu1 %v3546_v34  ;;  %v3499_v34 = vsel %vm3480_vm7, %v5599_v57, 0.0 }
 0x2d1   : > { %v6654_v33 = vpop.xlane.xlu0 %3202  ;;  %v3567_v26 = vsel %vm2732_vm3, %v3499_v34, 0.0  ;;  %v3494_v34 = vsel %vm3480_vm7, %v5300_v25, 0.0 }
 0x2d2   : > { %8258 = vst [vmem:[#allocation102_spill] sm:$0xff] %v6654_v33 }
 0x2d3   : > { %v6661_v52 = vpop.xlane.xlu1 %3322  ;;  %3559 = vadd.xlane.f32.xlu2 %v3558_v41  ;;  %v3498_v41 = vsel %vm3480_vm7, %v5372_v12, 0.0 }
 0x2d4   : > { %8259 = vst [vmem:[#allocation103_spill] sm:$0xff] %v6661_v52 }
 0x2d6   : > { %3535 = vadd.xlane.f32.xlu0 %v3534_v60  ;;  %v6667_v48 = vpop.xlane.xlu2 %3334 }
 0x2d7   : > { %8260 = vst [vmem:[#allocation104_spill] sm:$0xff] %v6667_v48  ;;  %v3564_v48 = vsel %vm2732_vm3, %v3498_v41, 0.0  ;;  %v3552_v41 = vsel %vm2732_vm3, %v3494_v34, 0.0 }
 0x2d8   : > { %3556 = vadd.xlane.f32.xlu1 %v3555_v11  ;;  %v3502_v11 = vsel %vm3480_vm7, %v5705_v18, 0.0 }
 0x2d9   : > { %v6672_v33 = vpop.xlane.xlu0 %3211  ;;  %v3576_v42 = vsel %vm2732_vm3, %v3502_v11, 0.0  ;;  %v3497_v11 = vsel %vm3480_vm7, %v5440_v0, 0.0 }
 0x2da   : > { %8261 = vst [vmem:[#allocation105_spill] sm:$0xff] %v6672_v33 }
 0x2db   : > { %v6679_v60 = vpop.xlane.xlu1 %3331  ;;  %3568 = vadd.xlane.f32.xlu2 %v3567_v26  ;;  %v3501_v26 = vsel %vm3480_vm7, %v5527_v37, 0.0 }
 0x2dc   : > { %8262 = vst [vmem:[#allocation106_spill] sm:$0xff] %v6679_v60 }
 0x2de   : > { %3544 = vadd.xlane.f32.xlu0 %v3543_v24  ;;  %v6685_v52 = vpop.xlane.xlu2 %3343 }
 0x2df   : > { %8263 = vst [vmem:[#allocation107_spill] sm:$0xff] %v6685_v52  ;;  %v3573_v52 = vsel %vm2732_vm3, %v3501_v26, 0.0  ;;  %v3561_v26 = vsel %vm2732_vm3, %v3497_v11, 0.0 }
 0x2e0   : > { %3565 = vadd.xlane.f32.xlu1 %v3564_v48  ;;  %v3505_v48 = vsel %vm3480_vm7, %v5860_v21, 0.0 }
 0x2e1   : > { %v6690_v33 = vpop.xlane.xlu0 %3319  ;;  %v3585_v34 = vsel %vm2732_vm3, %v3505_v48, 0.0  ;;  %v3500_v48 = vsel %vm3480_vm7, %v5561_v54, 0.0 }
 0x2e2   : > { %8264 = vst [vmem:[#allocation108_spill] sm:$0xff] %v6690_v33 }
 0x2e3   : > { %v6697_v24 = vpop.xlane.xlu1 %3340  ;;  %3577 = vadd.xlane.f32.xlu2 %v3576_v42  ;;  %v3504_v42 = vsel %vm3480_vm7, %v5633_v35, 0.0 }
 0x2e4   : > { %8265 = vst [vmem:[#allocation109_spill] sm:$0xff] %v6697_v24 }
 0x2e6   : > { %3553 = vadd.xlane.f32.xlu0 %v3552_v41  ;;  %v6703_v60 = vpop.xlane.xlu2 %3352 }
 0x2e7   : > { %8266 = vst [vmem:[#allocation110_spill] sm:$0xff] %v6703_v60  ;;  %v3582_v60 = vsel %vm2732_vm3, %v3504_v42, 0.0  ;;  %v3570_v42 = vsel %vm2732_vm3, %v3500_v48, 0.0 }
 0x2e8   : > { %3574 = vadd.xlane.f32.xlu1 %v3573_v52  ;;  %v3508_v52 = vsel %vm3480_vm7, %v5966_v1, 0.0 }
 0x2e9   : > { %v6708_v33 = vpop.xlane.xlu0 %3328  ;;  %v3594_v11 = vsel %vm2732_vm3, %v3508_v52, 0.0  ;;  %v3503_v52 = vsel %vm3480_vm7, %v8184_v2, 0.0 }
 0x2ea   : > { %8267 = vst [vmem:[#allocation111_spill] sm:$0xff] %v6708_v33 }
 0x2eb   : > { %v6715_v41 = vpop.xlane.xlu1 %3349  ;;  %3586 = vadd.xlane.f32.xlu2 %v3585_v34  ;;  %v3507_v34 = vsel %vm3480_vm7, %v5743_v38, 0.0 }
 0x2ec   : > { %8268 = vst [vmem:[#allocation112_spill] sm:$0xff] %v6715_v41  ;;  %v3591_v41 = vsel %vm2732_vm3, %v3507_v34, 0.0  ;;  %v3579_v34 = vsel %vm2732_vm3, %v3503_v52, 0.0 }
 0x2ee   : > { %3562 = vadd.xlane.f32.xlu0 %v3561_v26  ;;  %v6721_v24 = vpop.xlane.xlu2 %3361 }
 0x2f0   : > { %3583 = vadd.xlane.f32.xlu1 %v3582_v60  ;;  %v3511_v60 = vsel %vm3480_vm7, %v6037_v20, 0.0 }
 0x2f1   : > { %v6726_v33 = vpop.xlane.xlu0 %3337  ;;  %v3603_v48 = vsel %vm2732_vm3, %v3511_v60, 0.0  ;;  %v3506_v60 = vsel %vm3480_vm7, %v8186_v14, 0.0 }
 0x2f2   : > { %8269 = vst [vmem:[#allocation113_spill] sm:$0xff] %v6726_v33 }
 0x2f3   : > { %v6733_v26 = vpop.xlane.xlu1 %3358  ;;  %3595 = vadd.xlane.f32.xlu2 %v3594_v11  ;;  %v3510_v11 = vsel %vm3480_vm7, %v8185_v63, 0.0 }
 0x2f4   : > { %v3600_v38 = vsel %vm2732_vm3, %v3510_v11, 0.0  ;;  %v3588_v11 = vsel %vm2732_vm3, %v3506_v60, 0.0 }
 0x2f6   : > { %3571 = vadd.xlane.f32.xlu0 %v3570_v42  ;;  %v6739_v35 = vpop.xlane.xlu2 %3370 }
 0x2f8   : > { %3592 = vadd.xlane.f32.xlu1 %v3591_v41  ;;  %v3677_v41 = vsel %vm3675_vm8, %v4967_v40, 0.0 }
 0x2f9   : > { %v6744_v33 = vpop.xlane.xlu0 %3346  ;;  %v3711_v63 = vsel %vm2732_vm3, %v3677_v41, 0.0  ;;  %v3509_v41 = vsel %vm3480_vm7, %v5932_v29, 0.0 }
 0x2fa   : > { %8270 = vst [vmem:[#allocation114_spill] sm:$0xff] %v6744_v33 }
 0x2fb   : > { %v6751_v42 = vpop.xlane.xlu1 %3367  ;;  %3604 = vadd.xlane.f32.xlu2 %v3603_v48  ;;  %v3676_v48 = vsel %vm3675_vm8, %v4862_v8, 0.0 }
 0x2fc   : > { %8271 = vst [vmem:[#allocation115_spill] sm:$0xff] %v6751_v42  ;;  %v3708_v42 = vsel %vm2732_vm3, %v3676_v48, 0.0  ;;  %v3597_v48 = vsel %vm2732_vm3, %v3509_v41, 0.0 }
 0x2fe   : > { %3580 = vadd.xlane.f32.xlu0 %v3579_v34  ;;  %v6758_v33 = vpop.xlane.xlu2 %3379 }
 0x300   : > { %3601 = vadd.xlane.f32.xlu1 %v3600_v38  ;;  %v3680_v38 = vsel %vm3675_vm8, %v4794_v58, 0.0 }
 0x301   : > { %v6763_v52 = vpop.xlane.xlu0 %3355  ;;  %v3720_v60 = vsel %vm2732_vm3, %v3680_v38, 0.0  ;;  %v3512_v38 = vsel %vm3480_vm7, %v6007_v55, 0.0 }
 0x302   : > { %8272 = vst [vmem:[#allocation116_spill] sm:$0xff] %v6763_v52 }
 0x303   : > { %v6770_v34 = vpop.xlane.xlu1 %3376  ;;  %3712 = vadd.xlane.f32.xlu2 %v3711_v63  ;;  %v3679_v63 = vsel %vm3675_vm8, %v4933_v30, 0.0 }
 0x304   : > { %8273 = vst [vmem:[#allocation117_spill] sm:$0xff] %v6770_v34  ;;  %v3717_v8 = vsel %vm2732_vm3, %v3679_v63, 0.0  ;;  %v3606_v63 = vsel %vm2732_vm3, %v3512_v38, 0.0 }
 0x306   : > { %3589 = vadd.xlane.f32.xlu0 %v3588_v11  ;;  %v6776_v40 = vpop.xlane.xlu2 %3388 }
 0x308   : > { %3709 = vadd.xlane.f32.xlu1 %v3708_v42  ;;  %v3683_v42 = vsel %vm3675_vm8, %v5069_v62, 0.0 }
 0x309   : > { %v6781_v52 = vpop.xlane.xlu0 %3364  ;;  %v3729_v41 = vsel %vm2732_vm3, %v3683_v42, 0.0  ;;  %v3678_v42 = vsel %vm3675_vm8, %v4823_v51, 0.0 }
 0x30b   : > { %v6788_v11 = vpop.xlane.xlu1 %3385  ;;  %3721 = vadd.xlane.f32.xlu2 %v3720_v60  ;;  %v3682_v60 = vsel %vm3675_vm8, %v5122_v31, 0.0 }
 0x30c   : > { %8274 = vst [vmem:[#allocation118_spill] sm:$0xff] %v6788_v11  ;;  %v3726_v11 = vsel %vm2732_vm3, %v3682_v60, 0.0  ;;  %v3714_v60 = vsel %vm2732_vm3, %v3678_v42, 0.0 }
 0x30e   : > { %3598 = vadd.xlane.f32.xlu0 %v3597_v48  ;;  %v6794_v34 = vpop.xlane.xlu2 %3397 }
 0x310   : > { %3718 = vadd.xlane.f32.xlu1 %v3717_v8  ;;  %v3686_v8 = vsel %vm3675_vm8, %v5194_v9, 0.0 }
 0x311   : > { %v6799_v30 = vpop.xlane.xlu0 %3373  ;;  %v3738_v38 = vsel %vm2732_vm3, %v3686_v8, 0.0  ;;  %v3681_v8 = vsel %vm3675_vm8, %v4895_v13, 0.0 }
 0x313   : > { %v6806_v48 = vpop.xlane.xlu1 %3394  ;;  %3730 = vadd.xlane.f32.xlu2 %v3729_v41  ;;  %v3685_v41 = vsel %vm3675_vm8, %v5228_v27, 0.0 }
 0x314   : > { %8275 = vst [vmem:[#allocation119_spill] sm:$0xff] %v6806_v48  ;;  %v3735_v48 = vsel %vm2732_vm3, %v3685_v41, 0.0  ;;  %v3723_v41 = vsel %vm2732_vm3, %v3681_v8, 0.0 }
 0x316   : > { %3607 = vadd.xlane.f32.xlu0 %v3606_v63  ;;  %v6812_v62 = vpop.xlane.xlu2 %3406 }
 0x317   : > { %8276 = vst [vmem:[#allocation120_spill] sm:$0xff] %v6812_v62  ;;  %v8312_v62 = vld [vmem:[#allocation55_spill] sm:$0xff] }
 0x318   : > { %3727 = vadd.xlane.f32.xlu1 %v3726_v11  ;;  %v3689_v11 = vsel %vm3675_vm8, %v5300_v25, 0.0 }
 0x319   : > { %v6817_v31 = vpop.xlane.xlu0 %3382  ;;  %v3747_v42 = vsel %vm2732_vm3, %v3689_v11, 0.0  ;;  %v3684_v11 = vsel %vm3675_vm8, %v5005_v3, 0.0 }
 0x31b   : > { %v6824_v63 = vpop.xlane.xlu1 %3403  ;;  %3739 = vadd.xlane.f32.xlu2 %v3738_v38  ;;  %v3688_v38 = vsel %vm3675_vm8, %v5338_v5, 0.0 }
 0x31c   : > { %8277 = vst [vmem:[#allocation121_spill] sm:$0xff] %v6824_v63  ;;  %v3744_v63 = vsel %vm2732_vm3, %v3688_v38, 0.0  ;;  %v3732_v38 = vsel %vm2732_vm3, %v3684_v11, 0.0  ;;  %v6874_v11 = vld [vmem:[%s8096_s2] ss:$0 sm:$0xff] }
 0x31e   : > { %3715 = vadd.xlane.f32.xlu0 %v3714_v60  ;;  %v6830_v9 = vpop.xlane.xlu2 %3514 }
 0x31f   : > { %8278 = vst [vmem:[#allocation122_spill] sm:$0xff] %v6830_v9 }
 0x320   : > { %3736 = vadd.xlane.f32.xlu1 %v3735_v48  ;;  %v3692_v48 = vsel %vm3675_vm8, %v5440_v0, 0.0 }
 0x321   : > { %v6835_v27 = vpop.xlane.xlu0 %3391  ;;  %v3756_v8 = vsel %vm2732_vm3, %v3692_v48, 0.0  ;;  %v3687_v48 = vsel %vm3675_vm8, %v5156_v43, 0.0 }
 0x323   : > { %v6842_v60 = vpop.xlane.xlu1 %3412  ;;  %3748 = vadd.xlane.f32.xlu2 %v3747_v42  ;;  %v3691_v42 = vsel %vm3675_vm8, %v5489_v22, 0.0  ;;  %v2835_v22 = vmul.f32 %v6874_v11, %v6050_v56  ;;  %v3698_v56 = vsel %vm3675_vm8, %v8184_v2, 0.0 }
 0x324   : > { %8279 = vst [vmem:[#allocation123_spill] sm:$0xff] %v6842_v60  ;;  %v3753_v60 = vsel %vm2732_vm3, %v3691_v42, 0.0 }
 0x326   : > { %3724 = vadd.xlane.f32.xlu0 %v3723_v41  ;;  %v6848_v25 = vpop.xlane.xlu2 %3523 }
 0x327   : > { %8280 = vst [vmem:[#allocation124_spill] sm:$0xff] %v6848_v25 }
 0x328   : > { %3745 = vadd.xlane.f32.xlu1 %v3744_v63  ;;  %v3695_v63 = vsel %vm3675_vm8, %v5561_v54, 0.0 }
 0x329   : > { %v6853_v5 = vpop.xlane.xlu0 %3400  ;;  %v3765_v42 = vsel %vm2732_vm3, %v3695_v63, 0.0  ;;  %v2831_v63 = vmul.f32 %v6874_v11, %v6079_v45  ;;  %v2834_v45 = vmul.f32 %v6874_v11, %v6072_v47  ;;  %v2841_v47 = vmul.f32 %v6874_v11, %v6113_v15 }
 0x32a   : > { %v2848_v15 = vmul.f32 %v6874_v11, %v6146_v17 }
 0x32b   : > { %v6860_v41 = vpop.xlane.xlu1 %3520  ;;  %3757 = vadd.xlane.f32.xlu2 %v3756_v8 }
 0x32c   : > { %8281 = vst [vmem:[#allocation125_spill] sm:$0xff] %v6860_v41  ;;  %v2833_v41 = vmul.f32 %v6874_v11, %v6052_v23 }
 0x32e   : > { %3733 = vadd.xlane.f32.xlu0 %v3732_v38  ;;  %v6866_v0 = vpop.xlane.xlu2 %3532  ;;  %v3694_v38 = vsel %vm3675_vm8, %v5599_v57, 0.0 }
 0x32f   : > { %8282 = vst [vmem:[#allocation126_spill] sm:$0xff] %v6866_v0  ;;  %v6892_v0 = vld [vmem:[%s8097_s3] ss:$0 sm:$0xff]  ;;  %v3762_v57 = vsel %vm2732_vm3, %v3694_v38, 0.0  ;;  %v2832_v38 = vmul.f32 %v6874_v11, %v6100_v59  ;;  %v3774_v59 = vsel %vm2732_vm3, %v3698_v56, 0.0  ;;  %v2846_v56 = vmul.f32 %v6874_v11, %v6185_v7 }
 0x330   : > { %3754 = vadd.xlane.f32.xlu1 %v3753_v60  ;;  %v3741_v60 = vsel %vm2732_vm3, %v3687_v48, 0.0  ;;  %v6901_v23 = vadd.f32 %v6892_v0, %v2835_v22  ;;  %v6904_v48 = vadd.f32 %v6892_v0, %v2833_v41  ;;  %v3690_v22 = vsel %vm3675_vm8, %v5266_v61, 0.0 }
 0x331   : > { %v6876_v8 = vpop.xlane.xlu0 %3409  ;;  %v6920_v41 = vadd.f32 %v6892_v0, %v2831_v63  ;;  %v2847_v63 = vmul.f32 %v6874_v11, %v6156_v39  ;;  %v6963_v7 = vadd.f32 %v6892_v0, %v2841_v47 }
 0x332   : > { %8284 = vst [vmem:[#allocation128_spill] sm:$0xff] %v6901_v23 }
 0x333   : > { %v6887_v54 = vpop.xlane.xlu1 %3529  ;;  %3766 = vadd.xlane.f32.xlu2 %v3765_v42  ;;  %v2836_v42 = vmul.f32 %v6874_v11, %v6066_v4  ;;  %v2837_v4 = vmul.f32 %v6874_v11, %v6121_v53  ;;  %v3697_v53 = vsel %vm3675_vm8, %v5705_v18, 0.0  ;;  %v6954_v18 = vadd.f32 %v6892_v0, %v2832_v38  ;;  %8290 = vst [vmem:[#allocation134_spill] sm:$0xff] %v6963_v7  ;;  %v8297_v7 = vld [vmem:[#allocation32_spill] sm:$0xff] }
 0x334   : > { %8283 = vst [vmem:[#allocation127_spill] sm:$0xff] %v6887_v54 }
 0x335   : > { %v6960_v39 = vadd.f32 %v6892_v0, %v2837_v4  ;;  %v6977_v4 = vld [vmem:[%s8096_s2 + $0x1] ss:$0 sm:$0xff] }
 0x336   : > { %3742 = vadd.xlane.f32.xlu0 %v3741_v60  ;;  %v6908_v54 = vpop.xlane.xlu2 %3541  ;;  %v2838_v60 = vmul.f32 %v6874_v11, %v6094_v16  ;;  %v2840_v16 = vmul.f32 %v6874_v11, %v6144_v49  ;;  %v3750_v49 = vsel %vm2732_vm3, %v3690_v22, 0.0  ;;  %v3771_v22 = vsel %vm2732_vm3, %v3697_v53, 0.0 }
 0x337   : > { %8285 = vst [vmem:[#allocation129_spill] sm:$0xff] %v6908_v54  ;;  %v2845_v54 = vmul.f32 %v6874_v11, %v6124_v46  ;;  %v6948_v46 = vadd.f32 %v6892_v0, %v2836_v42  ;;  %v2851_v42 = vmul.f32 %v6874_v11, %v6165_v32  ;;  %v3701_v32 = vsel %vm3675_vm8, %v8186_v14, 0.0 }
 0x338   : > { %3763 = vadd.xlane.f32.xlu1 %v3762_v57  ;;  %v2844_v57 = vmul.f32 %v6874_v11, %v6134_v6  ;;  %v6951_v6 = vadd.f32 %v6892_v0, %v2834_v45  ;;  %v6957_v17 = vadd.f32 %v6892_v0, %v2838_v60  ;;  %v6969_v45 = vadd.f32 %v6892_v0, %v2840_v16 }
 0x339   : > { %v6926_v2 = vpop.xlane.xlu0 %3517  ;;  %8288 = vst [vmem:[#allocation132_spill] sm:$0xff] %v6948_v46  ;;  %v2877_v38 = vadd.f32 %v6892_v0, %v2845_v54  ;;  %v2850_v60 = vmul.f32 %v6874_v11, %v6178_v28  ;;  %v6989_v54 = vadd.f32 %v6892_v0, %v2847_v63  ;;  %v2878_v28 = vadd.f32 %v6892_v0, %v2846_v56  ;;  %v8295_v46 = vld [vmem:[#allocation31_spill] sm:$0xff] }
 0x33a   : > { %8286 = vst [vmem:[#allocation130_spill] sm:$0xff] %v6926_v2  ;;  %v6983_v47 = vadd.f32 %v6892_v0, %v2844_v57  ;;  %v2849_v53 = vmul.f32 %v6874_v11, %v6206_v36  ;;  %v3041_v57 = vmul.f32 %v6977_v4, %v6341_v50  ;;  %v3693_v63 = vsel %vm3675_vm8, %v5372_v12, 0.0  ;;  %v8311_v2 = vld [vmem:[#allocation37_spill] sm:$0xff] }
 0x33b   : > { %v6945_v25 = vpop.xlane.xlu1 %3538  ;;  %8289 = vst [vmem:[#allocation133_spill] sm:$0xff] %v6957_v17  ;;  %3775 = vadd.xlane.f32.xlu2 %v3774_v59  ;;  %v6986_v59 = vadd.f32 %v6892_v0, %v2848_v15  ;;  %v7003_v15 = vld [vmem:[%s8096_s2 + $0x2] ss:$0 sm:$0xff]  ;;  %v7009_v56 = vadd.f32 %v6892_v0, %v2851_v42  ;;  %v2853_v36 = vmul.f32 %v6874_v11, %v6198_v44  ;;  %v3783_v14 = vsel %vm2732_vm3, %v3701_v32, 0.0  ;;  %v7028_v44 = vld [vmem:[%s8096_s2 + $0x3] ss:$0 sm:$0xff] }
 0x33c   : > { %8287 = vst [vmem:[#allocation131_spill] sm:$0xff] %v6945_v25  ;;  %v2856_v32 = vmul.f32 %v6874_v11, %v8297_v7  ;;  %v8299_v17 = vld [vmem:[#allocation52_spill] sm:$0xff]  ;;  %v2881_v9 = vadd.f32 %v6892_v0, %v2849_v53  ;;  %v3073_v23 = vadd.f32 %v3041_v57, %v2878_v28  ;;  %v8302_v28 = vld [vmem:[#allocation90_spill] sm:$0xff] }
 0x33d   : > { %8291 = vst [vmem:[#allocation135_spill] sm:$0xff] %v6969_v45  ;;  %v2857_v45 = vmul.f32 %v6874_v11, %v8295_v46  ;;  %v3040_v46 = vmul.f32 %v6977_v4, %v8299_v17  ;;  %v7049_v7 = vadd.f32 %v6892_v0, %v2853_v36  ;;  %v8301_v17 = vld [vmem:[#allocation34_spill] sm:$0xff]  ;;  %v3235_v57 = vmul.f32 %v7003_v15, %v8302_v28  ;;  %v8304_v36 = vld [vmem:[#allocation53_spill] sm:$0xff] }
 0x33e   : > { %3751 = vadd.xlane.f32.xlu0 %v3750_v49  ;;  %v6992_v16 = vpop.xlane.xlu2 %3550  ;;  %v2854_v49 = vmul.f32 %v6874_v11, %v6187_v10  ;;  %v8293_v10 = vld [vmem:[#allocation33_spill] sm:$0xff] }
 0x33f   : > { %8292 = vst [vmem:[#allocation136_spill] sm:$0xff] %v6992_v16  ;;  %v2852_v25 = vmul.f32 %v6874_v11, %v8293_v10  ;;  %v7019_v16 = vadd.f32 %v6892_v0, %v2850_v60  ;;  %v3700_v10 = vsel %vm3675_vm8, %v5860_v21, 0.0  ;;  %v8298_v60 = vld [vmem:[#allocation36_spill] sm:$0xff]  ;;  %v3431_v21 = vmul.f32 %v7028_v44, %v6781_v52 }
 0x340   : > { %3772 = vadd.xlane.f32.xlu1 %v3771_v22  ;;  %v8296_v22 = vld [vmem:[#allocation85_spill] sm:$0xff]  ;;  %v2855_v12 = vmul.f32 %v6874_v11, %v8298_v60  ;;  %v7044_v61 = vadd.f32 %v6892_v0, %v2854_v49  ;;  %v7058_v53 = vadd.f32 %v6892_v0, %v2857_v45  ;;  %v7071_v52 = vadd.f32 %v6892_v0, %v2856_v32 }
 0x341   : > { %v7015_v50 = vpop.xlane.xlu0 %3526  ;;  %v3236_v42 = vmul.f32 %v7003_v15, %v8296_v22  ;;  %v3759_v22 = vsel %vm2732_vm3, %v3693_v63, 0.0  ;;  %v7052_v60 = vadd.f32 %v6892_v0, %v2852_v25  ;;  %v2860_v63 = vmul.f32 %v6874_v11, %v8301_v17 }
 0x342   : > { %8294 = vst [vmem:[#allocation33_spill] sm:$0xff] %v7015_v50  ;;  %v3704_v25 = vsel %vm3675_vm8, %v5932_v29, 0.0  ;;  %v7074_v45 = vadd.f32 %v6892_v0, %v2855_v12  ;;  %v3430_v17 = vmul.f32 %v7028_v44, %v6721_v24  ;;  %v8305_v12 = vld [vmem:[#allocation35_spill] sm:$0xff] }
 0x343   : > { %v7040_v50 = vpop.xlane.xlu1 %3547  ;;  %3784 = vadd.xlane.f32.xlu2 %v3783_v14  ;;  %v3268_v49 = vadd.f32 %v3236_v42, %v3073_v23  ;;  %v7065_v14 = vld [vmem:[%s8096_s2 + $0x4] ss:$0 sm:$0xff]  ;;  %8303 = vst [vmem:[#allocation85_spill] sm:$0xff] %v7071_v52  ;;  %v3072_v23 = vadd.f32 %v3040_v46, %v2877_v38  ;;  %v3044_v42 = vmul.f32 %v6977_v4, %v8304_v36  ;;  %v8306_v46 = vld [vmem:[#allocation39_spill] sm:$0xff] }
 0x344   : > { %8300 = vst [vmem:[#allocation31_spill] sm:$0xff] %v7040_v50  ;;  %v3780_v50 = vsel %vm2732_vm3, %v3700_v10, 0.0  ;;  %v7085_v29 = vadd.f32 %v6892_v0, %v2860_v63  ;;  %v2859_v38 = vmul.f32 %v6874_v11, %v8305_v12  ;;  %v2858_v36 = vmul.f32 %v6874_v11, %v8306_v46 }
 0x345   : > { %v3463_v28 = vadd.f32 %v3431_v21, %v3268_v49  ;;  %v3792_v21 = vsel %vm2732_vm3, %v3704_v25, 0.0  ;;  %v3267_v24 = vadd.f32 %v3235_v57, %v3072_v23  ;;  %v8308_v49 = vld [vmem:[#allocation88_spill] sm:$0xff]  ;;  %v3703_v63 = vsel %vm3675_vm8, %v5966_v1, 0.0 }
 0x346   : > { %3760 = vadd.xlane.f32.xlu0 %v3759_v22  ;;  %v3560_v10 = vpop.xlane.xlu2 %3559  ;;  %v3696_v22 = vsel %vm3675_vm8, %v5527_v37, 0.0  ;;  %v3239_v37 = vmul.f32 %v7003_v15, %v8308_v49  ;;  %v3026_v46 = vmul.f32 %v6977_v4, %v8311_v2  ;;  %v3076_v23 = vadd.f32 %v3044_v42, %v2881_v9  ;;  %v8313_v2 = vld [vmem:[#allocation40_spill] sm:$0xff]  ;;  %v8314_v9 = vld [vmem:[#allocation93_spill] sm:$0xff] }
 0x347   : > { %v3626_v32 = vmul.f32 %v7065_v14, %v3560_v10  ;;  %v8310_v10 = vld [vmem:[#allocation38_spill] sm:$0xff]  ;;  %v3768_v57 = vsel %vm2732_vm3, %v3696_v22, 0.0  ;;  %v3462_v49 = vadd.f32 %v3430_v17, %v3267_v24  ;;  %v7112_v1 = vadd.f32 %v6892_v0, %v2859_v38  ;;  %v8316_v24 = vld [vmem:[#allocation56_spill] sm:$0xff] }
 0x348   : > { %3781 = vadd.xlane.f32.xlu1 %v3780_v50  ;;  %v2862_v12 = vmul.f32 %v6874_v11, %v8310_v10  ;;  %v7115_v10 = vadd.f32 %v6892_v0, %v2858_v36  ;;  %v3789_v22 = vsel %vm2732_vm3, %v3703_v63, 0.0  ;;  %v3238_v42 = vmul.f32 %v7003_v15, %v8314_v9 }
 0x349   : > { %v7091_v52 = vpop.xlane.xlu0 %3535  ;;  %v7096_v50 = vadd.f32 %v3626_v32, %v3463_v28  ;;  %v3434_v28 = vmul.f32 %v7028_v44, %v6799_v30  ;;  %v3707_v17 = vsel %vm3675_vm8, %v6007_v55, 0.0  ;;  %v7131_v36 = vadd.f32 %v3026_v46, %v6920_v41 }
 0x34a   : > { %8307 = vst [vmem:[#allocation32_spill] sm:$0xff] %v7091_v52  ;;  %v3043_v52 = vmul.f32 %v6977_v4, %v8312_v62  ;;  %v3029_v62 = vmul.f32 %v6977_v4, %v8313_v2  ;;  %v7128_v38 = vadd.f32 %v6892_v0, %v2862_v12 }
 0x34b   : > { %8309 = vst [vmem:[#allocation36_spill] sm:$0xff] %v7096_v50  ;;  %v3557_v25 = vpop.xlane.xlu1 %3556  ;;  %3793 = vadd.xlane.f32.xlu2 %v3792_v21  ;;  %v3271_v50 = vadd.f32 %v3239_v37, %v3076_v23  ;;  %v3047_v37 = vmul.f32 %v6977_v4, %v8316_v24  ;;  %v8317_v23 = vld [vmem:[#allocation18_spill] sm:$0xff]  ;;  %v3706_v24 = vsel %vm3675_vm8, %v6037_v20, 0.0 }
 0x34c   : > { %v3625_v32 = vmul.f32 %v7065_v14, %v3557_v25  ;;  %v3075_v21 = vadd.f32 %v3043_v52, %v6986_v59  ;;  %v7145_v59 = vadd.f32 %v3029_v62, %v6951_v6  ;;  %v8319_v52 = vld [vmem:[#allocation57_spill] sm:$0xff]  ;;  %v8322_v62 = vld [vmem:[#allocation80_spill] sm:$0xff] }
 0x34d   : > { %v3466_v25 = vadd.f32 %v3434_v28, %v3271_v50  ;;  %v3039_v46 = vmul.f32 %v6977_v4, %v8319_v52  ;;  %v8320_v28 = vld [vmem:[#allocation91_spill] sm:$0xff] }
 0x34e   : > { %3769 = vadd.xlane.f32.xlu0 %v3768_v57  ;;  %v7122_v30 = vadd.f32 %v3625_v32, %v3462_v49  ;;  %v3569_v63 = vpop.xlane.xlu2 %3568  ;;  %v3433_v57 = vmul.f32 %v7028_v44, %v6739_v35  ;;  %v3699_v49 = vsel %vm3675_vm8, %v8317_v23, 0.0  ;;  %v8318_v32 = vld [vmem:[#allocation41_spill] sm:$0xff]  ;;  %v3801_v35 = vsel %vm2732_vm3, %v3707_v17, 0.0 }
 0x34f   : > { %v3629_v12 = vmul.f32 %v7065_v14, %v3569_v63  ;;  %v3028_v41 = vmul.f32 %v6977_v4, %v8318_v32  ;;  %v3270_v50 = vadd.f32 %v3238_v42, %v3075_v21  ;;  %v3242_v9 = vmul.f32 %v7003_v15, %v8320_v28  ;;  %v8321_v63 = vld [vmem:[#allocation58_spill] sm:$0xff] }
 0x350   : > { %8315 = vst [vmem:[#allocation52_spill] sm:$0xff] %v7122_v30  ;;  %3790 = vadd.xlane.f32.xlu1 %v3789_v22  ;;  %v3046_v6 = vmul.f32 %v6977_v4, %v8321_v63  ;;  %v3234_v32 = vmul.f32 %v7003_v15, %v8322_v62  ;;  %v3777_v52 = vsel %vm2732_vm3, %v3699_v49, 0.0  ;;  %v3079_v42 = vadd.f32 %v3047_v37, %v7052_v60  ;;  %v8323_v63 = vld [vmem:[#allocation96_spill] sm:$0xff] }
 0x351   : > { %v7149_v2 = vpop.xlane.xlu0 %3544  ;;  %v7154_v22 = vadd.f32 %v3629_v12, %v3466_v25  ;;  %v3465_v17 = vadd.f32 %v3433_v57, %v3270_v50  ;;  %v3437_v21 = vmul.f32 %v7028_v44, %v6817_v31  ;;  %v7170_v12 = vadd.f32 %v3028_v41, %v6904_v48  ;;  %v8324_v48 = vld [vmem:[#allocation42_spill] sm:$0xff]  ;;  %v8325_v57 = vld [vmem:[#allocation59_spill] sm:$0xff] }
 0x352   : > { %v3071_v28 = vadd.f32 %v3039_v46, %v6983_v47  ;;  %v3241_v49 = vmul.f32 %v7003_v15, %v8323_v63  ;;  %v3798_v62 = vsel %vm2732_vm3, %v3706_v24, 0.0  ;;  %v3274_v20 = vadd.f32 %v3242_v9, %v3079_v42  ;;  %v8326_v9 = vld [vmem:[#allocation21_spill] sm:$0xff]  ;;  %v8327_v42 = vld [vmem:[#allocation60_spill] sm:$0xff] }
 0x353   : > { %v3566_v30 = vpop.xlane.xlu1 %3565  ;;  %3802 = vadd.xlane.f32.xlu2 %v3801_v35  ;;  %v3429_v60 = vmul.f32 %v7028_v44, %v6733_v26  ;;  %v3873_v31 = vsel %vm3870_vm9, %v4823_v51, 0.0  ;;  %v3078_v47 = vadd.f32 %v3046_v6, %v7009_v56  ;;  %v3050_v41 = vmul.f32 %v6977_v4, %v8325_v57  ;;  %v8328_v6 = vld [vmem:[#allocation94_spill] sm:$0xff] }
 0x354   : > { %v3628_v25 = vmul.f32 %v7065_v14, %v3566_v30  ;;  %v3032_v30 = vmul.f32 %v6977_v4, %v8324_v48  ;;  %v3266_v46 = vadd.f32 %v3234_v32, %v3071_v28  ;;  %v3436_v26 = vmul.f32 %v7028_v44, %v6758_v33  ;;  %v8330_v48 = vld [vmem:[#allocation61_spill] sm:$0xff] }
 0x355   : > { %v3469_v50 = vadd.f32 %v3437_v21, %v3274_v20  ;;  %v3702_v24 = vsel %vm3675_vm8, %v8326_v9, 0.0  ;;  %v3273_v56 = vadd.f32 %v3241_v49, %v3078_v47  ;;  %v3909_v28 = vsel %vm2732_vm3, %v3873_v31, 0.0  ;;  %v8329_v21 = vld [vmem:[#allocation4_spill] sm:$0xff]  ;;  %v8331_v47 = vld [vmem:[#allocation83_spill] sm:$0xff] }
 0x356   : > { %3778 = vadd.xlane.f32.xlu0 %v3777_v52  ;;  %v7178_v37 = vadd.f32 %v3628_v25, %v3465_v17  ;;  %v3578_v35 = vpop.xlane.xlu2 %3577  ;;  %v3042_v17 = vmul.f32 %v6977_v4, %v8327_v42  ;;  %v3245_v25 = vmul.f32 %v7003_v15, %v8328_v6  ;;  %v3461_v63 = vadd.f32 %v3429_v60, %v3266_v46  ;;  %v8332_v6 = vld [vmem:[#allocation43_spill] sm:$0xff] }
 0x357   : > { %v3632_v52 = vmul.f32 %v7065_v14, %v3578_v35  ;;  %v3049_v57 = vmul.f32 %v6977_v4, %v8330_v48  ;;  %v3082_v49 = vadd.f32 %v3050_v41, %v7074_v45  ;;  %v3237_v35 = vmul.f32 %v7003_v15, %v8331_v47  ;;  %v8333_v41 = vld [vmem:[#allocation99_spill] sm:$0xff] }
 0x358   : > { %3799 = vadd.xlane.f32.xlu1 %v3798_v62  ;;  %v3872_v62 = vsel %vm3870_vm9, %v8329_v21, 0.0  ;;  %v3786_v42 = vsel %vm2732_vm3, %v3702_v24, 0.0  ;;  %v3468_v60 = vadd.f32 %v3436_v26, %v3273_v56  ;;  %v3440_v46 = vmul.f32 %v7028_v44, %v6835_v27  ;;  %v8334_v26 = vld [vmem:[#allocation115_spill] sm:$0xff] }
 0x359   : > { %v3554_v32 = vpop.xlane.xlu0 %3553  ;;  %v7200_v33 = vadd.f32 %v3632_v52, %v3469_v50  ;;  %v3074_v45 = vadd.f32 %v3042_v17, %v6989_v54  ;;  %v3244_v48 = vmul.f32 %v7003_v15, %v8333_v41  ;;  %v3906_v24 = vsel %vm2732_vm3, %v3872_v62, 0.0  ;;  %v8335_v17 = vld [vmem:[#allocation62_spill] sm:$0xff] }
 0x35a   : > { %v3624_v20 = vmul.f32 %v7065_v14, %v3554_v32  ;;  %v2861_v32 = vmul.f32 %v6874_v11, %v8332_v6  ;;  %v3277_v47 = vadd.f32 %v3245_v25, %v3082_v49  ;;  %v3432_v56 = vmul.f32 %v7028_v44, %v8334_v26 }
 0x35b   : > { %v3575_v31 = vpop.xlane.xlu1 %3574  ;;  %3910 = vadd.xlane.f32.xlu2 %v3909_v28  ;;  %v3876_v28 = vsel %vm3870_vm9, %v4895_v13, 0.0  ;;  %v3081_v54 = vadd.f32 %v3049_v57, %v7044_v61  ;;  %v3269_v62 = vadd.f32 %v3237_v35, %v3074_v45  ;;  %v3439_v49 = vmul.f32 %v7028_v44, %v6776_v40  ;;  %v8338_v57 = vld [vmem:[#allocation97_spill] sm:$0xff] }
 0x35c   : > { %v7213_v50 = vadd.f32 %v3624_v20, %v3461_v63  ;;  %v3631_v52 = vmul.f32 %v7065_v14, %v3575_v31  ;;  %v7230_v63 = vadd.f32 %v3032_v30, %v6960_v39  ;;  %v3053_v20 = vmul.f32 %v6977_v4, %v8335_v17  ;;  %v8336_v31 = vld [vmem:[#allocation24_spill] sm:$0xff]  ;;  %v8337_v39 = vld [vmem:[#allocation63_spill] sm:$0xff] }
 0x35d   : > { %v3045_v30 = vmul.f32 %v6977_v4, %v8337_v39  ;;  %v3276_v61 = vadd.f32 %v3244_v48, %v3081_v54  ;;  %v3248_v6 = vmul.f32 %v7003_v15, %v8338_v57  ;;  %v3918_v45 = vsel %vm2732_vm3, %v3876_v28, 0.0  ;;  %v8340_v54 = vld [vmem:[#allocation86_spill] sm:$0xff] }
 0x35e   : > { %3787 = vadd.xlane.f32.xlu0 %v3786_v42  ;;  %v7224_v27 = vadd.f32 %v3631_v52, %v3468_v60  ;;  %v3587_v25 = vpop.xlane.xlu2 %3586  ;;  %v3472_v42 = vadd.f32 %v3440_v46, %v3277_v47  ;;  %v3705_v60 = vsel %vm3675_vm8, %v8336_v31, 0.0  ;;  %v3464_v41 = vadd.f32 %v3432_v56, %v3269_v62  ;;  %v8339_v47 = vld [vmem:[#allocation64_spill] sm:$0xff] }
 0x35f   : > { %v3635_v52 = vmul.f32 %v7065_v14, %v3587_v25  ;;  %v3052_v26 = vmul.f32 %v6977_v4, %v8339_v47  ;;  %v3085_v48 = vadd.f32 %v3053_v20, %v7115_v10  ;;  %v3240_v17 = vmul.f32 %v7003_v15, %v8340_v54  ;;  %v8341_v10 = vld [vmem:[#allocation102_spill] sm:$0xff]  ;;  %v8342_v47 = vld [vmem:[#allocation117_spill] sm:$0xff] }
 0x360   : > { %3907 = vadd.xlane.f32.xlu1 %v3906_v24  ;;  %v3875_v24 = vsel %vm3870_vm9, %v4794_v58, 0.0  ;;  %v3795_v25 = vsel %vm2732_vm3, %v3705_v60, 0.0  ;;  %v3471_v56 = vadd.f32 %v3439_v49, %v3276_v61  ;;  %v3443_v62 = vmul.f32 %v7028_v44, %v6853_v5  ;;  %v8346_v54 = vld [vmem:[#allocation2_spill] sm:$0xff] }
 0x361   : > { %v3563_v35 = vpop.xlane.xlu0 %3562  ;;  %v7247_v46 = vadd.f32 %v3635_v52, %v3472_v42  ;;  %v2893_v39 = vadd.f32 %v6892_v0, %v2861_v32  ;;  %v3077_v57 = vadd.f32 %v3045_v30, %v7019_v16  ;;  %v3247_v20 = vmul.f32 %v7003_v15, %v8341_v10  ;;  %v8345_v30 = vld [vmem:[#allocation65_spill] sm:$0xff] }
 0x362   : > { %v3627_v40 = vmul.f32 %v7065_v14, %v3563_v35  ;;  %v3915_v35 = vsel %vm2732_vm3, %v3875_v24, 0.0  ;;  %v3280_v60 = vadd.f32 %v3248_v6, %v3085_v48  ;;  %v3435_v49 = vmul.f32 %v7028_v44, %v8342_v47 }
 0x363   : > { %v3584_v28 = vpop.xlane.xlu1 %3583  ;;  %3919 = vadd.xlane.f32.xlu2 %v3918_v45  ;;  %v3879_v61 = vsel %vm3870_vm9, %v5005_v3, 0.0  ;;  %v8344_v45 = vld [vmem:[#allocation46_spill] sm:$0xff]  ;;  %v3084_v16 = vadd.f32 %v3052_v26, %v7058_v53  ;;  %v3442_v24 = vmul.f32 %v7028_v44, %v6794_v34  ;;  %v8348_v26 = vld [vmem:[#allocation100_spill] sm:$0xff] }
 0x364   : > { %v7260_v42 = vadd.f32 %v3627_v40, %v3464_v41  ;;  %v3634_v52 = vmul.f32 %v7065_v14, %v3584_v28  ;;  %v3027_v32 = vmul.f32 %v6977_v4, %v8344_v45  ;;  %v3056_v41 = vmul.f32 %v6977_v4, %v8345_v30  ;;  %v8350_v45 = vld [vmem:[#allocation67_spill] sm:$0xff] }
 0x365   : > { %v3272_v40 = vadd.f32 %v3240_v17, %v3077_v57  ;;  %v3475_v48 = vadd.f32 %v3443_v62, %v3280_v60  ;;  %v3279_v53 = vadd.f32 %v3247_v20, %v3084_v16  ;;  %v3251_v10 = vmul.f32 %v7003_v15, %v8348_v26  ;;  %v8349_v60 = vld [vmem:[#allocation5_spill] sm:$0xff] }
 0x366   : > { %3796 = vadd.xlane.f32.xlu0 %v3795_v25  ;;  %v7270_v5 = vadd.f32 %v3634_v52, %v3471_v56  ;;  %v3596_v6 = vpop.xlane.xlu2 %3595  ;;  %v3871_v25 = vsel %vm3870_vm9, %v8346_v54, 0.0  ;;  %v8347_v56 = vld [vmem:[#allocation66_spill] sm:$0xff]  ;;  %v3927_v57 = vsel %vm2732_vm3, %v3879_v61, 0.0  ;;  %v3055_v30 = vmul.f32 %v6977_v4, %v8350_v45  ;;  %v8351_v20 = vld [vmem:[#allocation89_spill] sm:$0xff] }
 0x367   : > { %v3638_v28 = vmul.f32 %v7065_v14, %v3596_v6  ;;  %v3048_v52 = vmul.f32 %v6977_v4, %v8347_v56  ;;  %v3467_v47 = vadd.f32 %v3435_v49, %v3272_v40  ;;  %v3088_v6 = vadd.f32 %v3056_v41, %v2893_v39  ;;  %v8352_v39 = vld [vmem:[#allocation105_spill] sm:$0xff] }
 0x368   : > { %8343 = vst [vmem:[#allocation34_spill] sm:$0xff] %v7270_v5  ;;  %3916 = vadd.xlane.f32.xlu1 %v3915_v35  ;;  %v3878_v35 = vsel %vm3870_vm9, %v8349_v60, 0.0  ;;  %v3243_v16 = vmul.f32 %v7003_v15, %v8351_v20  ;;  %v3903_v56 = vsel %vm2732_vm3, %v3871_v25, 0.0  ;;  %v3474_v61 = vadd.f32 %v3442_v24, %v3279_v53  ;;  %v8353_v20 = vld [vmem:[#allocation118_spill] sm:$0xff]  ;;  %v8372_v60 = vld [vmem:[#allocation51_spill] sm:$0xff] }
 0x369   : > { %v3572_v17 = vpop.xlane.xlu0 %3571  ;;  %v7292_v62 = vadd.f32 %v3638_v28, %v3475_v48  ;;  %v3446_v49 = vmul.f32 %v7028_v44, %v6876_v8  ;;  %v3059_v28 = vadd.f32 %v3027_v32, %v6954_v18  ;;  %v3250_v41 = vmul.f32 %v7003_v15, %v8352_v39  ;;  %v8356_v32 = vld [vmem:[#allocation68_spill] sm:$0xff] }
 0x36a   : > { %v3630_v34 = vmul.f32 %v7065_v14, %v3572_v17  ;;  %v3080_v17 = vadd.f32 %v3048_v52, %v7049_v7  ;;  %v3924_v45 = vsel %vm2732_vm3, %v3878_v35, 0.0  ;;  %v3283_v25 = vadd.f32 %v3251_v10, %v3088_v6 }
 0x36b   : > { %v3593_v26 = vpop.xlane.xlu1 %3592  ;;  %3928 = vadd.xlane.f32.xlu2 %v3927_v57  ;;  %v3438_v24 = vmul.f32 %v7028_v44, %v8353_v20  ;;  %v3882_v53 = vsel %vm3870_vm9, %v5156_v43, 0.0  ;;  %v8355_v57 = vld [vmem:[#allocation49_spill] sm:$0xff]  ;;  %v3087_v7 = vadd.f32 %v3055_v30, %v7085_v29  ;;  %v3222_v52 = vmul.f32 %v7003_v15, %v8356_v32  ;;  %v8360_v30 = vld [vmem:[#allocation103_spill] sm:$0xff] }
 0x36c   : > { %v7304_v40 = vadd.f32 %v3630_v34, %v3467_v47  ;;  %v3637_v48 = vmul.f32 %v7065_v14, %v3593_v26  ;;  %v3030_v18 = vmul.f32 %v6977_v4, %v8355_v57  ;;  %v3275_v47 = vadd.f32 %v3243_v16, %v3080_v17  ;;  %v8357_v34 = vld [vmem:[#allocation120_spill] sm:$0xff]  ;;  %v8362_v32 = vld [vmem:[#allocation7_spill] sm:$0xff] }
 0x36d   : > { %v3445_v35 = vmul.f32 %v7028_v44, %v8357_v34  ;;  %v3478_v6 = vadd.f32 %v3446_v49, %v3283_v25  ;;  %v3282_v29 = vadd.f32 %v3250_v41, %v3087_v7  ;;  %v3417_v20 = vmul.f32 %v7028_v44, %v8360_v30  ;;  %v8364_v41 = vld [vmem:[#allocation92_spill] sm:$0xff] }
 0x36e   : > { %3904 = vadd.xlane.f32.xlu0 %v3903_v56  ;;  %v7314_v8 = vadd.f32 %v3637_v48, %v3474_v61  ;;  %v3605_v10 = vpop.xlane.xlu2 %3604  ;;  %v8358_v56 = vld [vmem:[#allocation3_spill] sm:$0xff]  ;;  %v8359_v48 = vld [vmem:[#allocation69_spill] sm:$0xff]  ;;  %v3936_v17 = vsel %vm2732_vm3, %v3882_v53, 0.0  ;;  %v3470_v57 = vadd.f32 %v3438_v24, %v3275_v47  ;;  %v3246_v7 = vmul.f32 %v7003_v15, %v8364_v41  ;;  %v8365_v24 = vld [vmem:[#allocation130_spill] sm:$0xff] }
 0x36f   : > { %v3874_v26 = vsel %vm3870_vm9, %v8358_v56, 0.0  ;;  %v3641_v61 = vmul.f32 %v7065_v14, %v3605_v10  ;;  %v3051_v39 = vmul.f32 %v6977_v4, %v8359_v48  ;;  %v8363_v10 = vld [vmem:[#allocation70_spill] sm:$0xff]  ;;  %v3254_v48 = vadd.f32 %v3222_v52, %v3059_v28  ;;  %v8366_v28 = vld [vmem:[#allocation128_spill] sm:$0xff] }
 0x370   : > { %8354 = vst [vmem:[#allocation90_spill] sm:$0xff] %v7314_v8  ;;  %3925 = vadd.xlane.f32.xlu1 %v3924_v45  ;;  %v3881_v45 = vsel %vm3870_vm9, %v8362_v32, 0.0  ;;  %v3221_v34 = vmul.f32 %v7003_v15, %v8363_v10  ;;  %v3912_v30 = vsel %vm2732_vm3, %v3874_v26, 0.0  ;;  %v3477_v53 = vadd.f32 %v3445_v35, %v3282_v29  ;;  %v8367_v10 = vld [vmem:[#allocation85_spill] sm:$0xff]  ;;  %v8368_v26 = vld [vmem:[#allocation108_spill] sm:$0xff] }
 0x371   : > { %v3581_v16 = vpop.xlane.xlu0 %3580  ;;  %v7336_v25 = vadd.f32 %v3641_v61, %v3478_v6  ;;  %v3612_v47 = vmul.f32 %v7065_v14, %v8365_v24  ;;  %v3062_v52 = vadd.f32 %v3030_v18, %v8366_v28  ;;  %v3083_v41 = vadd.f32 %v3051_v39, %v8367_v10  ;;  %v8373_v28 = vld [vmem:[#allocation71_spill] sm:$0xff] }
 0x372   : > { %v3633_v49 = vmul.f32 %v7065_v14, %v3581_v16  ;;  %v7354_v16 = vld [vmem:[%s8096_s2 + $0x5] ss:$0 sm:$0xff]  ;;  %v3416_v35 = vmul.f32 %v7028_v44, %v8368_v26  ;;  %v3933_v29 = vsel %vm2732_vm3, %v3881_v45, 0.0  ;;  %v3449_v24 = vadd.f32 %v3417_v20, %v3254_v48 }
 0x373   : > { %8361 = vst [vmem:[#allocation53_spill] sm:$0xff] %v7336_v25  ;;  %v3602_v8 = vpop.xlane.xlu1 %3601  ;;  %3937 = vadd.xlane.f32.xlu2 %v3936_v17  ;;  %v8371_v17 = vld [vmem:[#allocation9_spill] sm:$0xff]  ;;  %v3033_v18 = vmul.f32 %v6977_v4, %v8372_v60  ;;  %v3253_v39 = vadd.f32 %v3221_v34, %v7131_v36  ;;  %v3225_v10 = vmul.f32 %v7003_v15, %v8373_v28  ;;  %v8374_v48 = vld [vmem:[#allocation122_spill] sm:$0xff] }
 0x374   : > { %v7348_v6 = vadd.f32 %v3633_v49, %v3470_v57  ;;  %v3640_v61 = vmul.f32 %v7065_v14, %v3602_v8  ;;  %v8369_v57 = vld [vmem:[#allocation119_spill] sm:$0xff]  ;;  %v3885_v32 = vsel %vm3870_vm9, %v8371_v17, 0.0  ;;  %v3278_v45 = vadd.f32 %v3246_v7, %v3083_v41  ;;  %v8377_v34 = vld [vmem:[#allocation106_spill] sm:$0xff] }
 0x375   : > { %v3441_v49 = vmul.f32 %v7028_v44, %v8369_v57  ;;  %v3611_v26 = vmul.f32 %v7065_v14, %v8374_v48  ;;  %v3448_v36 = vadd.f32 %v3416_v35, %v3253_v39  ;;  %v3420_v28 = vmul.f32 %v7028_v44, %v8377_v34  ;;  %v8379_v48 = vld [vmem:[#allocation10_spill] sm:$0xff]  ;;  %v8381_v35 = vld [vmem:[#allocation95_spill] sm:$0xff] }
 0x376   : > { %3913 = vadd.xlane.f32.xlu0 %v3912_v30  ;;  %v7363_v8 = vadd.f32 %v3640_v61, %v3477_v53  ;;  %v3713_v20 = vpop.xlane.xlu2 %3712  ;;  %v3644_v30 = vadd.f32 %v3612_v47, %v3449_v24  ;;  %v8375_v53 = vld [vmem:[#allocation6_spill] sm:$0xff]  ;;  %v3945_v41 = vsel %vm2732_vm3, %v3885_v32, 0.0  ;;  %v3249_v39 = vmul.f32 %v7003_v15, %v8381_v35 }
 0x377   : > { %v3877_v61 = vsel %vm3870_vm9, %v8375_v53, 0.0  ;;  %v3807_v57 = vmul.f32 %v7354_v16, %v3713_v20  ;;  %v3473_v17 = vadd.f32 %v3441_v49, %v3278_v45  ;;  %v8380_v20 = vld [vmem:[#allocation73_spill] sm:$0xff]  ;;  %v3643_v32 = vadd.f32 %v3611_v26, %v3448_v36 }
 0x378   : > { %8370 = vst [vmem:[#allocation35_spill] sm:$0xff] %v7363_v8  ;;  %3934 = vadd.xlane.f32.xlu1 %v3933_v29  ;;  %v8376_v8 = vld [vmem:[#allocation72_spill] sm:$0xff]  ;;  %v3884_v29 = vsel %vm3870_vm9, %v8379_v48, 0.0  ;;  %v3224_v25 = vmul.f32 %v7003_v15, %v8380_v20  ;;  %v3921_v34 = vsel %vm2732_vm3, %v3877_v61, 0.0  ;;  %v8382_v49 = vld [vmem:[#allocation33_spill] sm:$0xff] }
 0x379   : > { %v3054_v60 = vmul.f32 %v6977_v4, %v8376_v8  ;;  %v3590_v7 = vpop.xlane.xlu0 %3589  ;;  %v7385_v24 = vadd.f32 %v3807_v57, %v3644_v30  ;;  %v3257_v8 = vadd.f32 %v3225_v10, %v3062_v52  ;;  %v3615_v45 = vmul.f32 %v7065_v14, %v8382_v49  ;;  %v8384_v52 = vld [vmem:[#allocation111_spill] sm:$0xff] }
 0x37a   : > { %v3636_v47 = vmul.f32 %v7065_v14, %v3590_v7  ;;  %v8383_v7 = vld [vmem:[#allocation133_spill] sm:$0xff]  ;;  %v3419_v10 = vmul.f32 %v7028_v44, %v8384_v52  ;;  %v3942_v35 = vsel %vm2732_vm3, %v3884_v29, 0.0 }
 0x37b   : > { %8378 = vst [vmem:[#allocation39_spill] sm:$0xff] %v7385_v24  ;;  %v3710_v5 = vpop.xlane.xlu1 %3709  ;;  %3946 = vadd.xlane.f32.xlu2 %v3945_v41  ;;  %v3065_v48 = vadd.f32 %v3033_v18, %v8383_v7  ;;  %v3086_v20 = vadd.f32 %v3054_v60, %v7112_v1  ;;  %v3452_v61 = vadd.f32 %v3420_v28, %v3257_v8  ;;  %v8385_v24 = vld [vmem:[#allocation121_spill] sm:$0xff]  ;;  %v8388_v41 = vld [vmem:[#allocation54_spill] sm:$0xff]  ;;  %v8390_v8 = vld [vmem:[#allocation124_spill] sm:$0xff] }
 0x37c   : > { %v7397_v30 = vadd.f32 %v3636_v47, %v3473_v17  ;;  %v3806_v57 = vmul.f32 %v7354_v16, %v3710_v5  ;;  %v3444_v26 = vmul.f32 %v7028_v44, %v8385_v24  ;;  %v8387_v17 = vld [vmem:[#allocation12_spill] sm:$0xff]  ;;  %v3036_v18 = vmul.f32 %v6977_v4, %v8388_v41  ;;  %v8389_v60 = vld [vmem:[#allocation74_spill] sm:$0xff]  ;;  %v8392_v7 = vld [vmem:[#allocation75_spill] sm:$0xff] }
 0x37d   : > { %v3888_v5 = vsel %vm3870_vm9, %v8387_v17, 0.0  ;;  %v3256_v1 = vadd.f32 %v3224_v25, %v7145_v59  ;;  %v3228_v47 = vmul.f32 %v7003_v15, %v8389_v60  ;;  %v3281_v29 = vadd.f32 %v3249_v39, %v3086_v20  ;;  %v8393_v25 = vld [vmem:[#allocation109_spill] sm:$0xff] }
 0x37e   : > { %3922 = vadd.xlane.f32.xlu0 %v3921_v34  ;;  %v7407_v36 = vadd.f32 %v3806_v57, %v3643_v32  ;;  %v3722_v28 = vpop.xlane.xlu2 %3721  ;;  %v3614_v24 = vmul.f32 %v7065_v14, %v8390_v8  ;;  %v3647_v34 = vadd.f32 %v3615_v45, %v3452_v61  ;;  %v8391_v32 = vld [vmem:[#allocation8_spill] sm:$0xff]  ;;  %v3057_v52 = vmul.f32 %v6977_v4, %v8392_v7  ;;  %v8395_v8 = vld [vmem:[#allocation13_spill] sm:$0xff] }
 0x37f   : > { %v3880_v49 = vsel %vm3870_vm9, %v8391_v32, 0.0  ;;  %v3810_v57 = vmul.f32 %v7354_v16, %v3722_v28  ;;  %v3451_v59 = vadd.f32 %v3419_v10, %v3256_v1  ;;  %v3423_v41 = vmul.f32 %v7028_v44, %v8393_v25  ;;  %v8396_v28 = vld [vmem:[#allocation76_spill] sm:$0xff]  ;;  %v8397_v10 = vld [vmem:[#allocation98_spill] sm:$0xff] }
 0x380   : > { %8386 = vst [vmem:[#allocation88_spill] sm:$0xff] %v7407_v36  ;;  %3943 = vadd.xlane.f32.xlu1 %v3942_v35  ;;  %v3954_v20 = vsel %vm2732_vm3, %v3888_v5, 0.0  ;;  %v3476_v60 = vadd.f32 %v3444_v26, %v3281_v29  ;;  %v3887_v35 = vsel %vm3870_vm9, %v8395_v8, 0.0  ;;  %v3227_v36 = vmul.f32 %v7003_v15, %v8396_v28  ;;  %v8398_v26 = vld [vmem:[#allocation32_spill] sm:$0xff] }
 0x381   : > { %v3599_v39 = vpop.xlane.xlu0 %3598  ;;  %v7429_v61 = vadd.f32 %v3810_v57, %v3647_v34  ;;  %v3260_v7 = vadd.f32 %v3228_v47, %v3065_v48  ;;  %v3252_v1 = vmul.f32 %v7003_v15, %v8397_v10  ;;  %v3930_v25 = vsel %vm2732_vm3, %v3880_v49, 0.0  ;;  %v8400_v47 = vld [vmem:[#allocation113_spill] sm:$0xff] }
 0x382   : > { %v3639_v45 = vmul.f32 %v7065_v14, %v3599_v39  ;;  %v3646_v5 = vadd.f32 %v3614_v24, %v3451_v59  ;;  %v3618_v29 = vmul.f32 %v7065_v14, %v8398_v26  ;;  %v8399_v39 = vld [vmem:[#allocation45_spill] sm:$0xff]  ;;  %v3089_v48 = vadd.f32 %v3057_v52, %v7128_v38  ;;  %v8401_v24 = vld [vmem:[#allocation123_spill] sm:$0xff] }
 0x383   : > { %8394 = vst [vmem:[#allocation38_spill] sm:$0xff] %v7429_v61  ;;  %v3719_v17 = vpop.xlane.xlu1 %3718  ;;  %3955 = vadd.xlane.f32.xlu2 %v3954_v20  ;;  %v3035_v8 = vmul.f32 %v6977_v4, %v8399_v39  ;;  %v3422_v28 = vmul.f32 %v7028_v44, %v8400_v47  ;;  %v3951_v49 = vsel %vm2732_vm3, %v3887_v35, 0.0  ;;  %v3455_v10 = vadd.f32 %v3423_v41, %v3260_v7  ;;  %v8404_v20 = vld [vmem:[#allocation134_spill] sm:$0xff]  ;;  %v8405_v52 = vld [vmem:[#allocation77_spill] sm:$0xff] }
 0x384   : > { %v7441_v34 = vadd.f32 %v3639_v45, %v3476_v60  ;;  %v3809_v57 = vmul.f32 %v7354_v16, %v3719_v17  ;;  %v3447_v59 = vmul.f32 %v7028_v44, %v8401_v24  ;;  %v8403_v45 = vld [vmem:[#allocation15_spill] sm:$0xff]  ;;  %v3068_v26 = vadd.f32 %v3036_v18, %v8404_v20  ;;  %v8406_v41 = vld [vmem:[#allocation126_spill] sm:$0xff] }
 0x385   : > { %v3891_v17 = vsel %vm3870_vm9, %v8403_v45, 0.0  ;;  %v3259_v38 = vadd.f32 %v3227_v36, %v7230_v63  ;;  %v3231_v39 = vmul.f32 %v7003_v15, %v8405_v52  ;;  %v3284_v47 = vadd.f32 %v3252_v1, %v3089_v48  ;;  %v8409_v36 = vld [vmem:[#allocation112_spill] sm:$0xff] }
 0x386   : > { %3931 = vadd.xlane.f32.xlu0 %v3930_v25  ;;  %v7452_v60 = vadd.f32 %v3809_v57, %v3646_v5  ;;  %v3731_v35 = vpop.xlane.xlu2 %3730  ;;  %v3617_v7 = vmul.f32 %v7065_v14, %v8406_v41  ;;  %v3650_v24 = vadd.f32 %v3618_v29, %v3455_v10  ;;  %v8407_v25 = vld [vmem:[#allocation11_spill] sm:$0xff]  ;;  %v3426_v20 = vmul.f32 %v7028_v44, %v8409_v36  ;;  %v8410_v41 = vld [vmem:[#allocation16_spill] sm:$0xff] }
 0x387   : > { %v3883_v5 = vsel %vm3870_vm9, %v8407_v25, 0.0  ;;  %v3813_v57 = vmul.f32 %v7354_v16, %v3731_v35  ;;  %v3454_v63 = vadd.f32 %v3422_v28, %v3259_v38  ;;  %v3963_v48 = vsel %vm2732_vm3, %v3891_v17, 0.0  ;;  %v8411_v35 = vld [vmem:[#allocation79_spill] sm:$0xff]  ;;  %v8412_v28 = vld [vmem:[#allocation101_spill] sm:$0xff] }
 0x388   : > { %8402 = vst [vmem:[#allocation37_spill] sm:$0xff] %v7452_v60  ;;  %3952 = vadd.xlane.f32.xlu1 %v3951_v49  ;;  %v8408_v60 = vld [vmem:[#allocation78_spill] sm:$0xff]  ;;  %v3479_v52 = vadd.f32 %v3447_v59, %v3284_v47  ;;  %v3890_v49 = vsel %vm3870_vm9, %v8410_v41, 0.0  ;;  %v3230_v45 = vmul.f32 %v7003_v15, %v8411_v35  ;;  %v3418_v38 = vmul.f32 %v7028_v44, %v8412_v28  ;;  %v8415_v41 = vld [vmem:[#allocation125_spill] sm:$0xff] }
 0x389   : > { %v3223_v18 = vmul.f32 %v7003_v15, %v8408_v60  ;;  %v3608_v1 = vpop.xlane.xlu0 %3607  ;;  %v7473_v10 = vadd.f32 %v3813_v57, %v3650_v24  ;;  %v3263_v60 = vadd.f32 %v3231_v39, %v3068_v26  ;;  %v3939_v36 = vsel %vm2732_vm3, %v3883_v5, 0.0  ;;  %v8413_v57 = vld [vmem:[#allocation135_spill] sm:$0xff]  ;;  %v8414_v26 = vld [vmem:[#allocation114_spill] sm:$0xff] }
 0x38a   : > { %v3642_v29 = vmul.f32 %v7065_v14, %v3608_v1  ;;  %v3649_v17 = vadd.f32 %v3617_v7, %v3454_v63  ;;  %v3621_v59 = vmul.f32 %v7065_v14, %v7149_v2  ;;  %v3067_v1 = vadd.f32 %v3035_v8, %v8413_v57  ;;  %v8417_v63 = vld [vmem:[#allocation30_spill] sm:$0xff] }
 0x38b   : > { %v3728_v61 = vpop.xlane.xlu1 %3727  ;;  %3964 = vadd.xlane.f32.xlu2 %v3963_v48  ;;  %v3255_v35 = vadd.f32 %v3223_v18, %v7170_v12  ;;  %v3425_v39 = vmul.f32 %v7028_v44, %v8414_v26  ;;  %v3960_v28 = vsel %vm2732_vm3, %v3890_v49, 0.0  ;;  %v3458_v5 = vadd.f32 %v3426_v20, %v3263_v60  ;;  %v8418_v12 = vld [vmem:[#allocation44_spill] sm:$0xff]  ;;  %v8419_v20 = vld [vmem:[#allocation129_spill] sm:$0xff]  ;;  %v8420_v60 = vld [vmem:[#allocation14_spill] sm:$0xff] }
 0x38c   : > { %v7485_v47 = vadd.f32 %v3642_v29, %v3479_v52  ;;  %v3812_v24 = vmul.f32 %v7354_v16, %v3728_v61  ;;  %v3613_v7 = vmul.f32 %v7065_v14, %v8415_v41  ;;  %v3894_v61 = vsel %vm3870_vm9, %v8317_v23, 0.0  ;;  %v8422_v26 = vld [vmem:[#allocation81_spill] sm:$0xff] }
 0x38d   : > { %v2843_v8 = vmul.f32 %v6874_v11, %v8417_v63  ;;  %v3031_v18 = vmul.f32 %v6977_v4, %v8418_v12  ;;  %v3262_v48 = vadd.f32 %v3230_v45, %v3067_v1  ;;  %v3450_v52 = vadd.f32 %v3418_v38, %v3255_v35  ;;  %v8424_v12 = vld [vmem:[#allocation19_spill] sm:$0xff] }
 0x38e   : > { %3940 = vadd.xlane.f32.xlu0 %v3939_v36  ;;  %v7495_v2 = vadd.f32 %v3812_v24, %v3649_v17  ;;  %v3740_v29 = vpop.xlane.xlu2 %3739  ;;  %v3620_v49 = vmul.f32 %v7065_v14, %v8419_v20  ;;  %v3653_v41 = vadd.f32 %v3621_v59, %v3458_v5  ;;  %v3886_v36 = vsel %vm3870_vm9, %v8420_v60, 0.0  ;;  %v8421_v24 = vld [vmem:[#allocation48_spill] sm:$0xff] }
 0x38f   : > { %v3816_v17 = vmul.f32 %v7354_v16, %v3740_v29  ;;  %v3038_v57 = vmul.f32 %v6977_v4, %v8421_v24  ;;  %v3226_v63 = vmul.f32 %v7003_v15, %v8422_v26  ;;  %v3457_v45 = vadd.f32 %v3425_v39, %v3262_v48  ;;  %v8425_v20 = vld [vmem:[#allocation132_spill] sm:$0xff] }
 0x390   : > { %8416 = vst [vmem:[#allocation55_spill] sm:$0xff] %v7495_v2  ;;  %3961 = vadd.xlane.f32.xlu1 %v3960_v28  ;;  %v3972_v1 = vsel %vm2732_vm3, %v3894_v61, 0.0  ;;  %v3645_v35 = vadd.f32 %v3613_v7, %v3450_v52  ;;  %v3893_v28 = vsel %vm3870_vm9, %v8424_v12, 0.0  ;;  %v2875_v29 = vadd.f32 %v6892_v0, %v2843_v8  ;;  %v8426_v2 = vld [vmem:[#allocation82_spill] sm:$0xff]  ;;  %v8427_v61 = vld [vmem:[#allocation104_spill] sm:$0xff] }
 0x391   : > { %v3716_v38 = vpop.xlane.xlu0 %3715  ;;  %v7516_v5 = vadd.f32 %v3816_v17, %v3653_v41  ;;  %v3063_v24 = vadd.f32 %v3031_v18, %v8425_v20  ;;  %v3233_v26 = vmul.f32 %v7003_v15, %v8426_v2  ;;  %v3948_v39 = vsel %vm2732_vm3, %v3886_v36, 0.0  ;;  %v8429_v18 = vld [vmem:[#allocation116_spill] sm:$0xff] }
 0x392   : > { %v3808_v59 = vmul.f32 %v7354_v16, %v3716_v38  ;;  %v3421_v7 = vmul.f32 %v7028_v44, %v8427_v61  ;;  %v3652_v52 = vadd.f32 %v3620_v49, %v3457_v45  ;;  %v8428_v38 = vld [vmem:[#allocation28_spill] sm:$0xff]  ;;  %v3070_v12 = vadd.f32 %v3038_v57, %v2875_v29 }
 0x393   : > { %8423 = vst [vmem:[#allocation40_spill] sm:$0xff] %v7516_v5  ;;  %v3737_v48 = vpop.xlane.xlu1 %3736  ;;  %3973 = vadd.xlane.f32.xlu2 %v3972_v1  ;;  %v2839_v8 = vmul.f32 %v6874_v11, %v8428_v38  ;;  %v3428_v20 = vmul.f32 %v7028_v44, %v8429_v18  ;;  %v3969_v2 = vsel %vm2732_vm3, %v3893_v28, 0.0  ;;  %v3258_v36 = vadd.f32 %v3226_v63, %v3063_v24  ;;  %v8430_v5 = vld [vmem:[#allocation127_spill] sm:$0xff]  ;;  %v8433_v63 = vld [vmem:[#allocation17_spill] sm:$0xff]  ;;  %v8434_v61 = vld [vmem:[#allocation84_spill] sm:$0xff] }
 0x394   : > { %v7528_v41 = vadd.f32 %v3808_v59, %v3645_v35  ;;  %v3815_v17 = vmul.f32 %v7354_v16, %v3737_v48  ;;  %v3616_v23 = vmul.f32 %v7065_v14, %v8430_v5  ;;  %v3897_v45 = vsel %vm3870_vm9, %v8326_v9, 0.0  ;;  %v8431_v1 = vld [vmem:[#allocation47_spill] sm:$0xff]  ;;  %v8432_v48 = vld [vmem:[#allocation136_spill] sm:$0xff] }
 0x395   : > { %v3034_v35 = vmul.f32 %v6977_v4, %v8431_v1  ;;  %v3265_v57 = vadd.f32 %v3233_v26, %v3070_v12  ;;  %v3453_v29 = vadd.f32 %v3421_v7, %v3258_v36  ;;  %v3623_v28 = vmul.f32 %v7065_v14, %v8432_v48  ;;  %v8435_v36 = vld [vmem:[#allocation22_spill] sm:$0xff]  ;;  %v8436_v48 = vld [vmem:[#allocation107_spill] sm:$0xff] }
 0x396   : > { %3949 = vadd.xlane.f32.xlu0 %v3948_v39  ;;  %v7538_v49 = vadd.f32 %v3815_v17, %v3652_v52  ;;  %v3749_v59 = vpop.xlane.xlu2 %3748  ;;  %v3889_v5 = vsel %vm3870_vm9, %v8433_v63, 0.0  ;;  %v2871_v39 = vadd.f32 %v6892_v0, %v2839_v8  ;;  %v3229_v52 = vmul.f32 %v7003_v15, %v8434_v61 }
 0x397   : > { %v3819_v24 = vmul.f32 %v7354_v16, %v3749_v59  ;;  %v3460_v17 = vadd.f32 %v3428_v20, %v3265_v57  ;;  %v3981_v12 = vsel %vm2732_vm3, %v3897_v45, 0.0  ;;  %v3648_v26 = vadd.f32 %v3616_v23, %v3453_v29  ;;  %v8437_v45 = vld [vmem:[#allocation29_spill] sm:$0xff] }
 0x398   : > { %3970 = vadd.xlane.f32.xlu1 %v3969_v2  ;;  %v3896_v2 = vsel %vm3870_vm9, %v8435_v36, 0.0  ;;  %v3066_v1 = vadd.f32 %v3034_v35, %v2871_v39  ;;  %v3957_v8 = vsel %vm2732_vm3, %v3889_v5, 0.0  ;;  %v3424_v20 = vmul.f32 %v7028_v44, %v8436_v48 }
 0x399   : > { %v3725_v38 = vpop.xlane.xlu0 %3724  ;;  %v7557_v18 = vadd.f32 %v3819_v24, %v7213_v50  ;;  %v3655_v57 = vadd.f32 %v3623_v28, %v3460_v17  ;;  %v2842_v50 = vmul.f32 %v6874_v11, %v8437_v45  ;;  %v3978_v29 = vsel %vm2732_vm3, %v3896_v2, 0.0  ;;  %v8439_v17 = vld [vmem:[#allocation50_spill] sm:$0xff] }
 0x39a   : > { %v3811_v7 = vmul.f32 %v7354_v16, %v3725_v38  ;;  %v3261_v24 = vadd.f32 %v3229_v52, %v3066_v1  ;;  %v8438_v38 = vld [vmem:[#allocation131_spill] sm:$0xff]  ;;  %v3900_v28 = vsel %vm3870_vm9, %v8336_v31, 0.0 }
 0x39b   : > { %v3746_v59 = vpop.xlane.xlu1 %3745  ;;  %3982 = vadd.xlane.f32.xlu2 %v3981_v12  ;;  %v3619_v35 = vmul.f32 %v7065_v14, %v8438_v38  ;;  %v3037_v12 = vmul.f32 %v6977_v4, %v8439_v17  ;;  %v2874_v2 = vadd.f32 %v6892_v0, %v2842_v50  ;;  %v8441_v1 = vld [vmem:[#allocation87_spill] sm:$0xff]  ;;  %v3990_v48 = vsel %vm2732_vm3, %v3900_v28, 0.0 }
 0x39c   : > { %v7565_v61 = vadd.f32 %v3811_v7, %v3648_v26  ;;  %v3818_v23 = vmul.f32 %v7354_v16, %v3746_v59  ;;  %v3456_v26 = vadd.f32 %v3424_v20, %v3261_v24  ;;  %v8440_v7 = vld [vmem:[#allocation20_spill] sm:$0xff]  ;;  %v8442_v20 = vld [vmem:[#allocation25_spill] sm:$0xff] }
 0x39d   : > { %v3892_v11 = vsel %vm3870_vm9, %v8440_v7, 0.0  ;;  %v3899_v45 = vsel %vm3870_vm9, %v8442_v20, 0.0  ;;  %v3069_v0 = vadd.f32 %v3037_v12, %v2874_v2  ;;  %v4066_v12 = vsel %vm4065_vm10, %v8346_v54, 0.0  ;;  %v8446_v2 = vld [vmem:[#allocation23_spill] sm:$0xff] }
 0x39e   : > { %3958 = vadd.xlane.f32.xlu0 %v3957_v8  ;;  %v7573_v5 = vadd.f32 %v3818_v23, %v3655_v57  ;;  %v3758_v39 = vpop.xlane.xlu2 %3757  ;;  %v3232_v8 = vmul.f32 %v7003_v15, %v8441_v1  ;;  %v3651_v57 = vadd.f32 %v3619_v35, %v3456_v26  ;;  %v8443_v15 = vld [vmem:[#allocation110_spill] sm:$0xff]  ;;  %v8445_v26 = vld [vmem:[#allocation36_spill] sm:$0xff]  ;;  %v3895_v1 = vsel %vm3870_vm9, %v8446_v2, 0.0 }
 0x39f   : > { %v3822_v52 = vmul.f32 %v7354_v16, %v3758_v39  ;;  %v3427_v50 = vmul.f32 %v7028_v44, %v8443_v15  ;;  %v8444_v39 = vld [vmem:[#allocation31_spill] sm:$0xff]  ;;  %v3902_v54 = vsel %vm3870_vm9, %v6007_v55, 0.0 }
 0x3a0   : > { %3979 = vadd.xlane.f32.xlu1 %v3978_v29  ;;  %v3966_v29 = vsel %vm2732_vm3, %v3892_v11, 0.0  ;;  %v3264_v28 = vadd.f32 %v3232_v8, %v3069_v0  ;;  %v3622_v17 = vmul.f32 %v7065_v14, %v8444_v39  ;;  %v4098_v14 = vsel %vm2732_vm3, %v4066_v12, 0.0 }
 0x3a1   : > { %v3734_v59 = vpop.xlane.xlu0 %3733  ;;  %v7590_v4 = vadd.f32 %v3822_v52, %v7260_v42  ;;  %v3987_v42 = vsel %vm2732_vm3, %v3899_v45, 0.0  ;;  %v3975_v45 = vsel %vm2732_vm3, %v3895_v1, 0.0  ;;  %v3996_v15 = vsel %vm2732_vm3, %v3902_v54, 0.0  ;;  %v8448_v1 = vld [vmem:[#allocation52_spill] sm:$0xff] }
 0x3a2   : > { %v3814_v23 = vmul.f32 %v7354_v16, %v3734_v59  ;;  %v3459_v52 = vadd.f32 %v3427_v50, %v3264_v28 }
 0x3a3   : > { %v3755_v24 = vpop.xlane.xlu1 %3754  ;;  %3991 = vadd.xlane.f32.xlu2 %v3990_v48 }
 0x3a4   : > { %v7599_v38 = vadd.f32 %v3814_v23, %v3651_v57  ;;  %v3821_v35 = vmul.f32 %v7354_v16, %v3755_v24  ;;  %v3654_v48 = vadd.f32 %v3622_v17, %v3459_v52 }
 0x3a6   : > { %3967 = vadd.xlane.f32.xlu0 %v3966_v29  ;;  %v7606_v11 = vadd.f32 %v3821_v35, %v8445_v26  ;;  %v3767_v44 = vpop.xlane.xlu2 %3766 }
 0x3a7   : > { %v3825_v8 = vmul.f32 %v7354_v16, %v3767_v44 }
 0x3a8   : > { %3988 = vadd.xlane.f32.xlu1 %v3987_v42  ;;  %v8447_v42 = vld [vmem:[#allocation26_spill] sm:$0xff] }
 0x3a9   : > { %v3743_v59 = vpop.xlane.xlu0 %3742  ;;  %v7618_v23 = vadd.f32 %v3825_v8, %v7304_v40  ;;  %v4069_v40 = vsel %vm4065_vm10, %v8358_v56, 0.0  ;;  %v3898_v28 = vsel %vm3870_vm9, %v8447_v42, 0.0  ;;  %v4068_v56 = vsel %vm4065_vm10, %v4823_v51, 0.0 }
 0x3aa   : > { %v3817_v57 = vmul.f32 %v7354_v16, %v3743_v59  ;;  %v4107_v26 = vsel %vm2732_vm3, %v4069_v40, 0.0  ;;  %v3984_v44 = vsel %vm2732_vm3, %v3898_v28, 0.0 }
 0x3ab   : > { %v3764_v29 = vpop.xlane.xlu1 %3763  ;;  %4099 = vadd.xlane.f32.xlu2 %v4098_v14  ;;  %v4104_v14 = vsel %vm2732_vm3, %v4068_v56, 0.0 }
 0x3ac   : > { %v7624_v24 = vadd.f32 %v3817_v57, %v3654_v48  ;;  %v3824_v0 = vmul.f32 %v7354_v16, %v3764_v29  ;;  %v8449_v57 = vld [vmem:[#allocation27_spill] sm:$0xff] }
 0x3ad   : > { %v3901_v54 = vsel %vm3870_vm9, %v8449_v57, 0.0 }
 0x3ae   : > { %3976 = vadd.xlane.f32.xlu0 %v3975_v45  ;;  %v7629_v50 = vadd.f32 %v3824_v0, %v7154_v22  ;;  %v3776_v35 = vpop.xlane.xlu2 %3775  ;;  %v3993_v40 = vsel %vm2732_vm3, %v3901_v54, 0.0  ;;  %v4070_v54 = vsel %vm4065_vm10, %v4794_v58, 0.0 }
 0x3af   : > { %v3828_v39 = vmul.f32 %v7354_v16, %v3776_v35 }
 0x3b0   : > { %3997 = vadd.xlane.f32.xlu1 %v3996_v15 }
 0x3b1   : > { %v3752_v17 = vpop.xlane.xlu0 %3751  ;;  %v7641_v22 = vadd.f32 %v3828_v39, %v7348_v6  ;;  %v4072_v6 = vsel %vm4065_vm10, %v8375_v53, 0.0  ;;  %v4071_v53 = vsel %vm4065_vm10, %v4895_v13, 0.0 }
 0x3b2   : > { %v3820_v12 = vmul.f32 %v7354_v16, %v3752_v17  ;;  %v4116_v0 = vsel %vm2732_vm3, %v4072_v6, 0.0  ;;  %v4113_v17 = vsel %vm2732_vm3, %v4071_v53, 0.0 }
 0x3b3   : > { %v3773_v52 = vpop.xlane.xlu1 %3772  ;;  %4108 = vadd.xlane.f32.xlu2 %v4107_v26 }
 0x3b4   : > { %v7648_v8 = vadd.f32 %v3820_v12, %v8448_v1  ;;  %v3827_v59 = vmul.f32 %v7354_v16, %v3773_v52  ;;  %v4067_v12 = vsel %vm4065_vm10, %v8329_v21, 0.0 }
 0x3b5   : > { %v4101_v1 = vsel %vm2732_vm3, %v4067_v12, 0.0  ;;  %v8452_v12 = vld [vmem:[#allocation5_spill] sm:$0xff] }
 0x3b6   : > { %3985 = vadd.xlane.f32.xlu0 %v3984_v44  ;;  %v7653_v48 = vadd.f32 %v3827_v59, %v7200_v33  ;;  %v3785_v51 = vpop.xlane.xlu2 %3784 }
 0x3b7   : > { %v3831_v45 = vmul.f32 %v7354_v16, %v3785_v51 }
 0x3b8   : > { %4105 = vadd.xlane.f32.xlu1 %v4104_v14 }
 0x3b9   : > { %v3761_v29 = vpop.xlane.xlu0 %3760  ;;  %v7665_v33 = vadd.f32 %v3831_v45, %v7397_v30  ;;  %v4075_v30 = vsel %vm4065_vm10, %v8391_v32, 0.0  ;;  %v4074_v32 = vsel %vm4065_vm10, %v5005_v3, 0.0 }
 0x3ba   : > { %v3823_v15 = vmul.f32 %v7354_v16, %v3761_v29  ;;  %v4125_v44 = vsel %vm2732_vm3, %v4075_v30, 0.0  ;;  %v4122_v6 = vsel %vm2732_vm3, %v4074_v32, 0.0 }
 0x3bb   : > { %v3782_v35 = vpop.xlane.xlu1 %3781  ;;  %4117 = vadd.xlane.f32.xlu2 %v4116_v0 }
 0x3bc   : > { %v7672_v28 = vadd.f32 %v3823_v15, %v7178_v37  ;;  %v3830_v39 = vmul.f32 %v7354_v16, %v3782_v35  ;;  %v4110_v15 = vsel %vm2732_vm3, %v4070_v54, 0.0 }
 0x3be   : > { %3994 = vadd.xlane.f32.xlu0 %v3993_v40  ;;  %v7677_v26 = vadd.f32 %v3830_v39, %v7247_v46  ;;  %v3794_v13 = vpop.xlane.xlu2 %3793  ;;  %v8450_v40 = vld [vmem:[#allocation34_spill] sm:$0xff] }
 0x3bf   : > { %v3834_v37 = vmul.f32 %v7354_v16, %v3794_v13  ;;  %v7726_v39 = vld [vmem:[%s8096_s2 + $0x6] ss:$0 sm:$0xff] }
 0x3c0   : > { %4114 = vadd.xlane.f32.xlu1 %v4113_v17  ;;  %v8451_v17 = vld [vmem:[#allocation53_spill] sm:$0xff] }
 0x3c1   : > { %v3770_v56 = vpop.xlane.xlu0 %3769  ;;  %v7689_v46 = vadd.f32 %v3834_v37, %v7441_v34  ;;  %v4078_v34 = vsel %vm4065_vm10, %v8407_v25, 0.0  ;;  %v4077_v25 = vsel %vm4065_vm10, %v5156_v43, 0.0  ;;  %v4081_v43 = vsel %vm4065_vm10, %v8420_v60, 0.0 }
 0x3c2   : > { %v3826_v52 = vmul.f32 %v7354_v16, %v3770_v56  ;;  %v4134_v29 = vsel %vm2732_vm3, %v4078_v34, 0.0  ;;  %v4073_v37 = vsel %vm4065_vm10, %v8452_v12, 0.0  ;;  %v8454_v34 = vld [vmem:[#allocation90_spill] sm:$0xff] }
 0x3c3   : > { %v3791_v59 = vpop.xlane.xlu1 %3790  ;;  %4126 = vadd.xlane.f32.xlu2 %v4125_v44 }
 0x3c4   : > { %v7696_v21 = vadd.f32 %v3826_v52, %v7224_v27  ;;  %v3833_v14 = vmul.f32 %v7354_v16, %v3791_v59  ;;  %v4143_v52 = vsel %vm2732_vm3, %v4081_v43, 0.0  ;;  %v8453_v59 = vld [vmem:[#allocation9_spill] sm:$0xff]  ;;  %v8457_v43 = vld [vmem:[#allocation12_spill] sm:$0xff] }
 0x3c5   : > { %v4080_v60 = vsel %vm4065_vm10, %v8453_v59, 0.0 }
 0x3c6   : > { %4102 = vadd.xlane.f32.xlu0 %v4101_v1  ;;  %v7701_v51 = vadd.f32 %v3833_v14, %v7292_v62  ;;  %v3803_v3 = vpop.xlane.xlu2 %3802  ;;  %v4119_v14 = vsel %vm2732_vm3, %v4073_v37, 0.0  ;;  %v8458_v37 = vld [vmem:[#allocation35_spill] sm:$0xff] }
 0x3c7   : > { %v3837_v27 = vmul.f32 %v7354_v16, %v3803_v3 }
 0x3c8   : > { %4123 = vadd.xlane.f32.xlu1 %v4122_v6 }
 0x3c9   : > { %v3779_v45 = vpop.xlane.xlu0 %3778  ;;  %v7713_v62 = vadd.f32 %v3837_v27, %v7485_v47  ;;  %v4131_v47 = vsel %vm2732_vm3, %v4077_v25, 0.0  ;;  %v4140_v27 = vsel %vm2732_vm3, %v4080_v60, 0.0  ;;  %v8456_v25 = vld [vmem:[#allocation7_spill] sm:$0xff]  ;;  %v8460_v60 = vld [vmem:[#allocation10_spill] sm:$0xff] }
 0x3ca   : > { %v3829_v0 = vmul.f32 %v7354_v16, %v3779_v45  ;;  %v8455_v45 = vld [vmem:[#allocation39_spill] sm:$0xff] }
 0x3cb   : > { %v3800_v53 = vpop.xlane.xlu1 %3799  ;;  %4135 = vadd.xlane.f32.xlu2 %v4134_v29 }
 0x3cc   : > { %v7720_v58 = vadd.f32 %v3829_v0, %v8450_v40  ;;  %v3836_v35 = vmul.f32 %v7354_v16, %v3800_v53 }
 0x3ce   : > { %4111 = vadd.xlane.f32.xlu0 %v4110_v15  ;;  %v7730_v30 = vadd.f32 %v3836_v35, %v8451_v17  ;;  %v3911_v13 = vpop.xlane.xlu2 %3910  ;;  %v4076_v15 = vsel %vm4065_vm10, %v8456_v25, 0.0 }
 0x3cf   : > { %v4003_v56 = vmul.f32 %v7726_v39, %v3911_v13  ;;  %v4128_v13 = vsel %vm2732_vm3, %v4076_v15, 0.0 }
 0x3d0   : > { %4132 = vadd.xlane.f32.xlu1 %v4131_v47 }
 0x3d1   : > { %v3788_v44 = vpop.xlane.xlu0 %3787  ;;  %v7742_v1 = vadd.f32 %v4003_v56, %v7528_v41  ;;  %v4084_v41 = vsel %vm4065_vm10, %v8433_v63, 0.0  ;;  %v4083_v63 = vsel %vm4065_vm10, %v8457_v43, 0.0 }
 0x3d2   : > { %v3832_v32 = vmul.f32 %v7354_v16, %v3788_v44  ;;  %v4152_v35 = vsel %vm2732_vm3, %v4084_v41, 0.0 }
 0x3d3   : > { %v3908_v6 = vpop.xlane.xlu1 %3907  ;;  %4144 = vadd.xlane.f32.xlu2 %v4143_v52  ;;  %v4149_v52 = vsel %vm2732_vm3, %v4083_v63, 0.0 }
 0x3d4   : > { %v7749_v3 = vadd.f32 %v3832_v32, %v8454_v34  ;;  %v4002_v54 = vmul.f32 %v7726_v39, %v3908_v6 }
 0x3d6   : > { %4120 = vadd.xlane.f32.xlu0 %v4119_v14  ;;  %v7754_v29 = vadd.f32 %v4002_v54, %v8455_v45  ;;  %v3920_v0 = vpop.xlane.xlu2 %3919  ;;  %v4079_v14 = vsel %vm4065_vm10, %v8460_v60, 0.0  ;;  %v8461_v45 = vld [vmem:[#allocation15_spill] sm:$0xff] }
 0x3d7   : > { %v4006_v53 = vmul.f32 %v7726_v39, %v3920_v0  ;;  %v4086_v41 = vsel %vm4065_vm10, %v8461_v45, 0.0 }
 0x3d8   : > { %4141 = vadd.xlane.f32.xlu1 %v4140_v27  ;;  %v4158_v15 = vsel %vm2732_vm3, %v4086_v41, 0.0 }
 0x3d9   : > { %v3797_v40 = vpop.xlane.xlu0 %3796  ;;  %v7766_v17 = vadd.f32 %v4006_v53, %v7565_v61  ;;  %v4087_v61 = vsel %vm4065_vm10, %v8440_v7, 0.0  ;;  %v4137_v7 = vsel %vm2732_vm3, %v4079_v14, 0.0  ;;  %v8465_v14 = vld [vmem:[#allocation16_spill] sm:$0xff] }
 0x3da   : > { %v3835_v47 = vmul.f32 %v7354_v16, %v3797_v40  ;;  %v8459_v16 = vld [vmem:[#allocation38_spill] sm:$0xff]  ;;  %v4161_v54 = vsel %vm2732_vm3, %v4087_v61, 0.0  ;;  %v8464_v61 = vld [vmem:[#allocation40_spill] sm:$0xff] }
 0x3db   : > { %v3917_v12 = vpop.xlane.xlu1 %3916  ;;  %4153 = vadd.xlane.f32.xlu2 %v4152_v35  ;;  %v8462_v35 = vld [vmem:[#allocation13_spill] sm:$0xff] }
 0x3dc   : > { %v7773_v56 = vadd.f32 %v3835_v47, %v8458_v37  ;;  %v4005_v44 = vmul.f32 %v7726_v39, %v3917_v12  ;;  %v4082_v47 = vsel %vm4065_vm10, %v8462_v35, 0.0 }
 0x3de   : > { %4129 = vadd.xlane.f32.xlu0 %v4128_v13  ;;  %v7778_v32 = vadd.f32 %v4005_v44, %v8459_v16  ;;  %v3929_v59 = vpop.xlane.xlu2 %3928 }
 0x3df   : > { %v4009_v6 = vmul.f32 %v7726_v39, %v3929_v59 }
 0x3e0   : > { %4150 = vadd.xlane.f32.xlu1 %v4149_v52 }
 0x3e1   : > { %v7787_v34 = vpop.xlane.xlu0 %3904  ;;  %v7791_v27 = vadd.f32 %v4009_v6, %v7599_v38  ;;  %v4090_v38 = vsel %vm4065_vm10, %v8446_v2, 0.0  ;;  %v4146_v2 = vsel %vm2732_vm3, %v4082_v47, 0.0  ;;  %v4085_v6 = vsel %vm4065_vm10, %v8465_v14, 0.0  ;;  %v8466_v47 = vld [vmem:[#allocation19_spill] sm:$0xff] }
 0x3e2   : > { %v4170_v13 = vsel %vm2732_vm3, %v4090_v38, 0.0 }
 0x3e3   : > { %v3926_v0 = vpop.xlane.xlu1 %3925  ;;  %4162 = vadd.xlane.f32.xlu2 %v4161_v54 }
 0x3e4   : > { %v4008_v25 = vmul.f32 %v7726_v39, %v3926_v0  ;;  %v4092_v0 = vsel %vm4065_vm10, %v8326_v9, 0.0  ;;  %v4088_v9 = vsel %vm4065_vm10, %v8466_v47, 0.0 }
 0x3e5   : > { %v4176_v38 = vsel %vm2732_vm3, %v4092_v0, 0.0 }
 0x3e6   : > { %4138 = vadd.xlane.f32.xlu0 %v4137_v7  ;;  %v7800_v53 = vadd.f32 %v4008_v25, %v7473_v10  ;;  %v3938_v40 = vpop.xlane.xlu2 %3937  ;;  %v8463_v10 = vld [vmem:[#allocation18_spill] sm:$0xff] }
 0x3e7   : > { %v4012_v43 = vmul.f32 %v7726_v39, %v3938_v40  ;;  %v4089_v37 = vsel %vm4065_vm10, %v8463_v10, 0.0 }
 0x3e8   : > { %4159 = vadd.xlane.f32.xlu1 %v4158_v15  ;;  %v4167_v16 = vsel %vm2732_vm3, %v4089_v37, 0.0 }
 0x3e9   : > { %v7809_v63 = vpop.xlane.xlu0 %3913  ;;  %v7813_v12 = vadd.f32 %v4012_v43, %v7624_v24  ;;  %v4093_v24 = vsel %vm4065_vm10, %v8447_v42, 0.0  ;;  %v4155_v42 = vsel %vm2732_vm3, %v4085_v6, 0.0 }
 0x3ea   : > { %v4179_v41 = vsel %vm2732_vm3, %v4093_v24, 0.0 }
 0x3eb   : > { %v3935_v44 = vpop.xlane.xlu1 %3934  ;;  %4171 = vadd.xlane.f32.xlu2 %v4170_v13 }
 0x3ec   : > { %v4011_v52 = vmul.f32 %v7726_v39, %v3935_v44 }
 0x3ee   : > { %4147 = vadd.xlane.f32.xlu0 %v4146_v2  ;;  %v7822_v59 = vadd.f32 %v4011_v52, %v8464_v61  ;;  %v3947_v60 = vpop.xlane.xlu2 %3946 }
 0x3ef   : > { %v4015_v54 = vmul.f32 %v7726_v39, %v3947_v60 }
 0x3f0   : > { %4168 = vadd.xlane.f32.xlu1 %v4167_v16 }
 0x3f1   : > { %v7831_v45 = vpop.xlane.xlu0 %3922  ;;  %v7835_v7 = vadd.f32 %v4015_v54, %v7648_v8  ;;  %v4096_v8 = vsel %vm4065_vm10, %v8449_v57, 0.0  ;;  %v4164_v57 = vsel %vm2732_vm3, %v4088_v9, 0.0 }
 0x3f2   : > { %v4188_v10 = vsel %vm2732_vm3, %v4096_v8, 0.0 }
 0x3f3   : > { %v3944_v25 = vpop.xlane.xlu1 %3943  ;;  %4180 = vadd.xlane.f32.xlu2 %v4179_v41 }
 0x3f4   : > { %v4014_v15 = vmul.f32 %v7726_v39, %v3944_v25 }
 0x3f6   : > { %4156 = vadd.xlane.f32.xlu0 %v4155_v42  ;;  %v7844_v40 = vadd.f32 %v4014_v15, %v7557_v18  ;;  %v3956_v35 = vpop.xlane.xlu2 %3955  ;;  %v4095_v18 = vsel %vm4065_vm10, %v8336_v31, 0.0 }
 0x3f7   : > { %v4018_v43 = vmul.f32 %v7726_v39, %v3956_v35  ;;  %v4185_v52 = vsel %vm2732_vm3, %v4095_v18, 0.0 }
 0x3f8   : > { %4177 = vadd.xlane.f32.xlu1 %v4176_v38 }
 0x3f9   : > { %v7853_v13 = vpop.xlane.xlu0 %3931  ;;  %v7857_v37 = vadd.f32 %v4018_v43, %v7672_v28  ;;  %v4091_v28 = vsel %vm4065_vm10, %v8435_v36, 0.0  ;;  %v4094_v36 = vsel %vm4065_vm10, %v8442_v20, 0.0  ;;  %v4097_v20 = vsel %vm4065_vm10, %v6007_v55, 0.0 }
 0x3fa   : > { %v4173_v14 = vsel %vm2732_vm3, %v4091_v28, 0.0  ;;  %v4182_v25 = vsel %vm2732_vm3, %v4094_v36, 0.0  ;;  %v4191_v9 = vsel %vm2732_vm3, %v4097_v20, 0.0  ;;  %v8467_v28 = vld [vmem:[#allocation88_spill] sm:$0xff] }
 0x3fb   : > { %v3953_v2 = vpop.xlane.xlu1 %3952  ;;  %4189 = vadd.xlane.f32.xlu2 %v4188_v10 }
 0x3fc   : > { %v4017_v44 = vmul.f32 %v7726_v39, %v3953_v2  ;;  %v4001_v2 = vmul.f32 %v7726_v39, %v7787_v34 }
 0x3fe   : > { %4165 = vadd.xlane.f32.xlu0 %v4164_v57  ;;  %v7866_v16 = vadd.f32 %v4017_v44, %v7590_v4  ;;  %v3965_v61 = vpop.xlane.xlu2 %3964 }
 0x3ff   : > { %v4021_v31 = vmul.f32 %v7726_v39, %v3965_v61 }
 0x400   : > { %4186 = vadd.xlane.f32.xlu1 %v4185_v52  ;;  %v7922_v52 = vld [vmem:[%s8096_s2 + $0x7] ss:$0 sm:$0xff] }
 0x401   : > { %v7872_v24 = vpop.xlane.xlu0 %3940  ;;  %v7875_v60 = vadd.f32 %v4021_v31, %v7696_v21  ;;  %v4033_v31 = vadd.f32 %v4001_v2, %v8467_v28  ;;  %v4010_v28 = vmul.f32 %v7726_v39, %v7853_v13 }
 0x403   : > { %v3962_v6 = vpop.xlane.xlu1 %3961 }
 0x404   : > { %v4020_v54 = vmul.f32 %v7726_v39, %v3962_v6 }
 0x406   : > { %4174 = vadd.xlane.f32.xlu0 %v4173_v14  ;;  %v7880_v4 = vadd.f32 %v4020_v54, %v7618_v23  ;;  %v3974_v41 = vpop.xlane.xlu2 %3973 }
 0x407   : > { %v4024_v0 = vmul.f32 %v7726_v39, %v3974_v41 }
 0x409   : > { %v7886_v42 = vpop.xlane.xlu0 %3949  ;;  %v7889_v21 = vadd.f32 %v4024_v0, %v7720_v58 }
 0x40b   : > { %v3971_v15 = vpop.xlane.xlu1 %3970 }
 0x40c   : > { %v4023_v38 = vmul.f32 %v7726_v39, %v3971_v15 }
 0x40e   : > { %4183 = vadd.xlane.f32.xlu0 %v4182_v25  ;;  %v7894_v23 = vadd.f32 %v4023_v38, %v7641_v22  ;;  %v3983_v8 = vpop.xlane.xlu2 %3982  ;;  %v8468_v25 = vld [vmem:[#allocation37_spill] sm:$0xff] }
 0x40f   : > { %v4027_v35 = vmul.f32 %v7726_v39, %v3983_v8 }
 0x411   : > { %v7900_v47 = vpop.xlane.xlu0 %3958  ;;  %v7903_v58 = vadd.f32 %v4027_v35, %v7749_v3 }
 0x413   : > { %v3980_v43 = vpop.xlane.xlu1 %3979 }
 0x414   : > { %v4026_v10 = vmul.f32 %v7726_v39, %v3980_v43 }
 0x416   : > { %4192 = vadd.xlane.f32.xlu0 %v4191_v9  ;;  %v7908_v22 = vadd.f32 %v4026_v10, %v7665_v33  ;;  %v3992_v18 = vpop.xlane.xlu2 %3991 }
 0x417   : > { %v4030_v19 = vmul.f32 %v7726_v39, %v3992_v18  ;;  %v8469_v18 = vld [vmem:[#allocation55_spill] sm:$0xff] }
 0x419   : > { %v7911_v55 = vpop.xlane.xlu0 %3967  ;;  %v7914_v57 = vadd.f32 %v4030_v19, %v7773_v56 }
 0x41b   : > { %v3989_v3 = vpop.xlane.xlu1 %3988 }
 0x41c   : > { %v4029_v44 = vmul.f32 %v7726_v39, %v3989_v3 }
 0x41e   : > { %v7925_v33 = vadd.f32 %v4029_v44, %v7689_v46  ;;  %v4100_v61 = vpop.xlane.xlu2 %4099  ;;  %v4004_v46 = vmul.f32 %v7726_v39, %v7809_v63  ;;  %v4007_v63 = vmul.f32 %v7726_v39, %v7831_v45 }
 0x41f   : > { %v4196_v56 = vmul.f32 %v7922_v52, %v4100_v61 }
 0x420   : > { %v4036_v15 = vadd.f32 %v4004_v46, %v8468_v25  ;;  %v4039_v19 = vadd.f32 %v4007_v63, %v8469_v18 }
 0x421   : > { %v7930_v14 = vpop.xlane.xlu0 %3976  ;;  %v4228_v6 = vadd.f32 %v4196_v56, %v4033_v31 }
 0x423   : > { %v3998_v34 = vpop.xlane.xlu1 %3997  ;;  %v4260_v41 = vpack.c.bf16 %v4228_v6, %v4228_v6 }
 0x424   : > { %v4032_v54 = vmul.f32 %v7726_v39, %v3998_v34  ;;  %v4042_v34 = vadd.f32 %v4010_v28, %v7538_v49 }
 0x425   : > { %4293 = vst.msk [vmem:[%s7935_s21] sm:$0xf] %vm4292_vm11, %v4260_v41 }
 0x426   : > { %v7941_v36 = vadd.f32 %v4032_v54, %v7713_v62  ;;  %v4109_v0 = vpop.xlane.xlu2 %4108 }
 0x427   : > { %v4199_v38 = vmul.f32 %v7922_v52, %v4109_v0 }
 0x429   : > { %v7947_v8 = vpop.xlane.xlu0 %3985  ;;  %v4231_v20 = vadd.f32 %v4199_v38, %v4036_v15 }
 0x42b   : > { %v4106_v35 = vpop.xlane.xlu1 %4105  ;;  %v4263_v62 = vpack.c.bf16 %v4231_v20, %v4231_v20 }
 0x42c   : > { %v4198_v9 = vmul.f32 %v7922_v52, %v4106_v35 }
 0x42d   : > { %4296 = vst.msk [vmem:[%s7935_s21 + $0xc] sm:$0xf] %vm4292_vm11, %v4263_v62 }
 0x42e   : > { %v4230_v43 = vadd.f32 %v4198_v9, %v7742_v1  ;;  %v4118_v10 = vpop.xlane.xlu2 %4117 }
 0x42f   : > { %v4202_v2 = vmul.f32 %v7922_v52, %v4118_v10 }
 0x430   : > { %v4262_v3 = vpack.c.bf16 %v4230_v43, %v4230_v43 }
 0x431   : > { %v7957_v44 = vpop.xlane.xlu0 %3994  ;;  %v4234_v45 = vadd.f32 %v4202_v2, %v4039_v19 }
 0x432   : > { %4295 = vst.msk [vmem:[%s7935_s21 + $0x8] sm:$0xf] %vm4292_vm11, %v4262_v3 }
 0x433   : > { %v4115_v61 = vpop.xlane.xlu1 %4114  ;;  %v4266_v31 = vpack.c.bf16 %v4234_v45, %v4234_v45 }
 0x434   : > { %v4201_v1 = vmul.f32 %v7922_v52, %v4115_v61 }
 0x435   : > { %4299 = vst.msk [vmem:[%s7935_s21 + $0x18] sm:$0xf] %vm4292_vm11, %v4266_v31 }
 0x436   : > { %v4233_v56 = vadd.f32 %v4201_v1, %v7766_v17  ;;  %v4127_v6 = vpop.xlane.xlu2 %4126  ;;  %v4013_v17 = vmul.f32 %v7726_v39, %v7872_v24 }
 0x437   : > { %v4205_v54 = vmul.f32 %v7922_v52, %v4127_v6 }
 0x438   : > { %v4265_v46 = vpack.c.bf16 %v4233_v56, %v4233_v56  ;;  %v4045_v9 = vadd.f32 %v4013_v17, %v7573_v5  ;;  %v4016_v5 = vmul.f32 %v7726_v39, %v7886_v42 }
 0x439   : > { %v4103_v41 = vpop.xlane.xlu0 %4102  ;;  %v4237_v13 = vadd.f32 %v4205_v54, %v4042_v34 }
 0x43a   : > { %v4197_v0 = vmul.f32 %v7922_v52, %v4103_v41  ;;  %4298 = vst.msk [vmem:[%s7935_s21 + $0x14] sm:$0xf] %vm4292_vm11, %v4265_v46  ;;  %v4048_v28 = vadd.f32 %v4016_v5, %v7606_v11  ;;  %v4019_v11 = vmul.f32 %v7726_v39, %v7900_v47 }
 0x43b   : > { %v4124_v25 = vpop.xlane.xlu1 %4123  ;;  %v4269_v38 = vpack.c.bf16 %v4237_v13, %v4237_v13 }
 0x43c   : > { %v4229_v15 = vadd.f32 %v4197_v0, %v7754_v29  ;;  %v4204_v49 = vmul.f32 %v7922_v52, %v4124_v25  ;;  %v4051_v13 = vadd.f32 %v4019_v11, %v7629_v50  ;;  %v4022_v50 = vmul.f32 %v7726_v39, %v7911_v55 }
 0x43d   : > { %4302 = vst.msk [vmem:[%s7935_s21 + $0x24] sm:$0xf] %vm4292_vm11, %v4269_v38 }
 0x43e   : > { %v4261_v20 = vpack.c.bf16 %v4229_v15, %v4229_v15  ;;  %v4236_v35 = vadd.f32 %v4204_v49, %v7791_v27  ;;  %v4136_v63 = vpop.xlane.xlu2 %4135 }
 0x43f   : > { %v4208_v43 = vmul.f32 %v7922_v52, %v4136_v63 }
 0x440   : > { %4294 = vst.msk [vmem:[%s7935_s21 + $0x4] sm:$0xf] %vm4292_vm11, %v4261_v20  ;;  %v4268_v62 = vpack.c.bf16 %v4236_v35, %v4236_v35 }
 0x441   : > { %v4112_v10 = vpop.xlane.xlu0 %4111  ;;  %v4240_v24 = vadd.f32 %v4208_v43, %v4045_v9 }
 0x442   : > { %v4200_v29 = vmul.f32 %v7922_v52, %v4112_v10  ;;  %4301 = vst.msk [vmem:[%s7935_s21 + $0x20] sm:$0xf] %vm4292_vm11, %v4268_v62  ;;  %v4054_v62 = vadd.f32 %v4022_v50, %v7653_v48  ;;  %v4025_v48 = vmul.f32 %v7726_v39, %v7930_v14 }
 0x443   : > { %v4133_v27 = vpop.xlane.xlu1 %4132  ;;  %v4272_v3 = vpack.c.bf16 %v4240_v24, %v4240_v24 }
 0x444   : > { %v4232_v18 = vadd.f32 %v4200_v29, %v7778_v32  ;;  %v4207_v19 = vmul.f32 %v7922_v52, %v4133_v27 }
 0x445   : > { %4305 = vst.msk [vmem:[%s7935_s21 + $0x30] sm:$0xf] %vm4292_vm11, %v4272_v3 }
 0x446   : > { %v4264_v2 = vpack.c.bf16 %v4232_v18, %v4232_v18  ;;  %v4239_v45 = vadd.f32 %v4207_v19, %v7813_v12  ;;  %v4145_v61 = vpop.xlane.xlu2 %4144 }
 0x447   : > { %v4211_v31 = vmul.f32 %v7922_v52, %v4145_v61 }
 0x448   : > { %4297 = vst.msk [vmem:[%s7935_s21 + $0x10] sm:$0xf] %vm4292_vm11, %v4264_v2  ;;  %v4271_v1 = vpack.c.bf16 %v4239_v45, %v4239_v45  ;;  %v4057_v2 = vadd.f32 %v4025_v48, %v7677_v26  ;;  %v4028_v26 = vmul.f32 %v7726_v39, %v7947_v8 }
 0x449   : > { %v4121_v56 = vpop.xlane.xlu0 %4120  ;;  %v4243_v42 = vadd.f32 %v4211_v31, %v4048_v28 }
 0x44a   : > { %v4203_v32 = vmul.f32 %v7922_v52, %v4121_v56  ;;  %4304 = vst.msk [vmem:[%s7935_s21 + $0x2c] sm:$0xf] %vm4292_vm11, %v4271_v1  ;;  %v4060_v11 = vadd.f32 %v4028_v26, %v7701_v51  ;;  %v4031_v51 = vmul.f32 %v7726_v39, %v7957_v44 }
 0x44b   : > { %v4142_v12 = vpop.xlane.xlu1 %4141  ;;  %v4275_v46 = vpack.c.bf16 %v4243_v42, %v4243_v42 }
 0x44c   : > { %v4235_v6 = vadd.f32 %v4203_v32, %v7800_v53  ;;  %v4210_v34 = vmul.f32 %v7922_v52, %v4142_v12 }
 0x44d   : > { %4308 = vst.msk [vmem:[%s7935_s21 + $0x3c] sm:$0xf] %vm4292_vm11, %v4275_v46 }
 0x44e   : > { %v4267_v54 = vpack.c.bf16 %v4235_v6, %v4235_v6  ;;  %v4242_v41 = vadd.f32 %v4210_v34, %v7835_v7  ;;  %v4154_v0 = vpop.xlane.xlu2 %4153 }
 0x44f   : > { %v4214_v17 = vmul.f32 %v7922_v52, %v4154_v0 }
 0x450   : > { %4300 = vst.msk [vmem:[%s7935_s21 + $0x1c] sm:$0xf] %vm4292_vm11, %v4267_v54  ;;  %v4274_v25 = vpack.c.bf16 %v4242_v41, %v4242_v41 }
 0x451   : > { %v4130_v15 = vpop.xlane.xlu0 %4129  ;;  %v4246_v47 = vadd.f32 %v4214_v17, %v4051_v13 }
 0x452   : > { %v4206_v53 = vmul.f32 %v7922_v52, %v4130_v15  ;;  %4307 = vst.msk [vmem:[%s7935_s21 + $0x38] sm:$0xf] %vm4292_vm11, %v4274_v25  ;;  %v4063_v15 = vadd.f32 %v4031_v51, %v7730_v30 }
 0x453   : > { %v4151_v7 = vpop.xlane.xlu1 %4150  ;;  %v4278_v20 = vpack.c.bf16 %v4246_v47, %v4246_v47 }
 0x454   : > { %v4238_v49 = vadd.f32 %v4206_v53, %v7822_v59  ;;  %v4213_v38 = vmul.f32 %v7922_v52, %v4151_v7 }
 0x455   : > { %4311 = vst.msk [vmem:[%s7935_s21 + $0x48] sm:$0xf] %vm4292_vm11, %v4278_v20 }
 0x456   : > { %v4270_v35 = vpack.c.bf16 %v4238_v49, %v4238_v49  ;;  %v4245_v63 = vadd.f32 %v4213_v38, %v7857_v37  ;;  %v4163_v9 = vpop.xlane.xlu2 %4162 }
 0x457   : > { %v4217_v10 = vmul.f32 %v7922_v52, %v4163_v9 }
 0x458   : > { %4303 = vst.msk [vmem:[%s7935_s21 + $0x28] sm:$0xf] %vm4292_vm11, %v4270_v35  ;;  %v4277_v43 = vpack.c.bf16 %v4245_v63, %v4245_v63 }
 0x459   : > { %v4139_v29 = vpop.xlane.xlu0 %4138  ;;  %v4249_v55 = vadd.f32 %v4217_v10, %v4054_v62 }
 0x45a   : > { %v4209_v59 = vmul.f32 %v7922_v52, %v4139_v29  ;;  %4310 = vst.msk [vmem:[%s7935_s21 + $0x44] sm:$0xf] %vm4292_vm11, %v4277_v43 }
 0x45b   : > { %v4160_v37 = vpop.xlane.xlu1 %4159  ;;  %v4281_v5 = vpack.c.bf16 %v4249_v55, %v4249_v55 }
 0x45c   : > { %v4241_v24 = vadd.f32 %v4209_v59, %v7844_v40  ;;  %v4216_v27 = vmul.f32 %v7922_v52, %v4160_v37 }
 0x45d   : > { %4314 = vst.msk [vmem:[%s7935_s21 + $0x54] sm:$0xf] %vm4292_vm11, %v4281_v5 }
 0x45e   : > { %v4273_v18 = vpack.c.bf16 %v4241_v24, %v4241_v24  ;;  %v4248_v19 = vadd.f32 %v4216_v27, %v7875_v60  ;;  %v4172_v3 = vpop.xlane.xlu2 %4171 }
 0x45f   : > { %v4220_v61 = vmul.f32 %v7922_v52, %v4172_v3 }
 0x460   : > { %4306 = vst.msk [vmem:[%s7935_s21 + $0x34] sm:$0xf] %vm4292_vm11, %v4273_v18  ;;  %v4280_v45 = vpack.c.bf16 %v4248_v19, %v4248_v19 }
 0x461   : > { %v4148_v28 = vpop.xlane.xlu0 %4147  ;;  %v4252_v14 = vadd.f32 %v4220_v61, %v4057_v2 }
 0x462   : > { %v4212_v40 = vmul.f32 %v7922_v52, %v4148_v28  ;;  %4313 = vst.msk [vmem:[%s7935_s21 + $0x50] sm:$0xf] %vm4292_vm11, %v4280_v45 }
 0x463   : > { %v4169_v60 = vpop.xlane.xlu1 %4168  ;;  %v4284_v56 = vpack.c.bf16 %v4252_v14, %v4252_v14 }
 0x464   : > { %v4244_v1 = vadd.f32 %v4212_v40, %v7866_v16  ;;  %v4219_v31 = vmul.f32 %v7922_v52, %v4169_v60 }
 0x465   : > { %4317 = vst.msk [vmem:[%s7935_s21 + $0x60] sm:$0xf] %vm4292_vm11, %v4284_v56 }
 0x466   : > { %v4276_v32 = vpack.c.bf16 %v4244_v1, %v4244_v1  ;;  %v4251_v42 = vadd.f32 %v4219_v31, %v7889_v21  ;;  %v4181_v12 = vpop.xlane.xlu2 %4180 }
 0x467   : > { %v4223_v34 = vmul.f32 %v7922_v52, %v4181_v12 }
 0x468   : > { %4309 = vst.msk [vmem:[%s7935_s21 + $0x40] sm:$0xf] %vm4292_vm11, %v4276_v32  ;;  %v4283_v6 = vpack.c.bf16 %v4251_v42, %v4251_v42 }
 0x469   : > { %v4157_v46 = vpop.xlane.xlu0 %4156  ;;  %v4255_v8 = vadd.f32 %v4223_v34, %v4060_v11 }
 0x46a   : > { %v4215_v16 = vmul.f32 %v7922_v52, %v4157_v46  ;;  %4316 = vst.msk [vmem:[%s7935_s21 + $0x5c] sm:$0xf] %vm4292_vm11, %v4283_v6 }
 0x46b   : > { %v4178_v21 = vpop.xlane.xlu1 %4177  ;;  %v4287_v0 = vpack.c.bf16 %v4255_v8, %v4255_v8 }
 0x46c   : > { %v4247_v54 = vadd.f32 %v4215_v16, %v7880_v4  ;;  %v4222_v41 = vmul.f32 %v7922_v52, %v4178_v21 }
 0x46d   : > { %4320 = vst.msk [vmem:[%s7935_s21 + $0x6c] sm:$0xf] %vm4292_vm11, %v4287_v0 }
 0x46e   : > { %v4279_v13 = vpack.c.bf16 %v4247_v54, %v4247_v54  ;;  %v4254_v25 = vadd.f32 %v4222_v41, %v7903_v58  ;;  %v4190_v17 = vpop.xlane.xlu2 %4189 }
 0x46f   : > { %v4226_v47 = vmul.f32 %v7922_v52, %v4190_v17 }
 0x470   : > { %4312 = vst.msk [vmem:[%s7935_s21 + $0x4c] sm:$0xf] %vm4292_vm11, %v4279_v13  ;;  %v4286_v53 = vpack.c.bf16 %v4254_v25, %v4254_v25 }
 0x471   : > { %v4166_v7 = vpop.xlane.xlu0 %4165  ;;  %v4258_v4 = vadd.f32 %v4226_v47, %v4063_v15 }
 0x472   : > { %v4218_v39 = vmul.f32 %v7922_v52, %v4166_v7  ;;  %4319 = vst.msk [vmem:[%s7935_s21 + $0x68] sm:$0xf] %vm4292_vm11, %v4286_v53 }
 0x473   : > { %v4187_v58 = vpop.xlane.xlu1 %4186  ;;  %v4290_v50 = vpack.c.bf16 %v4258_v4, %v4258_v4 }
 0x474   : > { %v4250_v44 = vadd.f32 %v4218_v39, %v7894_v23  ;;  %v4225_v30 = vmul.f32 %v7922_v52, %v4187_v58 }
 0x475   : > { %4323 = vst.msk [vmem:[%s7935_s21 + $0x78] sm:$0xf] %vm4292_vm11, %v4290_v50 }
 0x476   : > { %v4282_v49 = vpack.c.bf16 %v4250_v44, %v4250_v44  ;;  %v4257_v38 = vadd.f32 %v4225_v30, %v7914_v57 }
 0x478   : > { %4315 = vst.msk [vmem:[%s7935_s21 + $0x58] sm:$0xf] %vm4292_vm11, %v4282_v49  ;;  %v4289_v20 = vpack.c.bf16 %v4257_v38, %v4257_v38 }
 0x479   : > { %v4175_v35 = vpop.xlane.xlu0 %4174 }
 0x47a   : > { %v4221_v63 = vmul.f32 %v7922_v52, %v4175_v35  ;;  %4322 = vst.msk [vmem:[%s7935_s21 + $0x74] sm:$0xf] %vm4292_vm11, %v4289_v20 }
 0x47c   : > { %v4253_v23 = vadd.f32 %v4221_v63, %v7908_v22 }
 0x47e   : > { %v4285_v9 = vpack.c.bf16 %v4253_v23, %v4253_v23 }
 0x480   : > { %4318 = vst.msk [vmem:[%s7935_s21 + $0x64] sm:$0xf] %vm4292_vm11, %v4285_v9 }
 0x481   : > { %v4184_v62 = vpop.xlane.xlu0 %4183 }
 0x482   : > { %v4224_v43 = vmul.f32 %v7922_v52, %v4184_v62 }
 0x484   : > { %v4256_v57 = vadd.f32 %v4224_v43, %v7925_v33 }
 0x486   : > { %v4288_v10 = vpack.c.bf16 %v4256_v57, %v4256_v57 }
 0x488   : > { %4321 = vst.msk [vmem:[%s7935_s21 + $0x70] sm:$0xf] %vm4292_vm11, %v4288_v10 }
 0x489   : > { %v4193_v29 = vpop.xlane.xlu0 %4192 }
 0x48a   : > { %v4227_v59 = vmul.f32 %v7922_v52, %v4193_v29 }
 0x48c   : > { %v4259_v55 = vadd.f32 %v4227_v59, %v7941_v36 }
 0x48e   : > { %v4291_v37 = vpack.c.bf16 %v4259_v55, %v4259_v55 }
 0x490   : > { %4324 = vst.msk [vmem:[%s7935_s21 + $0x7c] sm:$0xf] %vm4292_vm11, %v4291_v37 }
 0x491 PF: > { %s14_s15 = sadd.s32 1, %s4648_s15  }
 0x492   : > { %p11_p4 = scmp.ge.s32.totalorder %s14_s15, 4  }
 0x494   :  { %13 = sbr.rel (!%p11_p4) target bundleno = 1 (0x1), region = 68 }

</bundles_post_ra>
